<compile_context>
chip_gen: v7x
topology: tpu7x:2x2x1
jax: 0.10.0
libtpu: 0.0.40
codegen_flags: <defaults>
</compile_context>

<pallas_src>
import functools

import jax
import jax.numpy as jnp
from jax.experimental import pallas as pl
from jax.experimental.pallas import tpu as pltpu  # noqa: F401  (TPU backend)

LANE = 128      # native lane width
SUBLANE = 8     # native sublane count


def _round_up(x, m):
    return ((x + m - 1) // m) * m


# ------------------------------ Fused model kernel ----------------------------

def _fused_model_kernel(no_layers, *refs):
    """Single-invocation kernel: 2 LSTM stacks + ReLU + FC, all in VMEM.

    refs layout (inputs..., output):
      text (T1, Bp, Dp), entity (T2, Bp, Dp), h0 (L, Bp, Hp), c0 (L, Bp, Hp),
      [w_ih_t, w_hh_t, b] * L   (lstm1 layers, padded),
      [w_ih_t, w_hh_t, b] * L   (lstm2 layers, padded),
      fc_w_t (Hp, Cp), fc_b (1, Cp),
      out (Bp, Cp)
    """
    text_ref, ent_ref, h0_ref, c0_ref = refs[0], refs[1], refs[2], refs[3]
    idx = 4
    lstm1 = [refs[idx + 3 * l: idx + 3 * l + 3] for l in range(no_layers)]
    idx += 3 * no_layers
    lstm2 = [refs[idx + 3 * l: idx + 3 * l + 3] for l in range(no_layers)]
    idx += 3 * no_layers
    fc_w_ref, fc_b_ref, out_ref = refs[idx], refs[idx + 1], refs[idx + 2]

    Bp = h0_ref.shape[1]
    Hp = h0_ref.shape[2]

    def run_layer(x_rows, T, w_ih, w_hh, b, h, c, collect_y):
        # Hoisted input projection: one (T*Bp, Din) @ (Din, 4Hp) MXU matmul
        # (+ bias, added once on the big matrix) instead of T tiny matmuls
        # inside the serial chain.
        xp = jnp.dot(x_rows, w_ih, preferred_element_type=jnp.float32) + b
        ys = []
        for t in range(T):  # fully unrolled: T is small and static
            gates = xp[t * Bp:(t + 1) * Bp, :] + jnp.dot(
                h, w_hh, preferred_element_type=jnp.float32)
            # 128-lane-aligned gate slices (Hp is a multiple of 128).
            i_g = jax.nn.sigmoid(gates[:, 0 * Hp:1 * Hp])
            f_g = jax.nn.sigmoid(gates[:, 1 * Hp:2 * Hp])
            g_g = jnp.tanh(gates[:, 2 * Hp:3 * Hp])
            o_g = jax.nn.sigmoid(gates[:, 3 * Hp:4 * Hp])
            c = f_g * c + i_g * g_g
            h = o_g * jnp.tanh(c)
            if collect_y:
                ys.append(h)
        y_rows = jnp.concatenate(ys, axis=0) if collect_y else None
        return y_rows, h, c

    def run_stack(x_ref_3d, layers, h_in, c_in):
        T = x_ref_3d.shape[0]
        Din = x_ref_3d.shape[2]
        # (T, Bp, Dp) -> (T*Bp, Dp): Bp is a multiple of 8 and Dp of 128, so
        # collapsing the leading dims is a layout no-op (no copies).
        x_rows = x_ref_3d[...].reshape(T * Bp, Din)
        h_out, c_out = [], []
        for l in range(no_layers):
            w_ih_ref, w_hh_ref, b_ref = layers[l]
            collect_y = l < no_layers - 1   # last layer's per-step y is unused
            y_rows, h, c = run_layer(x_rows, T, w_ih_ref[...], w_hh_ref[...],
                                     b_ref[...], h_in[l], c_in[l], collect_y)
            h_out.append(h)
            c_out.append(c)
            if collect_y:
                x_rows = y_rows
        return h_out, c_out

    h0 = [h0_ref[l] for l in range(no_layers)]
    c0 = [c0_ref[l] for l in range(no_layers)]

    # lstm1 over the text sequence; only its final (h, c) are used downstream.
    h1, c1 = run_stack(text_ref, lstm1, h0, c0)
    # lstm2 over the entity sequence, seeded with lstm1's final states.
    h2, _ = run_stack(ent_ref, lstm2, h1, c1)

    # out = fc1(relu(h_n_of_lstm2[-1])), fused (no separate kernel launch).
    # Output is lane-dense (Cp multiple of 128) -> unmasked vst.
    act = jnp.maximum(h2[-1], 0.0)
    out_ref[...] = (jnp.dot(act, fc_w_ref[...],
                            preferred_element_type=jnp.float32)
                    + fc_b_ref[...])


def fused_forward(kparams, x_text, x_ent, h0p, c0p):
    """x_text: (T1, Bp, Dp), x_ent: (T2, Bp, Dp), h0p/c0p: (L, Bp, Hp)."""
    no_layers = len(kparams["lstm1"])
    Bp = h0p.shape[1]
    Cp = kparams["fc_w_t"].shape[-1]

    args = [x_text, x_ent, h0p, c0p]
    for layer in kparams["lstm1"]:
        args += [layer["w_ih_t"], layer["w_hh_t"], layer["b"]]
    for layer in kparams["lstm2"]:
        args += [layer["w_ih_t"], layer["w_hh_t"], layer["b"]]
    args += [kparams["fc_w_t"], kparams["fc_b"]]

    # No grid: single invocation, every operand resident in VMEM (~2 MiB).
    return pl.pallas_call(
        functools.partial(_fused_model_kernel, no_layers),
        out_shape=jax.ShapeDtypeStruct((Bp, Cp), jnp.float32),
    )(*args)


# -------------------------------- Model glue ---------------------------------

@functools.partial(jax.jit, static_argnames=("n_classes",))
def model_forward(kparams, text, entity, h0, c0, n_classes):
    emb = kparams["emb"]
    H = h0.shape[-1]
    Hp = kparams["fc_w_t"].shape[0]
    D = emb.shape[-1]
    Dp = kparams["lstm1"][0]["w_ih_t"].shape[0]
    B = text.shape[0]
    Bp = _round_up(B, SUBLANE)

    def prep_seq(tok):
        e = jnp.take(emb, tok, axis=0)                    # (B, T, D) gather (glue)
        e = jnp.transpose(e, (1, 0, 2))                   # time-major (T, B, D)
        # sublane-pad batch, lane-pad embedding dim (zeros; weight rows are
        # zero-padded too so results are bit-identical).
        return jnp.pad(e, ((0, 0), (0, Bp - B), (0, Dp - D)))

    def prep_state(s):  # (L, B, H) -> (L, Bp, Hp), zero padding
        return jnp.pad(s, ((0, 0), (0, Bp - B), (0, Hp - H)))

    # TODO(synk): nn.LSTM dropout=0.5 between layers applies only in train
    # mode; eval-mode (no dropout) semantics are implemented.
    out = fused_forward(kparams, prep_seq(text), prep_seq(entity),
                        prep_state(h0), prep_state(c0))
    return out[:B, :n_classes]


# ------------------------------ Parameter prep --------------------------------

def init_params(key, vocab, emb_dim, hidden, no_layers, n_classes):
    keys = iter(jax.random.split(key, 64))
    k = 1.0 / jnp.sqrt(hidden)

    def uni(shape):
        return jax.random.uniform(next(keys), shape, jnp.float32, -k, k)

    def lstm_stack():
        layers = []
        for l in range(no_layers):
            d_in = emb_dim if l == 0 else hidden
            w_ih = uni((4 * hidden, d_in))
            w_hh = uni((4 * hidden, hidden))
            b_ih = uni((4 * hidden,))
            b_hh = uni((4 * hidden,))
            layers.append({
                "w_ih_t": w_ih.T,                 # (d_in, 4H)
                "w_hh_t": w_hh.T,                 # (H, 4H)
                "b": (b_ih + b_hh)[None, :],      # (1, 4H)
            })
        return layers

    emb = jax.random.normal(next(keys), (vocab, emb_dim), jnp.float32) * 0.1
    fc_w = uni((n_classes, hidden))
    fc_b = uni((n_classes,))
    return {
        "emb": emb,
        "lstm1": lstm_stack(),
        "lstm2": lstm_stack(),
        "fc_w_t": fc_w.T,            # (H, C)
        "fc_b": fc_b[None, :],       # (1, C)
    }


def _pad_gate_cols(w, H, Hp):
    """(..., 4H) with [i|f|g|o] blocks -> (..., 4Hp) with zero-padded blocks."""
    parts = []
    for g in range(4):
        blk = w[..., g * H:(g + 1) * H]
        pad_width = [(0, 0)] * (w.ndim - 1) + [(0, Hp - H)]
        parts.append(jnp.pad(blk, pad_width))
    return jnp.concatenate(parts, axis=-1)


def build_kernel_params(params, hidden):
    """Zero-pad all minor dims to hardware-friendly sizes.

    Hidden H -> Hp (128-multiple): zero-padded gate columns give i=f=o=0.5,
    g=0 in the padded lanes; with zero-padded h0/c0 the padded lanes of h and
    c stay exactly 0 forever, so the real lanes are bit-for-bit unaffected.
    Embedding D -> Dp (128-multiple): padded embedding lanes are zero and the
    corresponding w_ih rows are zero, contributing nothing.
    Classes C -> Cp (128-multiple): padded fc columns are zero; wrapper slices
    them away.  This makes the kernel's output store lane-dense (unmasked).
    """
    Hp = _round_up(hidden, LANE)
    emb_dim = params["emb"].shape[-1]
    Dp = _round_up(emb_dim, LANE)
    C = params["fc_w_t"].shape[-1]
    Cp = _round_up(C, LANE)

    def pad_layer(p, layer_idx):
        w_ih = _pad_gate_cols(p["w_ih_t"], hidden, Hp)          # (d_in, 4Hp)
        rows_in = emb_dim if layer_idx == 0 else hidden
        rows_out = Dp if layer_idx == 0 else Hp
        w_ih = jnp.pad(w_ih, ((0, rows_out - rows_in), (0, 0))) # (Din_p, 4Hp)
        w_hh = jnp.pad(_pad_gate_cols(p["w_hh_t"], hidden, Hp),
                       ((0, Hp - hidden), (0, 0)))              # (Hp, 4Hp)
        b = _pad_gate_cols(p["b"], hidden, Hp)                  # (1, 4Hp)
        return {"w_ih_t": w_ih, "w_hh_t": w_hh, "b": b}

    def pad_stack(stack):
        return [pad_layer(p, l) for l, p in enumerate(stack)]

    return {
        "emb": params["emb"],
        "lstm1": pad_stack(params["lstm1"]),
        "lstm2": pad_stack(params["lstm2"]),
        "fc_w_t": jnp.pad(params["fc_w_t"],
                          ((0, Hp - hidden), (0, Cp - C))),      # (Hp, Cp)
        "fc_b": jnp.pad(params["fc_b"], ((0, 0), (0, Cp - C))),  # (1, Cp)
    }


# ------------------------------ Pure-JAX reference ----------------------------

def _ref_lstm_stack(layer_params, x_btd, h0, c0):
    x = x_btd
    hs, cs = [], []
    for l, p in enumerate(layer_params):
        H = h0.shape[-1]
        h, c = h0[l], c0[l]
        ys = []
        for t in range(x.shape[1]):
            gates = x[:, t, :] @ p["w_ih_t"] + h @ p["w_hh_t"] + p["b"]
            i_g = jax.nn.sigmoid(gates[:, :H])
            f_g = jax.nn.sigmoid(gates[:, H:2 * H])
            g_g = jnp.tanh(gates[:, 2 * H:3 * H])
            o_g = jax.nn.sigmoid(gates[:, 3 * H:])
            c = f_g * c + i_g * g_g
            h = o_g * jnp.tanh(c)
            ys.append(h)
        x = jnp.stack(ys, axis=1)
        hs.append(h)
        cs.append(c)
    return x, jnp.stack(hs), jnp.stack(cs)


def model_forward_ref(params, text, entity, h0, c0):
    emb_text = jnp.take(params["emb"], text, axis=0)
    emb_entity = jnp.take(params["emb"], entity, axis=0)
    _, h1, c1 = _ref_lstm_stack(params["lstm1"], emb_text, h0, c0)
    _, h2, _ = _ref_lstm_stack(params["lstm2"], emb_entity, h1, c1)
    out = jnp.maximum(h2[-1], 0.0)
    return out @ params["fc_w_t"] + params["fc_b"]


# ----------------------------------- main -------------------------------------

if __name__ == "__main__":
    vocab, emb_dim = 50, 100          # embedding dim fixed by LSTM input_size=100
    hidden, no_layers, n_classes = 32, 2, 4
    B, T_text, T_ent = 2, 8, 6

    key = jax.random.PRNGKey(0)
    k_par, k_txt, k_ent, k_h, k_c = jax.random.split(key, 5)

    params = init_params(k_par, vocab, emb_dim, hidden, no_layers, n_classes)
    kparams = build_kernel_params(params, hidden)   # padded once, outside jit

    text = jax.random.randint(k_txt, (B, T_text), 0, vocab, dtype=jnp.int32)
    entity = jax.random.randint(k_ent, (B, T_ent), 0, vocab, dtype=jnp.int32)
    h0 = jax.random.normal(k_h, (no_layers, B, hidden), jnp.float32)
    c0 = jax.random.normal(k_c, (no_layers, B, hidden), jnp.float32)

    out = model_forward(kparams, text, entity, h0, c0, n_classes)
    out = jax.block_until_ready(out)

    ref = model_forward_ref(params, text, entity, h0, c0)
    assert out.shape == (B, n_classes), out.shape
    assert jnp.allclose(out, ref, atol=1e-3, rtol=1e-3), (out, ref)

    print("KERNEL_OK")
</pallas_src>

<mosaic_0001>
module attributes {stable_mosaic.version = 11 : i64} {
  func.func @_fused_model_kernel(%arg0: memref<8x8x128xf32, #tpu.memory_space<vmem>>, %arg1: memref<6x8x128xf32, #tpu.memory_space<vmem>>, %arg2: memref<2x8x128xf32, #tpu.memory_space<vmem>>, %arg3: memref<2x8x128xf32, #tpu.memory_space<vmem>>, %arg4: memref<128x512xf32, #tpu.memory_space<vmem>>, %arg5: memref<128x512xf32, #tpu.memory_space<vmem>>, %arg6: memref<1x512xf32, #tpu.memory_space<vmem>>, %arg7: memref<128x512xf32, #tpu.memory_space<vmem>>, %arg8: memref<128x512xf32, #tpu.memory_space<vmem>>, %arg9: memref<1x512xf32, #tpu.memory_space<vmem>>, %arg10: memref<128x512xf32, #tpu.memory_space<vmem>>, %arg11: memref<128x512xf32, #tpu.memory_space<vmem>>, %arg12: memref<1x512xf32, #tpu.memory_space<vmem>>, %arg13: memref<128x512xf32, #tpu.memory_space<vmem>>, %arg14: memref<128x512xf32, #tpu.memory_space<vmem>>, %arg15: memref<1x512xf32, #tpu.memory_space<vmem>>, %arg16: memref<128x128xf32, #tpu.memory_space<vmem>>, %arg17: memref<1x128xf32, #tpu.memory_space<vmem>>, %arg18: memref<8x128xf32, #tpu.memory_space<vmem>>) attributes {dimension_semantics = [], scalar_prefetch = 0 : i64, scratch_operands = 0 : i64, tpu.core_type = #tpu.core_type<tc>} {
    %c0 = arith.constant 0 : index
    %c0_0 = arith.constant 0 : index
    %c0_1 = arith.constant 0 : index
    %0 = vector.load %arg2[%c0, %c0_0, %c0_1] : memref<2x8x128xf32, #tpu.memory_space<vmem>>, vector<1x8x128xf32>
    %1 = vector.shape_cast %0 : vector<1x8x128xf32> to vector<8x128xf32>
    %c1 = arith.constant 1 : index
    %c0_2 = arith.constant 0 : index
    %c0_3 = arith.constant 0 : index
    %2 = vector.load %arg2[%c1, %c0_2, %c0_3] : memref<2x8x128xf32, #tpu.memory_space<vmem>>, vector<1x8x128xf32>
    %3 = vector.shape_cast %2 : vector<1x8x128xf32> to vector<8x128xf32>
    %c0_4 = arith.constant 0 : index
    %c0_5 = arith.constant 0 : index
    %c0_6 = arith.constant 0 : index
    %4 = vector.load %arg3[%c0_4, %c0_5, %c0_6] : memref<2x8x128xf32, #tpu.memory_space<vmem>>, vector<1x8x128xf32>
    %5 = vector.shape_cast %4 : vector<1x8x128xf32> to vector<8x128xf32>
    %c1_7 = arith.constant 1 : index
    %c0_8 = arith.constant 0 : index
    %c0_9 = arith.constant 0 : index
    %6 = vector.load %arg3[%c1_7, %c0_8, %c0_9] : memref<2x8x128xf32, #tpu.memory_space<vmem>>, vector<1x8x128xf32>
    %7 = vector.shape_cast %6 : vector<1x8x128xf32> to vector<8x128xf32>
    %c0_10 = arith.constant 0 : index
    %c0_11 = arith.constant 0 : index
    %c0_12 = arith.constant 0 : index
    %8 = vector.load %arg0[%c0_10, %c0_11, %c0_12] : memref<8x8x128xf32, #tpu.memory_space<vmem>>, vector<8x8x128xf32>
    %9 = vector.shape_cast %8 : vector<8x8x128xf32> to vector<64x128xf32>
    %c0_13 = arith.constant 0 : index
    %c0_14 = arith.constant 0 : index
    %10 = vector.load %arg4[%c0_13, %c0_14] : memref<128x512xf32, #tpu.memory_space<vmem>>, vector<128x512xf32>
    %c0_15 = arith.constant 0 : index
    %c0_16 = arith.constant 0 : index
    %11 = vector.load %arg5[%c0_15, %c0_16] : memref<128x512xf32, #tpu.memory_space<vmem>>, vector<128x512xf32>
    %c0_17 = arith.constant 0 : index
    %c0_18 = arith.constant 0 : index
    %12 = vector.load %arg6[%c0_17, %c0_18] : memref<1x512xf32, #tpu.memory_space<vmem>>, vector<1x512xf32>
    %cst = arith.constant dense<0.000000e+00> : vector<64x512xf32>
    %13 = tpu.matmul %9, %10, %cst {dimension_numbers = #tpu.dot_dimension_numbers<[1], [0], [0], [1], [0, 0, 1, 1], [], []>} : vector<64x128xf32>, vector<128x512xf32>, vector<64x512xf32> -> vector<64x512xf32>
    %14 = vector.broadcast %12 : vector<1x512xf32> to vector<64x512xf32>
    %15 = arith.addf %13, %14 : vector<64x512xf32>
    %16 = vector.extract_strided_slice %15 {offsets = [0, 0], sizes = [8, 512], strides = [1, 1]} : vector<64x512xf32> to vector<8x512xf32>
    %cst_19 = arith.constant dense<0.000000e+00> : vector<8x512xf32>
    %17 = tpu.matmul %1, %11, %cst_19 {dimension_numbers = #tpu.dot_dimension_numbers<[1], [0], [0], [1], [0, 0, 1, 1], [], []>} : vector<8x128xf32>, vector<128x512xf32>, vector<8x512xf32> -> vector<8x512xf32>
    %18 = arith.addf %16, %17 : vector<8x512xf32>
    %19 = vector.extract_strided_slice %18 {offsets = [0, 0], sizes = [8, 128], strides = [1, 1]} : vector<8x512xf32> to vector<8x128xf32>
    %20 = arith.negf %19 : vector<8x128xf32>
    %21 = math.exp %20 : vector<8x128xf32>
    %cst_20 = arith.constant 1.000000e+00 : f32
    %22 = vector.broadcast %cst_20 : f32 to vector<8x128xf32>
    %23 = arith.addf %22, %21 : vector<8x128xf32>
    %24 = arith.divf %22, %23 : vector<8x128xf32>
    %25 = vector.extract_strided_slice %18 {offsets = [0, 128], sizes = [8, 128], strides = [1, 1]} : vector<8x512xf32> to vector<8x128xf32>
    %26 = arith.negf %25 : vector<8x128xf32>
    %27 = math.exp %26 : vector<8x128xf32>
    %cst_21 = arith.constant 1.000000e+00 : f32
    %28 = vector.broadcast %cst_21 : f32 to vector<8x128xf32>
    %29 = arith.addf %28, %27 : vector<8x128xf32>
    %30 = arith.divf %28, %29 : vector<8x128xf32>
    %31 = vector.extract_strided_slice %18 {offsets = [0, 256], sizes = [8, 128], strides = [1, 1]} : vector<8x512xf32> to vector<8x128xf32>
    %32 = math.tanh %31 : vector<8x128xf32>
    %33 = vector.extract_strided_slice %18 {offsets = [0, 384], sizes = [8, 128], strides = [1, 1]} : vector<8x512xf32> to vector<8x128xf32>
    %34 = arith.negf %33 : vector<8x128xf32>
    %35 = math.exp %34 : vector<8x128xf32>
    %cst_22 = arith.constant 1.000000e+00 : f32
    %36 = vector.broadcast %cst_22 : f32 to vector<8x128xf32>
    %37 = arith.addf %36, %35 : vector<8x128xf32>
    %38 = arith.divf %36, %37 : vector<8x128xf32>
    %39 = arith.mulf %30, %5 : vector<8x128xf32>
    %40 = arith.mulf %24, %32 : vector<8x128xf32>
    %41 = arith.addf %39, %40 : vector<8x128xf32>
    %42 = math.tanh %41 : vector<8x128xf32>
    %43 = arith.mulf %38, %42 : vector<8x128xf32>
    %44 = vector.extract_strided_slice %15 {offsets = [8, 0], sizes = [8, 512], strides = [1, 1]} : vector<64x512xf32> to vector<8x512xf32>
    %cst_23 = arith.constant dense<0.000000e+00> : vector<8x512xf32>
    %45 = tpu.matmul %43, %11, %cst_23 {dimension_numbers = #tpu.dot_dimension_numbers<[1], [0], [0], [1], [0, 0, 1, 1], [], []>} : vector<8x128xf32>, vector<128x512xf32>, vector<8x512xf32> -> vector<8x512xf32>
    %46 = arith.addf %44, %45 : vector<8x512xf32>
    %47 = vector.extract_strided_slice %46 {offsets = [0, 0], sizes = [8, 128], strides = [1, 1]} : vector<8x512xf32> to vector<8x128xf32>
    %48 = arith.negf %47 : vector<8x128xf32>
    %49 = math.exp %48 : vector<8x128xf32>
    %cst_24 = arith.constant 1.000000e+00 : f32
    %50 = vector.broadcast %cst_24 : f32 to vector<8x128xf32>
    %51 = arith.addf %50, %49 : vector<8x128xf32>
    %52 = arith.divf %50, %51 : vector<8x128xf32>
    %53 = vector.extract_strided_slice %46 {offsets = [0, 128], sizes = [8, 128], strides = [1, 1]} : vector<8x512xf32> to vector<8x128xf32>
    %54 = arith.negf %53 : vector<8x128xf32>
    %55 = math.exp %54 : vector<8x128xf32>
    %cst_25 = arith.constant 1.000000e+00 : f32
    %56 = vector.broadcast %cst_25 : f32 to vector<8x128xf32>
    %57 = arith.addf %56, %55 : vector<8x128xf32>
    %58 = arith.divf %56, %57 : vector<8x128xf32>
    %59 = vector.extract_strided_slice %46 {offsets = [0, 256], sizes = [8, 128], strides = [1, 1]} : vector<8x512xf32> to vector<8x128xf32>
    %60 = math.tanh %59 : vector<8x128xf32>
    %61 = vector.extract_strided_slice %46 {offsets = [0, 384], sizes = [8, 128], strides = [1, 1]} : vector<8x512xf32> to vector<8x128xf32>
    %62 = arith.negf %61 : vector<8x128xf32>
    %63 = math.exp %62 : vector<8x128xf32>
    %cst_26 = arith.constant 1.000000e+00 : f32
    %64 = vector.broadcast %cst_26 : f32 to vector<8x128xf32>
    %65 = arith.addf %64, %63 : vector<8x128xf32>
    %66 = arith.divf %64, %65 : vector<8x128xf32>
    %67 = arith.mulf %58, %41 : vector<8x128xf32>
    %68 = arith.mulf %52, %60 : vector<8x128xf32>
    %69 = arith.addf %67, %68 : vector<8x128xf32>
    %70 = math.tanh %69 : vector<8x128xf32>
    %71 = arith.mulf %66, %70 : vector<8x128xf32>
    %72 = vector.extract_strided_slice %15 {offsets = [16, 0], sizes = [8, 512], strides = [1, 1]} : vector<64x512xf32> to vector<8x512xf32>
    %cst_27 = arith.constant dense<0.000000e+00> : vector<8x512xf32>
    %73 = tpu.matmul %71, %11, %cst_27 {dimension_numbers = #tpu.dot_dimension_numbers<[1], [0], [0], [1], [0, 0, 1, 1], [], []>} : vector<8x128xf32>, vector<128x512xf32>, vector<8x512xf32> -> vector<8x512xf32>
    %74 = arith.addf %72, %73 : vector<8x512xf32>
    %75 = vector.extract_strided_slice %74 {offsets = [0, 0], sizes = [8, 128], strides = [1, 1]} : vector<8x512xf32> to vector<8x128xf32>
    %76 = arith.negf %75 : vector<8x128xf32>
    %77 = math.exp %76 : vector<8x128xf32>
    %cst_28 = arith.constant 1.000000e+00 : f32
    %78 = vector.broadcast %cst_28 : f32 to vector<8x128xf32>
    %79 = arith.addf %78, %77 : vector<8x128xf32>
    %80 = arith.divf %78, %79 : vector<8x128xf32>
    %81 = vector.extract_strided_slice %74 {offsets = [0, 128], sizes = [8, 128], strides = [1, 1]} : vector<8x512xf32> to vector<8x128xf32>
    %82 = arith.negf %81 : vector<8x128xf32>
    %83 = math.exp %82 : vector<8x128xf32>
    %cst_29 = arith.constant 1.000000e+00 : f32
    %84 = vector.broadcast %cst_29 : f32 to vector<8x128xf32>
    %85 = arith.addf %84, %83 : vector<8x128xf32>
    %86 = arith.divf %84, %85 : vector<8x128xf32>
    %87 = vector.extract_strided_slice %74 {offsets = [0, 256], sizes = [8, 128], strides = [1, 1]} : vector<8x512xf32> to vector<8x128xf32>
    %88 = math.tanh %87 : vector<8x128xf32>
    %89 = vector.extract_strided_slice %74 {offsets = [0, 384], sizes = [8, 128], strides = [1, 1]} : vector<8x512xf32> to vector<8x128xf32>
    %90 = arith.negf %89 : vector<8x128xf32>
    %91 = math.exp %90 : vector<8x128xf32>
    %cst_30 = arith.constant 1.000000e+00 : f32
    %92 = vector.broadcast %cst_30 : f32 to vector<8x128xf32>
    %93 = arith.addf %92, %91 : vector<8x128xf32>
    %94 = arith.divf %92, %93 : vector<8x128xf32>
    %95 = arith.mulf %86, %69 : vector<8x128xf32>
    %96 = arith.mulf %80, %88 : vector<8x128xf32>
    %97 = arith.addf %95, %96 : vector<8x128xf32>
    %98 = math.tanh %97 : vector<8x128xf32>
    %99 = arith.mulf %94, %98 : vector<8x128xf32>
    %100 = vector.extract_strided_slice %15 {offsets = [24, 0], sizes = [8, 512], strides = [1, 1]} : vector<64x512xf32> to vector<8x512xf32>
    %cst_31 = arith.constant dense<0.000000e+00> : vector<8x512xf32>
    %101 = tpu.matmul %99, %11, %cst_31 {dimension_numbers = #tpu.dot_dimension_numbers<[1], [0], [0], [1], [0, 0, 1, 1], [], []>} : vector<8x128xf32>, vector<128x512xf32>, vector<8x512xf32> -> vector<8x512xf32>
    %102 = arith.addf %100, %101 : vector<8x512xf32>
    %103 = vector.extract_strided_slice %102 {offsets = [0, 0], sizes = [8, 128], strides = [1, 1]} : vector<8x512xf32> to vector<8x128xf32>
    %104 = arith.negf %103 : vector<8x128xf32>
    %105 = math.exp %104 : vector<8x128xf32>
    %cst_32 = arith.constant 1.000000e+00 : f32
    %106 = vector.broadcast %cst_32 : f32 to vector<8x128xf32>
    %107 = arith.addf %106, %105 : vector<8x128xf32>
    %108 = arith.divf %106, %107 : vector<8x128xf32>
    %109 = vector.extract_strided_slice %102 {offsets = [0, 128], sizes = [8, 128], strides = [1, 1]} : vector<8x512xf32> to vector<8x128xf32>
    %110 = arith.negf %109 : vector<8x128xf32>
    %111 = math.exp %110 : vector<8x128xf32>
    %cst_33 = arith.constant 1.000000e+00 : f32
    %112 = vector.broadcast %cst_33 : f32 to vector<8x128xf32>
    %113 = arith.addf %112, %111 : vector<8x128xf32>
    %114 = arith.divf %112, %113 : vector<8x128xf32>
    %115 = vector.extract_strided_slice %102 {offsets = [0, 256], sizes = [8, 128], strides = [1, 1]} : vector<8x512xf32> to vector<8x128xf32>
    %116 = math.tanh %115 : vector<8x128xf32>
    %117 = vector.extract_strided_slice %102 {offsets = [0, 384], sizes = [8, 128], strides = [1, 1]} : vector<8x512xf32> to vector<8x128xf32>
    %118 = arith.negf %117 : vector<8x128xf32>
    %119 = math.exp %118 : vector<8x128xf32>
    %cst_34 = arith.constant 1.000000e+00 : f32
    %120 = vector.broadcast %cst_34 : f32 to vector<8x128xf32>
    %121 = arith.addf %120, %119 : vector<8x128xf32>
    %122 = arith.divf %120, %121 : vector<8x128xf32>
    %123 = arith.mulf %114, %97 : vector<8x128xf32>
    %124 = arith.mulf %108, %116 : vector<8x128xf32>
    %125 = arith.addf %123, %124 : vector<8x128xf32>
    %126 = math.tanh %125 : vector<8x128xf32>
    %127 = arith.mulf %122, %126 : vector<8x128xf32>
    %128 = vector.extract_strided_slice %15 {offsets = [32, 0], sizes = [8, 512], strides = [1, 1]} : vector<64x512xf32> to vector<8x512xf32>
    %cst_35 = arith.constant dense<0.000000e+00> : vector<8x512xf32>
    %129 = tpu.matmul %127, %11, %cst_35 {dimension_numbers = #tpu.dot_dimension_numbers<[1], [0], [0], [1], [0, 0, 1, 1], [], []>} : vector<8x128xf32>, vector<128x512xf32>, vector<8x512xf32> -> vector<8x512xf32>
    %130 = arith.addf %128, %129 : vector<8x512xf32>
    %131 = vector.extract_strided_slice %130 {offsets = [0, 0], sizes = [8, 128], strides = [1, 1]} : vector<8x512xf32> to vector<8x128xf32>
    %132 = arith.negf %131 : vector<8x128xf32>
    %133 = math.exp %132 : vector<8x128xf32>
    %cst_36 = arith.constant 1.000000e+00 : f32
    %134 = vector.broadcast %cst_36 : f32 to vector<8x128xf32>
    %135 = arith.addf %134, %133 : vector<8x128xf32>
    %136 = arith.divf %134, %135 : vector<8x128xf32>
    %137 = vector.extract_strided_slice %130 {offsets = [0, 128], sizes = [8, 128], strides = [1, 1]} : vector<8x512xf32> to vector<8x128xf32>
    %138 = arith.negf %137 : vector<8x128xf32>
    %139 = math.exp %138 : vector<8x128xf32>
    %cst_37 = arith.constant 1.000000e+00 : f32
    %140 = vector.broadcast %cst_37 : f32 to vector<8x128xf32>
    %141 = arith.addf %140, %139 : vector<8x128xf32>
    %142 = arith.divf %140, %141 : vector<8x128xf32>
    %143 = vector.extract_strided_slice %130 {offsets = [0, 256], sizes = [8, 128], strides = [1, 1]} : vector<8x512xf32> to vector<8x128xf32>
    %144 = math.tanh %143 : vector<8x128xf32>
    %145 = vector.extract_strided_slice %130 {offsets = [0, 384], sizes = [8, 128], strides = [1, 1]} : vector<8x512xf32> to vector<8x128xf32>
    %146 = arith.negf %145 : vector<8x128xf32>
    %147 = math.exp %146 : vector<8x128xf32>
    %cst_38 = arith.constant 1.000000e+00 : f32
    %148 = vector.broadcast %cst_38 : f32 to vector<8x128xf32>
    %149 = arith.addf %148, %147 : vector<8x128xf32>
    %150 = arith.divf %148, %149 : vector<8x128xf32>
    %151 = arith.mulf %142, %125 : vector<8x128xf32>
    %152 = arith.mulf %136, %144 : vector<8x128xf32>
    %153 = arith.addf %151, %152 : vector<8x128xf32>
    %154 = math.tanh %153 : vector<8x128xf32>
    %155 = arith.mulf %150, %154 : vector<8x128xf32>
    %156 = vector.extract_strided_slice %15 {offsets = [40, 0], sizes = [8, 512], strides = [1, 1]} : vector<64x512xf32> to vector<8x512xf32>
    %cst_39 = arith.constant dense<0.000000e+00> : vector<8x512xf32>
    %157 = tpu.matmul %155, %11, %cst_39 {dimension_numbers = #tpu.dot_dimension_numbers<[1], [0], [0], [1], [0, 0, 1, 1], [], []>} : vector<8x128xf32>, vector<128x512xf32>, vector<8x512xf32> -> vector<8x512xf32>
    %158 = arith.addf %156, %157 : vector<8x512xf32>
    %159 = vector.extract_strided_slice %158 {offsets = [0, 0], sizes = [8, 128], strides = [1, 1]} : vector<8x512xf32> to vector<8x128xf32>
    %160 = arith.negf %159 : vector<8x128xf32>
    %161 = math.exp %160 : vector<8x128xf32>
    %cst_40 = arith.constant 1.000000e+00 : f32
    %162 = vector.broadcast %cst_40 : f32 to vector<8x128xf32>
    %163 = arith.addf %162, %161 : vector<8x128xf32>
    %164 = arith.divf %162, %163 : vector<8x128xf32>
    %165 = vector.extract_strided_slice %158 {offsets = [0, 128], sizes = [8, 128], strides = [1, 1]} : vector<8x512xf32> to vector<8x128xf32>
    %166 = arith.negf %165 : vector<8x128xf32>
    %167 = math.exp %166 : vector<8x128xf32>
    %cst_41 = arith.constant 1.000000e+00 : f32
    %168 = vector.broadcast %cst_41 : f32 to vector<8x128xf32>
    %169 = arith.addf %168, %167 : vector<8x128xf32>
    %170 = arith.divf %168, %169 : vector<8x128xf32>
    %171 = vector.extract_strided_slice %158 {offsets = [0, 256], sizes = [8, 128], strides = [1, 1]} : vector<8x512xf32> to vector<8x128xf32>
    %172 = math.tanh %171 : vector<8x128xf32>
    %173 = vector.extract_strided_slice %158 {offsets = [0, 384], sizes = [8, 128], strides = [1, 1]} : vector<8x512xf32> to vector<8x128xf32>
    %174 = arith.negf %173 : vector<8x128xf32>
    %175 = math.exp %174 : vector<8x128xf32>
    %cst_42 = arith.constant 1.000000e+00 : f32
    %176 = vector.broadcast %cst_42 : f32 to vector<8x128xf32>
    %177 = arith.addf %176, %175 : vector<8x128xf32>
    %178 = arith.divf %176, %177 : vector<8x128xf32>
    %179 = arith.mulf %170, %153 : vector<8x128xf32>
    %180 = arith.mulf %164, %172 : vector<8x128xf32>
    %181 = arith.addf %179, %180 : vector<8x128xf32>
    %182 = math.tanh %181 : vector<8x128xf32>
    %183 = arith.mulf %178, %182 : vector<8x128xf32>
    %184 = vector.extract_strided_slice %15 {offsets = [48, 0], sizes = [8, 512], strides = [1, 1]} : vector<64x512xf32> to vector<8x512xf32>
    %cst_43 = arith.constant dense<0.000000e+00> : vector<8x512xf32>
    %185 = tpu.matmul %183, %11, %cst_43 {dimension_numbers = #tpu.dot_dimension_numbers<[1], [0], [0], [1], [0, 0, 1, 1], [], []>} : vector<8x128xf32>, vector<128x512xf32>, vector<8x512xf32> -> vector<8x512xf32>
    %186 = arith.addf %184, %185 : vector<8x512xf32>
    %187 = vector.extract_strided_slice %186 {offsets = [0, 0], sizes = [8, 128], strides = [1, 1]} : vector<8x512xf32> to vector<8x128xf32>
    %188 = arith.negf %187 : vector<8x128xf32>
    %189 = math.exp %188 : vector<8x128xf32>
    %cst_44 = arith.constant 1.000000e+00 : f32
    %190 = vector.broadcast %cst_44 : f32 to vector<8x128xf32>
    %191 = arith.addf %190, %189 : vector<8x128xf32>
    %192 = arith.divf %190, %191 : vector<8x128xf32>
    %193 = vector.extract_strided_slice %186 {offsets = [0, 128], sizes = [8, 128], strides = [1, 1]} : vector<8x512xf32> to vector<8x128xf32>
    %194 = arith.negf %193 : vector<8x128xf32>
    %195 = math.exp %194 : vector<8x128xf32>
    %cst_45 = arith.constant 1.000000e+00 : f32
    %196 = vector.broadcast %cst_45 : f32 to vector<8x128xf32>
    %197 = arith.addf %196, %195 : vector<8x128xf32>
    %198 = arith.divf %196, %197 : vector<8x128xf32>
    %199 = vector.extract_strided_slice %186 {offsets = [0, 256], sizes = [8, 128], strides = [1, 1]} : vector<8x512xf32> to vector<8x128xf32>
    %200 = math.tanh %199 : vector<8x128xf32>
    %201 = vector.extract_strided_slice %186 {offsets = [0, 384], sizes = [8, 128], strides = [1, 1]} : vector<8x512xf32> to vector<8x128xf32>
    %202 = arith.negf %201 : vector<8x128xf32>
    %203 = math.exp %202 : vector<8x128xf32>
    %cst_46 = arith.constant 1.000000e+00 : f32
    %204 = vector.broadcast %cst_46 : f32 to vector<8x128xf32>
    %205 = arith.addf %204, %203 : vector<8x128xf32>
    %206 = arith.divf %204, %205 : vector<8x128xf32>
    %207 = arith.mulf %198, %181 : vector<8x128xf32>
    %208 = arith.mulf %192, %200 : vector<8x128xf32>
    %209 = arith.addf %207, %208 : vector<8x128xf32>
    %210 = math.tanh %209 : vector<8x128xf32>
    %211 = arith.mulf %206, %210 : vector<8x128xf32>
    %212 = vector.extract_strided_slice %15 {offsets = [56, 0], sizes = [8, 512], strides = [1, 1]} : vector<64x512xf32> to vector<8x512xf32>
    %cst_47 = arith.constant dense<0.000000e+00> : vector<8x512xf32>
    %213 = tpu.matmul %211, %11, %cst_47 {dimension_numbers = #tpu.dot_dimension_numbers<[1], [0], [0], [1], [0, 0, 1, 1], [], []>} : vector<8x128xf32>, vector<128x512xf32>, vector<8x512xf32> -> vector<8x512xf32>
    %214 = arith.addf %212, %213 : vector<8x512xf32>
    %215 = vector.extract_strided_slice %214 {offsets = [0, 0], sizes = [8, 128], strides = [1, 1]} : vector<8x512xf32> to vector<8x128xf32>
    %216 = arith.negf %215 : vector<8x128xf32>
    %217 = math.exp %216 : vector<8x128xf32>
    %cst_48 = arith.constant 1.000000e+00 : f32
    %218 = vector.broadcast %cst_48 : f32 to vector<8x128xf32>
    %219 = arith.addf %218, %217 : vector<8x128xf32>
    %220 = arith.divf %218, %219 : vector<8x128xf32>
    %221 = vector.extract_strided_slice %214 {offsets = [0, 128], sizes = [8, 128], strides = [1, 1]} : vector<8x512xf32> to vector<8x128xf32>
    %222 = arith.negf %221 : vector<8x128xf32>
    %223 = math.exp %222 : vector<8x128xf32>
    %cst_49 = arith.constant 1.000000e+00 : f32
    %224 = vector.broadcast %cst_49 : f32 to vector<8x128xf32>
    %225 = arith.addf %224, %223 : vector<8x128xf32>
    %226 = arith.divf %224, %225 : vector<8x128xf32>
    %227 = vector.extract_strided_slice %214 {offsets = [0, 256], sizes = [8, 128], strides = [1, 1]} : vector<8x512xf32> to vector<8x128xf32>
    %228 = math.tanh %227 : vector<8x128xf32>
    %229 = vector.extract_strided_slice %214 {offsets = [0, 384], sizes = [8, 128], strides = [1, 1]} : vector<8x512xf32> to vector<8x128xf32>
    %230 = arith.negf %229 : vector<8x128xf32>
    %231 = math.exp %230 : vector<8x128xf32>
    %cst_50 = arith.constant 1.000000e+00 : f32
    %232 = vector.broadcast %cst_50 : f32 to vector<8x128xf32>
    %233 = arith.addf %232, %231 : vector<8x128xf32>
    %234 = arith.divf %232, %233 : vector<8x128xf32>
    %235 = arith.mulf %226, %209 : vector<8x128xf32>
    %236 = arith.mulf %220, %228 : vector<8x128xf32>
    %237 = arith.addf %235, %236 : vector<8x128xf32>
    %238 = math.tanh %237 : vector<8x128xf32>
    %239 = arith.mulf %234, %238 : vector<8x128xf32>
    %240 = tpu.concatenate %43, %71, %99, %127, %155, %183, %211, %239 in 0 : vector<8x128xf32>, vector<8x128xf32>, vector<8x128xf32>, vector<8x128xf32>, vector<8x128xf32>, vector<8x128xf32>, vector<8x128xf32>, vector<8x128xf32> -> vector<64x128xf32>
    %c0_51 = arith.constant 0 : index
    %c0_52 = arith.constant 0 : index
    %241 = vector.load %arg7[%c0_51, %c0_52] : memref<128x512xf32, #tpu.memory_space<vmem>>, vector<128x512xf32>
    %c0_53 = arith.constant 0 : index
    %c0_54 = arith.constant 0 : index
    %242 = vector.load %arg8[%c0_53, %c0_54] : memref<128x512xf32, #tpu.memory_space<vmem>>, vector<128x512xf32>
    %c0_55 = arith.constant 0 : index
    %c0_56 = arith.constant 0 : index
    %243 = vector.load %arg9[%c0_55, %c0_56] : memref<1x512xf32, #tpu.memory_space<vmem>>, vector<1x512xf32>
    %cst_57 = arith.constant dense<0.000000e+00> : vector<64x512xf32>
    %244 = tpu.matmul %240, %241, %cst_57 {dimension_numbers = #tpu.dot_dimension_numbers<[1], [0], [0], [1], [0, 0, 1, 1], [], []>} : vector<64x128xf32>, vector<128x512xf32>, vector<64x512xf32> -> vector<64x512xf32>
    %245 = vector.broadcast %243 : vector<1x512xf32> to vector<64x512xf32>
    %246 = arith.addf %244, %245 : vector<64x512xf32>
    %247 = vector.extract_strided_slice %246 {offsets = [0, 0], sizes = [8, 512], strides = [1, 1]} : vector<64x512xf32> to vector<8x512xf32>
    %cst_58 = arith.constant dense<0.000000e+00> : vector<8x512xf32>
    %248 = tpu.matmul %3, %242, %cst_58 {dimension_numbers = #tpu.dot_dimension_numbers<[1], [0], [0], [1], [0, 0, 1, 1], [], []>} : vector<8x128xf32>, vector<128x512xf32>, vector<8x512xf32> -> vector<8x512xf32>
    %249 = arith.addf %247, %248 : vector<8x512xf32>
    %250 = vector.extract_strided_slice %249 {offsets = [0, 0], sizes = [8, 128], strides = [1, 1]} : vector<8x512xf32> to vector<8x128xf32>
    %251 = arith.negf %250 : vector<8x128xf32>
    %252 = math.exp %251 : vector<8x128xf32>
    %cst_59 = arith.constant 1.000000e+00 : f32
    %253 = vector.broadcast %cst_59 : f32 to vector<8x128xf32>
    %254 = arith.addf %253, %252 : vector<8x128xf32>
    %255 = arith.divf %253, %254 : vector<8x128xf32>
    %256 = vector.extract_strided_slice %249 {offsets = [0, 128], sizes = [8, 128], strides = [1, 1]} : vector<8x512xf32> to vector<8x128xf32>
    %257 = arith.negf %256 : vector<8x128xf32>
    %258 = math.exp %257 : vector<8x128xf32>
    %cst_60 = arith.constant 1.000000e+00 : f32
    %259 = vector.broadcast %cst_60 : f32 to vector<8x128xf32>
    %260 = arith.addf %259, %258 : vector<8x128xf32>
    %261 = arith.divf %259, %260 : vector<8x128xf32>
    %262 = vector.extract_strided_slice %249 {offsets = [0, 256], sizes = [8, 128], strides = [1, 1]} : vector<8x512xf32> to vector<8x128xf32>
    %263 = math.tanh %262 : vector<8x128xf32>
    %264 = vector.extract_strided_slice %249 {offsets = [0, 384], sizes = [8, 128], strides = [1, 1]} : vector<8x512xf32> to vector<8x128xf32>
    %265 = arith.negf %264 : vector<8x128xf32>
    %266 = math.exp %265 : vector<8x128xf32>
    %cst_61 = arith.constant 1.000000e+00 : f32
    %267 = vector.broadcast %cst_61 : f32 to vector<8x128xf32>
    %268 = arith.addf %267, %266 : vector<8x128xf32>
    %269 = arith.divf %267, %268 : vector<8x128xf32>
    %270 = arith.mulf %261, %7 : vector<8x128xf32>
    %271 = arith.mulf %255, %263 : vector<8x128xf32>
    %272 = arith.addf %270, %271 : vector<8x128xf32>
    %273 = math.tanh %272 : vector<8x128xf32>
    %274 = arith.mulf %269, %273 : vector<8x128xf32>
    %275 = vector.extract_strided_slice %246 {offsets = [8, 0], sizes = [8, 512], strides = [1, 1]} : vector<64x512xf32> to vector<8x512xf32>
    %cst_62 = arith.constant dense<0.000000e+00> : vector<8x512xf32>
    %276 = tpu.matmul %274, %242, %cst_62 {dimension_numbers = #tpu.dot_dimension_numbers<[1], [0], [0], [1], [0, 0, 1, 1], [], []>} : vector<8x128xf32>, vector<128x512xf32>, vector<8x512xf32> -> vector<8x512xf32>
    %277 = arith.addf %275, %276 : vector<8x512xf32>
    %278 = vector.extract_strided_slice %277 {offsets = [0, 0], sizes = [8, 128], strides = [1, 1]} : vector<8x512xf32> to vector<8x128xf32>
    %279 = arith.negf %278 : vector<8x128xf32>
    %280 = math.exp %279 : vector<8x128xf32>
    %cst_63 = arith.constant 1.000000e+00 : f32
    %281 = vector.broadcast %cst_63 : f32 to vector<8x128xf32>
    %282 = arith.addf %281, %280 : vector<8x128xf32>
    %283 = arith.divf %281, %282 : vector<8x128xf32>
    %284 = vector.extract_strided_slice %277 {offsets = [0, 128], sizes = [8, 128], strides = [1, 1]} : vector<8x512xf32> to vector<8x128xf32>
    %285 = arith.negf %284 : vector<8x128xf32>
    %286 = math.exp %285 : vector<8x128xf32>
    %cst_64 = arith.constant 1.000000e+00 : f32
    %287 = vector.broadcast %cst_64 : f32 to vector<8x128xf32>
    %288 = arith.addf %287, %286 : vector<8x128xf32>
    %289 = arith.divf %287, %288 : vector<8x128xf32>
    %290 = vector.extract_strided_slice %277 {offsets = [0, 256], sizes = [8, 128], strides = [1, 1]} : vector<8x512xf32> to vector<8x128xf32>
    %291 = math.tanh %290 : vector<8x128xf32>
    %292 = vector.extract_strided_slice %277 {offsets = [0, 384], sizes = [8, 128], strides = [1, 1]} : vector<8x512xf32> to vector<8x128xf32>
    %293 = arith.negf %292 : vector<8x128xf32>
    %294 = math.exp %293 : vector<8x128xf32>
    %cst_65 = arith.constant 1.000000e+00 : f32
    %295 = vector.broadcast %cst_65 : f32 to vector<8x128xf32>
    %296 = arith.addf %295, %294 : vector<8x128xf32>
    %297 = arith.divf %295, %296 : vector<8x128xf32>
    %298 = arith.mulf %289, %272 : vector<8x128xf32>
    %299 = arith.mulf %283, %291 : vector<8x128xf32>
    %300 = arith.addf %298, %299 : vector<8x128xf32>
    %301 = math.tanh %300 : vector<8x128xf32>
    %302 = arith.mulf %297, %301 : vector<8x128xf32>
    %303 = vector.extract_strided_slice %246 {offsets = [16, 0], sizes = [8, 512], strides = [1, 1]} : vector<64x512xf32> to vector<8x512xf32>
    %cst_66 = arith.constant dense<0.000000e+00> : vector<8x512xf32>
    %304 = tpu.matmul %302, %242, %cst_66 {dimension_numbers = #tpu.dot_dimension_numbers<[1], [0], [0], [1], [0, 0, 1, 1], [], []>} : vector<8x128xf32>, vector<128x512xf32>, vector<8x512xf32> -> vector<8x512xf32>
    %305 = arith.addf %303, %304 : vector<8x512xf32>
    %306 = vector.extract_strided_slice %305 {offsets = [0, 0], sizes = [8, 128], strides = [1, 1]} : vector<8x512xf32> to vector<8x128xf32>
    %307 = arith.negf %306 : vector<8x128xf32>
    %308 = math.exp %307 : vector<8x128xf32>
    %cst_67 = arith.constant 1.000000e+00 : f32
    %309 = vector.broadcast %cst_67 : f32 to vector<8x128xf32>
    %310 = arith.addf %309, %308 : vector<8x128xf32>
    %311 = arith.divf %309, %310 : vector<8x128xf32>
    %312 = vector.extract_strided_slice %305 {offsets = [0, 128], sizes = [8, 128], strides = [1, 1]} : vector<8x512xf32> to vector<8x128xf32>
    %313 = arith.negf %312 : vector<8x128xf32>
    %314 = math.exp %313 : vector<8x128xf32>
    %cst_68 = arith.constant 1.000000e+00 : f32
    %315 = vector.broadcast %cst_68 : f32 to vector<8x128xf32>
    %316 = arith.addf %315, %314 : vector<8x128xf32>
    %317 = arith.divf %315, %316 : vector<8x128xf32>
    %318 = vector.extract_strided_slice %305 {offsets = [0, 256], sizes = [8, 128], strides = [1, 1]} : vector<8x512xf32> to vector<8x128xf32>
    %319 = math.tanh %318 : vector<8x128xf32>
    %320 = vector.extract_strided_slice %305 {offsets = [0, 384], sizes = [8, 128], strides = [1, 1]} : vector<8x512xf32> to vector<8x128xf32>
    %321 = arith.negf %320 : vector<8x128xf32>
    %322 = math.exp %321 : vector<8x128xf32>
    %cst_69 = arith.constant 1.000000e+00 : f32
    %323 = vector.broadcast %cst_69 : f32 to vector<8x128xf32>
    %324 = arith.addf %323, %322 : vector<8x128xf32>
    %325 = arith.divf %323, %324 : vector<8x128xf32>
    %326 = arith.mulf %317, %300 : vector<8x128xf32>
    %327 = arith.mulf %311, %319 : vector<8x128xf32>
    %328 = arith.addf %326, %327 : vector<8x128xf32>
    %329 = math.tanh %328 : vector<8x128xf32>
    %330 = arith.mulf %325, %329 : vector<8x128xf32>
    %331 = vector.extract_strided_slice %246 {offsets = [24, 0], sizes = [8, 512], strides = [1, 1]} : vector<64x512xf32> to vector<8x512xf32>
    %cst_70 = arith.constant dense<0.000000e+00> : vector<8x512xf32>
    %332 = tpu.matmul %330, %242, %cst_70 {dimension_numbers = #tpu.dot_dimension_numbers<[1], [0], [0], [1], [0, 0, 1, 1], [], []>} : vector<8x128xf32>, vector<128x512xf32>, vector<8x512xf32> -> vector<8x512xf32>
    %333 = arith.addf %331, %332 : vector<8x512xf32>
    %334 = vector.extract_strided_slice %333 {offsets = [0, 0], sizes = [8, 128], strides = [1, 1]} : vector<8x512xf32> to vector<8x128xf32>
    %335 = arith.negf %334 : vector<8x128xf32>
    %336 = math.exp %335 : vector<8x128xf32>
    %cst_71 = arith.constant 1.000000e+00 : f32
    %337 = vector.broadcast %cst_71 : f32 to vector<8x128xf32>
    %338 = arith.addf %337, %336 : vector<8x128xf32>
    %339 = arith.divf %337, %338 : vector<8x128xf32>
    %340 = vector.extract_strided_slice %333 {offsets = [0, 128], sizes = [8, 128], strides = [1, 1]} : vector<8x512xf32> to vector<8x128xf32>
    %341 = arith.negf %340 : vector<8x128xf32>
    %342 = math.exp %341 : vector<8x128xf32>
    %cst_72 = arith.constant 1.000000e+00 : f32
    %343 = vector.broadcast %cst_72 : f32 to vector<8x128xf32>
    %344 = arith.addf %343, %342 : vector<8x128xf32>
    %345 = arith.divf %343, %344 : vector<8x128xf32>
    %346 = vector.extract_strided_slice %333 {offsets = [0, 256], sizes = [8, 128], strides = [1, 1]} : vector<8x512xf32> to vector<8x128xf32>
    %347 = math.tanh %346 : vector<8x128xf32>
    %348 = vector.extract_strided_slice %333 {offsets = [0, 384], sizes = [8, 128], strides = [1, 1]} : vector<8x512xf32> to vector<8x128xf32>
    %349 = arith.negf %348 : vector<8x128xf32>
    %350 = math.exp %349 : vector<8x128xf32>
    %cst_73 = arith.constant 1.000000e+00 : f32
    %351 = vector.broadcast %cst_73 : f32 to vector<8x128xf32>
    %352 = arith.addf %351, %350 : vector<8x128xf32>
    %353 = arith.divf %351, %352 : vector<8x128xf32>
    %354 = arith.mulf %345, %328 : vector<8x128xf32>
    %355 = arith.mulf %339, %347 : vector<8x128xf32>
    %356 = arith.addf %354, %355 : vector<8x128xf32>
    %357 = math.tanh %356 : vector<8x128xf32>
    %358 = arith.mulf %353, %357 : vector<8x128xf32>
    %359 = vector.extract_strided_slice %246 {offsets = [32, 0], sizes = [8, 512], strides = [1, 1]} : vector<64x512xf32> to vector<8x512xf32>
    %cst_74 = arith.constant dense<0.000000e+00> : vector<8x512xf32>
    %360 = tpu.matmul %358, %242, %cst_74 {dimension_numbers = #tpu.dot_dimension_numbers<[1], [0], [0], [1], [0, 0, 1, 1], [], []>} : vector<8x128xf32>, vector<128x512xf32>, vector<8x512xf32> -> vector<8x512xf32>
    %361 = arith.addf %359, %360 : vector<8x512xf32>
    %362 = vector.extract_strided_slice %361 {offsets = [0, 0], sizes = [8, 128], strides = [1, 1]} : vector<8x512xf32> to vector<8x128xf32>
    %363 = arith.negf %362 : vector<8x128xf32>
    %364 = math.exp %363 : vector<8x128xf32>
    %cst_75 = arith.constant 1.000000e+00 : f32
    %365 = vector.broadcast %cst_75 : f32 to vector<8x128xf32>
    %366 = arith.addf %365, %364 : vector<8x128xf32>
    %367 = arith.divf %365, %366 : vector<8x128xf32>
    %368 = vector.extract_strided_slice %361 {offsets = [0, 128], sizes = [8, 128], strides = [1, 1]} : vector<8x512xf32> to vector<8x128xf32>
    %369 = arith.negf %368 : vector<8x128xf32>
    %370 = math.exp %369 : vector<8x128xf32>
    %cst_76 = arith.constant 1.000000e+00 : f32
    %371 = vector.broadcast %cst_76 : f32 to vector<8x128xf32>
    %372 = arith.addf %371, %370 : vector<8x128xf32>
    %373 = arith.divf %371, %372 : vector<8x128xf32>
    %374 = vector.extract_strided_slice %361 {offsets = [0, 256], sizes = [8, 128], strides = [1, 1]} : vector<8x512xf32> to vector<8x128xf32>
    %375 = math.tanh %374 : vector<8x128xf32>
    %376 = vector.extract_strided_slice %361 {offsets = [0, 384], sizes = [8, 128], strides = [1, 1]} : vector<8x512xf32> to vector<8x128xf32>
    %377 = arith.negf %376 : vector<8x128xf32>
    %378 = math.exp %377 : vector<8x128xf32>
    %cst_77 = arith.constant 1.000000e+00 : f32
    %379 = vector.broadcast %cst_77 : f32 to vector<8x128xf32>
    %380 = arith.addf %379, %378 : vector<8x128xf32>
    %381 = arith.divf %379, %380 : vector<8x128xf32>
    %382 = arith.mulf %373, %356 : vector<8x128xf32>
    %383 = arith.mulf %367, %375 : vector<8x128xf32>
    %384 = arith.addf %382, %383 : vector<8x128xf32>
    %385 = math.tanh %384 : vector<8x128xf32>
    %386 = arith.mulf %381, %385 : vector<8x128xf32>
    %387 = vector.extract_strided_slice %246 {offsets = [40, 0], sizes = [8, 512], strides = [1, 1]} : vector<64x512xf32> to vector<8x512xf32>
    %cst_78 = arith.constant dense<0.000000e+00> : vector<8x512xf32>
    %388 = tpu.matmul %386, %242, %cst_78 {dimension_numbers = #tpu.dot_dimension_numbers<[1], [0], [0], [1], [0, 0, 1, 1], [], []>} : vector<8x128xf32>, vector<128x512xf32>, vector<8x512xf32> -> vector<8x512xf32>
    %389 = arith.addf %387, %388 : vector<8x512xf32>
    %390 = vector.extract_strided_slice %389 {offsets = [0, 0], sizes = [8, 128], strides = [1, 1]} : vector<8x512xf32> to vector<8x128xf32>
    %391 = arith.negf %390 : vector<8x128xf32>
    %392 = math.exp %391 : vector<8x128xf32>
    %cst_79 = arith.constant 1.000000e+00 : f32
    %393 = vector.broadcast %cst_79 : f32 to vector<8x128xf32>
    %394 = arith.addf %393, %392 : vector<8x128xf32>
    %395 = arith.divf %393, %394 : vector<8x128xf32>
    %396 = vector.extract_strided_slice %389 {offsets = [0, 128], sizes = [8, 128], strides = [1, 1]} : vector<8x512xf32> to vector<8x128xf32>
    %397 = arith.negf %396 : vector<8x128xf32>
    %398 = math.exp %397 : vector<8x128xf32>
    %cst_80 = arith.constant 1.000000e+00 : f32
    %399 = vector.broadcast %cst_80 : f32 to vector<8x128xf32>
    %400 = arith.addf %399, %398 : vector<8x128xf32>
    %401 = arith.divf %399, %400 : vector<8x128xf32>
    %402 = vector.extract_strided_slice %389 {offsets = [0, 256], sizes = [8, 128], strides = [1, 1]} : vector<8x512xf32> to vector<8x128xf32>
    %403 = math.tanh %402 : vector<8x128xf32>
    %404 = vector.extract_strided_slice %389 {offsets = [0, 384], sizes = [8, 128], strides = [1, 1]} : vector<8x512xf32> to vector<8x128xf32>
    %405 = arith.negf %404 : vector<8x128xf32>
    %406 = math.exp %405 : vector<8x128xf32>
    %cst_81 = arith.constant 1.000000e+00 : f32
    %407 = vector.broadcast %cst_81 : f32 to vector<8x128xf32>
    %408 = arith.addf %407, %406 : vector<8x128xf32>
    %409 = arith.divf %407, %408 : vector<8x128xf32>
    %410 = arith.mulf %401, %384 : vector<8x128xf32>
    %411 = arith.mulf %395, %403 : vector<8x128xf32>
    %412 = arith.addf %410, %411 : vector<8x128xf32>
    %413 = math.tanh %412 : vector<8x128xf32>
    %414 = arith.mulf %409, %413 : vector<8x128xf32>
    %415 = vector.extract_strided_slice %246 {offsets = [48, 0], sizes = [8, 512], strides = [1, 1]} : vector<64x512xf32> to vector<8x512xf32>
    %cst_82 = arith.constant dense<0.000000e+00> : vector<8x512xf32>
    %416 = tpu.matmul %414, %242, %cst_82 {dimension_numbers = #tpu.dot_dimension_numbers<[1], [0], [0], [1], [0, 0, 1, 1], [], []>} : vector<8x128xf32>, vector<128x512xf32>, vector<8x512xf32> -> vector<8x512xf32>
    %417 = arith.addf %415, %416 : vector<8x512xf32>
    %418 = vector.extract_strided_slice %417 {offsets = [0, 0], sizes = [8, 128], strides = [1, 1]} : vector<8x512xf32> to vector<8x128xf32>
    %419 = arith.negf %418 : vector<8x128xf32>
    %420 = math.exp %419 : vector<8x128xf32>
    %cst_83 = arith.constant 1.000000e+00 : f32
    %421 = vector.broadcast %cst_83 : f32 to vector<8x128xf32>
    %422 = arith.addf %421, %420 : vector<8x128xf32>
    %423 = arith.divf %421, %422 : vector<8x128xf32>
    %424 = vector.extract_strided_slice %417 {offsets = [0, 128], sizes = [8, 128], strides = [1, 1]} : vector<8x512xf32> to vector<8x128xf32>
    %425 = arith.negf %424 : vector<8x128xf32>
    %426 = math.exp %425 : vector<8x128xf32>
    %cst_84 = arith.constant 1.000000e+00 : f32
    %427 = vector.broadcast %cst_84 : f32 to vector<8x128xf32>
    %428 = arith.addf %427, %426 : vector<8x128xf32>
    %429 = arith.divf %427, %428 : vector<8x128xf32>
    %430 = vector.extract_strided_slice %417 {offsets = [0, 256], sizes = [8, 128], strides = [1, 1]} : vector<8x512xf32> to vector<8x128xf32>
    %431 = math.tanh %430 : vector<8x128xf32>
    %432 = vector.extract_strided_slice %417 {offsets = [0, 384], sizes = [8, 128], strides = [1, 1]} : vector<8x512xf32> to vector<8x128xf32>
    %433 = arith.negf %432 : vector<8x128xf32>
    %434 = math.exp %433 : vector<8x128xf32>
    %cst_85 = arith.constant 1.000000e+00 : f32
    %435 = vector.broadcast %cst_85 : f32 to vector<8x128xf32>
    %436 = arith.addf %435, %434 : vector<8x128xf32>
    %437 = arith.divf %435, %436 : vector<8x128xf32>
    %438 = arith.mulf %429, %412 : vector<8x128xf32>
    %439 = arith.mulf %423, %431 : vector<8x128xf32>
    %440 = arith.addf %438, %439 : vector<8x128xf32>
    %441 = math.tanh %440 : vector<8x128xf32>
    %442 = arith.mulf %437, %441 : vector<8x128xf32>
    %443 = vector.extract_strided_slice %246 {offsets = [56, 0], sizes = [8, 512], strides = [1, 1]} : vector<64x512xf32> to vector<8x512xf32>
    %cst_86 = arith.constant dense<0.000000e+00> : vector<8x512xf32>
    %444 = tpu.matmul %442, %242, %cst_86 {dimension_numbers = #tpu.dot_dimension_numbers<[1], [0], [0], [1], [0, 0, 1, 1], [], []>} : vector<8x128xf32>, vector<128x512xf32>, vector<8x512xf32> -> vector<8x512xf32>
    %445 = arith.addf %443, %444 : vector<8x512xf32>
    %446 = vector.extract_strided_slice %445 {offsets = [0, 0], sizes = [8, 128], strides = [1, 1]} : vector<8x512xf32> to vector<8x128xf32>
    %447 = arith.negf %446 : vector<8x128xf32>
    %448 = math.exp %447 : vector<8x128xf32>
    %cst_87 = arith.constant 1.000000e+00 : f32
    %449 = vector.broadcast %cst_87 : f32 to vector<8x128xf32>
    %450 = arith.addf %449, %448 : vector<8x128xf32>
    %451 = arith.divf %449, %450 : vector<8x128xf32>
    %452 = vector.extract_strided_slice %445 {offsets = [0, 128], sizes = [8, 128], strides = [1, 1]} : vector<8x512xf32> to vector<8x128xf32>
    %453 = arith.negf %452 : vector<8x128xf32>
    %454 = math.exp %453 : vector<8x128xf32>
    %cst_88 = arith.constant 1.000000e+00 : f32
    %455 = vector.broadcast %cst_88 : f32 to vector<8x128xf32>
    %456 = arith.addf %455, %454 : vector<8x128xf32>
    %457 = arith.divf %455, %456 : vector<8x128xf32>
    %458 = vector.extract_strided_slice %445 {offsets = [0, 256], sizes = [8, 128], strides = [1, 1]} : vector<8x512xf32> to vector<8x128xf32>
    %459 = math.tanh %458 : vector<8x128xf32>
    %460 = vector.extract_strided_slice %445 {offsets = [0, 384], sizes = [8, 128], strides = [1, 1]} : vector<8x512xf32> to vector<8x128xf32>
    %461 = arith.negf %460 : vector<8x128xf32>
    %462 = math.exp %461 : vector<8x128xf32>
    %cst_89 = arith.constant 1.000000e+00 : f32
    %463 = vector.broadcast %cst_89 : f32 to vector<8x128xf32>
    %464 = arith.addf %463, %462 : vector<8x128xf32>
    %465 = arith.divf %463, %464 : vector<8x128xf32>
    %466 = arith.mulf %457, %440 : vector<8x128xf32>
    %467 = arith.mulf %451, %459 : vector<8x128xf32>
    %468 = arith.addf %466, %467 : vector<8x128xf32>
    %469 = math.tanh %468 : vector<8x128xf32>
    %470 = arith.mulf %465, %469 : vector<8x128xf32>
    %c0_90 = arith.constant 0 : index
    %c0_91 = arith.constant 0 : index
    %c0_92 = arith.constant 0 : index
    %471 = vector.load %arg1[%c0_90, %c0_91, %c0_92] : memref<6x8x128xf32, #tpu.memory_space<vmem>>, vector<6x8x128xf32>
    %472 = vector.shape_cast %471 : vector<6x8x128xf32> to vector<48x128xf32>
    %c0_93 = arith.constant 0 : index
    %c0_94 = arith.constant 0 : index
    %473 = vector.load %arg10[%c0_93, %c0_94] : memref<128x512xf32, #tpu.memory_space<vmem>>, vector<128x512xf32>
    %c0_95 = arith.constant 0 : index
    %c0_96 = arith.constant 0 : index
    %474 = vector.load %arg11[%c0_95, %c0_96] : memref<128x512xf32, #tpu.memory_space<vmem>>, vector<128x512xf32>
    %c0_97 = arith.constant 0 : index
    %c0_98 = arith.constant 0 : index
    %475 = vector.load %arg12[%c0_97, %c0_98] : memref<1x512xf32, #tpu.memory_space<vmem>>, vector<1x512xf32>
    %cst_99 = arith.constant dense<0.000000e+00> : vector<48x512xf32>
    %476 = tpu.matmul %472, %473, %cst_99 {dimension_numbers = #tpu.dot_dimension_numbers<[1], [0], [0], [1], [0, 0, 1, 1], [], []>} : vector<48x128xf32>, vector<128x512xf32>, vector<48x512xf32> -> vector<48x512xf32>
    %477 = vector.broadcast %475 : vector<1x512xf32> to vector<48x512xf32>
    %478 = arith.addf %476, %477 : vector<48x512xf32>
    %479 = vector.extract_strided_slice %478 {offsets = [0, 0], sizes = [8, 512], strides = [1, 1]} : vector<48x512xf32> to vector<8x512xf32>
    %cst_100 = arith.constant dense<0.000000e+00> : vector<8x512xf32>
    %480 = tpu.matmul %239, %474, %cst_100 {dimension_numbers = #tpu.dot_dimension_numbers<[1], [0], [0], [1], [0, 0, 1, 1], [], []>} : vector<8x128xf32>, vector<128x512xf32>, vector<8x512xf32> -> vector<8x512xf32>
    %481 = arith.addf %479, %480 : vector<8x512xf32>
    %482 = vector.extract_strided_slice %481 {offsets = [0, 0], sizes = [8, 128], strides = [1, 1]} : vector<8x512xf32> to vector<8x128xf32>
    %483 = arith.negf %482 : vector<8x128xf32>
    %484 = math.exp %483 : vector<8x128xf32>
    %cst_101 = arith.constant 1.000000e+00 : f32
    %485 = vector.broadcast %cst_101 : f32 to vector<8x128xf32>
    %486 = arith.addf %485, %484 : vector<8x128xf32>
    %487 = arith.divf %485, %486 : vector<8x128xf32>
    %488 = vector.extract_strided_slice %481 {offsets = [0, 128], sizes = [8, 128], strides = [1, 1]} : vector<8x512xf32> to vector<8x128xf32>
    %489 = arith.negf %488 : vector<8x128xf32>
    %490 = math.exp %489 : vector<8x128xf32>
    %cst_102 = arith.constant 1.000000e+00 : f32
    %491 = vector.broadcast %cst_102 : f32 to vector<8x128xf32>
    %492 = arith.addf %491, %490 : vector<8x128xf32>
    %493 = arith.divf %491, %492 : vector<8x128xf32>
    %494 = vector.extract_strided_slice %481 {offsets = [0, 256], sizes = [8, 128], strides = [1, 1]} : vector<8x512xf32> to vector<8x128xf32>
    %495 = math.tanh %494 : vector<8x128xf32>
    %496 = vector.extract_strided_slice %481 {offsets = [0, 384], sizes = [8, 128], strides = [1, 1]} : vector<8x512xf32> to vector<8x128xf32>
    %497 = arith.negf %496 : vector<8x128xf32>
    %498 = math.exp %497 : vector<8x128xf32>
    %cst_103 = arith.constant 1.000000e+00 : f32
    %499 = vector.broadcast %cst_103 : f32 to vector<8x128xf32>
    %500 = arith.addf %499, %498 : vector<8x128xf32>
    %501 = arith.divf %499, %500 : vector<8x128xf32>
    %502 = arith.mulf %493, %237 : vector<8x128xf32>
    %503 = arith.mulf %487, %495 : vector<8x128xf32>
    %504 = arith.addf %502, %503 : vector<8x128xf32>
    %505 = math.tanh %504 : vector<8x128xf32>
    %506 = arith.mulf %501, %505 : vector<8x128xf32>
    %507 = vector.extract_strided_slice %478 {offsets = [8, 0], sizes = [8, 512], strides = [1, 1]} : vector<48x512xf32> to vector<8x512xf32>
    %cst_104 = arith.constant dense<0.000000e+00> : vector<8x512xf32>
    %508 = tpu.matmul %506, %474, %cst_104 {dimension_numbers = #tpu.dot_dimension_numbers<[1], [0], [0], [1], [0, 0, 1, 1], [], []>} : vector<8x128xf32>, vector<128x512xf32>, vector<8x512xf32> -> vector<8x512xf32>
    %509 = arith.addf %507, %508 : vector<8x512xf32>
    %510 = vector.extract_strided_slice %509 {offsets = [0, 0], sizes = [8, 128], strides = [1, 1]} : vector<8x512xf32> to vector<8x128xf32>
    %511 = arith.negf %510 : vector<8x128xf32>
    %512 = math.exp %511 : vector<8x128xf32>
    %cst_105 = arith.constant 1.000000e+00 : f32
    %513 = vector.broadcast %cst_105 : f32 to vector<8x128xf32>
    %514 = arith.addf %513, %512 : vector<8x128xf32>
    %515 = arith.divf %513, %514 : vector<8x128xf32>
    %516 = vector.extract_strided_slice %509 {offsets = [0, 128], sizes = [8, 128], strides = [1, 1]} : vector<8x512xf32> to vector<8x128xf32>
    %517 = arith.negf %516 : vector<8x128xf32>
    %518 = math.exp %517 : vector<8x128xf32>
    %cst_106 = arith.constant 1.000000e+00 : f32
    %519 = vector.broadcast %cst_106 : f32 to vector<8x128xf32>
    %520 = arith.addf %519, %518 : vector<8x128xf32>
    %521 = arith.divf %519, %520 : vector<8x128xf32>
    %522 = vector.extract_strided_slice %509 {offsets = [0, 256], sizes = [8, 128], strides = [1, 1]} : vector<8x512xf32> to vector<8x128xf32>
    %523 = math.tanh %522 : vector<8x128xf32>
    %524 = vector.extract_strided_slice %509 {offsets = [0, 384], sizes = [8, 128], strides = [1, 1]} : vector<8x512xf32> to vector<8x128xf32>
    %525 = arith.negf %524 : vector<8x128xf32>
    %526 = math.exp %525 : vector<8x128xf32>
    %cst_107 = arith.constant 1.000000e+00 : f32
    %527 = vector.broadcast %cst_107 : f32 to vector<8x128xf32>
    %528 = arith.addf %527, %526 : vector<8x128xf32>
    %529 = arith.divf %527, %528 : vector<8x128xf32>
    %530 = arith.mulf %521, %504 : vector<8x128xf32>
    %531 = arith.mulf %515, %523 : vector<8x128xf32>
    %532 = arith.addf %530, %531 : vector<8x128xf32>
    %533 = math.tanh %532 : vector<8x128xf32>
    %534 = arith.mulf %529, %533 : vector<8x128xf32>
    %535 = vector.extract_strided_slice %478 {offsets = [16, 0], sizes = [8, 512], strides = [1, 1]} : vector<48x512xf32> to vector<8x512xf32>
    %cst_108 = arith.constant dense<0.000000e+00> : vector<8x512xf32>
    %536 = tpu.matmul %534, %474, %cst_108 {dimension_numbers = #tpu.dot_dimension_numbers<[1], [0], [0], [1], [0, 0, 1, 1], [], []>} : vector<8x128xf32>, vector<128x512xf32>, vector<8x512xf32> -> vector<8x512xf32>
    %537 = arith.addf %535, %536 : vector<8x512xf32>
    %538 = vector.extract_strided_slice %537 {offsets = [0, 0], sizes = [8, 128], strides = [1, 1]} : vector<8x512xf32> to vector<8x128xf32>
    %539 = arith.negf %538 : vector<8x128xf32>
    %540 = math.exp %539 : vector<8x128xf32>
    %cst_109 = arith.constant 1.000000e+00 : f32
    %541 = vector.broadcast %cst_109 : f32 to vector<8x128xf32>
    %542 = arith.addf %541, %540 : vector<8x128xf32>
    %543 = arith.divf %541, %542 : vector<8x128xf32>
    %544 = vector.extract_strided_slice %537 {offsets = [0, 128], sizes = [8, 128], strides = [1, 1]} : vector<8x512xf32> to vector<8x128xf32>
    %545 = arith.negf %544 : vector<8x128xf32>
    %546 = math.exp %545 : vector<8x128xf32>
    %cst_110 = arith.constant 1.000000e+00 : f32
    %547 = vector.broadcast %cst_110 : f32 to vector<8x128xf32>
    %548 = arith.addf %547, %546 : vector<8x128xf32>
    %549 = arith.divf %547, %548 : vector<8x128xf32>
    %550 = vector.extract_strided_slice %537 {offsets = [0, 256], sizes = [8, 128], strides = [1, 1]} : vector<8x512xf32> to vector<8x128xf32>
    %551 = math.tanh %550 : vector<8x128xf32>
    %552 = vector.extract_strided_slice %537 {offsets = [0, 384], sizes = [8, 128], strides = [1, 1]} : vector<8x512xf32> to vector<8x128xf32>
    %553 = arith.negf %552 : vector<8x128xf32>
    %554 = math.exp %553 : vector<8x128xf32>
    %cst_111 = arith.constant 1.000000e+00 : f32
    %555 = vector.broadcast %cst_111 : f32 to vector<8x128xf32>
    %556 = arith.addf %555, %554 : vector<8x128xf32>
    %557 = arith.divf %555, %556 : vector<8x128xf32>
    %558 = arith.mulf %549, %532 : vector<8x128xf32>
    %559 = arith.mulf %543, %551 : vector<8x128xf32>
    %560 = arith.addf %558, %559 : vector<8x128xf32>
    %561 = math.tanh %560 : vector<8x128xf32>
    %562 = arith.mulf %557, %561 : vector<8x128xf32>
    %563 = vector.extract_strided_slice %478 {offsets = [24, 0], sizes = [8, 512], strides = [1, 1]} : vector<48x512xf32> to vector<8x512xf32>
    %cst_112 = arith.constant dense<0.000000e+00> : vector<8x512xf32>
    %564 = tpu.matmul %562, %474, %cst_112 {dimension_numbers = #tpu.dot_dimension_numbers<[1], [0], [0], [1], [0, 0, 1, 1], [], []>} : vector<8x128xf32>, vector<128x512xf32>, vector<8x512xf32> -> vector<8x512xf32>
    %565 = arith.addf %563, %564 : vector<8x512xf32>
    %566 = vector.extract_strided_slice %565 {offsets = [0, 0], sizes = [8, 128], strides = [1, 1]} : vector<8x512xf32> to vector<8x128xf32>
    %567 = arith.negf %566 : vector<8x128xf32>
    %568 = math.exp %567 : vector<8x128xf32>
    %cst_113 = arith.constant 1.000000e+00 : f32
    %569 = vector.broadcast %cst_113 : f32 to vector<8x128xf32>
    %570 = arith.addf %569, %568 : vector<8x128xf32>
    %571 = arith.divf %569, %570 : vector<8x128xf32>
    %572 = vector.extract_strided_slice %565 {offsets = [0, 128], sizes = [8, 128], strides = [1, 1]} : vector<8x512xf32> to vector<8x128xf32>
    %573 = arith.negf %572 : vector<8x128xf32>
    %574 = math.exp %573 : vector<8x128xf32>
    %cst_114 = arith.constant 1.000000e+00 : f32
    %575 = vector.broadcast %cst_114 : f32 to vector<8x128xf32>
    %576 = arith.addf %575, %574 : vector<8x128xf32>
    %577 = arith.divf %575, %576 : vector<8x128xf32>
    %578 = vector.extract_strided_slice %565 {offsets = [0, 256], sizes = [8, 128], strides = [1, 1]} : vector<8x512xf32> to vector<8x128xf32>
    %579 = math.tanh %578 : vector<8x128xf32>
    %580 = vector.extract_strided_slice %565 {offsets = [0, 384], sizes = [8, 128], strides = [1, 1]} : vector<8x512xf32> to vector<8x128xf32>
    %581 = arith.negf %580 : vector<8x128xf32>
    %582 = math.exp %581 : vector<8x128xf32>
    %cst_115 = arith.constant 1.000000e+00 : f32
    %583 = vector.broadcast %cst_115 : f32 to vector<8x128xf32>
    %584 = arith.addf %583, %582 : vector<8x128xf32>
    %585 = arith.divf %583, %584 : vector<8x128xf32>
    %586 = arith.mulf %577, %560 : vector<8x128xf32>
    %587 = arith.mulf %571, %579 : vector<8x128xf32>
    %588 = arith.addf %586, %587 : vector<8x128xf32>
    %589 = math.tanh %588 : vector<8x128xf32>
    %590 = arith.mulf %585, %589 : vector<8x128xf32>
    %591 = vector.extract_strided_slice %478 {offsets = [32, 0], sizes = [8, 512], strides = [1, 1]} : vector<48x512xf32> to vector<8x512xf32>
    %cst_116 = arith.constant dense<0.000000e+00> : vector<8x512xf32>
    %592 = tpu.matmul %590, %474, %cst_116 {dimension_numbers = #tpu.dot_dimension_numbers<[1], [0], [0], [1], [0, 0, 1, 1], [], []>} : vector<8x128xf32>, vector<128x512xf32>, vector<8x512xf32> -> vector<8x512xf32>
    %593 = arith.addf %591, %592 : vector<8x512xf32>
    %594 = vector.extract_strided_slice %593 {offsets = [0, 0], sizes = [8, 128], strides = [1, 1]} : vector<8x512xf32> to vector<8x128xf32>
    %595 = arith.negf %594 : vector<8x128xf32>
    %596 = math.exp %595 : vector<8x128xf32>
    %cst_117 = arith.constant 1.000000e+00 : f32
    %597 = vector.broadcast %cst_117 : f32 to vector<8x128xf32>
    %598 = arith.addf %597, %596 : vector<8x128xf32>
    %599 = arith.divf %597, %598 : vector<8x128xf32>
    %600 = vector.extract_strided_slice %593 {offsets = [0, 128], sizes = [8, 128], strides = [1, 1]} : vector<8x512xf32> to vector<8x128xf32>
    %601 = arith.negf %600 : vector<8x128xf32>
    %602 = math.exp %601 : vector<8x128xf32>
    %cst_118 = arith.constant 1.000000e+00 : f32
    %603 = vector.broadcast %cst_118 : f32 to vector<8x128xf32>
    %604 = arith.addf %603, %602 : vector<8x128xf32>
    %605 = arith.divf %603, %604 : vector<8x128xf32>
    %606 = vector.extract_strided_slice %593 {offsets = [0, 256], sizes = [8, 128], strides = [1, 1]} : vector<8x512xf32> to vector<8x128xf32>
    %607 = math.tanh %606 : vector<8x128xf32>
    %608 = vector.extract_strided_slice %593 {offsets = [0, 384], sizes = [8, 128], strides = [1, 1]} : vector<8x512xf32> to vector<8x128xf32>
    %609 = arith.negf %608 : vector<8x128xf32>
    %610 = math.exp %609 : vector<8x128xf32>
    %cst_119 = arith.constant 1.000000e+00 : f32
    %611 = vector.broadcast %cst_119 : f32 to vector<8x128xf32>
    %612 = arith.addf %611, %610 : vector<8x128xf32>
    %613 = arith.divf %611, %612 : vector<8x128xf32>
    %614 = arith.mulf %605, %588 : vector<8x128xf32>
    %615 = arith.mulf %599, %607 : vector<8x128xf32>
    %616 = arith.addf %614, %615 : vector<8x128xf32>
    %617 = math.tanh %616 : vector<8x128xf32>
    %618 = arith.mulf %613, %617 : vector<8x128xf32>
    %619 = vector.extract_strided_slice %478 {offsets = [40, 0], sizes = [8, 512], strides = [1, 1]} : vector<48x512xf32> to vector<8x512xf32>
    %cst_120 = arith.constant dense<0.000000e+00> : vector<8x512xf32>
    %620 = tpu.matmul %618, %474, %cst_120 {dimension_numbers = #tpu.dot_dimension_numbers<[1], [0], [0], [1], [0, 0, 1, 1], [], []>} : vector<8x128xf32>, vector<128x512xf32>, vector<8x512xf32> -> vector<8x512xf32>
    %621 = arith.addf %619, %620 : vector<8x512xf32>
    %622 = vector.extract_strided_slice %621 {offsets = [0, 0], sizes = [8, 128], strides = [1, 1]} : vector<8x512xf32> to vector<8x128xf32>
    %623 = arith.negf %622 : vector<8x128xf32>
    %624 = math.exp %623 : vector<8x128xf32>
    %cst_121 = arith.constant 1.000000e+00 : f32
    %625 = vector.broadcast %cst_121 : f32 to vector<8x128xf32>
    %626 = arith.addf %625, %624 : vector<8x128xf32>
    %627 = arith.divf %625, %626 : vector<8x128xf32>
    %628 = vector.extract_strided_slice %621 {offsets = [0, 128], sizes = [8, 128], strides = [1, 1]} : vector<8x512xf32> to vector<8x128xf32>
    %629 = arith.negf %628 : vector<8x128xf32>
    %630 = math.exp %629 : vector<8x128xf32>
    %cst_122 = arith.constant 1.000000e+00 : f32
    %631 = vector.broadcast %cst_122 : f32 to vector<8x128xf32>
    %632 = arith.addf %631, %630 : vector<8x128xf32>
    %633 = arith.divf %631, %632 : vector<8x128xf32>
    %634 = vector.extract_strided_slice %621 {offsets = [0, 256], sizes = [8, 128], strides = [1, 1]} : vector<8x512xf32> to vector<8x128xf32>
    %635 = math.tanh %634 : vector<8x128xf32>
    %636 = vector.extract_strided_slice %621 {offsets = [0, 384], sizes = [8, 128], strides = [1, 1]} : vector<8x512xf32> to vector<8x128xf32>
    %637 = arith.negf %636 : vector<8x128xf32>
    %638 = math.exp %637 : vector<8x128xf32>
    %cst_123 = arith.constant 1.000000e+00 : f32
    %639 = vector.broadcast %cst_123 : f32 to vector<8x128xf32>
    %640 = arith.addf %639, %638 : vector<8x128xf32>
    %641 = arith.divf %639, %640 : vector<8x128xf32>
    %642 = arith.mulf %633, %616 : vector<8x128xf32>
    %643 = arith.mulf %627, %635 : vector<8x128xf32>
    %644 = arith.addf %642, %643 : vector<8x128xf32>
    %645 = math.tanh %644 : vector<8x128xf32>
    %646 = arith.mulf %641, %645 : vector<8x128xf32>
    %647 = tpu.concatenate %506, %534, %562, %590, %618, %646 in 0 : vector<8x128xf32>, vector<8x128xf32>, vector<8x128xf32>, vector<8x128xf32>, vector<8x128xf32>, vector<8x128xf32> -> vector<48x128xf32>
    %c0_124 = arith.constant 0 : index
    %c0_125 = arith.constant 0 : index
    %648 = vector.load %arg13[%c0_124, %c0_125] : memref<128x512xf32, #tpu.memory_space<vmem>>, vector<128x512xf32>
    %c0_126 = arith.constant 0 : index
    %c0_127 = arith.constant 0 : index
    %649 = vector.load %arg14[%c0_126, %c0_127] : memref<128x512xf32, #tpu.memory_space<vmem>>, vector<128x512xf32>
    %c0_128 = arith.constant 0 : index
    %c0_129 = arith.constant 0 : index
    %650 = vector.load %arg15[%c0_128, %c0_129] : memref<1x512xf32, #tpu.memory_space<vmem>>, vector<1x512xf32>
    %cst_130 = arith.constant dense<0.000000e+00> : vector<48x512xf32>
    %651 = tpu.matmul %647, %648, %cst_130 {dimension_numbers = #tpu.dot_dimension_numbers<[1], [0], [0], [1], [0, 0, 1, 1], [], []>} : vector<48x128xf32>, vector<128x512xf32>, vector<48x512xf32> -> vector<48x512xf32>
    %652 = vector.broadcast %650 : vector<1x512xf32> to vector<48x512xf32>
    %653 = arith.addf %651, %652 : vector<48x512xf32>
    %654 = vector.extract_strided_slice %653 {offsets = [0, 0], sizes = [8, 512], strides = [1, 1]} : vector<48x512xf32> to vector<8x512xf32>
    %cst_131 = arith.constant dense<0.000000e+00> : vector<8x512xf32>
    %655 = tpu.matmul %470, %649, %cst_131 {dimension_numbers = #tpu.dot_dimension_numbers<[1], [0], [0], [1], [0, 0, 1, 1], [], []>} : vector<8x128xf32>, vector<128x512xf32>, vector<8x512xf32> -> vector<8x512xf32>
    %656 = arith.addf %654, %655 : vector<8x512xf32>
    %657 = vector.extract_strided_slice %656 {offsets = [0, 0], sizes = [8, 128], strides = [1, 1]} : vector<8x512xf32> to vector<8x128xf32>
    %658 = arith.negf %657 : vector<8x128xf32>
    %659 = math.exp %658 : vector<8x128xf32>
    %cst_132 = arith.constant 1.000000e+00 : f32
    %660 = vector.broadcast %cst_132 : f32 to vector<8x128xf32>
    %661 = arith.addf %660, %659 : vector<8x128xf32>
    %662 = arith.divf %660, %661 : vector<8x128xf32>
    %663 = vector.extract_strided_slice %656 {offsets = [0, 128], sizes = [8, 128], strides = [1, 1]} : vector<8x512xf32> to vector<8x128xf32>
    %664 = arith.negf %663 : vector<8x128xf32>
    %665 = math.exp %664 : vector<8x128xf32>
    %cst_133 = arith.constant 1.000000e+00 : f32
    %666 = vector.broadcast %cst_133 : f32 to vector<8x128xf32>
    %667 = arith.addf %666, %665 : vector<8x128xf32>
    %668 = arith.divf %666, %667 : vector<8x128xf32>
    %669 = vector.extract_strided_slice %656 {offsets = [0, 256], sizes = [8, 128], strides = [1, 1]} : vector<8x512xf32> to vector<8x128xf32>
    %670 = math.tanh %669 : vector<8x128xf32>
    %671 = vector.extract_strided_slice %656 {offsets = [0, 384], sizes = [8, 128], strides = [1, 1]} : vector<8x512xf32> to vector<8x128xf32>
    %672 = arith.negf %671 : vector<8x128xf32>
    %673 = math.exp %672 : vector<8x128xf32>
    %cst_134 = arith.constant 1.000000e+00 : f32
    %674 = vector.broadcast %cst_134 : f32 to vector<8x128xf32>
    %675 = arith.addf %674, %673 : vector<8x128xf32>
    %676 = arith.divf %674, %675 : vector<8x128xf32>
    %677 = arith.mulf %668, %468 : vector<8x128xf32>
    %678 = arith.mulf %662, %670 : vector<8x128xf32>
    %679 = arith.addf %677, %678 : vector<8x128xf32>
    %680 = math.tanh %679 : vector<8x128xf32>
    %681 = arith.mulf %676, %680 : vector<8x128xf32>
    %682 = vector.extract_strided_slice %653 {offsets = [8, 0], sizes = [8, 512], strides = [1, 1]} : vector<48x512xf32> to vector<8x512xf32>
    %cst_135 = arith.constant dense<0.000000e+00> : vector<8x512xf32>
    %683 = tpu.matmul %681, %649, %cst_135 {dimension_numbers = #tpu.dot_dimension_numbers<[1], [0], [0], [1], [0, 0, 1, 1], [], []>} : vector<8x128xf32>, vector<128x512xf32>, vector<8x512xf32> -> vector<8x512xf32>
    %684 = arith.addf %682, %683 : vector<8x512xf32>
    %685 = vector.extract_strided_slice %684 {offsets = [0, 0], sizes = [8, 128], strides = [1, 1]} : vector<8x512xf32> to vector<8x128xf32>
    %686 = arith.negf %685 : vector<8x128xf32>
    %687 = math.exp %686 : vector<8x128xf32>
    %cst_136 = arith.constant 1.000000e+00 : f32
    %688 = vector.broadcast %cst_136 : f32 to vector<8x128xf32>
    %689 = arith.addf %688, %687 : vector<8x128xf32>
    %690 = arith.divf %688, %689 : vector<8x128xf32>
    %691 = vector.extract_strided_slice %684 {offsets = [0, 128], sizes = [8, 128], strides = [1, 1]} : vector<8x512xf32> to vector<8x128xf32>
    %692 = arith.negf %691 : vector<8x128xf32>
    %693 = math.exp %692 : vector<8x128xf32>
    %cst_137 = arith.constant 1.000000e+00 : f32
    %694 = vector.broadcast %cst_137 : f32 to vector<8x128xf32>
    %695 = arith.addf %694, %693 : vector<8x128xf32>
    %696 = arith.divf %694, %695 : vector<8x128xf32>
    %697 = vector.extract_strided_slice %684 {offsets = [0, 256], sizes = [8, 128], strides = [1, 1]} : vector<8x512xf32> to vector<8x128xf32>
    %698 = math.tanh %697 : vector<8x128xf32>
    %699 = vector.extract_strided_slice %684 {offsets = [0, 384], sizes = [8, 128], strides = [1, 1]} : vector<8x512xf32> to vector<8x128xf32>
    %700 = arith.negf %699 : vector<8x128xf32>
    %701 = math.exp %700 : vector<8x128xf32>
    %cst_138 = arith.constant 1.000000e+00 : f32
    %702 = vector.broadcast %cst_138 : f32 to vector<8x128xf32>
    %703 = arith.addf %702, %701 : vector<8x128xf32>
    %704 = arith.divf %702, %703 : vector<8x128xf32>
    %705 = arith.mulf %696, %679 : vector<8x128xf32>
    %706 = arith.mulf %690, %698 : vector<8x128xf32>
    %707 = arith.addf %705, %706 : vector<8x128xf32>
    %708 = math.tanh %707 : vector<8x128xf32>
    %709 = arith.mulf %704, %708 : vector<8x128xf32>
    %710 = vector.extract_strided_slice %653 {offsets = [16, 0], sizes = [8, 512], strides = [1, 1]} : vector<48x512xf32> to vector<8x512xf32>
    %cst_139 = arith.constant dense<0.000000e+00> : vector<8x512xf32>
    %711 = tpu.matmul %709, %649, %cst_139 {dimension_numbers = #tpu.dot_dimension_numbers<[1], [0], [0], [1], [0, 0, 1, 1], [], []>} : vector<8x128xf32>, vector<128x512xf32>, vector<8x512xf32> -> vector<8x512xf32>
    %712 = arith.addf %710, %711 : vector<8x512xf32>
    %713 = vector.extract_strided_slice %712 {offsets = [0, 0], sizes = [8, 128], strides = [1, 1]} : vector<8x512xf32> to vector<8x128xf32>
    %714 = arith.negf %713 : vector<8x128xf32>
    %715 = math.exp %714 : vector<8x128xf32>
    %cst_140 = arith.constant 1.000000e+00 : f32
    %716 = vector.broadcast %cst_140 : f32 to vector<8x128xf32>
    %717 = arith.addf %716, %715 : vector<8x128xf32>
    %718 = arith.divf %716, %717 : vector<8x128xf32>
    %719 = vector.extract_strided_slice %712 {offsets = [0, 128], sizes = [8, 128], strides = [1, 1]} : vector<8x512xf32> to vector<8x128xf32>
    %720 = arith.negf %719 : vector<8x128xf32>
    %721 = math.exp %720 : vector<8x128xf32>
    %cst_141 = arith.constant 1.000000e+00 : f32
    %722 = vector.broadcast %cst_141 : f32 to vector<8x128xf32>
    %723 = arith.addf %722, %721 : vector<8x128xf32>
    %724 = arith.divf %722, %723 : vector<8x128xf32>
    %725 = vector.extract_strided_slice %712 {offsets = [0, 256], sizes = [8, 128], strides = [1, 1]} : vector<8x512xf32> to vector<8x128xf32>
    %726 = math.tanh %725 : vector<8x128xf32>
    %727 = vector.extract_strided_slice %712 {offsets = [0, 384], sizes = [8, 128], strides = [1, 1]} : vector<8x512xf32> to vector<8x128xf32>
    %728 = arith.negf %727 : vector<8x128xf32>
    %729 = math.exp %728 : vector<8x128xf32>
    %cst_142 = arith.constant 1.000000e+00 : f32
    %730 = vector.broadcast %cst_142 : f32 to vector<8x128xf32>
    %731 = arith.addf %730, %729 : vector<8x128xf32>
    %732 = arith.divf %730, %731 : vector<8x128xf32>
    %733 = arith.mulf %724, %707 : vector<8x128xf32>
    %734 = arith.mulf %718, %726 : vector<8x128xf32>
    %735 = arith.addf %733, %734 : vector<8x128xf32>
    %736 = math.tanh %735 : vector<8x128xf32>
    %737 = arith.mulf %732, %736 : vector<8x128xf32>
    %738 = vector.extract_strided_slice %653 {offsets = [24, 0], sizes = [8, 512], strides = [1, 1]} : vector<48x512xf32> to vector<8x512xf32>
    %cst_143 = arith.constant dense<0.000000e+00> : vector<8x512xf32>
    %739 = tpu.matmul %737, %649, %cst_143 {dimension_numbers = #tpu.dot_dimension_numbers<[1], [0], [0], [1], [0, 0, 1, 1], [], []>} : vector<8x128xf32>, vector<128x512xf32>, vector<8x512xf32> -> vector<8x512xf32>
    %740 = arith.addf %738, %739 : vector<8x512xf32>
    %741 = vector.extract_strided_slice %740 {offsets = [0, 0], sizes = [8, 128], strides = [1, 1]} : vector<8x512xf32> to vector<8x128xf32>
    %742 = arith.negf %741 : vector<8x128xf32>
    %743 = math.exp %742 : vector<8x128xf32>
    %cst_144 = arith.constant 1.000000e+00 : f32
    %744 = vector.broadcast %cst_144 : f32 to vector<8x128xf32>
    %745 = arith.addf %744, %743 : vector<8x128xf32>
    %746 = arith.divf %744, %745 : vector<8x128xf32>
    %747 = vector.extract_strided_slice %740 {offsets = [0, 128], sizes = [8, 128], strides = [1, 1]} : vector<8x512xf32> to vector<8x128xf32>
    %748 = arith.negf %747 : vector<8x128xf32>
    %749 = math.exp %748 : vector<8x128xf32>
    %cst_145 = arith.constant 1.000000e+00 : f32
    %750 = vector.broadcast %cst_145 : f32 to vector<8x128xf32>
    %751 = arith.addf %750, %749 : vector<8x128xf32>
    %752 = arith.divf %750, %751 : vector<8x128xf32>
    %753 = vector.extract_strided_slice %740 {offsets = [0, 256], sizes = [8, 128], strides = [1, 1]} : vector<8x512xf32> to vector<8x128xf32>
    %754 = math.tanh %753 : vector<8x128xf32>
    %755 = vector.extract_strided_slice %740 {offsets = [0, 384], sizes = [8, 128], strides = [1, 1]} : vector<8x512xf32> to vector<8x128xf32>
    %756 = arith.negf %755 : vector<8x128xf32>
    %757 = math.exp %756 : vector<8x128xf32>
    %cst_146 = arith.constant 1.000000e+00 : f32
    %758 = vector.broadcast %cst_146 : f32 to vector<8x128xf32>
    %759 = arith.addf %758, %757 : vector<8x128xf32>
    %760 = arith.divf %758, %759 : vector<8x128xf32>
    %761 = arith.mulf %752, %735 : vector<8x128xf32>
    %762 = arith.mulf %746, %754 : vector<8x128xf32>
    %763 = arith.addf %761, %762 : vector<8x128xf32>
    %764 = math.tanh %763 : vector<8x128xf32>
    %765 = arith.mulf %760, %764 : vector<8x128xf32>
    %766 = vector.extract_strided_slice %653 {offsets = [32, 0], sizes = [8, 512], strides = [1, 1]} : vector<48x512xf32> to vector<8x512xf32>
    %cst_147 = arith.constant dense<0.000000e+00> : vector<8x512xf32>
    %767 = tpu.matmul %765, %649, %cst_147 {dimension_numbers = #tpu.dot_dimension_numbers<[1], [0], [0], [1], [0, 0, 1, 1], [], []>} : vector<8x128xf32>, vector<128x512xf32>, vector<8x512xf32> -> vector<8x512xf32>
    %768 = arith.addf %766, %767 : vector<8x512xf32>
    %769 = vector.extract_strided_slice %768 {offsets = [0, 0], sizes = [8, 128], strides = [1, 1]} : vector<8x512xf32> to vector<8x128xf32>
    %770 = arith.negf %769 : vector<8x128xf32>
    %771 = math.exp %770 : vector<8x128xf32>
    %cst_148 = arith.constant 1.000000e+00 : f32
    %772 = vector.broadcast %cst_148 : f32 to vector<8x128xf32>
    %773 = arith.addf %772, %771 : vector<8x128xf32>
    %774 = arith.divf %772, %773 : vector<8x128xf32>
    %775 = vector.extract_strided_slice %768 {offsets = [0, 128], sizes = [8, 128], strides = [1, 1]} : vector<8x512xf32> to vector<8x128xf32>
    %776 = arith.negf %775 : vector<8x128xf32>
    %777 = math.exp %776 : vector<8x128xf32>
    %cst_149 = arith.constant 1.000000e+00 : f32
    %778 = vector.broadcast %cst_149 : f32 to vector<8x128xf32>
    %779 = arith.addf %778, %777 : vector<8x128xf32>
    %780 = arith.divf %778, %779 : vector<8x128xf32>
    %781 = vector.extract_strided_slice %768 {offsets = [0, 256], sizes = [8, 128], strides = [1, 1]} : vector<8x512xf32> to vector<8x128xf32>
    %782 = math.tanh %781 : vector<8x128xf32>
    %783 = vector.extract_strided_slice %768 {offsets = [0, 384], sizes = [8, 128], strides = [1, 1]} : vector<8x512xf32> to vector<8x128xf32>
    %784 = arith.negf %783 : vector<8x128xf32>
    %785 = math.exp %784 : vector<8x128xf32>
    %cst_150 = arith.constant 1.000000e+00 : f32
    %786 = vector.broadcast %cst_150 : f32 to vector<8x128xf32>
    %787 = arith.addf %786, %785 : vector<8x128xf32>
    %788 = arith.divf %786, %787 : vector<8x128xf32>
    %789 = arith.mulf %780, %763 : vector<8x128xf32>
    %790 = arith.mulf %774, %782 : vector<8x128xf32>
    %791 = arith.addf %789, %790 : vector<8x128xf32>
    %792 = math.tanh %791 : vector<8x128xf32>
    %793 = arith.mulf %788, %792 : vector<8x128xf32>
    %794 = vector.extract_strided_slice %653 {offsets = [40, 0], sizes = [8, 512], strides = [1, 1]} : vector<48x512xf32> to vector<8x512xf32>
    %cst_151 = arith.constant dense<0.000000e+00> : vector<8x512xf32>
    %795 = tpu.matmul %793, %649, %cst_151 {dimension_numbers = #tpu.dot_dimension_numbers<[1], [0], [0], [1], [0, 0, 1, 1], [], []>} : vector<8x128xf32>, vector<128x512xf32>, vector<8x512xf32> -> vector<8x512xf32>
    %796 = arith.addf %794, %795 : vector<8x512xf32>
    %797 = vector.extract_strided_slice %796 {offsets = [0, 0], sizes = [8, 128], strides = [1, 1]} : vector<8x512xf32> to vector<8x128xf32>
    %798 = arith.negf %797 : vector<8x128xf32>
    %799 = math.exp %798 : vector<8x128xf32>
    %cst_152 = arith.constant 1.000000e+00 : f32
    %800 = vector.broadcast %cst_152 : f32 to vector<8x128xf32>
    %801 = arith.addf %800, %799 : vector<8x128xf32>
    %802 = arith.divf %800, %801 : vector<8x128xf32>
    %803 = vector.extract_strided_slice %796 {offsets = [0, 128], sizes = [8, 128], strides = [1, 1]} : vector<8x512xf32> to vector<8x128xf32>
    %804 = arith.negf %803 : vector<8x128xf32>
    %805 = math.exp %804 : vector<8x128xf32>
    %cst_153 = arith.constant 1.000000e+00 : f32
    %806 = vector.broadcast %cst_153 : f32 to vector<8x128xf32>
    %807 = arith.addf %806, %805 : vector<8x128xf32>
    %808 = arith.divf %806, %807 : vector<8x128xf32>
    %809 = vector.extract_strided_slice %796 {offsets = [0, 256], sizes = [8, 128], strides = [1, 1]} : vector<8x512xf32> to vector<8x128xf32>
    %810 = math.tanh %809 : vector<8x128xf32>
    %811 = vector.extract_strided_slice %796 {offsets = [0, 384], sizes = [8, 128], strides = [1, 1]} : vector<8x512xf32> to vector<8x128xf32>
    %812 = arith.negf %811 : vector<8x128xf32>
    %813 = math.exp %812 : vector<8x128xf32>
    %cst_154 = arith.constant 1.000000e+00 : f32
    %814 = vector.broadcast %cst_154 : f32 to vector<8x128xf32>
    %815 = arith.addf %814, %813 : vector<8x128xf32>
    %816 = arith.divf %814, %815 : vector<8x128xf32>
    %817 = arith.mulf %808, %791 : vector<8x128xf32>
    %818 = arith.mulf %802, %810 : vector<8x128xf32>
    %819 = arith.addf %817, %818 : vector<8x128xf32>
    %820 = math.tanh %819 : vector<8x128xf32>
    %821 = arith.mulf %816, %820 : vector<8x128xf32>
    %cst_155 = arith.constant 0.000000e+00 : f32
    %822 = vector.broadcast %cst_155 : f32 to vector<8x128xf32>
    %823 = arith.maximumf %821, %822 : vector<8x128xf32>
    %c0_156 = arith.constant 0 : index
    %c0_157 = arith.constant 0 : index
    %824 = vector.load %arg16[%c0_156, %c0_157] : memref<128x128xf32, #tpu.memory_space<vmem>>, vector<128x128xf32>
    %cst_158 = arith.constant dense<0.000000e+00> : vector<8x128xf32>
    %825 = tpu.matmul %823, %824, %cst_158 {dimension_numbers = #tpu.dot_dimension_numbers<[1], [0], [0], [1], [0, 0, 1, 1], [], []>} : vector<8x128xf32>, vector<128x128xf32>, vector<8x128xf32> -> vector<8x128xf32>
    %c0_159 = arith.constant 0 : index
    %c0_160 = arith.constant 0 : index
    %826 = vector.load %arg17[%c0_159, %c0_160] : memref<1x128xf32, #tpu.memory_space<vmem>>, vector<1x128xf32>
    %827 = vector.broadcast %826 : vector<1x128xf32> to vector<8x128xf32>
    %828 = arith.addf %825, %827 : vector<8x128xf32>
    %c0_161 = arith.constant 0 : index
    %c0_162 = arith.constant 0 : index
    %829 = vector.load %arg18[%c0_161, %c0_162] : memref<8x128xf32, #tpu.memory_space<vmem>>, vector<8x128xf32>
    tpu.vector_store %arg18[%c0_161, %c0_162], %828 {strides = array<i32>} : memref<8x128xf32, #tpu.memory_space<vmem>>, vector<8x128xf32>,
    return
  }
}

</mosaic_0001>

<bundles_post_ra>
// kernel: model_forward.1
= control target key start
LH: loop header
LB: loop body
LE: loop exit
PB: predicated region body
PF: predicated region fallthrough
CT: control target
= control target key end

     0   :  { %s11713_s0 = inlined_call_operand.vmem [shape: f32[8,8,128], index: 0, kind: input, shape index: {}]   ;;  %s11714_s1 = inlined_call_operand.vmem [shape: f32[6,8,128], index: 1, kind: input, shape index: {}]   ;;  %s11715_s2 = inlined_call_operand.vmem [shape: f32[2,8,128], index: 2, kind: input, shape index: {}]   ;;  %s11716_s3 = inlined_call_operand.vmem [shape: f32[2,8,128], index: 3, kind: input, shape index: {}]   ;;  %s11717_s4 = inlined_call_operand.vmem [shape: f32[128,512], index: 4, kind: input, shape index: {}]   ;;  %s11718_s5 = inlined_call_operand.hbm [shape: f32[128,512], index: 5, kind: input, shape index: {}]   ;;  %s11719_s6 = inlined_call_operand.vmem [shape: f32[1,512], index: 6, kind: input, shape index: {}]   ;;  %s11720_s7 = inlined_call_operand.hbm [shape: f32[128,512], index: 7, kind: input, shape index: {}]   ;;  %s11721_s8 = inlined_call_operand.hbm [shape: f32[128,512], index: 8, kind: input, shape index: {}]   ;;  %s11722_s9 = inlined_call_operand.vmem [shape: f32[1,512], index: 9, kind: input, shape index: {}]   ;;  %s11723_s10 = inlined_call_operand.hbm [shape: f32[128,512], index: 10, kind: input, shape index: {}]   ;;  %s11724_s11 = inlined_call_operand.hbm [shape: f32[128,512], index: 11, kind: input, shape index: {}]   ;;  %s11725_s12 = inlined_call_operand.vmem [shape: f32[1,512], index: 12, kind: input, shape index: {}]   ;;  %s11726_s13 = inlined_call_operand.hbm [shape: f32[128,512], index: 13, kind: input, shape index: {}]   ;;  %s11727_s14 = inlined_call_operand.hbm [shape: f32[128,512], index: 14, kind: input, shape index: {}]   ;;  %s11728_s15 = inlined_call_operand.vmem [shape: f32[1,512], index: 15, kind: input, shape index: {}]   ;;  %s11729_s16 = inlined_call_operand.vmem [shape: f32[128,128], index: 16, kind: input, shape index: {}]   ;;  %s11730_s17 = inlined_call_operand.vmem [shape: f32[1,128], index: 17, kind: input, shape index: {}]   ;;  %s11731_s18 = inlined_call_operand.vmem [shape: f32[8,128], index: 18, kind: output, shape index: {}]  }
   0x1   :  { %11735 = sst [smem:[#allocation17_spill]] %s11713_s0 }
   0x2   :  { %11736 = sst [smem:[#allocation18_spill]] %s11714_s1 }
   0x3   :  { %11737 = sst [smem:[#allocation19_spill]] %s11715_s2 }
   0x4   :  { %23 = vsyncpa [#allocation3], 0 }
   0x5   :  { %24 = vsyncpa [#allocation5], 0 }
   0x6   :  { %25 = vsyncpa [#allocation8], 0 }
   0x7   :  { %26 = vsyncpa [#allocation11], 0  ;;  %s9550_s27 = smov [#allocation4]   ;;  %s9551_s29 = smov [#allocation7]  }
   0x8   :  { %s56_s28 = sshll.u32 %s9550_s27, 4  ;;  %s82_s30 = sshll.u32 %s9551_s29, 4  ;;  %s57_s28 = int_to_ptr.vmem [resolvable:$true] %s56_s28  ;;  %s9657_s30 = int_to_ptr.vmem [resolvable:$true] %s82_s30 }
   0x9   :  { %s9388_s1 = scalar_lea.hbm %s11720_s7, 8192 }
   0xa   :  { %p9389_p0 = scmp.ne.s32.totalorder %s11720_s7, %s9388_s1  ;;  %p9392_p1 = scmp.lt.u32.totalorder %s9388_s1, %s11720_s7 }
   0xc   :  { %p9394_p2 = pnand %p9392_p1, %p9389_p0 }
   0xe   :  { %9397 = shalt.err (!%p9394_p2)
}
   0xf   :  { %s9398_s23 = scalar_lea.vmem %s57_s28, 8192  ;;  %p9403_p4 = scmp.lt.s32.totalorder %s57_s28, %s57_s28 }
  0x10   :  { %p9399_p3 = scmp.ne.s32.totalorder %s57_s28, %s9398_s23  ;;  %p9404_p5 = scmp.lt.s32.totalorder %s9398_s23, %s9398_s23 }
  0x12   :  { %p9405_p6 = por %p9404_p5, %p9403_p4 }
  0x14   :  { %p9406_p7 = pnand %p9405_p6, %p9399_p3 }
  0x16   :  { %9409 = shalt.err (!%p9406_p7)
}
  0x17   :  { %s9552_s24 = smov 512   ;;  %s9553_s25 = smov 32  }
  0x18   :  { %62 = dma.hbm_to_vmem [thread:$0]  %s11720_s7, 8192, %s57_s28, [#allocation5], %s9552_s24, %s9552_s24, %s9553_s25  }
  0x19   :  { %s9410_s19 = scalar_lea.hbm %s11723_s10, 8192 }
  0x1a   :  { %p9411_p8 = scmp.ne.s32.totalorder %s11723_s10, %s9410_s19  ;;  %p9414_p9 = scmp.lt.u32.totalorder %s9410_s19, %s11723_s10 }
  0x1c   :  { %p9416_p10 = pnand %p9414_p9, %p9411_p8 }
  0x1e   :  { %9419 = shalt.err (!%p9416_p10)
}
  0x1f   :  { %s9420_s2 = scalar_lea.vmem %s9657_s30, 8192  ;;  %p9425_p12 = scmp.lt.s32.totalorder %s9657_s30, %s9657_s30 }
  0x20   :  { %p9421_p11 = scmp.ne.s32.totalorder %s9657_s30, %s9420_s2  ;;  %p9426_p13 = scmp.lt.s32.totalorder %s9420_s2, %s9420_s2 }
  0x22   :  { %p9427_p0 = por %p9426_p13, %p9425_p12 }
  0x24   :  { %p9428_p1 = pnand %p9427_p0, %p9421_p11 }
  0x26   :  { %9431 = shalt.err (!%p9428_p1)
}
  0x27   :  { %88 = dma.hbm_to_vmem [thread:$0]  %s11723_s10, 8192, %s9657_s30, [#allocation8], %s9552_s24, %s9552_s24, %s9553_s25  }
  0x28   :  { %s9554_s23 = smov [#allocation10]   ;;  %s9555_s27 = smov [#allocation2]  }
  0x29   :  { %s108_s26 = sshll.u32 %s9554_s23, 4  ;;  %s42_s29 = sshll.u32 %s9555_s27, 4  ;;  %s109_s26 = int_to_ptr.vmem [resolvable:$true] %s108_s26  ;;  %s9694_s29 = int_to_ptr.vmem [resolvable:$true] %s42_s29 }
  0x2a   :  { %s9432_s1 = scalar_lea.hbm %s11726_s13, 8192 }
  0x2b   :  { %p9433_p2 = scmp.ne.s32.totalorder %s11726_s13, %s9432_s1  ;;  %p9436_p3 = scmp.lt.u32.totalorder %s9432_s1, %s11726_s13 }
  0x2d   :  { %p9438_p4 = pnand %p9436_p3, %p9433_p2 }
  0x2f   :  { %9441 = shalt.err (!%p9438_p4)
}
  0x30   :  { %s9442_s10 = scalar_lea.vmem %s109_s26, 8192  ;;  %p9447_p6 = scmp.lt.s32.totalorder %s109_s26, %s109_s26 }
  0x31   :  { %p9443_p5 = scmp.ne.s32.totalorder %s109_s26, %s9442_s10  ;;  %p9448_p7 = scmp.lt.s32.totalorder %s9442_s10, %s9442_s10 }
  0x33   :  { %p9449_p8 = por %p9448_p7, %p9447_p6 }
  0x35   :  { %p9450_p9 = pnand %p9449_p8, %p9443_p5 }
  0x37   :  { %9453 = shalt.err (!%p9450_p9)
}
  0x38   :  { %114 = dma.hbm_to_vmem [thread:$0]  %s11726_s13, 8192, %s109_s26, [#allocation11], %s9552_s24, %s9552_s24, %s9553_s25  }
  0x39   :  { %s9454_s27 = scalar_lea.hbm %s11718_s5, 8192 }
  0x3a   :  { %p9455_p10 = scmp.ne.s32.totalorder %s11718_s5, %s9454_s27  ;;  %p9458_p11 = scmp.lt.u32.totalorder %s9454_s27, %s11718_s5 }
  0x3c   :  { %p9460_p12 = pnand %p9458_p11, %p9455_p10 }
  0x3e   :  { %9463 = shalt.err (!%p9460_p12)
}
  0x3f   :  { %s9464_s21 = scalar_lea.vmem %s9694_s29, 8192  ;;  %p9469_p0 = scmp.lt.s32.totalorder %s9694_s29, %s9694_s29 }
  0x40   :  { %p9465_p13 = scmp.ne.s32.totalorder %s9694_s29, %s9464_s21  ;;  %p9470_p1 = scmp.lt.s32.totalorder %s9464_s21, %s9464_s21 }
  0x42   :  { %p9471_p2 = por %p9470_p1, %p9469_p0 }
  0x44   :  { %p9472_p3 = pnand %p9471_p2, %p9465_p13 }
  0x46   :  { %9475 = shalt.err (!%p9472_p3)
}
  0x47   :  { %48 = dma.hbm_to_vmem [thread:$0]  %s11718_s5, 8192, %s9694_s29, [#allocation3], %s9552_s24, %s9552_s24, %s9553_s25  }
  0x48   :  { %s9556_s22 = smov [#allocation6]   ;;  %s9557_s10 = smov [#allocation9]  }
  0x49   :  { %s68_s2 = sshll.u32 %s9556_s22, 4  ;;  %s94_s30 = sshll.u32 %s9557_s10, 4  ;;  %s69_s2 = int_to_ptr.vmem [resolvable:$true] %s68_s2  ;;  %s9731_s30 = int_to_ptr.vmem [resolvable:$true] %s94_s30 }
  0x4a   :  { %s9476_s23 = scalar_lea.hbm %s11721_s8, 8192 }
  0x4b   :  { %p9477_p4 = scmp.ne.s32.totalorder %s11721_s8, %s9476_s23  ;;  %p9480_p5 = scmp.lt.u32.totalorder %s9476_s23, %s11721_s8 }
  0x4d   :  { %p9482_p6 = pnand %p9480_p5, %p9477_p4 }
  0x4f   :  { %9485 = shalt.err (!%p9482_p6)
}
  0x50   :  { %s9486_s5 = scalar_lea.vmem %s69_s2, 8192  ;;  %p9491_p8 = scmp.lt.s32.totalorder %s69_s2, %s69_s2 }
  0x51   :  { %p9487_p7 = scmp.ne.s32.totalorder %s69_s2, %s9486_s5  ;;  %p9492_p9 = scmp.lt.s32.totalorder %s9486_s5, %s9486_s5 }
  0x53   :  { %p9493_p10 = por %p9492_p9, %p9491_p8 }
  0x55   :  { %p9494_p11 = pnand %p9493_p10, %p9487_p7 }
  0x57   :  { %9497 = shalt.err (!%p9494_p11)
}
  0x58   :  { %74 = dma.hbm_to_vmem [thread:$0]  %s11721_s8, 8192, %s69_s2, [#allocation5], %s9552_s24, %s9552_s24, %s9553_s25  }
  0x59   :  { %s9498_s26 = scalar_lea.hbm %s11724_s11, 8192 }
  0x5a   :  { %p9499_p12 = scmp.ne.s32.totalorder %s11724_s11, %s9498_s26  ;;  %p9502_p13 = scmp.lt.u32.totalorder %s9498_s26, %s11724_s11 }
  0x5c   :  { %p9504_p0 = pnand %p9502_p13, %p9499_p12 }
  0x5e   :  { %9507 = shalt.err (!%p9504_p0)
}
  0x5f   :  { %s9508_s23 = scalar_lea.vmem %s9731_s30, 8192  ;;  %p9513_p2 = scmp.lt.s32.totalorder %s9731_s30, %s9731_s30 }
  0x60   :  { %p9509_p1 = scmp.ne.s32.totalorder %s9731_s30, %s9508_s23  ;;  %p9514_p3 = scmp.lt.s32.totalorder %s9508_s23, %s9508_s23 }
  0x62   :  { %p9515_p4 = por %p9514_p3, %p9513_p2 }
  0x64   :  { %p9516_p5 = pnand %p9515_p4, %p9509_p1 }
  0x66   :  { %9519 = shalt.err (!%p9516_p5)
}
  0x67   :  { %100 = dma.hbm_to_vmem [thread:$0]  %s11724_s11, 8192, %s9731_s30, [#allocation8], %s9552_s24, %s9552_s24, %s9553_s25  }
  0x68   :  { %s9558_s27 = smov [#allocation12]   ;;  %s9520_s5 = scalar_lea.hbm %s11727_s14, 8192 }
  0x69   :  { %s120_s0 = sshll.u32 %s9558_s27, 4  ;;  %p9521_p6 = scmp.ne.s32.totalorder %s11727_s14, %s9520_s5  ;;  %s121_s0 = int_to_ptr.vmem [resolvable:$true] %s120_s0 }
  0x6a   :  { %p9524_p7 = scmp.lt.u32.totalorder %s9520_s5, %s11727_s14 }
  0x6c   :  { %p9526_p8 = pnand %p9524_p7, %p9521_p6 }
  0x6e   :  { %9529 = shalt.err (!%p9526_p8)
}
  0x6f   :  { %s9530_s26 = scalar_lea.vmem %s121_s0, 8192  ;;  %p9535_p10 = scmp.lt.s32.totalorder %s121_s0, %s121_s0 }
  0x70   :  { %p9531_p9 = scmp.ne.s32.totalorder %s121_s0, %s9530_s26  ;;  %p9536_p11 = scmp.lt.s32.totalorder %s9530_s26, %s9530_s26 }
  0x72   :  { %p9537_p12 = por %p9536_p11, %p9535_p10 }
  0x74   :  { %p9538_p13 = pnand %p9537_p12, %p9531_p9 }
  0x76   :  { %9541 = shalt.err (!%p9538_p13)
}
  0x77   :  { %126 = dma.hbm_to_vmem [thread:$0]  %s11727_s14, 8192, %s121_s0, [#allocation11], %s9552_s24, %s9552_s24, %s9553_s25  }
  0x78   :  { %9542 = dma.done.wait [#allocation3], 8192  }
  0x79   :  { %9543 = vsyncadd [#allocation3], 4294959104 }
  0x7a   :  { %9544 = dma.done.wait [#allocation5], 16384  }
  0x7b   :  { %9545 = vsyncadd [#allocation5], 4294950912 }
  0x7c   :  { %9546 = dma.done.wait [#allocation8], 16384  }
  0x7d   :  { %9547 = vsyncadd [#allocation8], 4294950912 }
  0x7e   :  { %9548 = dma.done.wait [#allocation11], 16384  }
  0x7f   :  { %9549 = vsyncadd [#allocation11], 4294950912  ;;  %v9559_v0 = vmov 0.0   ;;  %v169_v1 = vld [vmem:[%s11717_s4 + $0x8] sm:$0xff]  ;;  %v171_v3 = vld [vmem:[%s11717_s4 + $0x18] sm:$0xff]  ;;  %s11738_s26 = sld [smem:[#allocation17_spill]] }
  0x80   :  { %382 = vmatprep.mubr.f32.mxu0 %v9559_v0  ;;  %495 = vmatprep.mubr.f32.mxu1 %v9559_v0  ;;  %v173_v2 = vld [vmem:[%s11717_s4 + $0x28] sm:$0xff]  ;;  %v175_v5 = vld [vmem:[%s11717_s4 + $0x38] sm:$0xff]  ;;  %v168_v6 = vld [vmem:[%s11717_s4] sm:$0xff]  ;;  %s11739_s5 = sld [smem:[#allocation19_spill]]  ;;  %s11740_s10 = sld [smem:[#allocation18_spill]]  ;;  %vm9561_vm0 = vmmov 0  }
  0x81   :  { %v6632_v4 = vpack.c.bf16 %v173_v2, %v169_v1  ;;  %v172_v7 = vld [vmem:[%s11717_s4 + $0x20] sm:$0xff]  ;;  %v6664_v8 = vpack.c.bf16 %v175_v5, %v171_v3  ;;  %v170_v10 = vld [vmem:[%s11717_s4 + $0x10] sm:$0xff]  ;;  %v177_v12 = vld [vmem:[%s11717_s4 + $0x48] sm:$0xff] }
  0x82   :  { %v6634_v9 = vpack.c.bf16 %v172_v7, %v168_v6  ;;  %v174_v11 = vld [vmem:[%s11717_s4 + $0x30] sm:$0xff]  ;;  %v181_v14 = vld [vmem:[%s11717_s4 + $0x68] sm:$0xff]  ;;  %v179_v15 = vld [vmem:[%s11717_s4 + $0x58] sm:$0xff] }
  0x83   :  { %6633 = vmatprep.subr.bf16.mxu0 %v6632_v4  ;;  %v6666_v13 = vpack.c.bf16 %v174_v11, %v170_v10  ;;  %v183_v16 = vld [vmem:[%s11717_s4 + $0x78] sm:$0xff]  ;;  %6665 = vmatprep.subr.bf16.mxu1 %v6664_v8  ;;  %v6636_v17 = vpack.c.bf16 %v181_v14, %v177_v12  ;;  %v176_v19 = vld [vmem:[%s11717_s4 + $0x40] sm:$0xff]  ;;  %v178_v21 = vld [vmem:[%s11717_s4 + $0x50] sm:$0xff] }
  0x84   :  { %6635 = vmatpush1.bf16.msra.mxu0 %v6634_v9  ;;  %v6668_v18 = vpack.c.bf16 %v183_v16, %v179_v15  ;;  %v180_v20 = vld [vmem:[%s11717_s4 + $0x60] sm:$0xff]  ;;  %v182_v23 = vld [vmem:[%s11717_s4 + $0x70] sm:$0xff]  ;;  %v185_v24 = vld [vmem:[%s11717_s4 + $0x88] sm:$0xff] }
  0x85   :  { %6667 = vmatpush1.bf16.msra.mxu1 %v6666_v13  ;;  %v6638_v22 = vpack.c.bf16 %v180_v20, %v176_v19  ;;  %v189_v25 = vld [vmem:[%s11717_s4 + $0xa8] sm:$0xff]  ;;  %6637 = vmatprep.subr.bf16.mxu0 %v6636_v17  ;;  %v6670_v26 = vpack.c.bf16 %v182_v23, %v178_v21  ;;  %v187_v28 = vld [vmem:[%s11717_s4 + $0x98] sm:$0xff]  ;;  %v184_v30 = vld [vmem:[%s11717_s4 + $0x80] sm:$0xff] }
  0x86   :  { %6669 = vmatprep.subr.bf16.mxu1 %v6668_v18  ;;  %v6640_v27 = vpack.c.bf16 %v189_v25, %v185_v24  ;;  %v191_v29 = vld [vmem:[%s11717_s4 + $0xb8] sm:$0xff]  ;;  %v188_v32 = vld [vmem:[%s11717_s4 + $0xa0] sm:$0xff]  ;;  %v186_v33 = vld [vmem:[%s11717_s4 + $0x90] sm:$0xff] }
  0x87   :  { %v6672_v31 = vpack.c.bf16 %v191_v29, %v187_v28  ;;  %v190_v34 = vld [vmem:[%s11717_s4 + $0xb0] sm:$0xff]  ;;  %v6642_v35 = vpack.c.bf16 %v188_v32, %v184_v30  ;;  %v193_v36 = vld [vmem:[%s11717_s4 + $0xc8] sm:$0xff]  ;;  %v195_v38 = vld [vmem:[%s11717_s4 + $0xd8] sm:$0xff] }
  0x88   :  { %6639 = vmatpush1.bf16.msra.mxu0 %v6638_v22  ;;  %v197_v37 = vld [vmem:[%s11717_s4 + $0xe8] sm:$0xff]  ;;  %v6674_v39 = vpack.c.bf16 %v190_v34, %v186_v33  ;;  %v199_v41 = vld [vmem:[%s11717_s4 + $0xf8] sm:$0xff]  ;;  %v192_v42 = vld [vmem:[%s11717_s4 + $0xc0] sm:$0xff] }
  0x89   :  { %6671 = vmatpush1.bf16.msra.mxu1 %v6670_v26  ;;  %6641 = vmatprep.subr.bf16.mxu0 %v6640_v27  ;;  %v6644_v40 = vpack.c.bf16 %v197_v37, %v193_v36  ;;  %v196_v43 = vld [vmem:[%s11717_s4 + $0xe0] sm:$0xff]  ;;  %v6676_v44 = vpack.c.bf16 %v199_v41, %v195_v38  ;;  %v194_v45 = vld [vmem:[%s11717_s4 + $0xd0] sm:$0xff]  ;;  %v201_v47 = vld [vmem:[%s11717_s4 + $0x108] sm:$0xff] }
  0x8a   :  { %6673 = vmatprep.subr.bf16.mxu1 %v6672_v31  ;;  %v198_v46 = vld [vmem:[%s11717_s4 + $0xf0] sm:$0xff]  ;;  %v205_v48 = vld [vmem:[%s11717_s4 + $0x128] sm:$0xff]  ;;  %v203_v49 = vld [vmem:[%s11717_s4 + $0x118] sm:$0xff]  ;;  %v6646_v51 = vpack.c.bf16 %v196_v43, %v192_v42 }
  0x8b   :  { %v207_v50 = vld [vmem:[%s11717_s4 + $0x138] sm:$0xff]  ;;  %v6678_v52 = vpack.c.bf16 %v198_v46, %v194_v45  ;;  %v6648_v53 = vpack.c.bf16 %v205_v48, %v201_v47  ;;  %v200_v54 = vld [vmem:[%s11717_s4 + $0x100] sm:$0xff]  ;;  %v202_v56 = vld [vmem:[%s11717_s4 + $0x110] sm:$0xff] }
  0x8c   :  { %6643 = vmatpush1.bf16.msra.mxu0 %v6642_v35  ;;  %v204_v55 = vld [vmem:[%s11717_s4 + $0x120] sm:$0xff]  ;;  %v6680_v57 = vpack.c.bf16 %v207_v50, %v203_v49  ;;  %v206_v58 = vld [vmem:[%s11717_s4 + $0x130] sm:$0xff]  ;;  %v209_v59 = vld [vmem:[%s11717_s4 + $0x148] sm:$0xff] }
  0x8d   :  { %6675 = vmatpush1.bf16.msra.mxu1 %v6674_v39  ;;  %6645 = vmatprep.subr.bf16.mxu0 %v6644_v40  ;;  %v213_v60 = vld [vmem:[%s11717_s4 + $0x168] sm:$0xff]  ;;  %v211_v61 = vld [vmem:[%s11717_s4 + $0x158] sm:$0xff]  ;;  %v6650_v63 = vpack.c.bf16 %v204_v55, %v200_v54  ;;  %v6682_v1 = vpack.c.bf16 %v206_v58, %v202_v56  ;;  %v208_v3 = vld [vmem:[%s11717_s4 + $0x140] sm:$0xff] }
  0x8e   :  { %6677 = vmatprep.subr.bf16.mxu1 %v6676_v44  ;;  %v215_v62 = vld [vmem:[%s11717_s4 + $0x178] sm:$0xff]  ;;  %v6652_v2 = vpack.c.bf16 %v213_v60, %v209_v59  ;;  %v212_v4 = vld [vmem:[%s11717_s4 + $0x160] sm:$0xff]  ;;  %v210_v5 = vld [vmem:[%s11717_s4 + $0x150] sm:$0xff] }
  0x8f   :  { %v6684_v6 = vpack.c.bf16 %v215_v62, %v211_v61  ;;  %v214_v7 = vld [vmem:[%s11717_s4 + $0x170] sm:$0xff]  ;;  %v217_v8 = vld [vmem:[%s11717_s4 + $0x188] sm:$0xff]  ;;  %v219_v10 = vld [vmem:[%s11717_s4 + $0x198] sm:$0xff]  ;;  %v6654_v12 = vpack.c.bf16 %v212_v4, %v208_v3 }
  0x90   :  { %6647 = vmatpush1.bf16.msra.mxu0 %v6646_v51  ;;  %v221_v9 = vld [vmem:[%s11717_s4 + $0x1a8] sm:$0xff]  ;;  %v223_v11 = vld [vmem:[%s11717_s4 + $0x1b8] sm:$0xff]  ;;  %v6686_v13 = vpack.c.bf16 %v214_v7, %v210_v5  ;;  %v216_v15 = vld [vmem:[%s11717_s4 + $0x180] sm:$0xff] }
  0x91   :  { %6679 = vmatpush1.bf16.msra.mxu1 %v6678_v52  ;;  %6649 = vmatprep.subr.bf16.mxu0 %v6648_v53  ;;  %v6656_v14 = vpack.c.bf16 %v221_v9, %v217_v8  ;;  %v220_v16 = vld [vmem:[%s11717_s4 + $0x1a0] sm:$0xff]  ;;  %v218_v17 = vld [vmem:[%s11717_s4 + $0x190] sm:$0xff]  ;;  %v6688_v18 = vpack.c.bf16 %v223_v11, %v219_v10  ;;  %v225_v20 = vld [vmem:[%s11717_s4 + $0x1c8] sm:$0xff] }
  0x92   :  { %6681 = vmatprep.subr.bf16.mxu1 %v6680_v57  ;;  %v222_v19 = vld [vmem:[%s11717_s4 + $0x1b0] sm:$0xff]  ;;  %v229_v21 = vld [vmem:[%s11717_s4 + $0x1e8] sm:$0xff]  ;;  %v227_v22 = vld [vmem:[%s11717_s4 + $0x1d8] sm:$0xff]  ;;  %v6658_v24 = vpack.c.bf16 %v220_v16, %v216_v15 }
  0x93   :  { %v231_v23 = vld [vmem:[%s11717_s4 + $0x1f8] sm:$0xff]  ;;  %v6690_v25 = vpack.c.bf16 %v222_v19, %v218_v17  ;;  %v6660_v26 = vpack.c.bf16 %v229_v21, %v225_v20  ;;  %v224_v27 = vld [vmem:[%s11717_s4 + $0x1c0] sm:$0xff]  ;;  %v226_v29 = vld [vmem:[%s11717_s4 + $0x1d0] sm:$0xff] }
  0x94   :  { %6651 = vmatpush1.bf16.msra.mxu0 %v6650_v63  ;;  %v228_v28 = vld [vmem:[%s11717_s4 + $0x1e0] sm:$0xff]  ;;  %v6692_v30 = vpack.c.bf16 %v231_v23, %v227_v22  ;;  %v230_v31 = vld [vmem:[%s11717_s4 + $0x1f0] sm:$0xff]  ;;  %v233_v32 = vld [vmem:[#allocation2 + $0x8] sm:$0xff] }
  0x95   :  { %6683 = vmatpush1.bf16.msra.mxu1 %v6682_v1  ;;  %6653 = vmatprep.subr.bf16.mxu0 %v6652_v2  ;;  %v237_v33 = vld [vmem:[#allocation2 + $0x28] sm:$0xff]  ;;  %v235_v34 = vld [vmem:[#allocation2 + $0x18] sm:$0xff]  ;;  %v6662_v36 = vpack.c.bf16 %v228_v28, %v224_v27  ;;  %v6694_v37 = vpack.c.bf16 %v230_v31, %v226_v29  ;;  %v232_v39 = vld [vmem:[#allocation2] sm:$0xff] }
  0x96   :  { %6685 = vmatprep.subr.bf16.mxu1 %v6684_v6  ;;  %v239_v35 = vld [vmem:[#allocation2 + $0x38] sm:$0xff]  ;;  %v9977_v38 = vpack.c.bf16 %v237_v33, %v233_v32  ;;  %v236_v40 = vld [vmem:[#allocation2 + $0x20] sm:$0xff]  ;;  %v234_v42 = vld [vmem:[#allocation2 + $0x10] sm:$0xff] }
  0x97   :  { %v9979_v41 = vpack.c.bf16 %v239_v35, %v235_v34  ;;  %v238_v43 = vld [vmem:[#allocation2 + $0x30] sm:$0xff]  ;;  %v241_v44 = vld [vmem:[#allocation2 + $0x48] sm:$0xff]  ;;  %v160_v46 = vld [vmem:[%s11738_s26] sm:$0xff]  ;;  %v9984_v47 = vpack.c.bf16 %v236_v40, %v232_v39 }
  0x98   :  { %6655 = vmatpush1.bf16.msra.mxu0 %v6654_v12  ;;  %v245_v45 = vld [vmem:[#allocation2 + $0x68] sm:$0xff]  ;;  %v243_v48 = vld [vmem:[#allocation2 + $0x58] sm:$0xff]  ;;  %v9987_v50 = vpack.c.bf16 %v238_v43, %v234_v42  ;;  %v240_v51 = vld [vmem:[#allocation2 + $0x40] sm:$0xff] }
  0x99   :  { %6687 = vmatpush1.bf16.msra.mxu1 %v6686_v13  ;;  %6657 = vmatprep.subr.bf16.mxu0 %v6656_v14  ;;  %v247_v49 = vld [vmem:[#allocation2 + $0x78] sm:$0xff]  ;;  %v244_v52 = vld [vmem:[#allocation2 + $0x60] sm:$0xff]  ;;  %v9990_v53 = vpack.c.bf16 %v245_v45, %v241_v44  ;;  %v242_v54 = vld [vmem:[#allocation2 + $0x50] sm:$0xff] }
  0x9a   :  { %6689 = vmatprep.subr.bf16.mxu1 %v6688_v18  ;;  %v246_v55 = vld [vmem:[#allocation2 + $0x70] sm:$0xff]  ;;  %v9992_v56 = vpack.c.bf16 %v247_v49, %v243_v48  ;;  %v249_v57 = vld [vmem:[#allocation2 + $0x88] sm:$0xff]  ;;  %v9998_v60 = vpack.c.bf16 %v244_v52, %v240_v51  ;;  %v251_v61 = vld [vmem:[#allocation2 + $0x98] sm:$0xff] }
  0x9b   :  { %v253_v58 = vld [vmem:[#allocation2 + $0xa8] sm:$0xff]  ;;  %v255_v62 = vld [vmem:[#allocation2 + $0xb8] sm:$0xff]  ;;  %v10002_v63 = vpack.c.bf16 %v246_v55, %v242_v54  ;;  %v248_v1 = vld [vmem:[#allocation2 + $0x80] sm:$0xff] }
  0x9c   :  { %6659 = vmatpush1.bf16.msra.mxu0 %v6658_v24  ;;  %v161_v59 = vld [vmem:[%s11738_s26 + $0x8] sm:$0xff]  ;;  %v252_v2 = vld [vmem:[#allocation2 + $0xa0] sm:$0xff]  ;;  %v10006_v3 = vpack.c.bf16 %v253_v58, %v249_v57  ;;  %v250_v4 = vld [vmem:[#allocation2 + $0x90] sm:$0xff]  ;;  %v10009_v6 = vpack.c.bf16 %v255_v62, %v251_v61 }
  0x9d   :  { %6691 = vmatpush1.bf16.msra.mxu1 %v6690_v25  ;;  %6661 = vmatprep.subr.bf16.mxu0 %v6660_v26  ;;  %v254_v5 = vld [vmem:[#allocation2 + $0xb0] sm:$0xff]  ;;  %v257_v7 = vld [vmem:[#allocation2 + $0xc8] sm:$0xff]  ;;  %v10015_v10 = vpack.c.bf16 %v252_v2, %v248_v1  ;;  %v259_v11 = vld [vmem:[#allocation2 + $0xd8] sm:$0xff] }
  0x9e   :  { %6693 = vmatprep.subr.bf16.mxu1 %v6692_v30  ;;  %v261_v8 = vld [vmem:[#allocation2 + $0xe8] sm:$0xff]  ;;  %v162_v9 = vld [vmem:[%s11738_s26 + $0x10] sm:$0xff]  ;;  %v263_v12 = vld [vmem:[#allocation2 + $0xf8] sm:$0xff]  ;;  %v10019_v13 = vpack.c.bf16 %v254_v5, %v250_v4 }
  0x9f   :  { %v256_v14 = vld [vmem:[#allocation2 + $0xc0] sm:$0xff]  ;;  %v10023_v16 = vpack.c.bf16 %v261_v8, %v257_v7  ;;  %v258_v17 = vld [vmem:[#allocation2 + $0xd0] sm:$0xff]  ;;  %v10026_v19 = vpack.c.bf16 %v263_v12, %v259_v11  ;;  %v265_v20 = vld [vmem:[#allocation2 + $0x108] sm:$0xff] }
  0xa0   :  { %6663 = vmatpush1.bf16.msra.mxu0 %v6662_v36  ;;  %v260_v15 = vld [vmem:[#allocation2 + $0xe0] sm:$0xff]  ;;  %v262_v18 = vld [vmem:[#allocation2 + $0xf0] sm:$0xff]  ;;  %v269_v21 = vld [vmem:[#allocation2 + $0x128] sm:$0xff] }
  0xa1   :  { %6695 = vmatpush1.bf16.msra.mxu1 %v6694_v37  ;;  %6697 = vmatprep.subr.bf16.mxu0 %v9977_v38  ;;  %v163_v22 = vld [vmem:[%s11738_s26 + $0x18] sm:$0xff]  ;;  %v10032_v23 = vpack.c.bf16 %v260_v15, %v256_v14  ;;  %v10036_v26 = vpack.c.bf16 %v262_v18, %v258_v17  ;;  %v264_v27 = vld [vmem:[#allocation2 + $0x100] sm:$0xff]  ;;  %v10040_v29 = vpack.c.bf16 %v269_v21, %v265_v20  ;;  %v266_v30 = vld [vmem:[#allocation2 + $0x110] sm:$0xff] }
  0xa2   :  { %6729 = vmatprep.subr.bf16.mxu1 %v9979_v41  ;;  %v267_v24 = vld [vmem:[#allocation2 + $0x118] sm:$0xff]  ;;  %v268_v28 = vld [vmem:[#allocation2 + $0x120] sm:$0xff]  ;;  %v270_v31 = vld [vmem:[#allocation2 + $0x130] sm:$0xff] }
  0xa3   :  { %383 = vmatmul.mubr.f32.vlgmr.msra.gmra.mrb[0].mxu0 %v160_v46  ;;  %v271_v25 = vld [vmem:[#allocation2 + $0x138] sm:$0xff]  ;;  %v273_v33 = vld [vmem:[#allocation2 + $0x148] sm:$0xff]  ;;  %v164_v35 = vld [vmem:[%s11738_s26 + $0x20] sm:$0xff]  ;;  %v10049_v36 = vpack.c.bf16 %v268_v28, %v264_v27  ;;  %v10053_v40 = vpack.c.bf16 %v270_v31, %v266_v30  ;;  %v298_v30 = vlaneseq }
  0xa4   :  { %496 = vmatmul.mubr.f32.vlgmr.msra.gmra.mrb[0].mxu1 %v160_v46  ;;  %6699 = vmatpush1.bf16.msra.mxu0 %v9984_v47  ;;  %v10043_v32 = vpack.c.bf16 %v271_v25, %v267_v24  ;;  %v277_v34 = vld [vmem:[#allocation2 + $0x168] sm:$0xff]  ;;  %v275_v37 = vld [vmem:[#allocation2 + $0x158] sm:$0xff]  ;;  %v272_v42 = vld [vmem:[#allocation2 + $0x140] sm:$0xff] }
  0xa5   :  { %6731 = vmatpush1.bf16.msra.mxu1 %v9987_v50  ;;  %388 = vmatprep.mubr.f32.mxu0 %v9559_v0  ;;  %v279_v39 = vld [vmem:[#allocation2 + $0x178] sm:$0xff]  ;;  %v276_v43 = vld [vmem:[#allocation2 + $0x160] sm:$0xff]  ;;  %v10057_v44 = vpack.c.bf16 %v277_v34, %v273_v33  ;;  %v274_v45 = vld [vmem:[#allocation2 + $0x150] sm:$0xff]  ;;  %v299_v31 = vshrl.u32 %v298_v30, 7 }
  0xa6   :  { %501 = vmatprep.mubr.f32.mxu1 %v9559_v0  ;;  %6701 = vmatprep.subr.bf16.mxu0 %v9990_v53  ;;  %v278_v46 = vld [vmem:[#allocation2 + $0x170] sm:$0xff]  ;;  %v10060_v48 = vpack.c.bf16 %v279_v39, %v275_v37  ;;  %v281_v49 = vld [vmem:[#allocation2 + $0x188] sm:$0xff]  ;;  %v10066_v54 = vpack.c.bf16 %v276_v43, %v272_v42  ;;  %v283_v55 = vld [vmem:[#allocation2 + $0x198] sm:$0xff] }
  0xa7   :  { %389 = vmatmul.mubr.f32.gmra.mrb[2].mxu0 %v161_v59  ;;  %6733 = vmatprep.subr.bf16.mxu1 %v9992_v56  ;;  %v285_v51 = vld [vmem:[#allocation2 + $0x1a8] sm:$0xff]  ;;  %v287_v57 = vld [vmem:[#allocation2 + $0x1b8] sm:$0xff]  ;;  %v10070_v58 = vpack.c.bf16 %v278_v46, %v274_v45  ;;  %v284_v61 = vld [vmem:[#allocation2 + $0x1a0] sm:$0xff]  ;;  %v10152_v33 = vsub.s32 0, %v299_v31  ;;  %v10165_v43 = vsub.s32 3, %v299_v31 }
  0xa8   :  { %502 = vmatmul.mubr.f32.gmra.mrb[2].mxu1 %v161_v59  ;;  %6703 = vmatpush1.bf16.msra.mxu0 %v9998_v60  ;;  %v165_v52 = vld [vmem:[%s11738_s26 + $0x28] sm:$0xff]  ;;  %v280_v59 = vld [vmem:[#allocation2 + $0x180] sm:$0xff]  ;;  %v10074_v62 = vpack.c.bf16 %v285_v51, %v281_v49  ;;  %v282_v1 = vld [vmem:[#allocation2 + $0x190] sm:$0xff]  ;;  %v10077_v4 = vpack.c.bf16 %v287_v57, %v283_v55 }
  0xa9   :  { %6735 = vmatpush1.bf16.msra.mxu1 %v10002_v63  ;;  %394 = vmatprep.mubr.f32.mxu0 %v9559_v0  ;;  %v286_v2 = vld [vmem:[#allocation2 + $0x1b0] sm:$0xff]  ;;  %v289_v5 = vld [vmem:[#allocation2 + $0x1c8] sm:$0xff]  ;;  %v291_v11 = vld [vmem:[#allocation2 + $0x1d8] sm:$0xff] }
  0xaa   :  { %507 = vmatprep.mubr.f32.mxu1 %v9559_v0  ;;  %6705 = vmatprep.subr.bf16.mxu0 %v10006_v3  ;;  %v293_v7 = vld [vmem:[#allocation2 + $0x1e8] sm:$0xff]  ;;  %v166_v8 = vld [vmem:[%s11738_s26 + $0x30] sm:$0xff]  ;;  %v295_v12 = vld [vmem:[#allocation2 + $0x1f8] sm:$0xff]  ;;  %v10087_v14 = vpack.c.bf16 %v286_v2, %v282_v1 }
  0xab   :  { %395 = vmatmul.mubr.f32.gmra.mrb[4].mxu0 %v162_v9  ;;  %6737 = vmatprep.subr.bf16.mxu1 %v10009_v6  ;;  %v288_v15 = vld [vmem:[#allocation2 + $0x1c0] sm:$0xff]  ;;  %v10091_v18 = vpack.c.bf16 %v293_v7, %v289_v5  ;;  %v290_v20 = vld [vmem:[#allocation2 + $0x1d0] sm:$0xff]  ;;  %v167_v24 = vld [vmem:[%s11738_s26 + $0x38] sm:$0xff] }
  0xac   :  { %508 = vmatmul.mubr.f32.gmra.mrb[4].mxu1 %v162_v9  ;;  %6707 = vmatpush1.bf16.msra.mxu0 %v10015_v10  ;;  %v10083_v9 = vpack.c.bf16 %v284_v61, %v280_v59  ;;  %v292_v17 = vld [vmem:[#allocation2 + $0x1e0] sm:$0xff]  ;;  %v294_v21 = vld [vmem:[#allocation2 + $0x1f0] sm:$0xff]  ;;  %v10172_v61 = vsub.s32 2, %v299_v31 }
  0xad   :  { %6739 = vmatpush1.bf16.msra.mxu1 %v10019_v13  ;;  %400 = vmatprep.mubr.f32.mxu0 %v9559_v0  ;;  %v10100_v25 = vpack.c.bf16 %v292_v17, %v288_v15  ;;  %v10104_v27 = vpack.c.bf16 %v294_v21, %v290_v20  ;;  %v154_v28 = vld [vmem:[%s11739_s5] sm:$0xff] }
  0xae   :  { %513 = vmatprep.mubr.f32.mxu1 %v9559_v0  ;;  %6709 = vmatprep.subr.bf16.mxu0 %v10023_v16  ;;  %v296_v34 = vld [vmem:[%s11719_s6] sm:$0xf] }
  0xaf   :  { %401 = vmatmul.mubr.f32.gmra.mrb[6].mxu0 %v163_v22  ;;  %6741 = vmatprep.subr.bf16.mxu1 %v10026_v19  ;;  %v10160_v37 = vrot.slane %v296_v34, %v10152_v33  ;;  %v10170_v59 = vrot.slane %v296_v34, %v10165_v43  ;;  %v10176_v2 = vrot.slane %v296_v34, %v10172_v61  ;;  %v157_v21 = vld [vmem:[%s11716_s3] sm:$0xff] }
  0xb0   :  { %514 = vmatmul.mubr.f32.gmra.mrb[6].mxu1 %v163_v22  ;;  %6711 = vmatpush1.bf16.msra.mxu0 %v10032_v23  ;;  %v10094_v22 = vpack.c.bf16 %v295_v12, %v291_v11 }
  0xb1   :  { %6743 = vmatpush1.bf16.msra.mxu1 %v10036_v26  ;;  %406 = vmatprep.mubr.f32.mxu0 %v9559_v0 }
  0xb2   :  { %519 = vmatprep.mubr.f32.mxu1 %v9559_v0  ;;  %6713 = vmatprep.subr.bf16.mxu0 %v10040_v29 }
  0xb3   :  { %407 = vmatmul.mubr.f32.gmra.mrb[8].mxu0 %v164_v35  ;;  %6745 = vmatprep.subr.bf16.mxu1 %v10043_v32 }
  0xb4   :  { %520 = vmatmul.mubr.f32.gmra.mrb[8].mxu1 %v164_v35  ;;  %6715 = vmatpush1.bf16.msra.mxu0 %v10049_v36  ;;  %v10157_v35 = vsub.s32 1, %v299_v31 }
  0xb5   :  { %6747 = vmatpush1.bf16.msra.mxu1 %v10053_v40  ;;  %412 = vmatprep.mubr.f32.mxu0 %v9559_v0 }
  0xb6   :  { %525 = vmatprep.mubr.f32.mxu1 %v9559_v0  ;;  %6717 = vmatprep.subr.bf16.mxu0 %v10057_v44  ;;  %v10163_v39 = vrot.slane %v296_v34, %v10157_v35 }
  0xb7   :  { %413 = vmatmul.mubr.f32.gmra.mrb[10].mxu0 %v165_v52  ;;  %6749 = vmatprep.subr.bf16.mxu1 %v10060_v48 }
  0xb8   :  { %526 = vmatmul.mubr.f32.gmra.mrb[10].mxu1 %v165_v52  ;;  %6719 = vmatpush1.bf16.msra.mxu0 %v10066_v54 }
  0xb9   :  { %6751 = vmatpush1.bf16.msra.mxu1 %v10070_v58  ;;  %418 = vmatprep.mubr.f32.mxu0 %v9559_v0 }
  0xba   :  { %531 = vmatprep.mubr.f32.mxu1 %v9559_v0  ;;  %6721 = vmatprep.subr.bf16.mxu0 %v10074_v62 }
  0xbb   :  { %419 = vmatmul.mubr.f32.gmra.mrb[12].mxu0 %v166_v8  ;;  %6753 = vmatprep.subr.bf16.mxu1 %v10077_v4 }
  0xbc   :  { %532 = vmatmul.mubr.f32.gmra.mrb[12].mxu1 %v166_v8  ;;  %6723 = vmatpush1.bf16.msra.mxu0 %v10083_v9 }
  0xbd   :  { %6755 = vmatpush1.bf16.msra.mxu1 %v10087_v14  ;;  %424 = vmatprep.mubr.f32.mxu0 %v9559_v0 }
  0xbe   :  { %537 = vmatprep.mubr.f32.mxu1 %v9559_v0  ;;  %6725 = vmatprep.subr.bf16.mxu0 %v10091_v18 }
  0xbf   :  { %425 = vmatmul.mubr.f32.gmra.mrb[14].mxu0 %v167_v24  ;;  %6757 = vmatprep.subr.bf16.mxu1 %v10094_v22 }
  0xc0   :  { %538 = vmatmul.mubr.f32.gmra.mrb[14].mxu1 %v167_v24  ;;  %6727 = vmatpush1.bf16.msra.mxu0 %v10100_v25 }
  0xc1   :  { %6759 = vmatpush1.bf16.msra.mxu1 %v10104_v27  ;;  %608 = vmatprep.mubr.f32.mxu0 %v9559_v0 }
  0xc2   :  { %679 = vmatprep.mubr.f32.mxu1 %v9559_v0  ;;  %6761 = vmatprep.subr.bf16.mxu0 %v9977_v38 }
  0xc3   :  { %609 = vmatmul.mubr.f32.vlgmr.msra.gmra.mrb[0].mxu0 %v154_v28  ;;  %6793 = vmatprep.subr.bf16.mxu1 %v9979_v41 }
  0xc4   :  { %680 = vmatmul.mubr.f32.vlgmr.msra.gmra.mrb[0].mxu1 %v154_v28  ;;  %6763 = vmatpush1.bf16.msra.mxu0 %v9984_v47 }
  0xc5   :  { %6795 = vmatpush1.bf16.msra.mxu1 %v9987_v50  ;;  %6765 = vmatprep.subr.bf16.mxu0 %v9990_v53 }
  0xc6   :  { %6797 = vmatprep.subr.bf16.mxu1 %v9992_v56  ;;  %778 = vmatprep.mubr.f32.mxu0 %v9559_v0 }
  0xc7   :  { %849 = vmatprep.mubr.f32.mxu1 %v9559_v0 }
  0xc8   :  { %6767 = vmatpush1.bf16.msra.mxu0 %v9998_v60 }
  0xc9   :  { %6799 = vmatpush1.bf16.msra.mxu1 %v10002_v63  ;;  %6769 = vmatprep.subr.bf16.mxu0 %v10006_v3 }
  0xca   :  { %6801 = vmatprep.subr.bf16.mxu1 %v10009_v6 }
  0xcc   :  { %6771 = vmatpush1.bf16.msra.mxu0 %v10015_v10 }
  0xcd   :  { %6803 = vmatpush1.bf16.msra.mxu1 %v10019_v13  ;;  %6773 = vmatprep.subr.bf16.mxu0 %v10023_v16 }
  0xce   :  { %6805 = vmatprep.subr.bf16.mxu1 %v10026_v19 }
  0xd0   :  { %6775 = vmatpush1.bf16.msra.mxu0 %v10032_v23 }
  0xd1   :  { %6807 = vmatpush1.bf16.msra.mxu1 %v10036_v26  ;;  %6777 = vmatprep.subr.bf16.mxu0 %v10040_v29 }
  0xd2   :  { %6809 = vmatprep.subr.bf16.mxu1 %v10043_v32 }
  0xd4   :  { %6779 = vmatpush1.bf16.msra.mxu0 %v10049_v36 }
  0xd5   :  { %6811 = vmatpush1.bf16.msra.mxu1 %v10053_v40  ;;  %6781 = vmatprep.subr.bf16.mxu0 %v10057_v44 }
  0xd6   :  { %6813 = vmatprep.subr.bf16.mxu1 %v10060_v48 }
  0xd8   :  { %6783 = vmatpush1.bf16.msra.mxu0 %v10066_v54 }
  0xd9   :  { %6815 = vmatpush1.bf16.msra.mxu1 %v10070_v58  ;;  %6785 = vmatprep.subr.bf16.mxu0 %v10074_v62 }
  0xda   :  { %6817 = vmatprep.subr.bf16.mxu1 %v10077_v4 }
  0xdc   :  { %6787 = vmatpush1.bf16.msra.mxu0 %v10083_v9 }
  0xdd   :  { %6819 = vmatpush1.bf16.msra.mxu1 %v10087_v14  ;;  %6789 = vmatprep.subr.bf16.mxu0 %v10091_v18 }
  0xde   :  { %6821 = vmatprep.subr.bf16.mxu1 %v10094_v22 }
  0xe0   :  { %6791 = vmatpush1.bf16.msra.mxu0 %v10100_v25 }
  0xe1   :  { %6823 = vmatpush1.bf16.msra.mxu1 %v10104_v27  ;;  %6825 = vmatprep.subr.bf16.mxu0 %v9977_v38 }
  0xe2   :  { %6857 = vmatprep.subr.bf16.mxu1 %v9979_v41 }
 0x196   :  { %v610_v42 = vpop.f32.mrb[0].mxu0 }
 0x197   :  { %v8704_v45 = vadd.f32 %v610_v42, %v10160_v37  ;;  %v681_v46 = vpop.f32.mrb[0].mxu1  ;;  %v612_v49 = vpop.f32.mrb[1].mxu0 }
 0x198   :  { %v8705_v51 = vadd.f32 %v612_v49, %v10163_v39  ;;  %v683_v52 = vpop.f32.mrb[1].mxu1  ;;  %v8720_v7 = vadd.f32 %v681_v46, %v10176_v2 }
 0x199   :  { %v6495_v55 = vmul.f32 -1.442695, %v8704_v45  ;;  %v8721_v1 = vadd.f32 %v683_v52, %v10170_v59 }
 0x19a   :  { %v6496_v57 = vmul.f32 -1.442695, %v8705_v51 }
 0x19b   :  { %8940 = vpow2.f32 %v6495_v55  ;;  %v6497_v5 = vmul.f32 -1.442695, %v8721_v1 }
 0x19c   :  { %8942 = vpow2.f32 %v6496_v57 }
 0x19d   :  { %8944 = vpow2.f32 %v6497_v5 }
 0x19e   :  { %8946 = vtanh.f32 %v8720_v7 }
 0x1a5   :  { %v8941_v8 = vpop.eup %8940 }
 0x1a6   :  { %v8943_v11 = vpop.eup %8942  ;;  %v693_v12 = vadd.f32 1.0, %v8941_v8 }
 0x1a7   :  { %v699_v15 = vadd.f32 1.0, %v8943_v11  ;;  %v8945_v17 = vpop.eup %8944 }
 0x1a8   :  { %8948 = vrcp.f32 %v693_v12  ;;  %v8947_v20 = vpop.eup %8946  ;;  %v706_v31 = vadd.f32 1.0, %v8945_v17 }
 0x1a9   :  { %8950 = vrcp.f32 %v699_v15 }
 0x1aa   :  { %8952 = vrcp.f32 %v706_v31 }
 0x1b2   :  { %v8949_v24 = vpop.eup %8948 }
 0x1b3   :  { %v8951_v28 = vpop.eup %8950  ;;  %v710_v30 = vmul.f32 %v8949_v24, %v8947_v20 }
 0x1b4   :  { %v709_v34 = vmul.f32 %v8951_v28, %v157_v21  ;;  %v8953_v45 = vpop.eup %8952 }
 0x1b6   :  { %v10182_v42 = vadd.f32 %v710_v30, %v709_v34 }
 0x1b8   :  { %8954 = vtanh.f32 %v10182_v42 }
 0x1c2   :  { %v8955_v46 = vpop.eup %8954 }
 0x1c3   :  { %v10185_v49 = vmul.f32 %v8955_v46, %v8953_v45 }
 0x1c5   :  { %779 = vmatmul.mubr.f32.vlgmr.msra.gmra.mrb[2].mxu0 %v10185_v49  ;;  %850 = vmatmul.mubr.f32.vlgmr.msra.gmra.mrb[2].mxu1 %v10185_v49 }
 0x1c6   :  { %6827 = vmatpush1.bf16.msra.mxu0 %v9984_v47  ;;  %6859 = vmatpush1.bf16.msra.mxu1 %v9987_v50 }
 0x1c7   :  { %6829 = vmatprep.subr.bf16.mxu0 %v9990_v53  ;;  %6861 = vmatprep.subr.bf16.mxu1 %v9992_v56 }
 0x1c8   :  { %948 = vmatprep.mubr.f32.mxu0 %v9559_v0  ;;  %1019 = vmatprep.mubr.f32.mxu1 %v9559_v0 }
 0x1ca   :  { %6831 = vmatpush1.bf16.msra.mxu0 %v9998_v60  ;;  %6863 = vmatpush1.bf16.msra.mxu1 %v10002_v63 }
 0x1cb   :  { %6833 = vmatprep.subr.bf16.mxu0 %v10006_v3  ;;  %6865 = vmatprep.subr.bf16.mxu1 %v10009_v6 }
 0x1ce   :  { %6835 = vmatpush1.bf16.msra.mxu0 %v10015_v10  ;;  %6867 = vmatpush1.bf16.msra.mxu1 %v10019_v13 }
 0x1cf   :  { %6837 = vmatprep.subr.bf16.mxu0 %v10023_v16  ;;  %6869 = vmatprep.subr.bf16.mxu1 %v10026_v19 }
 0x1d2   :  { %6839 = vmatpush1.bf16.msra.mxu0 %v10032_v23  ;;  %6871 = vmatpush1.bf16.msra.mxu1 %v10036_v26 }
 0x1d3   :  { %6841 = vmatprep.subr.bf16.mxu0 %v10040_v29  ;;  %6873 = vmatprep.subr.bf16.mxu1 %v10043_v32 }
 0x1d6   :  { %6843 = vmatpush1.bf16.msra.mxu0 %v10049_v36  ;;  %6875 = vmatpush1.bf16.msra.mxu1 %v10053_v40 }
 0x1d7   :  { %6845 = vmatprep.subr.bf16.mxu0 %v10057_v44  ;;  %6877 = vmatprep.subr.bf16.mxu1 %v10060_v48 }
 0x1da   :  { %6847 = vmatpush1.bf16.msra.mxu0 %v10066_v54  ;;  %6879 = vmatpush1.bf16.msra.mxu1 %v10070_v58 }
 0x1db   :  { %6849 = vmatprep.subr.bf16.mxu0 %v10074_v62  ;;  %6881 = vmatprep.subr.bf16.mxu1 %v10077_v4 }
 0x1de   :  { %6851 = vmatpush1.bf16.msra.mxu0 %v10083_v9  ;;  %6883 = vmatpush1.bf16.msra.mxu1 %v10087_v14 }
 0x1df   :  { %6853 = vmatprep.subr.bf16.mxu0 %v10091_v18  ;;  %6885 = vmatprep.subr.bf16.mxu1 %v10094_v22 }
 0x1e2   :  { %6855 = vmatpush1.bf16.msra.mxu0 %v10100_v25  ;;  %6887 = vmatpush1.bf16.msra.mxu1 %v10104_v27 }
 0x1e3   :  { %6889 = vmatprep.subr.bf16.mxu0 %v9977_v38  ;;  %6921 = vmatprep.subr.bf16.mxu1 %v9979_v41 }
 0x298   :  { %v780_v51 = vpop.f32.mrb[2].mxu0  ;;  %v851_v52 = vpop.f32.mrb[2].mxu1 }
 0x299   :  { %v8706_v55 = vadd.f32 %v780_v51, %v10160_v37  ;;  %v782_v57 = vpop.f32.mrb[3].mxu0  ;;  %v853_v1 = vpop.f32.mrb[3].mxu1  ;;  %v8722_v15 = vadd.f32 %v851_v52, %v10176_v2 }
 0x29a   :  { %v8707_v5 = vadd.f32 %v782_v57, %v10163_v39  ;;  %v8723_v11 = vadd.f32 %v853_v1, %v10170_v59 }
 0x29b   :  { %v6498_v7 = vmul.f32 -1.442695, %v8706_v55 }
 0x29c   :  { %v6499_v8 = vmul.f32 -1.442695, %v8707_v5  ;;  %v6500_v12 = vmul.f32 -1.442695, %v8723_v11 }
 0x29d   :  { %8956 = vpow2.f32 %v6498_v7 }
 0x29e   :  { %8958 = vpow2.f32 %v6499_v8 }
 0x29f   :  { %8960 = vpow2.f32 %v6500_v12 }
 0x2a0   :  { %8962 = vtanh.f32 %v8722_v15 }
 0x2a7   :  { %v8957_v17 = vpop.eup %8956 }
 0x2a8   :  { %v8959_v20 = vpop.eup %8958  ;;  %v863_v21 = vadd.f32 1.0, %v8957_v17 }
 0x2a9   :  { %v869_v24 = vadd.f32 1.0, %v8959_v20  ;;  %v8961_v28 = vpop.eup %8960 }
 0x2aa   :  { %8964 = vrcp.f32 %v863_v21  ;;  %v8963_v30 = vpop.eup %8962  ;;  %v876_v46 = vadd.f32 1.0, %v8961_v28 }
 0x2ab   :  { %8966 = vrcp.f32 %v869_v24 }
 0x2ac   :  { %8968 = vrcp.f32 %v876_v46 }
 0x2b4   :  { %v8965_v31 = vpop.eup %8964 }
 0x2b5   :  { %v8967_v34 = vpop.eup %8966  ;;  %v880_v45 = vmul.f32 %v8965_v31, %v8963_v30 }
 0x2b6   :  { %v879_v51 = vmul.f32 %v8967_v34, %v10182_v42  ;;  %v8969_v52 = vpop.eup %8968 }
 0x2b8   :  { %v10228_v55 = vadd.f32 %v880_v45, %v879_v51 }
 0x2ba   :  { %8970 = vtanh.f32 %v10228_v55 }
 0x2c4   :  { %v8971_v57 = vpop.eup %8970 }
 0x2c5   :  { %v10231_v1 = vmul.f32 %v8971_v57, %v8969_v52 }
 0x2c7   :  { %949 = vmatmul.mubr.f32.vlgmr.msra.gmra.mrb[4].mxu0 %v10231_v1  ;;  %1020 = vmatmul.mubr.f32.vlgmr.msra.gmra.mrb[4].mxu1 %v10231_v1 }
 0x2c8   :  { %6891 = vmatpush1.bf16.msra.mxu0 %v9984_v47  ;;  %6923 = vmatpush1.bf16.msra.mxu1 %v9987_v50 }
 0x2c9   :  { %6893 = vmatprep.subr.bf16.mxu0 %v9990_v53  ;;  %6925 = vmatprep.subr.bf16.mxu1 %v9992_v56 }
 0x2ca   :  { %1118 = vmatprep.mubr.f32.mxu0 %v9559_v0  ;;  %1189 = vmatprep.mubr.f32.mxu1 %v9559_v0 }
 0x2cc   :  { %6895 = vmatpush1.bf16.msra.mxu0 %v9998_v60  ;;  %6927 = vmatpush1.bf16.msra.mxu1 %v10002_v63 }
 0x2cd   :  { %6897 = vmatprep.subr.bf16.mxu0 %v10006_v3  ;;  %6929 = vmatprep.subr.bf16.mxu1 %v10009_v6 }
 0x2d0   :  { %6899 = vmatpush1.bf16.msra.mxu0 %v10015_v10  ;;  %6931 = vmatpush1.bf16.msra.mxu1 %v10019_v13 }
 0x2d1   :  { %6901 = vmatprep.subr.bf16.mxu0 %v10023_v16  ;;  %6933 = vmatprep.subr.bf16.mxu1 %v10026_v19 }
 0x2d4   :  { %6903 = vmatpush1.bf16.msra.mxu0 %v10032_v23  ;;  %6935 = vmatpush1.bf16.msra.mxu1 %v10036_v26 }
 0x2d5   :  { %6905 = vmatprep.subr.bf16.mxu0 %v10040_v29  ;;  %6937 = vmatprep.subr.bf16.mxu1 %v10043_v32 }
 0x2d8   :  { %6907 = vmatpush1.bf16.msra.mxu0 %v10049_v36  ;;  %6939 = vmatpush1.bf16.msra.mxu1 %v10053_v40 }
 0x2d9   :  { %6909 = vmatprep.subr.bf16.mxu0 %v10057_v44  ;;  %6941 = vmatprep.subr.bf16.mxu1 %v10060_v48 }
 0x2dc   :  { %6911 = vmatpush1.bf16.msra.mxu0 %v10066_v54  ;;  %6943 = vmatpush1.bf16.msra.mxu1 %v10070_v58 }
 0x2dd   :  { %6913 = vmatprep.subr.bf16.mxu0 %v10074_v62  ;;  %6945 = vmatprep.subr.bf16.mxu1 %v10077_v4 }
 0x2e0   :  { %6915 = vmatpush1.bf16.msra.mxu0 %v10083_v9  ;;  %6947 = vmatpush1.bf16.msra.mxu1 %v10087_v14 }
 0x2e1   :  { %6917 = vmatprep.subr.bf16.mxu0 %v10091_v18  ;;  %6949 = vmatprep.subr.bf16.mxu1 %v10094_v22 }
 0x2e4   :  { %6919 = vmatpush1.bf16.msra.mxu0 %v10100_v25  ;;  %6951 = vmatpush1.bf16.msra.mxu1 %v10104_v27 }
 0x2e5   :  { %6953 = vmatprep.subr.bf16.mxu0 %v9977_v38  ;;  %6985 = vmatprep.subr.bf16.mxu1 %v9979_v41 }
 0x39a   :  { %v950_v42 = vpop.f32.mrb[4].mxu0  ;;  %v1021_v5 = vpop.f32.mrb[4].mxu1 }
 0x39b   :  { %v8708_v7 = vadd.f32 %v950_v42, %v10160_v37  ;;  %v952_v8 = vpop.f32.mrb[5].mxu0  ;;  %v1023_v11 = vpop.f32.mrb[5].mxu1  ;;  %v8724_v24 = vadd.f32 %v1021_v5, %v10176_v2 }
 0x39c   :  { %v8709_v12 = vadd.f32 %v952_v8, %v10163_v39  ;;  %v8725_v20 = vadd.f32 %v1023_v11, %v10170_v59 }
 0x39d   :  { %v6501_v15 = vmul.f32 -1.442695, %v8708_v7 }
 0x39e   :  { %v6502_v17 = vmul.f32 -1.442695, %v8709_v12  ;;  %v6503_v21 = vmul.f32 -1.442695, %v8725_v20 }
 0x39f   :  { %8972 = vpow2.f32 %v6501_v15 }
 0x3a0   :  { %8974 = vpow2.f32 %v6502_v17 }
 0x3a1   :  { %8976 = vpow2.f32 %v6503_v21 }
 0x3a2   :  { %8978 = vtanh.f32 %v8724_v24 }
 0x3a9   :  { %v8973_v28 = vpop.eup %8972 }
 0x3aa   :  { %v8975_v30 = vpop.eup %8974  ;;  %v1033_v31 = vadd.f32 1.0, %v8973_v28 }
 0x3ab   :  { %v1039_v34 = vadd.f32 1.0, %v8975_v30  ;;  %v8977_v45 = vpop.eup %8976 }
 0x3ac   :  { %8980 = vrcp.f32 %v1033_v31  ;;  %v8979_v46 = vpop.eup %8978  ;;  %v1046_v42 = vadd.f32 1.0, %v8977_v45 }
 0x3ad   :  { %8982 = vrcp.f32 %v1039_v34 }
 0x3ae   :  { %8984 = vrcp.f32 %v1046_v42 }
 0x3b6   :  { %v8981_v51 = vpop.eup %8980 }
 0x3b7   :  { %v8983_v52 = vpop.eup %8982  ;;  %v1050_v57 = vmul.f32 %v8981_v51, %v8979_v46 }
 0x3b8   :  { %v1049_v7 = vmul.f32 %v8983_v52, %v10228_v55  ;;  %v8985_v5 = vpop.eup %8984 }
 0x3ba   :  { %v10274_v8 = vadd.f32 %v1050_v57, %v1049_v7 }
 0x3bc   :  { %8986 = vtanh.f32 %v10274_v8 }
 0x3c6   :  { %v8987_v11 = vpop.eup %8986 }
 0x3c7   :  { %v10277_v12 = vmul.f32 %v8987_v11, %v8985_v5 }
 0x3c9   :  { %1119 = vmatmul.mubr.f32.vlgmr.msra.gmra.mrb[6].mxu0 %v10277_v12  ;;  %1190 = vmatmul.mubr.f32.vlgmr.msra.gmra.mrb[6].mxu1 %v10277_v12 }
 0x3ca   :  { %6955 = vmatpush1.bf16.msra.mxu0 %v9984_v47  ;;  %6987 = vmatpush1.bf16.msra.mxu1 %v9987_v50 }
 0x3cb   :  { %6957 = vmatprep.subr.bf16.mxu0 %v9990_v53  ;;  %6989 = vmatprep.subr.bf16.mxu1 %v9992_v56 }
 0x3cc   :  { %1288 = vmatprep.mubr.f32.mxu0 %v9559_v0  ;;  %1359 = vmatprep.mubr.f32.mxu1 %v9559_v0 }
 0x3ce   :  { %6959 = vmatpush1.bf16.msra.mxu0 %v9998_v60  ;;  %6991 = vmatpush1.bf16.msra.mxu1 %v10002_v63 }
 0x3cf   :  { %6961 = vmatprep.subr.bf16.mxu0 %v10006_v3  ;;  %6993 = vmatprep.subr.bf16.mxu1 %v10009_v6 }
 0x3d2   :  { %6963 = vmatpush1.bf16.msra.mxu0 %v10015_v10  ;;  %6995 = vmatpush1.bf16.msra.mxu1 %v10019_v13 }
 0x3d3   :  { %6965 = vmatprep.subr.bf16.mxu0 %v10023_v16  ;;  %6997 = vmatprep.subr.bf16.mxu1 %v10026_v19 }
 0x3d6   :  { %6967 = vmatpush1.bf16.msra.mxu0 %v10032_v23  ;;  %6999 = vmatpush1.bf16.msra.mxu1 %v10036_v26 }
 0x3d7   :  { %6969 = vmatprep.subr.bf16.mxu0 %v10040_v29  ;;  %7001 = vmatprep.subr.bf16.mxu1 %v10043_v32 }
 0x3da   :  { %6971 = vmatpush1.bf16.msra.mxu0 %v10049_v36  ;;  %7003 = vmatpush1.bf16.msra.mxu1 %v10053_v40 }
 0x3db   :  { %6973 = vmatprep.subr.bf16.mxu0 %v10057_v44  ;;  %7005 = vmatprep.subr.bf16.mxu1 %v10060_v48 }
 0x3de   :  { %6975 = vmatpush1.bf16.msra.mxu0 %v10066_v54  ;;  %7007 = vmatpush1.bf16.msra.mxu1 %v10070_v58 }
 0x3df   :  { %6977 = vmatprep.subr.bf16.mxu0 %v10074_v62  ;;  %7009 = vmatprep.subr.bf16.mxu1 %v10077_v4 }
 0x3e2   :  { %6979 = vmatpush1.bf16.msra.mxu0 %v10083_v9  ;;  %7011 = vmatpush1.bf16.msra.mxu1 %v10087_v14 }
 0x3e3   :  { %6981 = vmatprep.subr.bf16.mxu0 %v10091_v18  ;;  %7013 = vmatprep.subr.bf16.mxu1 %v10094_v22 }
 0x3e6   :  { %6983 = vmatpush1.bf16.msra.mxu0 %v10100_v25  ;;  %7015 = vmatpush1.bf16.msra.mxu1 %v10104_v27 }
 0x3e7   :  { %7017 = vmatprep.subr.bf16.mxu0 %v9977_v38  ;;  %7049 = vmatprep.subr.bf16.mxu1 %v9979_v41 }
 0x49c   :  { %v1120_v55 = vpop.f32.mrb[6].mxu0  ;;  %v1191_v15 = vpop.f32.mrb[6].mxu1 }
 0x49d   :  { %v8710_v17 = vadd.f32 %v1120_v55, %v10160_v37  ;;  %v1122_v20 = vpop.f32.mrb[7].mxu0  ;;  %v1193_v21 = vpop.f32.mrb[7].mxu1  ;;  %v8726_v45 = vadd.f32 %v1191_v15, %v10176_v2 }
 0x49e   :  { %v8711_v24 = vadd.f32 %v1122_v20, %v10163_v39  ;;  %v8727_v31 = vadd.f32 %v1193_v21, %v10170_v59 }
 0x49f   :  { %v6504_v28 = vmul.f32 -1.442695, %v8710_v17 }
 0x4a0   :  { %v6505_v30 = vmul.f32 -1.442695, %v8711_v24  ;;  %v6506_v34 = vmul.f32 -1.442695, %v8727_v31 }
 0x4a1   :  { %8988 = vpow2.f32 %v6504_v28 }
 0x4a2   :  { %8990 = vpow2.f32 %v6505_v30 }
 0x4a3   :  { %8992 = vpow2.f32 %v6506_v34 }
 0x4a4   :  { %8994 = vtanh.f32 %v8726_v45 }
 0x4ab   :  { %v8989_v46 = vpop.eup %8988 }
 0x4ac   :  { %v8991_v51 = vpop.eup %8990  ;;  %v1203_v52 = vadd.f32 1.0, %v8989_v46 }
 0x4ad   :  { %v1209_v57 = vadd.f32 1.0, %v8991_v51  ;;  %v8993_v42 = vpop.eup %8992 }
 0x4ae   :  { %8996 = vrcp.f32 %v1203_v52  ;;  %v8995_v7 = vpop.eup %8994  ;;  %v1216_v17 = vadd.f32 1.0, %v8993_v42 }
 0x4af   :  { %8998 = vrcp.f32 %v1209_v57 }
 0x4b0   :  { %9000 = vrcp.f32 %v1216_v17 }
 0x4b8   :  { %v8997_v5 = vpop.eup %8996 }
 0x4b9   :  { %v8999_v11 = vpop.eup %8998  ;;  %v1220_v55 = vmul.f32 %v8997_v5, %v8995_v7 }
 0x4ba   :  { %v1219_v20 = vmul.f32 %v8999_v11, %v10274_v8  ;;  %v9001_v15 = vpop.eup %9000 }
 0x4bc   :  { %v10320_v21 = vadd.f32 %v1220_v55, %v1219_v20 }
 0x4be   :  { %9002 = vtanh.f32 %v10320_v21 }
 0x4c8   :  { %v9003_v24 = vpop.eup %9002 }
 0x4c9   :  { %v10323_v28 = vmul.f32 %v9003_v24, %v9001_v15 }
 0x4cb   :  { %1289 = vmatmul.mubr.f32.vlgmr.msra.gmra.mrb[8].mxu0 %v10323_v28  ;;  %1360 = vmatmul.mubr.f32.vlgmr.msra.gmra.mrb[8].mxu1 %v10323_v28 }
 0x4cc   :  { %7019 = vmatpush1.bf16.msra.mxu0 %v9984_v47  ;;  %7051 = vmatpush1.bf16.msra.mxu1 %v9987_v50 }
 0x4cd   :  { %7021 = vmatprep.subr.bf16.mxu0 %v9990_v53  ;;  %7053 = vmatprep.subr.bf16.mxu1 %v9992_v56 }
 0x4ce   :  { %1458 = vmatprep.mubr.f32.mxu0 %v9559_v0  ;;  %1529 = vmatprep.mubr.f32.mxu1 %v9559_v0 }
 0x4d0   :  { %7023 = vmatpush1.bf16.msra.mxu0 %v9998_v60  ;;  %7055 = vmatpush1.bf16.msra.mxu1 %v10002_v63 }
 0x4d1   :  { %7025 = vmatprep.subr.bf16.mxu0 %v10006_v3  ;;  %7057 = vmatprep.subr.bf16.mxu1 %v10009_v6 }
 0x4d4   :  { %7027 = vmatpush1.bf16.msra.mxu0 %v10015_v10  ;;  %7059 = vmatpush1.bf16.msra.mxu1 %v10019_v13 }
 0x4d5   :  { %7029 = vmatprep.subr.bf16.mxu0 %v10023_v16  ;;  %7061 = vmatprep.subr.bf16.mxu1 %v10026_v19 }
 0x4d8   :  { %7031 = vmatpush1.bf16.msra.mxu0 %v10032_v23  ;;  %7063 = vmatpush1.bf16.msra.mxu1 %v10036_v26 }
 0x4d9   :  { %7033 = vmatprep.subr.bf16.mxu0 %v10040_v29  ;;  %7065 = vmatprep.subr.bf16.mxu1 %v10043_v32 }
 0x4dc   :  { %7035 = vmatpush1.bf16.msra.mxu0 %v10049_v36  ;;  %7067 = vmatpush1.bf16.msra.mxu1 %v10053_v40 }
 0x4dd   :  { %7037 = vmatprep.subr.bf16.mxu0 %v10057_v44  ;;  %7069 = vmatprep.subr.bf16.mxu1 %v10060_v48 }
 0x4e0   :  { %7039 = vmatpush1.bf16.msra.mxu0 %v10066_v54  ;;  %7071 = vmatpush1.bf16.msra.mxu1 %v10070_v58 }
 0x4e1   :  { %7041 = vmatprep.subr.bf16.mxu0 %v10074_v62  ;;  %7073 = vmatprep.subr.bf16.mxu1 %v10077_v4 }
 0x4e4   :  { %7043 = vmatpush1.bf16.msra.mxu0 %v10083_v9  ;;  %7075 = vmatpush1.bf16.msra.mxu1 %v10087_v14 }
 0x4e5   :  { %7045 = vmatprep.subr.bf16.mxu0 %v10091_v18  ;;  %7077 = vmatprep.subr.bf16.mxu1 %v10094_v22 }
 0x4e8   :  { %7047 = vmatpush1.bf16.msra.mxu0 %v10100_v25  ;;  %7079 = vmatpush1.bf16.msra.mxu1 %v10104_v27 }
 0x4e9   :  { %7081 = vmatprep.subr.bf16.mxu0 %v9977_v38  ;;  %7113 = vmatprep.subr.bf16.mxu1 %v9979_v41 }
 0x59e   :  { %v1290_v8 = vpop.f32.mrb[8].mxu0  ;;  %v1361_v30 = vpop.f32.mrb[8].mxu1 }
 0x59f   :  { %v8712_v31 = vadd.f32 %v1290_v8, %v10160_v37  ;;  %v1292_v34 = vpop.f32.mrb[9].mxu0  ;;  %v1363_v45 = vpop.f32.mrb[9].mxu1  ;;  %v8728_v7 = vadd.f32 %v1361_v30, %v10176_v2 }
 0x5a0   :  { %v8713_v46 = vadd.f32 %v1292_v34, %v10163_v39  ;;  %v8729_v57 = vadd.f32 %v1363_v45, %v10170_v59 }
 0x5a1   :  { %v6507_v51 = vmul.f32 -1.442695, %v8712_v31 }
 0x5a2   :  { %v6508_v52 = vmul.f32 -1.442695, %v8713_v46  ;;  %v6509_v42 = vmul.f32 -1.442695, %v8729_v57 }
 0x5a3   :  { %9004 = vpow2.f32 %v6507_v51 }
 0x5a4   :  { %9006 = vpow2.f32 %v6508_v52 }
 0x5a5   :  { %9008 = vpow2.f32 %v6509_v42 }
 0x5a6   :  { %9010 = vtanh.f32 %v8728_v7 }
 0x5ad   :  { %v9005_v5 = vpop.eup %9004 }
 0x5ae   :  { %v9007_v11 = vpop.eup %9006  ;;  %v1373_v55 = vadd.f32 1.0, %v9005_v5 }
 0x5af   :  { %v1379_v17 = vadd.f32 1.0, %v9007_v11  ;;  %v9009_v20 = vpop.eup %9008 }
 0x5b0   :  { %9012 = vrcp.f32 %v1373_v55  ;;  %v9011_v15 = vpop.eup %9010  ;;  %v1386_v34 = vadd.f32 1.0, %v9009_v20 }
 0x5b1   :  { %9014 = vrcp.f32 %v1379_v17 }
 0x5b2   :  { %9016 = vrcp.f32 %v1386_v34 }
 0x5ba   :  { %v9013_v24 = vpop.eup %9012 }
 0x5bb   :  { %v9015_v8 = vpop.eup %9014  ;;  %v1390_v31 = vmul.f32 %v9013_v24, %v9011_v15 }
 0x5bc   :  { %v1389_v46 = vmul.f32 %v9015_v8, %v10320_v21  ;;  %v9017_v30 = vpop.eup %9016 }
 0x5be   :  { %v10366_v45 = vadd.f32 %v1390_v31, %v1389_v46 }
 0x5c0   :  { %9018 = vtanh.f32 %v10366_v45 }
 0x5ca   :  { %v9019_v51 = vpop.eup %9018 }
 0x5cb   :  { %v10369_v52 = vmul.f32 %v9019_v51, %v9017_v30 }
 0x5cd   :  { %1459 = vmatmul.mubr.f32.vlgmr.msra.gmra.mrb[10].mxu0 %v10369_v52  ;;  %1530 = vmatmul.mubr.f32.vlgmr.msra.gmra.mrb[10].mxu1 %v10369_v52 }
 0x5ce   :  { %7083 = vmatpush1.bf16.msra.mxu0 %v9984_v47  ;;  %7115 = vmatpush1.bf16.msra.mxu1 %v9987_v50 }
 0x5cf   :  { %7085 = vmatprep.subr.bf16.mxu0 %v9990_v53  ;;  %7117 = vmatprep.subr.bf16.mxu1 %v9992_v56 }
 0x5d0   :  { %1628 = vmatprep.mubr.f32.mxu0 %v9559_v0  ;;  %1699 = vmatprep.mubr.f32.mxu1 %v9559_v0 }
 0x5d2   :  { %7087 = vmatpush1.bf16.msra.mxu0 %v9998_v60  ;;  %7119 = vmatpush1.bf16.msra.mxu1 %v10002_v63 }
 0x5d3   :  { %7089 = vmatprep.subr.bf16.mxu0 %v10006_v3  ;;  %7121 = vmatprep.subr.bf16.mxu1 %v10009_v6 }
 0x5d6   :  { %7091 = vmatpush1.bf16.msra.mxu0 %v10015_v10  ;;  %7123 = vmatpush1.bf16.msra.mxu1 %v10019_v13 }
 0x5d7   :  { %7093 = vmatprep.subr.bf16.mxu0 %v10023_v16  ;;  %7125 = vmatprep.subr.bf16.mxu1 %v10026_v19 }
 0x5da   :  { %7095 = vmatpush1.bf16.msra.mxu0 %v10032_v23  ;;  %7127 = vmatpush1.bf16.msra.mxu1 %v10036_v26 }
 0x5db   :  { %7097 = vmatprep.subr.bf16.mxu0 %v10040_v29  ;;  %7129 = vmatprep.subr.bf16.mxu1 %v10043_v32 }
 0x5de   :  { %7099 = vmatpush1.bf16.msra.mxu0 %v10049_v36  ;;  %7131 = vmatpush1.bf16.msra.mxu1 %v10053_v40 }
 0x5df   :  { %7101 = vmatprep.subr.bf16.mxu0 %v10057_v44  ;;  %7133 = vmatprep.subr.bf16.mxu1 %v10060_v48 }
 0x5e2   :  { %7103 = vmatpush1.bf16.msra.mxu0 %v10066_v54  ;;  %7135 = vmatpush1.bf16.msra.mxu1 %v10070_v58 }
 0x5e3   :  { %7105 = vmatprep.subr.bf16.mxu0 %v10074_v62  ;;  %7137 = vmatprep.subr.bf16.mxu1 %v10077_v4 }
 0x5e6   :  { %7107 = vmatpush1.bf16.msra.mxu0 %v10083_v9  ;;  %7139 = vmatpush1.bf16.msra.mxu1 %v10087_v14 }
 0x5e7   :  { %7109 = vmatprep.subr.bf16.mxu0 %v10091_v18  ;;  %7141 = vmatprep.subr.bf16.mxu1 %v10094_v22 }
 0x5ea   :  { %7111 = vmatpush1.bf16.msra.mxu0 %v10100_v25  ;;  %7143 = vmatpush1.bf16.msra.mxu1 %v10104_v27 }
 0x5eb   :  { %7145 = vmatprep.subr.bf16.mxu0 %v9977_v38  ;;  %7177 = vmatprep.subr.bf16.mxu1 %v9979_v41 }
 0x6a0   :  { %v1460_v21 = vpop.f32.mrb[10].mxu0  ;;  %v1531_v57 = vpop.f32.mrb[10].mxu1 }
 0x6a1   :  { %v8714_v42 = vadd.f32 %v1460_v21, %v10160_v37  ;;  %v1462_v7 = vpop.f32.mrb[11].mxu0  ;;  %v1533_v5 = vpop.f32.mrb[11].mxu1  ;;  %v8730_v24 = vadd.f32 %v1531_v57, %v10176_v2 }
 0x6a2   :  { %v8715_v11 = vadd.f32 %v1462_v7, %v10163_v39  ;;  %v8731_v20 = vadd.f32 %v1533_v5, %v10170_v59 }
 0x6a3   :  { %v6510_v55 = vmul.f32 -1.442695, %v8714_v42 }
 0x6a4   :  { %v6511_v17 = vmul.f32 -1.442695, %v8715_v11  ;;  %v6512_v15 = vmul.f32 -1.442695, %v8731_v20  ;;  %v1910_v20 = vld [vmem:[#allocation4 + $0x30] sm:$0xff] }
 0x6a5   :  { %9020 = vpow2.f32 %v6510_v55 }
 0x6a6   :  { %9022 = vpow2.f32 %v6511_v17  ;;  %v1906_v17 = vld [vmem:[#allocation4 + $0x10] sm:$0xff] }
 0x6a7   :  { %9024 = vpow2.f32 %v6512_v15  ;;  %v1913_v15 = vld [vmem:[#allocation4 + $0x48] sm:$0xff] }
 0x6a8   :  { %9026 = vtanh.f32 %v8730_v24  ;;  %v1917_v24 = vld [vmem:[#allocation4 + $0x68] sm:$0xff] }
 0x6af   :  { %v9021_v38 = vpop.eup %9020 }
 0x6b0   :  { %v9023_v8 = vpop.eup %9022  ;;  %v1543_v41 = vadd.f32 1.0, %v9021_v38  ;;  %v1915_v38 = vld [vmem:[#allocation4 + $0x58] sm:$0xff] }
 0x6b1   :  { %v1549_v31 = vadd.f32 1.0, %v9023_v8  ;;  %v9025_v34 = vpop.eup %9024  ;;  %v1919_v8 = vld [vmem:[#allocation4 + $0x78] sm:$0xff] }
 0x6b2   :  { %9028 = vrcp.f32 %v1543_v41  ;;  %v9027_v46 = vpop.eup %9026  ;;  %v1556_v42 = vadd.f32 1.0, %v9025_v34 }
 0x6b3   :  { %9030 = vrcp.f32 %v1549_v31 }
 0x6b4   :  { %9032 = vrcp.f32 %v1556_v42  ;;  %v7212_v42 = vpack.c.bf16 %v1917_v24, %v1913_v15  ;;  %v1938_v24 = vld [vmem:[#allocation4 + $0x110] sm:$0xff] }
 0x6bc   :  { %v9029_v30 = vpop.eup %9028 }
 0x6bd   :  { %v9031_v51 = vpop.eup %9030  ;;  %v1560_v21 = vmul.f32 %v9029_v30, %v9027_v46  ;;  %v7242_v46 = vpack.c.bf16 %v1910_v20, %v1906_v17  ;;  %v1912_v30 = vld [vmem:[#allocation4 + $0x40] sm:$0xff] }
 0x6be   :  { %v1559_v7 = vmul.f32 %v9031_v51, %v10366_v45  ;;  %v9033_v57 = vpop.eup %9032  ;;  %v1908_v45 = vld [vmem:[#allocation4 + $0x20] sm:$0xff] }
 0x6bf   :  { %v1916_v51 = vld [vmem:[#allocation4 + $0x60] sm:$0xff] }
 0x6c0   :  { %v10412_v5 = vadd.f32 %v1560_v21, %v1559_v7  ;;  %v7244_v7 = vpack.c.bf16 %v1919_v8, %v1915_v38  ;;  %v1940_v17 = vld [vmem:[#allocation4 + $0x120] sm:$0xff]  ;;  %v1942_v38 = vld [vmem:[#allocation4 + $0x130] sm:$0xff]  ;;  %v1945_v8 = vld [vmem:[#allocation4 + $0x148] sm:$0xff] }
 0x6c2   :  { %9034 = vtanh.f32 %v10412_v5 }
 0x6cc   :  { %v9035_v11 = vpop.eup %9034 }
 0x6cd   :  { %v10415_v55 = vmul.f32 %v9035_v11, %v9033_v57  ;;  %v1918_v57 = vld [vmem:[#allocation4 + $0x70] sm:$0xff]  ;;  %v1921_v11 = vld [vmem:[#allocation4 + $0x88] sm:$0xff] }
 0x6cf   :  { %1629 = vmatmul.mubr.f32.vlgmr.msra.gmra.mrb[12].mxu0 %v10415_v55  ;;  %1700 = vmatmul.mubr.f32.vlgmr.msra.gmra.mrb[12].mxu1 %v10415_v55 }
 0x6d0   :  { %7147 = vmatpush1.bf16.msra.mxu0 %v9984_v47  ;;  %7179 = vmatpush1.bf16.msra.mxu1 %v9987_v50  ;;  %v1905_v47 = vld [vmem:[#allocation4 + $0x8] sm:$0xff] }
 0x6d1   :  { %7149 = vmatprep.subr.bf16.mxu0 %v9990_v53  ;;  %7181 = vmatprep.subr.bf16.mxu1 %v9992_v56  ;;  %v1909_v50 = vld [vmem:[#allocation4 + $0x28] sm:$0xff]  ;;  %v1907_v53 = vld [vmem:[#allocation4 + $0x18] sm:$0xff] }
 0x6d2   :  { %1798 = vmatprep.mubr.f32.mxu0 %v9559_v0  ;;  %1869 = vmatprep.mubr.f32.mxu1 %v9559_v0  ;;  %v7208_v56 = vpack.c.bf16 %v1909_v50, %v1905_v47  ;;  %v1925_v47 = vld [vmem:[#allocation4 + $0xa8] sm:$0xff]  ;;  %v1923_v50 = vld [vmem:[#allocation4 + $0x98] sm:$0xff] }
 0x6d4   :  { %7151 = vmatpush1.bf16.msra.mxu0 %v9998_v60  ;;  %7183 = vmatpush1.bf16.msra.mxu1 %v10002_v63  ;;  %v1911_v60 = vld [vmem:[#allocation4 + $0x38] sm:$0xff] }
 0x6d5   :  { %7153 = vmatprep.subr.bf16.mxu0 %v10006_v3  ;;  %7185 = vmatprep.subr.bf16.mxu1 %v10009_v6  ;;  %v7240_v63 = vpack.c.bf16 %v1911_v60, %v1907_v53  ;;  %v1927_v53 = vld [vmem:[#allocation4 + $0xb8] sm:$0xff] }
 0x6d8   :  { %7155 = vmatpush1.bf16.msra.mxu0 %v10015_v10  ;;  %7187 = vmatpush1.bf16.msra.mxu1 %v10019_v13 }
 0x6d9   :  { %7157 = vmatprep.subr.bf16.mxu0 %v10023_v16  ;;  %7189 = vmatprep.subr.bf16.mxu1 %v10026_v19 }
 0x6dc   :  { %7159 = vmatpush1.bf16.msra.mxu0 %v10032_v23  ;;  %7191 = vmatpush1.bf16.msra.mxu1 %v10036_v26 }
 0x6dd   :  { %7161 = vmatprep.subr.bf16.mxu0 %v10040_v29  ;;  %7193 = vmatprep.subr.bf16.mxu1 %v10043_v32 }
 0x6e0   :  { %7163 = vmatpush1.bf16.msra.mxu0 %v10049_v36  ;;  %7195 = vmatpush1.bf16.msra.mxu1 %v10053_v40 }
 0x6e1   :  { %7165 = vmatprep.subr.bf16.mxu0 %v10057_v44  ;;  %7197 = vmatprep.subr.bf16.mxu1 %v10060_v48 }
 0x6e4   :  { %7167 = vmatpush1.bf16.msra.mxu0 %v10066_v54  ;;  %7199 = vmatpush1.bf16.msra.mxu1 %v10070_v58 }
 0x6e5   :  { %7169 = vmatprep.subr.bf16.mxu0 %v10074_v62  ;;  %7201 = vmatprep.subr.bf16.mxu1 %v10077_v4 }
 0x6e8   :  { %7171 = vmatpush1.bf16.msra.mxu0 %v10083_v9  ;;  %7203 = vmatpush1.bf16.msra.mxu1 %v10087_v14 }
 0x6e9   :  { %7173 = vmatprep.subr.bf16.mxu0 %v10091_v18  ;;  %7205 = vmatprep.subr.bf16.mxu1 %v10094_v22 }
 0x6ec   :  { %7175 = vmatpush1.bf16.msra.mxu0 %v10100_v25  ;;  %7207 = vmatpush1.bf16.msra.mxu1 %v10104_v27  ;;  %v1904_v27 = vld [vmem:[#allocation4] sm:$0xff] }
 0x6ed   :  { %7209 = vmatprep.subr.bf16.mxu0 %v7208_v56  ;;  %7241 = vmatprep.subr.bf16.mxu1 %v7240_v63  ;;  %v7210_v34 = vpack.c.bf16 %v1908_v45, %v1904_v27  ;;  %v7214_v56 = vpack.c.bf16 %v1916_v51, %v1912_v30  ;;  %v1920_v63 = vld [vmem:[#allocation4 + $0x80] sm:$0xff]  ;;  %v7258_v30 = vpack.c.bf16 %v1942_v38, %v1938_v24  ;;  %v1979_v24 = vld [vmem:[#allocation6 + $0x58] sm:$0xff] }
 0x6ee   :  { %v1936_v45 = vld [vmem:[#allocation4 + $0x100] sm:$0xff] }
 0x6ef   :  { %v1944_v51 = vld [vmem:[#allocation4 + $0x140] sm:$0xff] }
 0x7a2   :  { %v1630_v3 = vpop.f32.mrb[12].mxu0  ;;  %v1701_v6 = vpop.f32.mrb[12].mxu1 }
 0x7a3   :  { %v8716_v10 = vadd.f32 %v1630_v3, %v10160_v37  ;;  %v1632_v13 = vpop.f32.mrb[13].mxu0  ;;  %v1703_v16 = vpop.f32.mrb[13].mxu1  ;;  %v8732_v36 = vadd.f32 %v1701_v6, %v10176_v2  ;;  %v1924_v3 = vld [vmem:[#allocation4 + $0xa0] sm:$0xff]  ;;  %v7216_v6 = vpack.c.bf16 %v1925_v47, %v1921_v11  ;;  %v1950_v11 = vld [vmem:[#allocation4 + $0x170] sm:$0xff]  ;;  %v1953_v47 = vld [vmem:[#allocation4 + $0x188] sm:$0xff] }
 0x7a4   :  { %v8717_v19 = vadd.f32 %v1632_v13, %v10163_v39  ;;  %v8733_v29 = vadd.f32 %v1703_v16, %v10170_v59  ;;  %v1922_v13 = vld [vmem:[#allocation4 + $0x90] sm:$0xff] }
 0x7a5   :  { %v6513_v23 = vmul.f32 -1.442695, %v8716_v10  ;;  %v7248_v10 = vpack.c.bf16 %v1927_v53, %v1923_v50  ;;  %v1926_v16 = vld [vmem:[#allocation4 + $0xb0] sm:$0xff]  ;;  %v1957_v50 = vld [vmem:[#allocation4 + $0x1a8] sm:$0xff]  ;;  %v1955_v53 = vld [vmem:[#allocation4 + $0x198] sm:$0xff] }
 0x7a6   :  { %v6514_v26 = vmul.f32 -1.442695, %v8717_v19  ;;  %v6515_v32 = vmul.f32 -1.442695, %v8733_v29  ;;  %v1929_v19 = vld [vmem:[#allocation4 + $0xc8] sm:$0xff]  ;;  %v1935_v29 = vld [vmem:[#allocation4 + $0xf8] sm:$0xff] }
 0x7a7   :  { %9036 = vpow2.f32 %v6513_v23  ;;  %v1933_v23 = vld [vmem:[#allocation4 + $0xe8] sm:$0xff] }
 0x7a8   :  { %9038 = vpow2.f32 %v6514_v26  ;;  %v1931_v26 = vld [vmem:[#allocation4 + $0xd8] sm:$0xff] }
 0x7a9   :  { %9040 = vpow2.f32 %v6515_v32  ;;  %v7218_v32 = vpack.c.bf16 %v1924_v3, %v1920_v63  ;;  %v1952_v3 = vld [vmem:[#allocation4 + $0x180] sm:$0xff] }
 0x7aa   :  { %9042 = vtanh.f32 %v8732_v36  ;;  %v7250_v36 = vpack.c.bf16 %v1926_v16, %v1922_v13  ;;  %v1954_v16 = vld [vmem:[#allocation4 + $0x190] sm:$0xff] }
 0x7b1   :  { %v9037_v40 = vpop.eup %9036 }
 0x7b2   :  { %v9039_v44 = vpop.eup %9038  ;;  %v1713_v48 = vadd.f32 1.0, %v9037_v40  ;;  %v1928_v40 = vld [vmem:[#allocation4 + $0xc0] sm:$0xff] }
 0x7b3   :  { %v1719_v54 = vadd.f32 1.0, %v9039_v44  ;;  %v9041_v58 = vpop.eup %9040  ;;  %v1932_v44 = vld [vmem:[#allocation4 + $0xe0] sm:$0xff] }
 0x7b4   :  { %9044 = vrcp.f32 %v1713_v48  ;;  %v9043_v62 = vpop.eup %9042  ;;  %v1726_v18 = vadd.f32 1.0, %v9041_v58  ;;  %v7220_v48 = vpack.c.bf16 %v1933_v23, %v1929_v19  ;;  %v1930_v58 = vld [vmem:[#allocation4 + $0xd0] sm:$0xff]  ;;  %v1961_v23 = vld [vmem:[#allocation4 + $0x1c8] sm:$0xff] }
 0x7b5   :  { %9046 = vrcp.f32 %v1719_v54  ;;  %v7252_v54 = vpack.c.bf16 %v1935_v29, %v1931_v26  ;;  %v1958_v19 = vld [vmem:[#allocation4 + $0x1b0] sm:$0xff]  ;;  %v1965_v26 = vld [vmem:[#allocation4 + $0x1e8] sm:$0xff]  ;;  %v1963_v29 = vld [vmem:[#allocation4 + $0x1d8] sm:$0xff] }
 0x7b6   :  { %9048 = vrcp.f32 %v1726_v18  ;;  %v1943_v18 = vld [vmem:[#allocation4 + $0x138] sm:$0xff] }
 0x7be   :  { %v9045_v4 = vpop.eup %9044 }
 0x7bf   :  { %v9047_v9 = vpop.eup %9046  ;;  %v1730_v14 = vmul.f32 %v9045_v4, %v9043_v62  ;;  %v1934_v62 = vld [vmem:[#allocation4 + $0xf0] sm:$0xff]  ;;  %v1937_v4 = vld [vmem:[#allocation4 + $0x108] sm:$0xff] }
 0x7c0   :  { %v1729_v22 = vmul.f32 %v9047_v9, %v10412_v5  ;;  %v9049_v41 = vpop.eup %9048  ;;  %v1914_v5 = vld [vmem:[#allocation4 + $0x50] sm:$0xff]  ;;  %v1941_v9 = vld [vmem:[#allocation4 + $0x128] sm:$0xff]  ;;  %v7254_v27 = vpack.c.bf16 %v1934_v62, %v1930_v58  ;;  %v1964_v58 = vld [vmem:[#allocation4 + $0x1e0] sm:$0xff] }
 0x7c1   :  { %v7246_v60 = vpack.c.bf16 %v1918_v57, %v1914_v5  ;;  %v7224_v20 = vpack.c.bf16 %v1941_v9, %v1937_v4  ;;  %v1946_v57 = vld [vmem:[#allocation4 + $0x150] sm:$0xff] }
 0x7c2   :  { %v10456_v25 = vadd.f32 %v1730_v14, %v1729_v22  ;;  %v1939_v14 = vld [vmem:[#allocation4 + $0x118] sm:$0xff]  ;;  %v7222_v22 = vpack.c.bf16 %v1932_v44, %v1928_v40  ;;  %v7262_v63 = vpack.c.bf16 %v1950_v11, %v1946_v57  ;;  %v7266_v40 = vpack.c.bf16 %v1958_v19, %v1954_v16  ;;  %v1960_v44 = vld [vmem:[#allocation4 + $0x1c0] sm:$0xff]  ;;  %v1962_v62 = vld [vmem:[#allocation4 + $0x1d0] sm:$0xff] }
 0x7c3   :  { %v7256_v15 = vpack.c.bf16 %v1943_v18, %v1939_v14  ;;  %v1966_v4 = vld [vmem:[#allocation4 + $0x1f0] sm:$0xff]  ;;  %v7238_v9 = vpack.c.bf16 %v1964_v58, %v1960_v44  ;;  %v1968_v18 = vld [vmem:[#allocation6] sm:$0xff]  ;;  %v1987_v57 = vld [vmem:[#allocation6 + $0x98] sm:$0xff] }
 0x7c4   :  { %9050 = vtanh.f32 %v10456_v25  ;;  %v7270_v14 = vpack.c.bf16 %v1966_v4, %v1962_v62  ;;  %v1995_v16 = vld [vmem:[#allocation6 + $0xd8] sm:$0xff]  ;;  %v1998_v44 = vld [vmem:[#allocation6 + $0xf0] sm:$0xff]  ;;  %v2005_v58 = vld [vmem:[#allocation6 + $0x128] sm:$0xff] }
 0x7c5   :  { %v2003_v62 = vld [vmem:[#allocation6 + $0x118] sm:$0xff] }
 0x7ce   :  { %v9051_v31 = vpop.eup %9050 }
 0x7cf   :  { %v10459_v21 = vmul.f32 %v9051_v31, %v9049_v41  ;;  %v1949_v41 = vld [vmem:[#allocation4 + $0x168] sm:$0xff]  ;;  %v1947_v31 = vld [vmem:[#allocation4 + $0x158] sm:$0xff] }
 0x7d1   :  { %1799 = vmatmul.mubr.f32.vlgmr.msra.gmra.mrb[14].mxu0 %v10459_v21  ;;  %1870 = vmatmul.mubr.f32.vlgmr.msra.gmra.mrb[14].mxu1 %v10459_v21 }
 0x7d2   :  { %7211 = vmatpush1.bf16.msra.mxu0 %v7210_v34  ;;  %7243 = vmatpush1.bf16.msra.mxu1 %v7242_v46  ;;  %v1951_v34 = vld [vmem:[#allocation4 + $0x178] sm:$0xff]  ;;  %v7226_v46 = vpack.c.bf16 %v1940_v17, %v1936_v45  ;;  %v1970_v45 = vld [vmem:[#allocation6 + $0x10] sm:$0xff] }
 0x7d3   :  { %7213 = vmatprep.subr.bf16.mxu0 %v7212_v42  ;;  %7245 = vmatprep.subr.bf16.mxu1 %v7244_v7  ;;  %v1948_v42 = vld [vmem:[#allocation4 + $0x160] sm:$0xff]  ;;  %v7228_v7 = vpack.c.bf16 %v1949_v41, %v1945_v8  ;;  %v7260_v5 = vpack.c.bf16 %v1951_v34, %v1947_v31  ;;  %v1974_v17 = vld [vmem:[#allocation6 + $0x30] sm:$0xff]  ;;  %v1983_v8 = vld [vmem:[#allocation6 + $0x78] sm:$0xff] }
 0x7d4   :  { %2118 = vmatprep.mubr.f32.mxu0 %v9559_v0  ;;  %2231 = vmatprep.mubr.f32.mxu1 %v9559_v0  ;;  %v1976_v41 = vld [vmem:[#allocation6 + $0x40] sm:$0xff]  ;;  %v10507_v34 = vpack.c.bf16 %v1983_v8, %v1979_v24 }
 0x7d5   :  { %v1980_v31 = vld [vmem:[#allocation6 + $0x60] sm:$0xff] }
 0x7d6   :  { %7215 = vmatpush1.bf16.msra.mxu0 %v7214_v56  ;;  %7247 = vmatpush1.bf16.msra.mxu1 %v7246_v60  ;;  %v1959_v56 = vld [vmem:[#allocation4 + $0x1b8] sm:$0xff]  ;;  %v7230_v60 = vpack.c.bf16 %v1948_v42, %v1944_v51  ;;  %v1982_v51 = vld [vmem:[#allocation6 + $0x70] sm:$0xff] }
 0x7d7   :  { %7217 = vmatprep.subr.bf16.mxu0 %v7216_v6  ;;  %7249 = vmatprep.subr.bf16.mxu1 %v7248_v10  ;;  %v1956_v6 = vld [vmem:[#allocation4 + $0x1a0] sm:$0xff]  ;;  %v7232_v10 = vpack.c.bf16 %v1957_v50, %v1953_v47  ;;  %v7264_v13 = vpack.c.bf16 %v1959_v56, %v1955_v53  ;;  %v1991_v47 = vld [vmem:[#allocation6 + $0xb8] sm:$0xff] }
 0x7d8   :  { %v1984_v50 = vld [vmem:[#allocation6 + $0x80] sm:$0xff]  ;;  %v10519_v56 = vpack.c.bf16 %v1991_v47, %v1987_v57  ;;  %v2021_v57 = vld [vmem:[#allocation6 + $0x1a8] sm:$0xff] }
 0x7d9   :  { %v1988_v53 = vld [vmem:[#allocation6 + $0xa0] sm:$0xff] }
 0x7da   :  { %7219 = vmatpush1.bf16.msra.mxu0 %v7218_v32  ;;  %7251 = vmatpush1.bf16.msra.mxu1 %v7250_v36  ;;  %v1967_v32 = vld [vmem:[#allocation4 + $0x1f8] sm:$0xff]  ;;  %v7234_v36 = vpack.c.bf16 %v1956_v6, %v1952_v3  ;;  %v1990_v3 = vld [vmem:[#allocation6 + $0xb0] sm:$0xff] }
 0x7db   :  { %7221 = vmatprep.subr.bf16.mxu0 %v7220_v48  ;;  %7253 = vmatprep.subr.bf16.mxu1 %v7252_v54  ;;  %v7236_v48 = vpack.c.bf16 %v1965_v26, %v1961_v23  ;;  %v7268_v54 = vpack.c.bf16 %v1967_v32, %v1963_v29  ;;  %v1999_v23 = vld [vmem:[#allocation6 + $0xf8] sm:$0xff]  ;;  %v1992_v26 = vld [vmem:[#allocation6 + $0xc0] sm:$0xff] }
 0x7dc   :  { %v1996_v29 = vld [vmem:[#allocation6 + $0xe0] sm:$0xff]  ;;  %v10531_v32 = vpack.c.bf16 %v1999_v23, %v1995_v16  ;;  %v2018_v16 = vld [vmem:[#allocation6 + $0x190] sm:$0xff] }
 0x7dd   :  { %v2022_v23 = vld [vmem:[#allocation6 + $0x1b0] sm:$0xff] }
 0x7de   :  { %7223 = vmatpush1.bf16.msra.mxu0 %v7222_v22  ;;  %7255 = vmatpush1.bf16.msra.mxu1 %v7254_v27 }
 0x7df   :  { %7225 = vmatprep.subr.bf16.mxu0 %v7224_v20  ;;  %7257 = vmatprep.subr.bf16.mxu1 %v7256_v15  ;;  %v1977_v20 = vld [vmem:[#allocation6 + $0x48] sm:$0xff] }
 0x7e0   :  { %v1981_v15 = vld [vmem:[#allocation6 + $0x68] sm:$0xff] }
 0x7e1   :  { %v10505_v38 = vpack.c.bf16 %v1981_v15, %v1977_v20  ;;  %v2011_v20 = vld [vmem:[#allocation6 + $0x158] sm:$0xff] }
 0x7e2   :  { %7227 = vmatpush1.bf16.msra.mxu0 %v7226_v46  ;;  %7259 = vmatpush1.bf16.msra.mxu1 %v7258_v30  ;;  %v10509_v46 = vpack.c.bf16 %v1980_v31, %v1976_v41  ;;  %v1978_v30 = vld [vmem:[#allocation6 + $0x50] sm:$0xff]  ;;  %v2015_v15 = vld [vmem:[#allocation6 + $0x178] sm:$0xff]  ;;  %v2008_v41 = vld [vmem:[#allocation6 + $0x140] sm:$0xff] }
 0x7e3   :  { %7229 = vmatprep.subr.bf16.mxu0 %v7228_v7  ;;  %7261 = vmatprep.subr.bf16.mxu1 %v7260_v5  ;;  %v10512_v42 = vpack.c.bf16 %v1982_v51, %v1978_v30  ;;  %v1985_v7 = vld [vmem:[#allocation6 + $0x88] sm:$0xff]  ;;  %v10553_v8 = vpack.c.bf16 %v2015_v15, %v2011_v20  ;;  %v2012_v31 = vld [vmem:[#allocation6 + $0x160] sm:$0xff]  ;;  %v2010_v30 = vld [vmem:[#allocation6 + $0x150] sm:$0xff] }
 0x7e4   :  { %v1989_v5 = vld [vmem:[#allocation6 + $0xa8] sm:$0xff]  ;;  %v10556_v51 = vpack.c.bf16 %v2012_v31, %v2008_v41 }
 0x7e5   :  { %v10517_v11 = vpack.c.bf16 %v1989_v5, %v1985_v7  ;;  %v2014_v7 = vld [vmem:[#allocation6 + $0x170] sm:$0xff]  ;;  %v2017_v5 = vld [vmem:[#allocation6 + $0x188] sm:$0xff] }
 0x7e6   :  { %7231 = vmatpush1.bf16.msra.mxu0 %v7230_v60  ;;  %7263 = vmatpush1.bf16.msra.mxu1 %v7262_v63  ;;  %v10521_v60 = vpack.c.bf16 %v1988_v53, %v1984_v50  ;;  %v1986_v63 = vld [vmem:[#allocation6 + $0x90] sm:$0xff]  ;;  %v10560_v47 = vpack.c.bf16 %v2014_v7, %v2010_v30  ;;  %v10562_v50 = vpack.c.bf16 %v2021_v57, %v2017_v5  ;;  %v2019_v53 = vld [vmem:[#allocation6 + $0x198] sm:$0xff] }
 0x7e7   :  { %7233 = vmatprep.subr.bf16.mxu0 %v7232_v10  ;;  %7265 = vmatprep.subr.bf16.mxu1 %v7264_v13  ;;  %v10524_v6 = vpack.c.bf16 %v1990_v3, %v1986_v63  ;;  %v1993_v10 = vld [vmem:[#allocation6 + $0xc8] sm:$0xff]  ;;  %v2023_v63 = vld [vmem:[#allocation6 + $0x1b8] sm:$0xff]  ;;  %v2016_v3 = vld [vmem:[#allocation6 + $0x180] sm:$0xff] }
 0x7e8   :  { %v1997_v13 = vld [vmem:[#allocation6 + $0xe8] sm:$0xff] }
 0x7e9   :  { %v10529_v19 = vpack.c.bf16 %v1997_v13, %v1993_v10  ;;  %v10565_v10 = vpack.c.bf16 %v2023_v63, %v2019_v53  ;;  %v2020_v13 = vld [vmem:[#allocation6 + $0x1a0] sm:$0xff] }
 0x7ea   :  { %7235 = vmatpush1.bf16.msra.mxu0 %v7234_v36  ;;  %7267 = vmatpush1.bf16.msra.mxu1 %v7266_v40  ;;  %v10533_v36 = vpack.c.bf16 %v1996_v29, %v1992_v26  ;;  %v1994_v40 = vld [vmem:[#allocation6 + $0xd0] sm:$0xff]  ;;  %v10568_v26 = vpack.c.bf16 %v2020_v13, %v2016_v3  ;;  %v10572_v29 = vpack.c.bf16 %v2022_v23, %v2018_v16 }
 0x7eb   :  { %7237 = vmatprep.subr.bf16.mxu0 %v7236_v48  ;;  %7269 = vmatprep.subr.bf16.mxu1 %v7268_v54  ;;  %v10536_v48 = vpack.c.bf16 %v1998_v44, %v1994_v40  ;;  %v2001_v54 = vld [vmem:[#allocation6 + $0x108] sm:$0xff] }
 0x7ec   :  { %v10540_v4 = vpack.c.bf16 %v2005_v58, %v2001_v54  ;;  %v2025_v40 = vld [vmem:[#allocation6 + $0x1c8] sm:$0xff]  ;;  %v2027_v54 = vld [vmem:[#allocation6 + $0x1d8] sm:$0xff] }
 0x7ed   :  { %v2029_v44 = vld [vmem:[#allocation6 + $0x1e8] sm:$0xff] }
 0x7ee   :  { %7239 = vmatpush1.bf16.msra.mxu0 %v7238_v9  ;;  %7271 = vmatpush1.bf16.msra.mxu1 %v7270_v14  ;;  %v2007_v9 = vld [vmem:[#allocation6 + $0x138] sm:$0xff]  ;;  %v2000_v14 = vld [vmem:[#allocation6 + $0x100] sm:$0xff]  ;;  %v10577_v58 = vpack.c.bf16 %v2029_v44, %v2025_v40 }
 0x7f1   :  { %2119 = vmatmul.mubr.f32.vlgmr.msra.gmra.mrb[16].mxu0 %v10185_v49  ;;  %2232 = vmatmul.mubr.f32.vlgmr.msra.gmra.mrb[16].mxu1 %v10185_v49  ;;  %v1969_v49 = vld [vmem:[#allocation6 + $0x8] sm:$0xff] }
 0x7f2   :  { %2124 = vmatprep.mubr.f32.mxu0 %v9559_v0  ;;  %2237 = vmatprep.mubr.f32.mxu1 %v9559_v0 }
 0x7f5   :  { %2125 = vmatmul.mubr.f32.gmra.mrb[18].mxu0 %v10231_v1  ;;  %2238 = vmatmul.mubr.f32.gmra.mrb[18].mxu1 %v10231_v1  ;;  %v1973_v1 = vld [vmem:[#allocation6 + $0x28] sm:$0xff] }
 0x7f6   :  { %2130 = vmatprep.mubr.f32.mxu0 %v9559_v0  ;;  %2243 = vmatprep.mubr.f32.mxu1 %v9559_v0 }
 0x7f9   :  { %2131 = vmatmul.mubr.f32.gmra.mrb[20].mxu0 %v10277_v12  ;;  %2244 = vmatmul.mubr.f32.gmra.mrb[20].mxu1 %v10277_v12  ;;  %v1971_v12 = vld [vmem:[#allocation6 + $0x18] sm:$0xff] }
 0x7fa   :  { %2136 = vmatprep.mubr.f32.mxu0 %v9559_v0  ;;  %2249 = vmatprep.mubr.f32.mxu1 %v9559_v0 }
 0x7fd   :  { %2137 = vmatmul.mubr.f32.gmra.mrb[22].mxu0 %v10323_v28  ;;  %2250 = vmatmul.mubr.f32.gmra.mrb[22].mxu1 %v10323_v28  ;;  %v10493_v28 = vpack.c.bf16 %v1973_v1, %v1969_v49  ;;  %v2004_v49 = vld [vmem:[#allocation6 + $0x120] sm:$0xff]  ;;  %v10543_v1 = vpack.c.bf16 %v2007_v9, %v2003_v62  ;;  %v2031_v62 = vld [vmem:[#allocation6 + $0x1f8] sm:$0xff] }
 0x7fe   :  { %2142 = vmatprep.mubr.f32.mxu0 %v9559_v0  ;;  %2255 = vmatprep.mubr.f32.mxu1 %v9559_v0  ;;  %v2024_v9 = vld [vmem:[#allocation6 + $0x1c0] sm:$0xff] }
 0x7ff   :  { %7273 = vmatprep.subr.bf16.mxu0 %v10493_v28 }
 0x801   :  { %2143 = vmatmul.mubr.f32.gmra.mrb[24].mxu0 %v10369_v52  ;;  %2256 = vmatmul.mubr.f32.gmra.mrb[24].mxu1 %v10369_v52  ;;  %v1975_v52 = vld [vmem:[#allocation6 + $0x38] sm:$0xff] }
 0x802   :  { %2148 = vmatprep.mubr.f32.mxu0 %v9559_v0  ;;  %2261 = vmatprep.mubr.f32.mxu1 %v9559_v0  ;;  %v10495_v22 = vpack.c.bf16 %v1975_v52, %v1971_v12  ;;  %v10545_v12 = vpack.c.bf16 %v2004_v49, %v2000_v14  ;;  %v2002_v52 = vld [vmem:[#allocation6 + $0x110] sm:$0xff]  ;;  %v2028_v14 = vld [vmem:[#allocation6 + $0x1e0] sm:$0xff]  ;;  %v10579_v49 = vpack.c.bf16 %v2031_v62, %v2027_v54 }
 0x804   :  { %7305 = vmatprep.subr.bf16.mxu1 %v10495_v22 }
 0x805   :  { %2149 = vmatmul.mubr.f32.gmra.mrb[26].mxu0 %v10415_v55  ;;  %2262 = vmatmul.mubr.f32.gmra.mrb[26].mxu1 %v10415_v55  ;;  %v1972_v55 = vld [vmem:[#allocation6 + $0x20] sm:$0xff] }
 0x806   :  { %2154 = vmatprep.mubr.f32.mxu0 %v9559_v0  ;;  %2267 = vmatprep.mubr.f32.mxu1 %v9559_v0  ;;  %v10497_v27 = vpack.c.bf16 %v1972_v55, %v1968_v18  ;;  %v2006_v18 = vld [vmem:[#allocation6 + $0x130] sm:$0xff]  ;;  %v2009_v55 = vld [vmem:[#allocation6 + $0x148] sm:$0xff] }
 0x808   :  { %7275 = vmatpush1.bf16.msra.mxu0 %v10497_v27 }
 0x809   :  { %2155 = vmatmul.mubr.f32.gmra.mrb[28].mxu0 %v10459_v21  ;;  %2268 = vmatmul.mubr.f32.gmra.mrb[28].mxu1 %v10459_v21  ;;  %v10500_v21 = vpack.c.bf16 %v1974_v17, %v1970_v45  ;;  %v10548_v45 = vpack.c.bf16 %v2006_v18, %v2002_v52  ;;  %v2013_v17 = vld [vmem:[#allocation6 + $0x168] sm:$0xff]  ;;  %v10581_v52 = vpack.c.bf16 %v2028_v14, %v2024_v9  ;;  %v2026_v18 = vld [vmem:[#allocation6 + $0x1d0] sm:$0xff] }
 0x80a   :  { %2160 = vmatprep.mubr.f32.mxu0 %v9559_v0  ;;  %2273 = vmatprep.mubr.f32.mxu1 %v9559_v0  ;;  %v10551_v24 = vpack.c.bf16 %v2013_v17, %v2009_v55  ;;  %v2030_v55 = vld [vmem:[#allocation6 + $0x1f0] sm:$0xff] }
 0x80b   :  { %7307 = vmatpush1.bf16.msra.mxu1 %v10500_v21  ;;  %7277 = vmatprep.subr.bf16.mxu0 %v10505_v38  ;;  %v10584_v17 = vpack.c.bf16 %v2030_v55, %v2026_v18 }
 0x80c   :  { %7309 = vmatprep.subr.bf16.mxu1 %v10507_v34  ;;  %7279 = vmatpush1.bf16.msra.mxu0 %v10509_v46 }
 0x80d   :  { %7281 = vmatprep.subr.bf16.mxu0 %v10517_v11 }
 0x80f   :  { %7311 = vmatpush1.bf16.msra.mxu1 %v10512_v42 }
 0x810   :  { %7313 = vmatprep.subr.bf16.mxu1 %v10519_v56  ;;  %7283 = vmatpush1.bf16.msra.mxu0 %v10521_v60 }
 0x811   :  { %7285 = vmatprep.subr.bf16.mxu0 %v10529_v19 }
 0x813   :  { %7315 = vmatpush1.bf16.msra.mxu1 %v10524_v6 }
 0x814   :  { %7317 = vmatprep.subr.bf16.mxu1 %v10531_v32  ;;  %7287 = vmatpush1.bf16.msra.mxu0 %v10533_v36 }
 0x815   :  { %7289 = vmatprep.subr.bf16.mxu0 %v10540_v4 }
 0x817   :  { %7319 = vmatpush1.bf16.msra.mxu1 %v10536_v48 }
 0x818   :  { %7321 = vmatprep.subr.bf16.mxu1 %v10543_v1  ;;  %7291 = vmatpush1.bf16.msra.mxu0 %v10545_v12 }
 0x819   :  { %7293 = vmatprep.subr.bf16.mxu0 %v10551_v24 }
 0x81b   :  { %7323 = vmatpush1.bf16.msra.mxu1 %v10548_v45 }
 0x81c   :  { %7325 = vmatprep.subr.bf16.mxu1 %v10553_v8  ;;  %7295 = vmatpush1.bf16.msra.mxu0 %v10556_v51 }
 0x81d   :  { %7297 = vmatprep.subr.bf16.mxu0 %v10562_v50 }
 0x81f   :  { %7327 = vmatpush1.bf16.msra.mxu1 %v10560_v47 }
 0x820   :  { %7329 = vmatprep.subr.bf16.mxu1 %v10565_v10  ;;  %7299 = vmatpush1.bf16.msra.mxu0 %v10568_v26 }
 0x821   :  { %7301 = vmatprep.subr.bf16.mxu0 %v10577_v58 }
 0x823   :  { %7331 = vmatpush1.bf16.msra.mxu1 %v10572_v29 }
 0x824   :  { %7333 = vmatprep.subr.bf16.mxu1 %v10579_v49  ;;  %7303 = vmatpush1.bf16.msra.mxu0 %v10581_v52 }
 0x825   :  { %7337 = vmatprep.subr.bf16.mxu0 %v10493_v28 }
 0x827   :  { %7335 = vmatpush1.bf16.msra.mxu1 %v10584_v17 }
 0x828   :  { %7369 = vmatprep.subr.bf16.mxu1 %v10495_v22 }
 0x8a4   :  { %v1800_v20 = vpop.f32.mrb[14].mxu0  ;;  %v1871_v15 = vpop.f32.mrb[14].mxu1 }
 0x8a5   :  { %v8718_v41 = vadd.f32 %v1800_v20, %v10160_v37  ;;  %v1802_v31 = vpop.f32.mrb[15].mxu0  ;;  %v1873_v30 = vpop.f32.mrb[15].mxu1  ;;  %v8734_v3 = vadd.f32 %v1871_v15, %v10176_v2  ;;  %v2032_v20 = vld [vmem:[%s11722_s9] sm:$0xf] }
 0x8a6   :  { %v8719_v7 = vadd.f32 %v1802_v31, %v10163_v39  ;;  %v8735_v53 = vadd.f32 %v1873_v30, %v10170_v59  ;;  %v10646_v15 = vrot.slane %v2032_v20, %v10152_v33 }
 0x8a7   :  { %v6516_v5 = vmul.f32 -1.442695, %v8718_v41  ;;  %v10649_v41 = vrot.slane %v2032_v20, %v10157_v35 }
 0x8a8   :  { %v6517_v57 = vmul.f32 -1.442695, %v8719_v7  ;;  %v6518_v63 = vmul.f32 -1.442695, %v8735_v53 }
 0x8a9   :  { %9052 = vpow2.f32 %v6516_v5 }
 0x8aa   :  { %9054 = vpow2.f32 %v6517_v57 }
 0x8ab   :  { %9056 = vpow2.f32 %v6518_v63 }
 0x8ac   :  { %9058 = vtanh.f32 %v8734_v3 }
 0x8b3   :  { %v9053_v13 = vpop.eup %9052 }
 0x8b4   :  { %v9055_v16 = vpop.eup %9054  ;;  %v1883_v23 = vadd.f32 1.0, %v9053_v13  ;;  %v10654_v13 = vrot.slane %v2032_v20, %v10165_v43 }
 0x8b5   :  { %v1889_v40 = vadd.f32 1.0, %v9055_v16  ;;  %v9057_v37 = vpop.eup %9056 }
 0x8b6   :  { %9060 = vrcp.f32 %v1883_v23  ;;  %v9059_v44 = vpop.eup %9058  ;;  %v1896_v9 = vadd.f32 1.0, %v9057_v37  ;;  %v10658_v23 = vrot.slane %v2032_v20, %v10172_v61 }
 0x8b7   :  { %9062 = vrcp.f32 %v1889_v40 }
 0x8b8   :  { %9064 = vrcp.f32 %v1896_v9 }
 0x8c0   :  { %v9061_v39 = vpop.eup %9060 }
 0x8c1   :  { %v9063_v54 = vpop.eup %9062  ;;  %v1900_v62 = vmul.f32 %v9061_v39, %v9059_v44 }
 0x8c2   :  { %v1899_v14 = vmul.f32 %v9063_v54, %v10456_v25  ;;  %v9065_v2 = vpop.eup %9064  ;;  %v6493_v25 = vld [vmem:[%s11739_s5 + $0x8] sm:$0xff] }
 0x8c4   :  { %v10596_v59 = vadd.f32 %v1900_v62, %v1899_v14 }
 0x8c6   :  { %9066 = vtanh.f32 %v10596_v59 }
 0x8d0   :  { %v9067_v18 = vpop.eup %9066 }
 0x8d1   :  { %v10599_v55 = vmul.f32 %v9067_v18, %v9065_v2  ;;  %v6494_v2 = vld [vmem:[%s11716_s3 + $0x8] sm:$0xff] }
 0x8d3   :  { %2161 = vmatmul.mubr.f32.gmra.mrb[30].mxu0 %v10599_v55  ;;  %2274 = vmatmul.mubr.f32.gmra.mrb[30].mxu1 %v10599_v55 }
 0x8d4   :  { %2344 = vmatprep.mubr.f32.mxu0 %v9559_v0  ;;  %2415 = vmatprep.mubr.f32.mxu1 %v9559_v0 }
 0x8d7   :  { %2345 = vmatmul.mubr.f32.vlgmr.msra.gmra.mrb[16].mxu0 %v6493_v25  ;;  %2416 = vmatmul.mubr.f32.vlgmr.msra.gmra.mrb[16].mxu1 %v6493_v25 }
 0x8d8   :  { %7339 = vmatpush1.bf16.msra.mxu0 %v10497_v27  ;;  %7371 = vmatpush1.bf16.msra.mxu1 %v10500_v21 }
 0x8d9   :  { %7341 = vmatprep.subr.bf16.mxu0 %v10505_v38  ;;  %7373 = vmatprep.subr.bf16.mxu1 %v10507_v34 }
 0x8da   :  { %2514 = vmatprep.mubr.f32.mxu0 %v9559_v0  ;;  %2585 = vmatprep.mubr.f32.mxu1 %v9559_v0 }
 0x8dc   :  { %7343 = vmatpush1.bf16.msra.mxu0 %v10509_v46  ;;  %7375 = vmatpush1.bf16.msra.mxu1 %v10512_v42 }
 0x8dd   :  { %7345 = vmatprep.subr.bf16.mxu0 %v10517_v11  ;;  %7377 = vmatprep.subr.bf16.mxu1 %v10519_v56 }
 0x8e0   :  { %7347 = vmatpush1.bf16.msra.mxu0 %v10521_v60  ;;  %7379 = vmatpush1.bf16.msra.mxu1 %v10524_v6 }
 0x8e1   :  { %7349 = vmatprep.subr.bf16.mxu0 %v10529_v19  ;;  %7381 = vmatprep.subr.bf16.mxu1 %v10531_v32 }
 0x8e4   :  { %7351 = vmatpush1.bf16.msra.mxu0 %v10533_v36  ;;  %7383 = vmatpush1.bf16.msra.mxu1 %v10536_v48 }
 0x8e5   :  { %7353 = vmatprep.subr.bf16.mxu0 %v10540_v4  ;;  %7385 = vmatprep.subr.bf16.mxu1 %v10543_v1 }
 0x8e8   :  { %7355 = vmatpush1.bf16.msra.mxu0 %v10545_v12  ;;  %7387 = vmatpush1.bf16.msra.mxu1 %v10548_v45 }
 0x8e9   :  { %7357 = vmatprep.subr.bf16.mxu0 %v10551_v24  ;;  %7389 = vmatprep.subr.bf16.mxu1 %v10553_v8 }
 0x8ec   :  { %7359 = vmatpush1.bf16.msra.mxu0 %v10556_v51  ;;  %7391 = vmatpush1.bf16.msra.mxu1 %v10560_v47 }
 0x8ed   :  { %7361 = vmatprep.subr.bf16.mxu0 %v10562_v50  ;;  %7393 = vmatprep.subr.bf16.mxu1 %v10565_v10 }
 0x8f0   :  { %7363 = vmatpush1.bf16.msra.mxu0 %v10568_v26  ;;  %7395 = vmatpush1.bf16.msra.mxu1 %v10572_v29 }
 0x8f1   :  { %7365 = vmatprep.subr.bf16.mxu0 %v10577_v58  ;;  %7397 = vmatprep.subr.bf16.mxu1 %v10579_v49 }
 0x8f4   :  { %7367 = vmatpush1.bf16.msra.mxu0 %v10581_v52  ;;  %7399 = vmatpush1.bf16.msra.mxu1 %v10584_v17 }
 0x8f5   :  { %7401 = vmatprep.subr.bf16.mxu0 %v10493_v28  ;;  %7433 = vmatprep.subr.bf16.mxu1 %v10495_v22 }
 0x9aa   :  { %v2346_v31 = vpop.f32.mrb[16].mxu0  ;;  %v2417_v30 = vpop.f32.mrb[16].mxu1 }
 0x9ab   :  { %v8736_v7 = vadd.f32 %v2346_v31, %v10646_v15  ;;  %v2348_v5 = vpop.f32.mrb[17].mxu0  ;;  %v2419_v57 = vpop.f32.mrb[17].mxu1  ;;  %v8752_v37 = vadd.f32 %v2417_v30, %v10658_v23 }
 0x9ac   :  { %v8737_v53 = vadd.f32 %v2348_v5, %v10649_v41  ;;  %v8753_v16 = vadd.f32 %v2419_v57, %v10654_v13 }
 0x9ad   :  { %v6519_v63 = vmul.f32 -1.442695, %v8736_v7 }
 0x9ae   :  { %v6520_v3 = vmul.f32 -1.442695, %v8737_v53  ;;  %v6521_v40 = vmul.f32 -1.442695, %v8753_v16 }
 0x9af   :  { %9068 = vpow2.f32 %v6519_v63 }
 0x9b0   :  { %9070 = vpow2.f32 %v6520_v3 }
 0x9b1   :  { %9072 = vpow2.f32 %v6521_v40 }
 0x9b2   :  { %9074 = vtanh.f32 %v8752_v37 }
 0x9b9   :  { %v9069_v44 = vpop.eup %9068 }
 0x9ba   :  { %v9071_v39 = vpop.eup %9070  ;;  %v2429_v54 = vadd.f32 1.0, %v9069_v44 }
 0x9bb   :  { %v2435_v62 = vadd.f32 1.0, %v9071_v39  ;;  %v9073_v9 = vpop.eup %9072 }
 0x9bc   :  { %9076 = vrcp.f32 %v2429_v54  ;;  %v9075_v14 = vpop.eup %9074  ;;  %v2442_v31 = vadd.f32 1.0, %v9073_v9 }
 0x9bd   :  { %9078 = vrcp.f32 %v2435_v62 }
 0x9be   :  { %9080 = vrcp.f32 %v2442_v31 }
 0x9c6   :  { %v9077_v18 = vpop.eup %9076 }
 0x9c7   :  { %v9079_v25 = vpop.eup %9078  ;;  %v2446_v20 = vmul.f32 %v9077_v18, %v9075_v14 }
 0x9c8   :  { %v2445_v7 = vmul.f32 %v9079_v25, %v6494_v2  ;;  %v9081_v5 = vpop.eup %9080 }
 0x9ca   :  { %v10664_v30 = vadd.f32 %v2446_v20, %v2445_v7 }
 0x9cc   :  { %9082 = vtanh.f32 %v10664_v30 }
 0x9d6   :  { %v9083_v57 = vpop.eup %9082 }
 0x9d7   :  { %v2449_v53 = vmul.f32 %v9083_v57, %v9081_v5 }
 0x9d9   :  { %2515 = vmatmul.mubr.f32.vlgmr.msra.gmra.mrb[18].mxu0 %v2449_v53  ;;  %2586 = vmatmul.mubr.f32.vlgmr.msra.gmra.mrb[18].mxu1 %v2449_v53 }
 0x9da   :  { %7403 = vmatpush1.bf16.msra.mxu0 %v10497_v27  ;;  %7435 = vmatpush1.bf16.msra.mxu1 %v10500_v21 }
 0x9db   :  { %7405 = vmatprep.subr.bf16.mxu0 %v10505_v38  ;;  %7437 = vmatprep.subr.bf16.mxu1 %v10507_v34 }
 0x9dc   :  { %2684 = vmatprep.mubr.f32.mxu0 %v9559_v0  ;;  %2755 = vmatprep.mubr.f32.mxu1 %v9559_v0 }
 0x9de   :  { %7407 = vmatpush1.bf16.msra.mxu0 %v10509_v46  ;;  %7439 = vmatpush1.bf16.msra.mxu1 %v10512_v42 }
 0x9df   :  { %7409 = vmatprep.subr.bf16.mxu0 %v10517_v11  ;;  %7441 = vmatprep.subr.bf16.mxu1 %v10519_v56 }
 0x9e2   :  { %7411 = vmatpush1.bf16.msra.mxu0 %v10521_v60  ;;  %7443 = vmatpush1.bf16.msra.mxu1 %v10524_v6 }
 0x9e3   :  { %7413 = vmatprep.subr.bf16.mxu0 %v10529_v19  ;;  %7445 = vmatprep.subr.bf16.mxu1 %v10531_v32 }
 0x9e6   :  { %7415 = vmatpush1.bf16.msra.mxu0 %v10533_v36  ;;  %7447 = vmatpush1.bf16.msra.mxu1 %v10536_v48 }
 0x9e7   :  { %7417 = vmatprep.subr.bf16.mxu0 %v10540_v4  ;;  %7449 = vmatprep.subr.bf16.mxu1 %v10543_v1 }
 0x9ea   :  { %7419 = vmatpush1.bf16.msra.mxu0 %v10545_v12  ;;  %7451 = vmatpush1.bf16.msra.mxu1 %v10548_v45 }
 0x9eb   :  { %7421 = vmatprep.subr.bf16.mxu0 %v10551_v24  ;;  %7453 = vmatprep.subr.bf16.mxu1 %v10553_v8 }
 0x9ee   :  { %7423 = vmatpush1.bf16.msra.mxu0 %v10556_v51  ;;  %7455 = vmatpush1.bf16.msra.mxu1 %v10560_v47 }
 0x9ef   :  { %7425 = vmatprep.subr.bf16.mxu0 %v10562_v50  ;;  %7457 = vmatprep.subr.bf16.mxu1 %v10565_v10 }
 0x9f2   :  { %7427 = vmatpush1.bf16.msra.mxu0 %v10568_v26  ;;  %7459 = vmatpush1.bf16.msra.mxu1 %v10572_v29 }
 0x9f3   :  { %7429 = vmatprep.subr.bf16.mxu0 %v10577_v58  ;;  %7461 = vmatprep.subr.bf16.mxu1 %v10579_v49 }
 0x9f6   :  { %7431 = vmatpush1.bf16.msra.mxu0 %v10581_v52  ;;  %7463 = vmatpush1.bf16.msra.mxu1 %v10584_v17 }
 0x9f7   :  { %7465 = vmatprep.subr.bf16.mxu0 %v10493_v28  ;;  %7497 = vmatprep.subr.bf16.mxu1 %v10495_v22 }
 0xaac   :  { %v2516_v63 = vpop.f32.mrb[18].mxu0  ;;  %v2587_v3 = vpop.f32.mrb[18].mxu1 }
 0xaad   :  { %v8738_v16 = vadd.f32 %v2516_v63, %v10646_v15  ;;  %v2518_v40 = vpop.f32.mrb[19].mxu0  ;;  %v2589_v37 = vpop.f32.mrb[19].mxu1  ;;  %v8754_v14 = vadd.f32 %v2587_v3, %v10658_v23 }
 0xaae   :  { %v8739_v44 = vadd.f32 %v2518_v40, %v10649_v41  ;;  %v8755_v62 = vadd.f32 %v2589_v37, %v10654_v13 }
 0xaaf   :  { %v6522_v39 = vmul.f32 -1.442695, %v8738_v16 }
 0xab0   :  { %v6523_v54 = vmul.f32 -1.442695, %v8739_v44  ;;  %v6524_v9 = vmul.f32 -1.442695, %v8755_v62 }
 0xab1   :  { %9084 = vpow2.f32 %v6522_v39 }
 0xab2   :  { %9086 = vpow2.f32 %v6523_v54 }
 0xab3   :  { %9088 = vpow2.f32 %v6524_v9 }
 0xab4   :  { %9090 = vtanh.f32 %v8754_v14 }
 0xabb   :  { %v9085_v2 = vpop.eup %9084 }
 0xabc   :  { %v9087_v18 = vpop.eup %9086  ;;  %v2599_v25 = vadd.f32 1.0, %v9085_v2 }
 0xabd   :  { %v2605_v20 = vadd.f32 1.0, %v9087_v18  ;;  %v9089_v31 = vpop.eup %9088 }
 0xabe   :  { %9092 = vrcp.f32 %v2599_v25  ;;  %v9091_v7 = vpop.eup %9090  ;;  %v2612_v63 = vadd.f32 1.0, %v9089_v31 }
 0xabf   :  { %9094 = vrcp.f32 %v2605_v20 }
 0xac0   :  { %9096 = vrcp.f32 %v2612_v63 }
 0xac8   :  { %v9093_v5 = vpop.eup %9092 }
 0xac9   :  { %v9095_v57 = vpop.eup %9094  ;;  %v2616_v53 = vmul.f32 %v9093_v5, %v9091_v7 }
 0xaca   :  { %v2615_v16 = vmul.f32 %v9095_v57, %v10664_v30  ;;  %v9097_v3 = vpop.eup %9096 }
 0xacc   :  { %v10706_v40 = vadd.f32 %v2616_v53, %v2615_v16 }
 0xace   :  { %9098 = vtanh.f32 %v10706_v40 }
 0xad8   :  { %v9099_v37 = vpop.eup %9098 }
 0xad9   :  { %v2619_v44 = vmul.f32 %v9099_v37, %v9097_v3 }
 0xadb   :  { %2685 = vmatmul.mubr.f32.vlgmr.msra.gmra.mrb[20].mxu0 %v2619_v44  ;;  %2756 = vmatmul.mubr.f32.vlgmr.msra.gmra.mrb[20].mxu1 %v2619_v44 }
 0xadc   :  { %7467 = vmatpush1.bf16.msra.mxu0 %v10497_v27  ;;  %7499 = vmatpush1.bf16.msra.mxu1 %v10500_v21 }
 0xadd   :  { %7469 = vmatprep.subr.bf16.mxu0 %v10505_v38  ;;  %7501 = vmatprep.subr.bf16.mxu1 %v10507_v34 }
 0xade   :  { %2854 = vmatprep.mubr.f32.mxu0 %v9559_v0  ;;  %2925 = vmatprep.mubr.f32.mxu1 %v9559_v0 }
 0xae0   :  { %7471 = vmatpush1.bf16.msra.mxu0 %v10509_v46  ;;  %7503 = vmatpush1.bf16.msra.mxu1 %v10512_v42 }
 0xae1   :  { %7473 = vmatprep.subr.bf16.mxu0 %v10517_v11  ;;  %7505 = vmatprep.subr.bf16.mxu1 %v10519_v56 }
 0xae4   :  { %7475 = vmatpush1.bf16.msra.mxu0 %v10521_v60  ;;  %7507 = vmatpush1.bf16.msra.mxu1 %v10524_v6 }
 0xae5   :  { %7477 = vmatprep.subr.bf16.mxu0 %v10529_v19  ;;  %7509 = vmatprep.subr.bf16.mxu1 %v10531_v32 }
 0xae8   :  { %7479 = vmatpush1.bf16.msra.mxu0 %v10533_v36  ;;  %7511 = vmatpush1.bf16.msra.mxu1 %v10536_v48 }
 0xae9   :  { %7481 = vmatprep.subr.bf16.mxu0 %v10540_v4  ;;  %7513 = vmatprep.subr.bf16.mxu1 %v10543_v1 }
 0xaec   :  { %7483 = vmatpush1.bf16.msra.mxu0 %v10545_v12  ;;  %7515 = vmatpush1.bf16.msra.mxu1 %v10548_v45 }
 0xaed   :  { %7485 = vmatprep.subr.bf16.mxu0 %v10551_v24  ;;  %7517 = vmatprep.subr.bf16.mxu1 %v10553_v8 }
 0xaf0   :  { %7487 = vmatpush1.bf16.msra.mxu0 %v10556_v51  ;;  %7519 = vmatpush1.bf16.msra.mxu1 %v10560_v47 }
 0xaf1   :  { %7489 = vmatprep.subr.bf16.mxu0 %v10562_v50  ;;  %7521 = vmatprep.subr.bf16.mxu1 %v10565_v10 }
 0xaf4   :  { %7491 = vmatpush1.bf16.msra.mxu0 %v10568_v26  ;;  %7523 = vmatpush1.bf16.msra.mxu1 %v10572_v29 }
 0xaf5   :  { %7493 = vmatprep.subr.bf16.mxu0 %v10577_v58  ;;  %7525 = vmatprep.subr.bf16.mxu1 %v10579_v49 }
 0xaf8   :  { %7495 = vmatpush1.bf16.msra.mxu0 %v10581_v52  ;;  %7527 = vmatpush1.bf16.msra.mxu1 %v10584_v17 }
 0xaf9   :  { %7529 = vmatprep.subr.bf16.mxu0 %v10493_v28  ;;  %7561 = vmatprep.subr.bf16.mxu1 %v10495_v22 }
 0xbae   :  { %v2686_v30 = vpop.f32.mrb[20].mxu0  ;;  %v2757_v39 = vpop.f32.mrb[20].mxu1 }
 0xbaf   :  { %v8740_v54 = vadd.f32 %v2686_v30, %v10646_v15  ;;  %v2688_v62 = vpop.f32.mrb[21].mxu0  ;;  %v2759_v9 = vpop.f32.mrb[21].mxu1  ;;  %v8756_v31 = vadd.f32 %v2757_v39, %v10658_v23 }
 0xbb0   :  { %v8741_v14 = vadd.f32 %v2688_v62, %v10649_v41  ;;  %v8757_v25 = vadd.f32 %v2759_v9, %v10654_v13 }
 0xbb1   :  { %v6525_v2 = vmul.f32 -1.442695, %v8740_v54 }
 0xbb2   :  { %v6526_v18 = vmul.f32 -1.442695, %v8741_v14  ;;  %v6527_v20 = vmul.f32 -1.442695, %v8757_v25 }
 0xbb3   :  { %9100 = vpow2.f32 %v6525_v2 }
 0xbb4   :  { %9102 = vpow2.f32 %v6526_v18 }
 0xbb5   :  { %9104 = vpow2.f32 %v6527_v20 }
 0xbb6   :  { %9106 = vtanh.f32 %v8756_v31 }
 0xbbd   :  { %v9101_v7 = vpop.eup %9100 }
 0xbbe   :  { %v9103_v5 = vpop.eup %9102  ;;  %v2769_v57 = vadd.f32 1.0, %v9101_v7 }
 0xbbf   :  { %v2775_v53 = vadd.f32 1.0, %v9103_v5  ;;  %v9105_v63 = vpop.eup %9104 }
 0xbc0   :  { %9108 = vrcp.f32 %v2769_v57  ;;  %v9107_v16 = vpop.eup %9106  ;;  %v2782_v30 = vadd.f32 1.0, %v9105_v63 }
 0xbc1   :  { %9110 = vrcp.f32 %v2775_v53 }
 0xbc2   :  { %9112 = vrcp.f32 %v2782_v30 }
 0xbca   :  { %v9109_v3 = vpop.eup %9108 }
 0xbcb   :  { %v9111_v37 = vpop.eup %9110  ;;  %v2786_v44 = vmul.f32 %v9109_v3, %v9107_v16 }
 0xbcc   :  { %v2785_v54 = vmul.f32 %v9111_v37, %v10706_v40  ;;  %v9113_v39 = vpop.eup %9112 }
 0xbce   :  { %v10748_v62 = vadd.f32 %v2786_v44, %v2785_v54 }
 0xbd0   :  { %9114 = vtanh.f32 %v10748_v62 }
 0xbda   :  { %v9115_v9 = vpop.eup %9114 }
 0xbdb   :  { %v2789_v14 = vmul.f32 %v9115_v9, %v9113_v39 }
 0xbdd   :  { %2855 = vmatmul.mubr.f32.vlgmr.msra.gmra.mrb[22].mxu0 %v2789_v14  ;;  %2926 = vmatmul.mubr.f32.vlgmr.msra.gmra.mrb[22].mxu1 %v2789_v14 }
 0xbde   :  { %7531 = vmatpush1.bf16.msra.mxu0 %v10497_v27  ;;  %7563 = vmatpush1.bf16.msra.mxu1 %v10500_v21 }
 0xbdf   :  { %7533 = vmatprep.subr.bf16.mxu0 %v10505_v38  ;;  %7565 = vmatprep.subr.bf16.mxu1 %v10507_v34 }
 0xbe0   :  { %3024 = vmatprep.mubr.f32.mxu0 %v9559_v0  ;;  %3095 = vmatprep.mubr.f32.mxu1 %v9559_v0 }
 0xbe2   :  { %7535 = vmatpush1.bf16.msra.mxu0 %v10509_v46  ;;  %7567 = vmatpush1.bf16.msra.mxu1 %v10512_v42 }
 0xbe3   :  { %7537 = vmatprep.subr.bf16.mxu0 %v10517_v11  ;;  %7569 = vmatprep.subr.bf16.mxu1 %v10519_v56 }
 0xbe6   :  { %7539 = vmatpush1.bf16.msra.mxu0 %v10521_v60  ;;  %7571 = vmatpush1.bf16.msra.mxu1 %v10524_v6 }
 0xbe7   :  { %7541 = vmatprep.subr.bf16.mxu0 %v10529_v19  ;;  %7573 = vmatprep.subr.bf16.mxu1 %v10531_v32 }
 0xbea   :  { %7543 = vmatpush1.bf16.msra.mxu0 %v10533_v36  ;;  %7575 = vmatpush1.bf16.msra.mxu1 %v10536_v48 }
 0xbeb   :  { %7545 = vmatprep.subr.bf16.mxu0 %v10540_v4  ;;  %7577 = vmatprep.subr.bf16.mxu1 %v10543_v1 }
 0xbee   :  { %7547 = vmatpush1.bf16.msra.mxu0 %v10545_v12  ;;  %7579 = vmatpush1.bf16.msra.mxu1 %v10548_v45 }
 0xbef   :  { %7549 = vmatprep.subr.bf16.mxu0 %v10551_v24  ;;  %7581 = vmatprep.subr.bf16.mxu1 %v10553_v8 }
 0xbf2   :  { %7551 = vmatpush1.bf16.msra.mxu0 %v10556_v51  ;;  %7583 = vmatpush1.bf16.msra.mxu1 %v10560_v47 }
 0xbf3   :  { %7553 = vmatprep.subr.bf16.mxu0 %v10562_v50  ;;  %7585 = vmatprep.subr.bf16.mxu1 %v10565_v10 }
 0xbf6   :  { %7555 = vmatpush1.bf16.msra.mxu0 %v10568_v26  ;;  %7587 = vmatpush1.bf16.msra.mxu1 %v10572_v29 }
 0xbf7   :  { %7557 = vmatprep.subr.bf16.mxu0 %v10577_v58  ;;  %7589 = vmatprep.subr.bf16.mxu1 %v10579_v49 }
 0xbfa   :  { %7559 = vmatpush1.bf16.msra.mxu0 %v10581_v52  ;;  %7591 = vmatpush1.bf16.msra.mxu1 %v10584_v17 }
 0xbfb   :  { %7593 = vmatprep.subr.bf16.mxu0 %v10493_v28  ;;  %7625 = vmatprep.subr.bf16.mxu1 %v10495_v22 }
 0xcb0   :  { %v2856_v40 = vpop.f32.mrb[22].mxu0  ;;  %v2927_v2 = vpop.f32.mrb[22].mxu1 }
 0xcb1   :  { %v8742_v18 = vadd.f32 %v2856_v40, %v10646_v15  ;;  %v2858_v25 = vpop.f32.mrb[23].mxu0  ;;  %v2929_v20 = vpop.f32.mrb[23].mxu1  ;;  %v8758_v63 = vadd.f32 %v2927_v2, %v10658_v23 }
 0xcb2   :  { %v8743_v31 = vadd.f32 %v2858_v25, %v10649_v41  ;;  %v8759_v57 = vadd.f32 %v2929_v20, %v10654_v13 }
 0xcb3   :  { %v6528_v7 = vmul.f32 -1.442695, %v8742_v18 }
 0xcb4   :  { %v6529_v5 = vmul.f32 -1.442695, %v8743_v31  ;;  %v6530_v53 = vmul.f32 -1.442695, %v8759_v57 }
 0xcb5   :  { %9116 = vpow2.f32 %v6528_v7 }
 0xcb6   :  { %9118 = vpow2.f32 %v6529_v5 }
 0xcb7   :  { %9120 = vpow2.f32 %v6530_v53 }
 0xcb8   :  { %9122 = vtanh.f32 %v8758_v63 }
 0xcbf   :  { %v9117_v16 = vpop.eup %9116 }
 0xcc0   :  { %v9119_v3 = vpop.eup %9118  ;;  %v2939_v37 = vadd.f32 1.0, %v9117_v16 }
 0xcc1   :  { %v2945_v44 = vadd.f32 1.0, %v9119_v3  ;;  %v9121_v30 = vpop.eup %9120 }
 0xcc2   :  { %9124 = vrcp.f32 %v2939_v37  ;;  %v9123_v54 = vpop.eup %9122  ;;  %v2952_v40 = vadd.f32 1.0, %v9121_v30 }
 0xcc3   :  { %9126 = vrcp.f32 %v2945_v44 }
 0xcc4   :  { %9128 = vrcp.f32 %v2952_v40 }
 0xccc   :  { %v9125_v39 = vpop.eup %9124 }
 0xccd   :  { %v9127_v9 = vpop.eup %9126  ;;  %v2956_v14 = vmul.f32 %v9125_v39, %v9123_v54 }
 0xcce   :  { %v2955_v18 = vmul.f32 %v9127_v9, %v10748_v62  ;;  %v9129_v2 = vpop.eup %9128 }
 0xcd0   :  { %v10790_v25 = vadd.f32 %v2956_v14, %v2955_v18 }
 0xcd2   :  { %9130 = vtanh.f32 %v10790_v25 }
 0xcdc   :  { %v9131_v20 = vpop.eup %9130 }
 0xcdd   :  { %v2959_v31 = vmul.f32 %v9131_v20, %v9129_v2 }
 0xcdf   :  { %3025 = vmatmul.mubr.f32.vlgmr.msra.gmra.mrb[24].mxu0 %v2959_v31  ;;  %3096 = vmatmul.mubr.f32.vlgmr.msra.gmra.mrb[24].mxu1 %v2959_v31 }
 0xce0   :  { %7595 = vmatpush1.bf16.msra.mxu0 %v10497_v27  ;;  %7627 = vmatpush1.bf16.msra.mxu1 %v10500_v21 }
 0xce1   :  { %7597 = vmatprep.subr.bf16.mxu0 %v10505_v38  ;;  %7629 = vmatprep.subr.bf16.mxu1 %v10507_v34 }
 0xce2   :  { %3194 = vmatprep.mubr.f32.mxu0 %v9559_v0  ;;  %3265 = vmatprep.mubr.f32.mxu1 %v9559_v0 }
 0xce4   :  { %7599 = vmatpush1.bf16.msra.mxu0 %v10509_v46  ;;  %7631 = vmatpush1.bf16.msra.mxu1 %v10512_v42 }
 0xce5   :  { %7601 = vmatprep.subr.bf16.mxu0 %v10517_v11  ;;  %7633 = vmatprep.subr.bf16.mxu1 %v10519_v56 }
 0xce8   :  { %7603 = vmatpush1.bf16.msra.mxu0 %v10521_v60  ;;  %7635 = vmatpush1.bf16.msra.mxu1 %v10524_v6 }
 0xce9   :  { %7605 = vmatprep.subr.bf16.mxu0 %v10529_v19  ;;  %7637 = vmatprep.subr.bf16.mxu1 %v10531_v32 }
 0xcec   :  { %7607 = vmatpush1.bf16.msra.mxu0 %v10533_v36  ;;  %7639 = vmatpush1.bf16.msra.mxu1 %v10536_v48 }
 0xced   :  { %7609 = vmatprep.subr.bf16.mxu0 %v10540_v4  ;;  %7641 = vmatprep.subr.bf16.mxu1 %v10543_v1 }
 0xcf0   :  { %7611 = vmatpush1.bf16.msra.mxu0 %v10545_v12  ;;  %7643 = vmatpush1.bf16.msra.mxu1 %v10548_v45 }
 0xcf1   :  { %7613 = vmatprep.subr.bf16.mxu0 %v10551_v24  ;;  %7645 = vmatprep.subr.bf16.mxu1 %v10553_v8 }
 0xcf4   :  { %7615 = vmatpush1.bf16.msra.mxu0 %v10556_v51  ;;  %7647 = vmatpush1.bf16.msra.mxu1 %v10560_v47 }
 0xcf5   :  { %7617 = vmatprep.subr.bf16.mxu0 %v10562_v50  ;;  %7649 = vmatprep.subr.bf16.mxu1 %v10565_v10 }
 0xcf8   :  { %7619 = vmatpush1.bf16.msra.mxu0 %v10568_v26  ;;  %7651 = vmatpush1.bf16.msra.mxu1 %v10572_v29 }
 0xcf9   :  { %7621 = vmatprep.subr.bf16.mxu0 %v10577_v58  ;;  %7653 = vmatprep.subr.bf16.mxu1 %v10579_v49 }
 0xcfc   :  { %7623 = vmatpush1.bf16.msra.mxu0 %v10581_v52  ;;  %7655 = vmatpush1.bf16.msra.mxu1 %v10584_v17 }
 0xcfd   :  { %7657 = vmatprep.subr.bf16.mxu0 %v10493_v28  ;;  %7689 = vmatprep.subr.bf16.mxu1 %v10495_v22 }
 0xdb2   :  { %v3026_v62 = vpop.f32.mrb[24].mxu0  ;;  %v3097_v7 = vpop.f32.mrb[24].mxu1 }
 0xdb3   :  { %v8744_v5 = vadd.f32 %v3026_v62, %v10646_v15  ;;  %v3028_v57 = vpop.f32.mrb[25].mxu0  ;;  %v3099_v53 = vpop.f32.mrb[25].mxu1  ;;  %v8760_v30 = vadd.f32 %v3097_v7, %v10658_v23 }
 0xdb4   :  { %v8745_v63 = vadd.f32 %v3028_v57, %v10649_v41  ;;  %v8761_v37 = vadd.f32 %v3099_v53, %v10654_v13 }
 0xdb5   :  { %v6531_v16 = vmul.f32 -1.442695, %v8744_v5 }
 0xdb6   :  { %v6532_v3 = vmul.f32 -1.442695, %v8745_v63  ;;  %v6533_v44 = vmul.f32 -1.442695, %v8761_v37 }
 0xdb7   :  { %9132 = vpow2.f32 %v6531_v16 }
 0xdb8   :  { %9134 = vpow2.f32 %v6532_v3 }
 0xdb9   :  { %9136 = vpow2.f32 %v6533_v44 }
 0xdba   :  { %9138 = vtanh.f32 %v8760_v30 }
 0xdc1   :  { %v9133_v54 = vpop.eup %9132 }
 0xdc2   :  { %v9135_v39 = vpop.eup %9134  ;;  %v3109_v9 = vadd.f32 1.0, %v9133_v54 }
 0xdc3   :  { %v3115_v14 = vadd.f32 1.0, %v9135_v39  ;;  %v9137_v40 = vpop.eup %9136 }
 0xdc4   :  { %9140 = vrcp.f32 %v3109_v9  ;;  %v9139_v18 = vpop.eup %9138  ;;  %v3122_v62 = vadd.f32 1.0, %v9137_v40 }
 0xdc5   :  { %9142 = vrcp.f32 %v3115_v14 }
 0xdc6   :  { %9144 = vrcp.f32 %v3122_v62 }
 0xdce   :  { %v9141_v2 = vpop.eup %9140 }
 0xdcf   :  { %v9143_v20 = vpop.eup %9142  ;;  %v3126_v31 = vmul.f32 %v9141_v2, %v9139_v18 }
 0xdd0   :  { %v3125_v5 = vmul.f32 %v9143_v20, %v10790_v25  ;;  %v9145_v7 = vpop.eup %9144 }
 0xdd2   :  { %v10832_v57 = vadd.f32 %v3126_v31, %v3125_v5 }
 0xdd4   :  { %9146 = vtanh.f32 %v10832_v57 }
 0xdde   :  { %v9147_v53 = vpop.eup %9146 }
 0xddf   :  { %v3129_v63 = vmul.f32 %v9147_v53, %v9145_v7 }
 0xde1   :  { %3195 = vmatmul.mubr.f32.vlgmr.msra.gmra.mrb[26].mxu0 %v3129_v63  ;;  %3266 = vmatmul.mubr.f32.vlgmr.msra.gmra.mrb[26].mxu1 %v3129_v63 }
 0xde2   :  { %7659 = vmatpush1.bf16.msra.mxu0 %v10497_v27  ;;  %7691 = vmatpush1.bf16.msra.mxu1 %v10500_v21 }
 0xde3   :  { %7661 = vmatprep.subr.bf16.mxu0 %v10505_v38  ;;  %7693 = vmatprep.subr.bf16.mxu1 %v10507_v34 }
 0xde4   :  { %3364 = vmatprep.mubr.f32.mxu0 %v9559_v0  ;;  %3435 = vmatprep.mubr.f32.mxu1 %v9559_v0 }
 0xde6   :  { %7663 = vmatpush1.bf16.msra.mxu0 %v10509_v46  ;;  %7695 = vmatpush1.bf16.msra.mxu1 %v10512_v42 }
 0xde7   :  { %7665 = vmatprep.subr.bf16.mxu0 %v10517_v11  ;;  %7697 = vmatprep.subr.bf16.mxu1 %v10519_v56 }
 0xdea   :  { %7667 = vmatpush1.bf16.msra.mxu0 %v10521_v60  ;;  %7699 = vmatpush1.bf16.msra.mxu1 %v10524_v6 }
 0xdeb   :  { %7669 = vmatprep.subr.bf16.mxu0 %v10529_v19  ;;  %7701 = vmatprep.subr.bf16.mxu1 %v10531_v32 }
 0xdee   :  { %7671 = vmatpush1.bf16.msra.mxu0 %v10533_v36  ;;  %7703 = vmatpush1.bf16.msra.mxu1 %v10536_v48 }
 0xdef   :  { %7673 = vmatprep.subr.bf16.mxu0 %v10540_v4  ;;  %7705 = vmatprep.subr.bf16.mxu1 %v10543_v1 }
 0xdf2   :  { %7675 = vmatpush1.bf16.msra.mxu0 %v10545_v12  ;;  %7707 = vmatpush1.bf16.msra.mxu1 %v10548_v45 }
 0xdf3   :  { %7677 = vmatprep.subr.bf16.mxu0 %v10551_v24  ;;  %7709 = vmatprep.subr.bf16.mxu1 %v10553_v8 }
 0xdf6   :  { %7679 = vmatpush1.bf16.msra.mxu0 %v10556_v51  ;;  %7711 = vmatpush1.bf16.msra.mxu1 %v10560_v47 }
 0xdf7   :  { %7681 = vmatprep.subr.bf16.mxu0 %v10562_v50  ;;  %7713 = vmatprep.subr.bf16.mxu1 %v10565_v10 }
 0xdfa   :  { %7683 = vmatpush1.bf16.msra.mxu0 %v10568_v26  ;;  %7715 = vmatpush1.bf16.msra.mxu1 %v10572_v29 }
 0xdfb   :  { %7685 = vmatprep.subr.bf16.mxu0 %v10577_v58  ;;  %7717 = vmatprep.subr.bf16.mxu1 %v10579_v49 }
 0xdfe   :  { %7687 = vmatpush1.bf16.msra.mxu0 %v10581_v52  ;;  %7719 = vmatpush1.bf16.msra.mxu1 %v10584_v17 }
 0xdff   :  { %7721 = vmatprep.subr.bf16.mxu0 %v10493_v28  ;;  %7753 = vmatprep.subr.bf16.mxu1 %v10495_v22 }
 0xeb4   :  { %v3196_v25 = vpop.f32.mrb[26].mxu0  ;;  %v3267_v16 = vpop.f32.mrb[26].mxu1 }
 0xeb5   :  { %v8746_v3 = vadd.f32 %v3196_v25, %v10646_v15  ;;  %v3198_v37 = vpop.f32.mrb[27].mxu0  ;;  %v3269_v44 = vpop.f32.mrb[27].mxu1  ;;  %v8762_v40 = vadd.f32 %v3267_v16, %v10658_v23 }
 0xeb6   :  { %v8747_v30 = vadd.f32 %v3198_v37, %v10649_v41  ;;  %v8763_v9 = vadd.f32 %v3269_v44, %v10654_v13  ;;  %v3648_v44 = vld [vmem:[#allocation7 + $0x10] sm:$0xff] }
 0xeb7   :  { %v6534_v54 = vmul.f32 -1.442695, %v8746_v3 }
 0xeb8   :  { %v6535_v39 = vmul.f32 -1.442695, %v8747_v30  ;;  %v6536_v14 = vmul.f32 -1.442695, %v8763_v9  ;;  %v3652_v30 = vld [vmem:[#allocation7 + $0x30] sm:$0xff]  ;;  %v3657_v9 = vld [vmem:[#allocation7 + $0x58] sm:$0xff] }
 0xeb9   :  { %9148 = vpow2.f32 %v6534_v54  ;;  %v3655_v54 = vld [vmem:[#allocation7 + $0x48] sm:$0xff] }
 0xeba   :  { %9150 = vpow2.f32 %v6535_v39  ;;  %v3659_v39 = vld [vmem:[#allocation7 + $0x68] sm:$0xff] }
 0xebb   :  { %9152 = vpow2.f32 %v6536_v14  ;;  %v3661_v14 = vld [vmem:[#allocation7 + $0x78] sm:$0xff] }
 0xebc   :  { %9154 = vtanh.f32 %v8762_v40 }
 0xec3   :  { %v9149_v28 = vpop.eup %9148 }
 0xec4   :  { %v9151_v18 = vpop.eup %9150  ;;  %v3279_v22 = vadd.f32 1.0, %v9149_v28 }
 0xec5   :  { %v3285_v2 = vadd.f32 1.0, %v9151_v18  ;;  %v9153_v20 = vpop.eup %9152 }
 0xec6   :  { %9156 = vrcp.f32 %v3279_v22  ;;  %v9155_v31 = vpop.eup %9154  ;;  %v3292_v53 = vadd.f32 1.0, %v9153_v20  ;;  %v7818_v22 = vpack.c.bf16 %v3652_v30, %v3648_v44  ;;  %v3658_v20 = vld [vmem:[#allocation7 + $0x60] sm:$0xff]  ;;  %v3684_v44 = vld [vmem:[#allocation7 + $0x130] sm:$0xff]  ;;  %v3687_v30 = vld [vmem:[#allocation7 + $0x148] sm:$0xff] }
 0xec7   :  { %9158 = vrcp.f32 %v3285_v2  ;;  %v3654_v2 = vld [vmem:[#allocation7 + $0x40] sm:$0xff] }
 0xec8   :  { %9160 = vrcp.f32 %v3292_v53  ;;  %v3660_v53 = vld [vmem:[#allocation7 + $0x70] sm:$0xff] }
 0xed0   :  { %v9157_v62 = vpop.eup %9156 }
 0xed1   :  { %v9159_v5 = vpop.eup %9158  ;;  %v3296_v7 = vmul.f32 %v9157_v62, %v9155_v31  ;;  %v7788_v62 = vpack.c.bf16 %v3659_v39, %v3655_v54  ;;  %v3691_v54 = vld [vmem:[#allocation7 + $0x168] sm:$0xff]  ;;  %v3689_v39 = vld [vmem:[#allocation7 + $0x158] sm:$0xff] }
 0xed2   :  { %v3295_v63 = vmul.f32 %v9159_v5, %v10832_v57  ;;  %v9161_v16 = vpop.eup %9160  ;;  %v3650_v57 = vld [vmem:[#allocation7 + $0x20] sm:$0xff]  ;;  %v7820_v5 = vpack.c.bf16 %v3661_v14, %v3657_v9  ;;  %v3693_v9 = vld [vmem:[#allocation7 + $0x178] sm:$0xff] }
 0xed4   :  { %v10874_v25 = vadd.f32 %v3296_v7, %v3295_v63  ;;  %v3656_v7 = vld [vmem:[#allocation7 + $0x50] sm:$0xff]  ;;  %v3663_v63 = vld [vmem:[#allocation7 + $0x88] sm:$0xff] }
 0xed6   :  { %9162 = vtanh.f32 %v10874_v25 }
 0xee0   :  { %v9163_v3 = vpop.eup %9162 }
 0xee1   :  { %v3299_v37 = vmul.f32 %v9163_v3, %v9161_v16  ;;  %v3665_v16 = vld [vmem:[#allocation7 + $0x98] sm:$0xff] }
 0xee2   :  { %v3669_v3 = vld [vmem:[#allocation7 + $0xb8] sm:$0xff] }
 0xee3   :  { %3365 = vmatmul.mubr.f32.vlgmr.msra.gmra.mrb[28].mxu0 %v3299_v37  ;;  %3436 = vmatmul.mubr.f32.vlgmr.msra.gmra.mrb[28].mxu1 %v3299_v37  ;;  %v7790_v37 = vpack.c.bf16 %v3658_v20, %v3654_v2  ;;  %v7836_v2 = vpack.c.bf16 %v3693_v9, %v3689_v39  ;;  %v3688_v20 = vld [vmem:[#allocation7 + $0x150] sm:$0xff]  ;;  %v3718_v9 = vld [vmem:[#allocation9 + $0x40] sm:$0xff] }
 0xee4   :  { %7723 = vmatpush1.bf16.msra.mxu0 %v10497_v27  ;;  %7755 = vmatpush1.bf16.msra.mxu1 %v10500_v21  ;;  %v3647_v27 = vld [vmem:[#allocation7 + $0x8] sm:$0xff] }
 0xee5   :  { %7725 = vmatprep.subr.bf16.mxu0 %v10505_v38  ;;  %7757 = vmatprep.subr.bf16.mxu1 %v10507_v34  ;;  %v3651_v21 = vld [vmem:[#allocation7 + $0x28] sm:$0xff]  ;;  %v3649_v38 = vld [vmem:[#allocation7 + $0x18] sm:$0xff] }
 0xee6   :  { %3534 = vmatprep.mubr.f32.mxu0 %v9559_v0  ;;  %3605 = vmatprep.mubr.f32.mxu1 %v9559_v0  ;;  %v7784_v34 = vpack.c.bf16 %v3651_v21, %v3647_v27  ;;  %v7822_v27 = vpack.c.bf16 %v3660_v53, %v3656_v7  ;;  %v3662_v21 = vld [vmem:[#allocation7 + $0x80] sm:$0xff]  ;;  %v3697_v7 = vld [vmem:[#allocation7 + $0x198] sm:$0xff] }
 0xee7   :  { %v3701_v53 = vld [vmem:[#allocation7 + $0x1b8] sm:$0xff] }
 0xee8   :  { %7727 = vmatpush1.bf16.msra.mxu0 %v10509_v46  ;;  %7759 = vmatpush1.bf16.msra.mxu1 %v10512_v42  ;;  %v3653_v46 = vld [vmem:[#allocation7 + $0x38] sm:$0xff] }
 0xee9   :  { %7729 = vmatprep.subr.bf16.mxu0 %v10517_v11  ;;  %7761 = vmatprep.subr.bf16.mxu1 %v10519_v56  ;;  %v7816_v42 = vpack.c.bf16 %v3653_v46, %v3649_v38  ;;  %v3666_v38 = vld [vmem:[#allocation7 + $0xa0] sm:$0xff]  ;;  %v7824_v46 = vpack.c.bf16 %v3669_v3, %v3665_v16 }
 0xeea   :  { %v3694_v16 = vld [vmem:[#allocation7 + $0x180] sm:$0xff] }
 0xeeb   :  { %v3698_v3 = vld [vmem:[#allocation7 + $0x1a0] sm:$0xff] }
 0xeec   :  { %7731 = vmatpush1.bf16.msra.mxu0 %v10521_v60  ;;  %7763 = vmatpush1.bf16.msra.mxu1 %v10524_v6 }
 0xeed   :  { %7733 = vmatprep.subr.bf16.mxu0 %v10529_v19  ;;  %7765 = vmatprep.subr.bf16.mxu1 %v10531_v32 }
 0xef0   :  { %7735 = vmatpush1.bf16.msra.mxu0 %v10533_v36  ;;  %7767 = vmatpush1.bf16.msra.mxu1 %v10536_v48 }
 0xef1   :  { %7737 = vmatprep.subr.bf16.mxu0 %v10540_v4  ;;  %7769 = vmatprep.subr.bf16.mxu1 %v10543_v1 }
 0xef4   :  { %7739 = vmatpush1.bf16.msra.mxu0 %v10545_v12  ;;  %7771 = vmatpush1.bf16.msra.mxu1 %v10548_v45 }
 0xef5   :  { %7741 = vmatprep.subr.bf16.mxu0 %v10551_v24  ;;  %7773 = vmatprep.subr.bf16.mxu1 %v10553_v8 }
 0xef8   :  { %7743 = vmatpush1.bf16.msra.mxu0 %v10556_v51  ;;  %7775 = vmatpush1.bf16.msra.mxu1 %v10560_v47 }
 0xef9   :  { %7745 = vmatprep.subr.bf16.mxu0 %v10562_v50  ;;  %7777 = vmatprep.subr.bf16.mxu1 %v10565_v10 }
 0xefc   :  { %7747 = vmatpush1.bf16.msra.mxu0 %v10568_v26  ;;  %7779 = vmatpush1.bf16.msra.mxu1 %v10572_v29 }
 0xefd   :  { %7749 = vmatprep.subr.bf16.mxu0 %v10577_v58  ;;  %7781 = vmatprep.subr.bf16.mxu1 %v10579_v49 }
 0xf00   :  { %7751 = vmatpush1.bf16.msra.mxu0 %v10581_v52  ;;  %7783 = vmatpush1.bf16.msra.mxu1 %v10584_v17  ;;  %v3646_v17 = vld [vmem:[#allocation7] sm:$0xff] }
 0xf01   :  { %7785 = vmatprep.subr.bf16.mxu0 %v7784_v34  ;;  %7817 = vmatprep.subr.bf16.mxu1 %v7816_v42  ;;  %v7786_v18 = vpack.c.bf16 %v3650_v57, %v3646_v17  ;;  %v3664_v42 = vld [vmem:[#allocation7 + $0x90] sm:$0xff] }
 0xf02   :  { %v3680_v57 = vld [vmem:[#allocation7 + $0x110] sm:$0xff] }
 0xfb6   :  { %v3366_v11 = vpop.f32.mrb[28].mxu0  ;;  %v3437_v56 = vpop.f32.mrb[28].mxu1 }
 0xfb7   :  { %v8748_v60 = vadd.f32 %v3366_v11, %v10646_v15  ;;  %v3368_v6 = vpop.f32.mrb[29].mxu0  ;;  %v3439_v19 = vpop.f32.mrb[29].mxu1  ;;  %v8764_v12 = vadd.f32 %v3437_v56, %v10658_v23  ;;  %v3668_v11 = vld [vmem:[#allocation7 + $0xb0] sm:$0xff]  ;;  %v3671_v56 = vld [vmem:[#allocation7 + $0xc8] sm:$0xff] }
 0xfb8   :  { %v8749_v32 = vadd.f32 %v3368_v6, %v10649_v41  ;;  %v8765_v4 = vadd.f32 %v3439_v19, %v10654_v13  ;;  %v3673_v6 = vld [vmem:[#allocation7 + $0xd8] sm:$0xff] }
 0xfb9   :  { %v6537_v36 = vmul.f32 -1.442695, %v8748_v60  ;;  %v3675_v60 = vld [vmem:[#allocation7 + $0xe8] sm:$0xff]  ;;  %v3677_v19 = vld [vmem:[#allocation7 + $0xf8] sm:$0xff] }
 0xfba   :  { %v6538_v48 = vmul.f32 -1.442695, %v8749_v32  ;;  %v6539_v1 = vmul.f32 -1.442695, %v8765_v4  ;;  %v7794_v32 = vpack.c.bf16 %v3666_v38, %v3662_v21  ;;  %v3674_v4 = vld [vmem:[#allocation7 + $0xe0] sm:$0xff]  ;;  %v3696_v21 = vld [vmem:[#allocation7 + $0x190] sm:$0xff] }
 0xfbb   :  { %9164 = vpow2.f32 %v6537_v36  ;;  %v7826_v36 = vpack.c.bf16 %v3668_v11, %v3664_v42  ;;  %v3700_v38 = vld [vmem:[#allocation7 + $0x1b0] sm:$0xff]  ;;  %v3705_v42 = vld [vmem:[#allocation7 + $0x1d8] sm:$0xff] }
 0xfbc   :  { %9166 = vpow2.f32 %v6538_v48  ;;  %v3670_v48 = vld [vmem:[#allocation7 + $0xc0] sm:$0xff]  ;;  %v3709_v11 = vld [vmem:[#allocation7 + $0x1f8] sm:$0xff] }
 0xfbd   :  { %9168 = vpow2.f32 %v6539_v1  ;;  %v7796_v1 = vpack.c.bf16 %v3675_v60, %v3671_v56  ;;  %v7810_v56 = vpack.c.bf16 %v3698_v3, %v3694_v16  ;;  %v7842_v60 = vpack.c.bf16 %v3700_v38, %v3696_v21  ;;  %v3735_v21 = vld [vmem:[#allocation9 + $0xc8] sm:$0xff] }
 0xfbe   :  { %9170 = vtanh.f32 %v8764_v12  ;;  %v7828_v12 = vpack.c.bf16 %v3677_v19, %v3673_v6  ;;  %v3702_v6 = vld [vmem:[#allocation7 + $0x1c0] sm:$0xff]  ;;  %v3739_v38 = vld [vmem:[#allocation9 + $0xe8] sm:$0xff] }
 0xfbf   :  { %v3706_v19 = vld [vmem:[#allocation7 + $0x1e0] sm:$0xff] }
 0xfc5   :  { %v9165_v45 = vpop.eup %9164 }
 0xfc6   :  { %v9167_v24 = vpop.eup %9166  ;;  %v3449_v8 = vadd.f32 1.0, %v9165_v45  ;;  %v3672_v45 = vld [vmem:[#allocation7 + $0xd0] sm:$0xff] }
 0xfc7   :  { %v3455_v51 = vadd.f32 1.0, %v9167_v24  ;;  %v9169_v47 = vpop.eup %9168  ;;  %v3676_v24 = vld [vmem:[#allocation7 + $0xf0] sm:$0xff] }
 0xfc8   :  { %9172 = vrcp.f32 %v3449_v8  ;;  %v9171_v50 = vpop.eup %9170  ;;  %v3462_v58 = vadd.f32 1.0, %v9169_v47  ;;  %v3679_v8 = vld [vmem:[#allocation7 + $0x108] sm:$0xff]  ;;  %v3681_v47 = vld [vmem:[#allocation7 + $0x118] sm:$0xff] }
 0xfc9   :  { %9174 = vrcp.f32 %v3455_v51  ;;  %v3683_v51 = vld [vmem:[#allocation7 + $0x128] sm:$0xff] }
 0xfca   :  { %9176 = vrcp.f32 %v3462_v58  ;;  %v3682_v58 = vld [vmem:[#allocation7 + $0x120] sm:$0xff] }
 0xfd2   :  { %v9173_v10 = vpop.eup %9172 }
 0xfd3   :  { %v9175_v26 = vpop.eup %9174  ;;  %v3466_v29 = vmul.f32 %v9173_v10, %v9171_v50  ;;  %v3685_v50 = vld [vmem:[#allocation7 + $0x138] sm:$0xff]  ;;  %v7798_v10 = vpack.c.bf16 %v3674_v4, %v3670_v48  ;;  %v3704_v48 = vld [vmem:[#allocation7 + $0x1d0] sm:$0xff] }
 0xfd4   :  { %v3465_v49 = vmul.f32 %v9175_v26, %v10874_v25  ;;  %v9177_v40 = vpop.eup %9176  ;;  %v3667_v25 = vld [vmem:[#allocation7 + $0xa8] sm:$0xff]  ;;  %v7830_v26 = vpack.c.bf16 %v3676_v24, %v3672_v45  ;;  %v7832_v17 = vpack.c.bf16 %v3685_v50, %v3681_v47  ;;  %v3708_v4 = vld [vmem:[#allocation7 + $0x1f0] sm:$0xff]  ;;  %v3713_v45 = vld [vmem:[#allocation9 + $0x18] sm:$0xff] }
 0xfd5   :  { %v7792_v34 = vpack.c.bf16 %v3667_v25, %v3663_v63  ;;  %v3717_v24 = vld [vmem:[#allocation9 + $0x38] sm:$0xff]  ;;  %v3710_v47 = vld [vmem:[#allocation9] sm:$0xff] }
 0xfd6   :  { %v10914_v52 = vadd.f32 %v3466_v29, %v3465_v49  ;;  %v3678_v29 = vld [vmem:[#allocation7 + $0x100] sm:$0xff]  ;;  %v7800_v49 = vpack.c.bf16 %v3683_v51, %v3679_v8  ;;  %v7814_v8 = vpack.c.bf16 %v3706_v19, %v3702_v6  ;;  %v7846_v51 = vpack.c.bf16 %v3708_v4, %v3704_v48  ;;  %v3642_v6 = vld [vmem:[%s11740_s10 + $0x10] sm:$0xff]  ;;  %v3743_v4 = vld [vmem:[#allocation9 + $0x108] sm:$0xff] }
 0xfd7   :  { %v7802_v14 = vpack.c.bf16 %v3682_v58, %v3678_v29  ;;  %v3714_v50 = vld [vmem:[#allocation9 + $0x20] sm:$0xff]  ;;  %v3712_v29 = vld [vmem:[#allocation9 + $0x10] sm:$0xff]  ;;  %v10964_v19 = vpack.c.bf16 %v3739_v38, %v3735_v21  ;;  %v3765_v21 = vld [vmem:[#allocation9 + $0x1b8] sm:$0xff] }
 0xfd8   :  { %9178 = vtanh.f32 %v10914_v52  ;;  %v3716_v58 = vld [vmem:[#allocation9 + $0x30] sm:$0xff] }
 0xfd9   :  { %v10928_v39 = vpack.c.bf16 %v3716_v58, %v3712_v29  ;;  %v3740_v48 = vld [vmem:[#allocation9 + $0xf0] sm:$0xff] }
 0xfe2   :  { %v9179_v28 = vpop.eup %9178 }
 0xfe3   :  { %v3469_v31 = vmul.f32 %v9179_v28, %v9177_v40  ;;  %v7834_v40 = vpack.c.bf16 %v3684_v44, %v3680_v57  ;;  %v3686_v28 = vld [vmem:[#allocation7 + $0x140] sm:$0xff]  ;;  %v3721_v57 = vld [vmem:[#allocation9 + $0x58] sm:$0xff] }
 0xfe4   :  { %v3725_v44 = vld [vmem:[#allocation9 + $0x78] sm:$0xff] }
 0xfe5   :  { %3535 = vmatmul.mubr.f32.vlgmr.msra.gmra.mrb[30].mxu0 %v3469_v31  ;;  %3606 = vmatmul.mubr.f32.vlgmr.msra.gmra.mrb[30].mxu1 %v3469_v31  ;;  %v3692_v31 = vld [vmem:[#allocation7 + $0x170] sm:$0xff] }
 0xfe6   :  { %7787 = vmatpush1.bf16.msra.mxu0 %v7786_v18  ;;  %7819 = vmatpush1.bf16.msra.mxu1 %v7818_v22  ;;  %v3690_v18 = vld [vmem:[#allocation7 + $0x160] sm:$0xff]  ;;  %v7804_v22 = vpack.c.bf16 %v3691_v54, %v3687_v30  ;;  %v7838_v25 = vpack.c.bf16 %v3692_v31, %v3688_v20  ;;  %v10926_v54 = vpack.c.bf16 %v3714_v50, %v3710_v47  ;;  %v3731_v20 = vld [vmem:[#allocation9 + $0xa8] sm:$0xff]  ;;  %v3729_v31 = vld [vmem:[#allocation9 + $0x98] sm:$0xff] }
 0xfe7   :  { %7789 = vmatprep.subr.bf16.mxu0 %v7788_v62  ;;  %7821 = vmatprep.subr.bf16.mxu1 %v7820_v5  ;;  %v3695_v62 = vld [vmem:[#allocation7 + $0x188] sm:$0xff]  ;;  %v7806_v63 = vpack.c.bf16 %v3690_v18, %v3686_v28  ;;  %v3640_v30 = vld [vmem:[%s11740_s10] sm:$0xff]  ;;  %v10934_v28 = vpack.c.bf16 %v3725_v44, %v3721_v57  ;;  %v3720_v18 = vld [vmem:[#allocation9 + $0x50] sm:$0xff] }
 0xfe8   :  { %3860 = vmatprep.mubr.f32.mxu0 %v9559_v0  ;;  %3961 = vmatprep.mubr.f32.mxu1 %v9559_v0  ;;  %v3699_v5 = vld [vmem:[#allocation7 + $0x1a8] sm:$0xff]  ;;  %v3746_v47 = vld [vmem:[#allocation9 + $0x120] sm:$0xff]  ;;  %v3643_v50 = vld [vmem:[%s11740_s10 + $0x18] sm:$0xff] }
 0xfe9   :  { %v3751_v57 = vld [vmem:[#allocation9 + $0x148] sm:$0xff] }
 0xfea   :  { %7791 = vmatpush1.bf16.msra.mxu0 %v7790_v37  ;;  %7823 = vmatpush1.bf16.msra.mxu1 %v7822_v27  ;;  %v7808_v37 = vpack.c.bf16 %v3699_v5, %v3695_v62  ;;  %v7840_v27 = vpack.c.bf16 %v3701_v53, %v3697_v7  ;;  %v3733_v62 = vld [vmem:[#allocation9 + $0xb8] sm:$0xff]  ;;  %v3726_v53 = vld [vmem:[#allocation9 + $0x80] sm:$0xff]  ;;  %v3755_v44 = vld [vmem:[#allocation9 + $0x168] sm:$0xff] }
 0xfeb   :  { %7793 = vmatprep.subr.bf16.mxu0 %v7792_v34  ;;  %7825 = vmatprep.subr.bf16.mxu1 %v7824_v46  ;;  %v3703_v34 = vld [vmem:[#allocation7 + $0x1c8] sm:$0xff]  ;;  %v10949_v3 = vpack.c.bf16 %v3733_v62, %v3729_v31  ;;  %v10998_v31 = vpack.c.bf16 %v3755_v44, %v3751_v57  ;;  %v3770_v44 = vld [vmem:[#allocation9 + $0x1e0] sm:$0xff] }
 0xfec   :  { %v3707_v46 = vld [vmem:[#allocation7 + $0x1e8] sm:$0xff] }
 0xfee   :  { %7795 = vmatpush1.bf16.msra.mxu0 %v7794_v32  ;;  %7827 = vmatpush1.bf16.msra.mxu1 %v7826_v36  ;;  %v7812_v32 = vpack.c.bf16 %v3707_v46, %v3703_v34  ;;  %v7844_v36 = vpack.c.bf16 %v3709_v11, %v3705_v42  ;;  %v3737_v34 = vld [vmem:[#allocation9 + $0xd8] sm:$0xff] }
 0xfef   :  { %7797 = vmatprep.subr.bf16.mxu0 %v7796_v1  ;;  %7829 = vmatprep.subr.bf16.mxu1 %v7828_v12  ;;  %v3711_v1 = vld [vmem:[#allocation9 + $0x8] sm:$0xff]  ;;  %v3741_v46 = vld [vmem:[#allocation9 + $0xf8] sm:$0xff] }
 0xff0   :  { %v3715_v12 = vld [vmem:[#allocation9 + $0x28] sm:$0xff] }
 0xff2   :  { %7799 = vmatpush1.bf16.msra.mxu0 %v7798_v10  ;;  %7831 = vmatpush1.bf16.msra.mxu1 %v7830_v26  ;;  %v10919_v10 = vpack.c.bf16 %v3715_v12, %v3711_v1  ;;  %v10921_v26 = vpack.c.bf16 %v3717_v24, %v3713_v45  ;;  %v3747_v1 = vld [vmem:[#allocation9 + $0x128] sm:$0xff]  ;;  %v3745_v12 = vld [vmem:[#allocation9 + $0x118] sm:$0xff] }
 0xff3   :  { %7801 = vmatprep.subr.bf16.mxu0 %v7800_v49  ;;  %7833 = vmatprep.subr.bf16.mxu1 %v7832_v17  ;;  %v3719_v49 = vld [vmem:[#allocation9 + $0x48] sm:$0xff]  ;;  %v3749_v45 = vld [vmem:[#allocation9 + $0x138] sm:$0xff]  ;;  %v10981_v29 = vpack.c.bf16 %v3747_v1, %v3743_v4  ;;  %v3764_v4 = vld [vmem:[#allocation9 + $0x1b0] sm:$0xff] }
 0xff4   :  { %v3723_v17 = vld [vmem:[#allocation9 + $0x68] sm:$0xff]  ;;  %v10983_v58 = vpack.c.bf16 %v3749_v45, %v3745_v12  ;;  %v3769_v45 = vld [vmem:[#allocation9 + $0x1d8] sm:$0xff] }
 0xff5   :  { %v3767_v1 = vld [vmem:[#allocation9 + $0x1c8] sm:$0xff] }
 0xff6   :  { %7803 = vmatpush1.bf16.msra.mxu0 %v7802_v14  ;;  %7835 = vmatpush1.bf16.msra.mxu1 %v7834_v40  ;;  %v3722_v14 = vld [vmem:[#allocation9 + $0x60] sm:$0xff]  ;;  %v10932_v40 = vpack.c.bf16 %v3723_v17, %v3719_v49  ;;  %v3744_v49 = vld [vmem:[#allocation9 + $0x110] sm:$0xff]  ;;  %v3771_v12 = vld [vmem:[#allocation9 + $0x1e8] sm:$0xff] }
 0xff7   :  { %7805 = vmatprep.subr.bf16.mxu0 %v7804_v22  ;;  %7837 = vmatprep.subr.bf16.mxu1 %v7836_v2  ;;  %v3724_v22 = vld [vmem:[#allocation9 + $0x70] sm:$0xff]  ;;  %v3727_v2 = vld [vmem:[#allocation9 + $0x88] sm:$0xff]  ;;  %v10938_v5 = vpack.c.bf16 %v3722_v14, %v3718_v9  ;;  %v3757_v9 = vld [vmem:[#allocation9 + $0x178] sm:$0xff] }
 0xff8   :  { %v10940_v7 = vpack.c.bf16 %v3724_v22, %v3720_v18  ;;  %v10947_v16 = vpack.c.bf16 %v3731_v20, %v3727_v2  ;;  %v3748_v17 = vld [vmem:[#allocation9 + $0x130] sm:$0xff]  ;;  %v3750_v22 = vld [vmem:[#allocation9 + $0x140] sm:$0xff] }
 0xff9   :  { %v10991_v18 = vpack.c.bf16 %v3748_v17, %v3744_v49  ;;  %v3754_v2 = vld [vmem:[#allocation9 + $0x160] sm:$0xff]  ;;  %v11029_v17 = vpack.c.bf16 %v3771_v12, %v3767_v1 }
 0xffa   :  { %7807 = vmatpush1.bf16.msra.mxu0 %v7806_v63  ;;  %7839 = vmatpush1.bf16.msra.mxu1 %v7838_v25  ;;  %v3730_v63 = vld [vmem:[#allocation9 + $0xa0] sm:$0xff]  ;;  %v3641_v25 = vld [vmem:[%s11740_s10 + $0x8] sm:$0xff]  ;;  %v11006_v38 = vpack.c.bf16 %v3754_v2, %v3750_v22 }
 0xffb   :  { %7809 = vmatprep.subr.bf16.mxu0 %v7808_v37  ;;  %7841 = vmatprep.subr.bf16.mxu1 %v7840_v27  ;;  %v3728_v37 = vld [vmem:[#allocation9 + $0x90] sm:$0xff]  ;;  %v10955_v42 = vpack.c.bf16 %v3730_v63, %v3726_v53  ;;  %v3644_v20 = vld [vmem:[%s11740_s10 + $0x20] sm:$0xff] }
 0xffc   :  { %v3732_v27 = vld [vmem:[#allocation9 + $0xb0] sm:$0xff]  ;;  %v3766_v49 = vld [vmem:[#allocation9 + $0x1c0] sm:$0xff] }
 0xffd   :  { %v10957_v11 = vpack.c.bf16 %v3732_v27, %v3728_v37  ;;  %v3752_v53 = vld [vmem:[#allocation9 + $0x150] sm:$0xff]  ;;  %v3763_v37 = vld [vmem:[#allocation9 + $0x1a8] sm:$0xff]  ;;  %v3761_v27 = vld [vmem:[#allocation9 + $0x198] sm:$0xff]  ;;  %v11037_v22 = vpack.c.bf16 %v3770_v44, %v3766_v49 }
 0xffe   :  { %7811 = vmatpush1.bf16.msra.mxu0 %v7810_v56  ;;  %7843 = vmatpush1.bf16.msra.mxu1 %v7842_v60  ;;  %v3734_v56 = vld [vmem:[#allocation9 + $0xc0] sm:$0xff]  ;;  %v3756_v63 = vld [vmem:[#allocation9 + $0x170] sm:$0xff] }
 0xfff   :  { %7813 = vmatprep.subr.bf16.mxu0 %v7812_v32  ;;  %7845 = vmatprep.subr.bf16.mxu1 %v7844_v36  ;;  %v3738_v60 = vld [vmem:[#allocation9 + $0xe0] sm:$0xff]  ;;  %v10966_v32 = vpack.c.bf16 %v3741_v46, %v3737_v34  ;;  %v3736_v36 = vld [vmem:[#allocation9 + $0xd0] sm:$0xff]  ;;  %v11008_v34 = vpack.c.bf16 %v3756_v63, %v3752_v53 }
0x1000   :  { %v10972_v24 = vpack.c.bf16 %v3738_v60, %v3734_v56  ;;  %v3758_v46 = vld [vmem:[#allocation9 + $0x180] sm:$0xff]  ;;  %v3645_v60 = vld [vmem:[%s11740_s10 + $0x28] sm:$0xff] }
0x1001   :  { %v3762_v56 = vld [vmem:[#allocation9 + $0x1a0] sm:$0xff] }
0x1002   :  { %7815 = vmatpush1.bf16.msra.mxu0 %v7814_v8  ;;  %7847 = vmatpush1.bf16.msra.mxu1 %v7846_v51  ;;  %v10974_v8 = vpack.c.bf16 %v3740_v48, %v3736_v36  ;;  %v3742_v51 = vld [vmem:[#allocation9 + $0x100] sm:$0xff]  ;;  %v11017_v36 = vpack.c.bf16 %v3765_v21, %v3761_v27  ;;  %v3760_v48 = vld [vmem:[#allocation9 + $0x190] sm:$0xff] }
0x1003   :  { %7849 = vmatprep.subr.bf16.mxu0 %v10919_v10  ;;  %7881 = vmatprep.subr.bf16.mxu1 %v10921_v26  ;;  %v10989_v14 = vpack.c.bf16 %v3746_v47, %v3742_v51  ;;  %v3773_v51 = vld [vmem:[#allocation9 + $0x1f8] sm:$0xff]  ;;  %v11023_v47 = vpack.c.bf16 %v3762_v56, %v3758_v46  ;;  %v3774_v49 = vld [vmem:[%s11725_s12] sm:$0xf] }
0x1004   :  { %v11031_v57 = vpack.c.bf16 %v3773_v51, %v3769_v45  ;;  %v11098_v44 = vrot.slane %v3774_v49, %v10157_v35 }
0x1005   :  { %3861 = vmatmul.mubr.f32.vlgmr.msra.gmra.mrb[32].mxu0 %v3640_v30  ;;  %3962 = vmatmul.mubr.f32.vlgmr.msra.gmra.mrb[32].mxu1 %v3640_v30  ;;  %v3753_v30 = vld [vmem:[#allocation9 + $0x158] sm:$0xff] }
0x1006   :  { %7851 = vmatpush1.bf16.msra.mxu0 %v10926_v54  ;;  %7883 = vmatpush1.bf16.msra.mxu1 %v10928_v39  ;;  %v11000_v62 = vpack.c.bf16 %v3757_v9, %v3753_v30  ;;  %v3768_v30 = vld [vmem:[#allocation9 + $0x1d0] sm:$0xff] }
0x1007   :  { %7853 = vmatprep.subr.bf16.mxu0 %v10932_v40  ;;  %7885 = vmatprep.subr.bf16.mxu1 %v10934_v28  ;;  %v3772_v9 = vld [vmem:[#allocation9 + $0x1f0] sm:$0xff] }
0x1008   :  { %3866 = vmatprep.mubr.f32.mxu0 %v9559_v0  ;;  %3967 = vmatprep.mubr.f32.mxu1 %v9559_v0  ;;  %v11039_v2 = vpack.c.bf16 %v3772_v9, %v3768_v30 }
0x1009   :  { %3867 = vmatmul.mubr.f32.gmra.mrb[34].mxu0 %v3641_v25  ;;  %3968 = vmatmul.mubr.f32.gmra.mrb[34].mxu1 %v3641_v25  ;;  %v3759_v25 = vld [vmem:[#allocation9 + $0x188] sm:$0xff] }
0x100a   :  { %7855 = vmatpush1.bf16.msra.mxu0 %v10938_v5  ;;  %7887 = vmatpush1.bf16.msra.mxu1 %v10940_v7 }
0x100b   :  { %7857 = vmatprep.subr.bf16.mxu0 %v10947_v16  ;;  %7889 = vmatprep.subr.bf16.mxu1 %v10949_v3 }
0x100c   :  { %3872 = vmatprep.mubr.f32.mxu0 %v9559_v0  ;;  %3973 = vmatprep.mubr.f32.mxu1 %v9559_v0 }
0x100d   :  { %3873 = vmatmul.mubr.f32.gmra.mrb[36].mxu0 %v3642_v6  ;;  %3974 = vmatmul.mubr.f32.gmra.mrb[36].mxu1 %v3642_v6  ;;  %v11015_v6 = vpack.c.bf16 %v3763_v37, %v3759_v25 }
0x100e   :  { %7859 = vmatpush1.bf16.msra.mxu0 %v10955_v42  ;;  %7891 = vmatpush1.bf16.msra.mxu1 %v10957_v11 }
0x100f   :  { %7861 = vmatprep.subr.bf16.mxu0 %v10964_v19  ;;  %7893 = vmatprep.subr.bf16.mxu1 %v10966_v32 }
0x1010   :  { %3878 = vmatprep.mubr.f32.mxu0 %v9559_v0  ;;  %3979 = vmatprep.mubr.f32.mxu1 %v9559_v0 }
0x1011   :  { %3879 = vmatmul.mubr.f32.gmra.mrb[38].mxu0 %v3643_v50  ;;  %3980 = vmatmul.mubr.f32.gmra.mrb[38].mxu1 %v3643_v50  ;;  %v11025_v50 = vpack.c.bf16 %v3764_v4, %v3760_v48 }
0x1012   :  { %7863 = vmatpush1.bf16.msra.mxu0 %v10972_v24  ;;  %7895 = vmatpush1.bf16.msra.mxu1 %v10974_v8 }
0x1013   :  { %7865 = vmatprep.subr.bf16.mxu0 %v10981_v29  ;;  %7897 = vmatprep.subr.bf16.mxu1 %v10983_v58 }
0x1014   :  { %3884 = vmatprep.mubr.f32.mxu0 %v9559_v0  ;;  %3985 = vmatprep.mubr.f32.mxu1 %v9559_v0 }
0x1015   :  { %3885 = vmatmul.mubr.f32.gmra.mrb[40].mxu0 %v3644_v20  ;;  %3986 = vmatmul.mubr.f32.gmra.mrb[40].mxu1 %v3644_v20 }
0x1016   :  { %7867 = vmatpush1.bf16.msra.mxu0 %v10989_v14  ;;  %7899 = vmatpush1.bf16.msra.mxu1 %v10991_v18 }
0x1017   :  { %7869 = vmatprep.subr.bf16.mxu0 %v10998_v31  ;;  %7901 = vmatprep.subr.bf16.mxu1 %v11000_v62 }
0x1018   :  { %3890 = vmatprep.mubr.f32.mxu0 %v9559_v0  ;;  %3991 = vmatprep.mubr.f32.mxu1 %v9559_v0 }
0x1019   :  { %3891 = vmatmul.mubr.f32.gmra.mrb[42].mxu0 %v3645_v60  ;;  %3992 = vmatmul.mubr.f32.gmra.mrb[42].mxu1 %v3645_v60 }
0x101a   :  { %7871 = vmatpush1.bf16.msra.mxu0 %v11006_v38  ;;  %7903 = vmatpush1.bf16.msra.mxu1 %v11008_v34 }
0x101b   :  { %7873 = vmatprep.subr.bf16.mxu0 %v11015_v6  ;;  %7905 = vmatprep.subr.bf16.mxu1 %v11017_v36 }
0x101c   :  { %4062 = vmatprep.mubr.f32.mxu0 %v9559_v0  ;;  %4133 = vmatprep.mubr.f32.mxu1 %v9559_v0 }
0x101e   :  { %7875 = vmatpush1.bf16.msra.mxu0 %v11023_v47  ;;  %7907 = vmatpush1.bf16.msra.mxu1 %v11025_v50 }
0x101f   :  { %7877 = vmatprep.subr.bf16.mxu0 %v11029_v17  ;;  %7909 = vmatprep.subr.bf16.mxu1 %v11031_v57 }
0x1022   :  { %7879 = vmatpush1.bf16.msra.mxu0 %v11037_v22  ;;  %7911 = vmatpush1.bf16.msra.mxu1 %v11039_v2 }
0x1023   :  { %7913 = vmatprep.subr.bf16.mxu0 %v10919_v10  ;;  %7945 = vmatprep.subr.bf16.mxu1 %v10921_v26 }
0x1025   :  { %4063 = vmatmul.mubr.f32.vlgmr.msra.gmra.mrb[32].mxu0 %v10599_v55  ;;  %4134 = vmatmul.mubr.f32.vlgmr.msra.gmra.mrb[32].mxu1 %v10599_v55 }
0x1026   :  { %7915 = vmatpush1.bf16.msra.mxu0 %v10926_v54  ;;  %7947 = vmatpush1.bf16.msra.mxu1 %v10928_v39 }
0x1027   :  { %7917 = vmatprep.subr.bf16.mxu0 %v10932_v40  ;;  %7949 = vmatprep.subr.bf16.mxu1 %v10934_v28 }
0x1028   :  { %4232 = vmatprep.mubr.f32.mxu0 %v9559_v0  ;;  %4303 = vmatprep.mubr.f32.mxu1 %v9559_v0 }
0x102a   :  { %7919 = vmatpush1.bf16.msra.mxu0 %v10938_v5  ;;  %7951 = vmatpush1.bf16.msra.mxu1 %v10940_v7 }
0x102b   :  { %7921 = vmatprep.subr.bf16.mxu0 %v10947_v16  ;;  %7953 = vmatprep.subr.bf16.mxu1 %v10949_v3 }
0x102e   :  { %7923 = vmatpush1.bf16.msra.mxu0 %v10955_v42  ;;  %7955 = vmatpush1.bf16.msra.mxu1 %v10957_v11 }
0x102f   :  { %7925 = vmatprep.subr.bf16.mxu0 %v10964_v19  ;;  %7957 = vmatprep.subr.bf16.mxu1 %v10966_v32 }
0x1032   :  { %7927 = vmatpush1.bf16.msra.mxu0 %v10972_v24  ;;  %7959 = vmatpush1.bf16.msra.mxu1 %v10974_v8 }
0x1033   :  { %7929 = vmatprep.subr.bf16.mxu0 %v10981_v29  ;;  %7961 = vmatprep.subr.bf16.mxu1 %v10983_v58 }
0x1036   :  { %7931 = vmatpush1.bf16.msra.mxu0 %v10989_v14  ;;  %7963 = vmatpush1.bf16.msra.mxu1 %v10991_v18 }
0x1037   :  { %7933 = vmatprep.subr.bf16.mxu0 %v10998_v31  ;;  %7965 = vmatprep.subr.bf16.mxu1 %v11000_v62 }
0x103a   :  { %7935 = vmatpush1.bf16.msra.mxu0 %v11006_v38  ;;  %7967 = vmatpush1.bf16.msra.mxu1 %v11008_v34 }
0x103b   :  { %7937 = vmatprep.subr.bf16.mxu0 %v11015_v6  ;;  %7969 = vmatprep.subr.bf16.mxu1 %v11017_v36 }
0x103e   :  { %7939 = vmatpush1.bf16.msra.mxu0 %v11023_v47  ;;  %7971 = vmatpush1.bf16.msra.mxu1 %v11025_v50 }
0x103f   :  { %7941 = vmatprep.subr.bf16.mxu0 %v11029_v17  ;;  %7973 = vmatprep.subr.bf16.mxu1 %v11031_v57 }
0x1042   :  { %7943 = vmatpush1.bf16.msra.mxu0 %v11037_v22  ;;  %7975 = vmatpush1.bf16.msra.mxu1 %v11039_v2 }
0x1043   :  { %7977 = vmatprep.subr.bf16.mxu0 %v10919_v10  ;;  %8009 = vmatprep.subr.bf16.mxu1 %v10921_v26 }
0x10b8   :  { %v3536_v55 = vpop.f32.mrb[30].mxu0  ;;  %v3607_v20 = vpop.f32.mrb[30].mxu1 }
0x10b9   :  { %v8750_v53 = vadd.f32 %v3536_v55, %v10646_v15  ;;  %v3538_v63 = vpop.f32.mrb[31].mxu0  ;;  %v11084_v25 = vpop.f32.mrb[31].mxu1  ;;  %v8766_v46 = vadd.f32 %v3607_v20, %v10658_v23  ;;  %v11095_v23 = vrot.slane %v3774_v49, %v10152_v33 }
0x10ba   :  { %v8751_v37 = vadd.f32 %v3538_v63, %v10649_v41 }
0x10bb   :  { %v6540_v27 = vmul.f32 -1.442695, %v8750_v53 }
0x10bc   :  { %v6541_v21 = vmul.f32 -1.442695, %v8751_v37 }
0x10bd   :  { %9180 = vpow2.f32 %v6540_v27  ;;  %v11103_v27 = vrot.slane %v3774_v49, %v10165_v43 }
0x10be   :  { %9182 = vpow2.f32 %v6541_v21 }
0x10bf   :  { %9184 = vtanh.f32 %v8766_v46  ;;  %v11107_v46 = vrot.slane %v3774_v49, %v10172_v61 }
0x10c7   :  { %v9181_v56 = vpop.eup %9180 }
0x10c8   :  { %v9183_v60 = vpop.eup %9182  ;;  %v3619_v48 = vadd.f32 1.0, %v9181_v56 }
0x10c9   :  { %v3625_v4 = vadd.f32 1.0, %v9183_v60  ;;  %v9185_v1 = vpop.eup %9184 }
0x10ca   :  { %9186 = vrcp.f32 %v3619_v48 }
0x10cb   :  { %9188 = vrcp.f32 %v3625_v4 }
0x10d4   :  { %v9187_v15 = vpop.eup %9186 }
0x10d5   :  { %v9189_v12 = vpop.eup %9188  ;;  %v3636_v45 = vmul.f32 %v9187_v15, %v9185_v1 }
0x10d6   :  { %v3635_v51 = vmul.f32 %v9189_v12, %v10914_v52 }
0x10d8   :  { %v11089_v41 = vadd.f32 %v3636_v45, %v3635_v51 }
0x10f8   :  { %v4064_v30 = vpop.f32.mrb[32].mxu0  ;;  %v4135_v9 = vpop.f32.mrb[32].mxu1 }
0x10f9   :  { %v8768_v55 = vadd.f32 %v4064_v30, %v11095_v23  ;;  %v4066_v20 = vpop.f32.mrb[33].mxu0  ;;  %v4137_v53 = vpop.f32.mrb[33].mxu1  ;;  %v8780_v60 = vadd.f32 %v4135_v9, %v11107_v46 }
0x10fa   :  { %v8769_v52 = vadd.f32 %v4066_v20, %v11098_v44  ;;  %v8781_v21 = vadd.f32 %v4137_v53, %v11103_v27 }
0x10fb   :  { %v6543_v63 = vmul.f32 -1.442695, %v8768_v55 }
0x10fc   :  { %v6544_v37 = vmul.f32 -1.442695, %v8769_v52  ;;  %v6545_v56 = vmul.f32 -1.442695, %v8781_v21 }
0x10fd   :  { %9190 = vpow2.f32 %v6543_v63 }
0x10fe   :  { %9192 = vpow2.f32 %v6544_v37 }
0x10ff   :  { %9194 = vpow2.f32 %v6545_v56 }
0x1100   :  { %9196 = vtanh.f32 %v8780_v60 }
0x1107   :  { %v9191_v48 = vpop.eup %9190 }
0x1108   :  { %v9193_v4 = vpop.eup %9192  ;;  %v4147_v1 = vadd.f32 1.0, %v9191_v48 }
0x1109   :  { %v4153_v15 = vadd.f32 1.0, %v9193_v4  ;;  %v9195_v12 = vpop.eup %9194 }
0x110a   :  { %9198 = vrcp.f32 %v4147_v1  ;;  %v9197_v45 = vpop.eup %9196  ;;  %v4160_v20 = vadd.f32 1.0, %v9195_v12 }
0x110b   :  { %9200 = vrcp.f32 %v4153_v15 }
0x110c   :  { %9202 = vrcp.f32 %v4160_v20 }
0x1114   :  { %v9199_v51 = vpop.eup %9198 }
0x1115   :  { %v9201_v30 = vpop.eup %9200  ;;  %v4164_v55 = vmul.f32 %v9199_v51, %v9197_v45 }
0x1116   :  { %v4163_v49 = vmul.f32 %v9201_v30, %v10596_v59  ;;  %v9203_v9 = vpop.eup %9202 }
0x1118   :  { %v11111_v53 = vadd.f32 %v4164_v55, %v4163_v49 }
0x111a   :  { %9204 = vtanh.f32 %v11111_v53 }
0x1124   :  { %v9205_v52 = vpop.eup %9204 }
0x1125   :  { %v11114_v63 = vmul.f32 %v9205_v52, %v9203_v9 }
0x1127   :  { %4233 = vmatmul.mubr.f32.vlgmr.msra.gmra.mrb[34].mxu0 %v11114_v63  ;;  %4304 = vmatmul.mubr.f32.vlgmr.msra.gmra.mrb[34].mxu1 %v11114_v63 }
0x1128   :  { %7979 = vmatpush1.bf16.msra.mxu0 %v10926_v54  ;;  %8011 = vmatpush1.bf16.msra.mxu1 %v10928_v39 }
0x1129   :  { %7981 = vmatprep.subr.bf16.mxu0 %v10932_v40  ;;  %8013 = vmatprep.subr.bf16.mxu1 %v10934_v28 }
0x112a   :  { %4402 = vmatprep.mubr.f32.mxu0 %v9559_v0  ;;  %4473 = vmatprep.mubr.f32.mxu1 %v9559_v0 }
0x112c   :  { %7983 = vmatpush1.bf16.msra.mxu0 %v10938_v5  ;;  %8015 = vmatpush1.bf16.msra.mxu1 %v10940_v7 }
0x112d   :  { %7985 = vmatprep.subr.bf16.mxu0 %v10947_v16  ;;  %8017 = vmatprep.subr.bf16.mxu1 %v10949_v3 }
0x1130   :  { %7987 = vmatpush1.bf16.msra.mxu0 %v10955_v42  ;;  %8019 = vmatpush1.bf16.msra.mxu1 %v10957_v11 }
0x1131   :  { %7989 = vmatprep.subr.bf16.mxu0 %v10964_v19  ;;  %8021 = vmatprep.subr.bf16.mxu1 %v10966_v32 }
0x1134   :  { %7991 = vmatpush1.bf16.msra.mxu0 %v10972_v24  ;;  %8023 = vmatpush1.bf16.msra.mxu1 %v10974_v8 }
0x1135   :  { %7993 = vmatprep.subr.bf16.mxu0 %v10981_v29  ;;  %8025 = vmatprep.subr.bf16.mxu1 %v10983_v58 }
0x1138   :  { %7995 = vmatpush1.bf16.msra.mxu0 %v10989_v14  ;;  %8027 = vmatpush1.bf16.msra.mxu1 %v10991_v18 }
0x1139   :  { %7997 = vmatprep.subr.bf16.mxu0 %v10998_v31  ;;  %8029 = vmatprep.subr.bf16.mxu1 %v11000_v62 }
0x113c   :  { %7999 = vmatpush1.bf16.msra.mxu0 %v11006_v38  ;;  %8031 = vmatpush1.bf16.msra.mxu1 %v11008_v34 }
0x113d   :  { %8001 = vmatprep.subr.bf16.mxu0 %v11015_v6  ;;  %8033 = vmatprep.subr.bf16.mxu1 %v11017_v36 }
0x1140   :  { %8003 = vmatpush1.bf16.msra.mxu0 %v11023_v47  ;;  %8035 = vmatpush1.bf16.msra.mxu1 %v11025_v50 }
0x1141   :  { %8005 = vmatprep.subr.bf16.mxu0 %v11029_v17  ;;  %8037 = vmatprep.subr.bf16.mxu1 %v11031_v57 }
0x1144   :  { %8007 = vmatpush1.bf16.msra.mxu0 %v11037_v22  ;;  %8039 = vmatpush1.bf16.msra.mxu1 %v11039_v2 }
0x1145   :  { %8041 = vmatprep.subr.bf16.mxu0 %v10919_v10  ;;  %8073 = vmatprep.subr.bf16.mxu1 %v10921_v26 }
0x11fa   :  { %v4234_v59 = vpop.f32.mrb[34].mxu0  ;;  %v4305_v37 = vpop.f32.mrb[34].mxu1 }
0x11fb   :  { %v8770_v21 = vadd.f32 %v4234_v59, %v11095_v23  ;;  %v4236_v56 = vpop.f32.mrb[35].mxu0  ;;  %v4307_v60 = vpop.f32.mrb[35].mxu1  ;;  %v8782_v45 = vadd.f32 %v4305_v37, %v11107_v46 }
0x11fc   :  { %v8771_v48 = vadd.f32 %v4236_v56, %v11098_v44  ;;  %v8783_v15 = vadd.f32 %v4307_v60, %v11103_v27 }
0x11fd   :  { %v6546_v4 = vmul.f32 -1.442695, %v8770_v21 }
0x11fe   :  { %v6547_v1 = vmul.f32 -1.442695, %v8771_v48  ;;  %v6548_v12 = vmul.f32 -1.442695, %v8783_v15 }
0x11ff   :  { %9206 = vpow2.f32 %v6546_v4 }
0x1200   :  { %9208 = vpow2.f32 %v6547_v1 }
0x1201   :  { %9210 = vpow2.f32 %v6548_v12 }
0x1202   :  { %9212 = vtanh.f32 %v8782_v45 }
0x1209   :  { %v9207_v51 = vpop.eup %9206 }
0x120a   :  { %v9209_v30 = vpop.eup %9208  ;;  %v4317_v55 = vadd.f32 1.0, %v9207_v51 }
0x120b   :  { %v4323_v20 = vadd.f32 1.0, %v9209_v30  ;;  %v9211_v49 = vpop.eup %9210 }
0x120c   :  { %9214 = vrcp.f32 %v4317_v55  ;;  %v9213_v9 = vpop.eup %9212  ;;  %v4330_v56 = vadd.f32 1.0, %v9211_v49 }
0x120d   :  { %9216 = vrcp.f32 %v4323_v20 }
0x120e   :  { %9218 = vrcp.f32 %v4330_v56 }
0x1216   :  { %v9215_v52 = vpop.eup %9214 }
0x1217   :  { %v9217_v59 = vpop.eup %9216  ;;  %v4334_v21 = vmul.f32 %v9215_v52, %v9213_v9 }
0x1218   :  { %v4333_v48 = vmul.f32 %v9217_v59, %v11111_v53  ;;  %v9219_v37 = vpop.eup %9218 }
0x121a   :  { %v11157_v60 = vadd.f32 %v4334_v21, %v4333_v48 }
0x121c   :  { %9220 = vtanh.f32 %v11157_v60 }
0x1226   :  { %v9221_v4 = vpop.eup %9220 }
0x1227   :  { %v11160_v1 = vmul.f32 %v9221_v4, %v9219_v37 }
0x1229   :  { %4403 = vmatmul.mubr.f32.vlgmr.msra.gmra.mrb[36].mxu0 %v11160_v1  ;;  %4474 = vmatmul.mubr.f32.vlgmr.msra.gmra.mrb[36].mxu1 %v11160_v1 }
0x122a   :  { %8043 = vmatpush1.bf16.msra.mxu0 %v10926_v54  ;;  %8075 = vmatpush1.bf16.msra.mxu1 %v10928_v39 }
0x122b   :  { %8045 = vmatprep.subr.bf16.mxu0 %v10932_v40  ;;  %8077 = vmatprep.subr.bf16.mxu1 %v10934_v28 }
0x122c   :  { %4572 = vmatprep.mubr.f32.mxu0 %v9559_v0  ;;  %4643 = vmatprep.mubr.f32.mxu1 %v9559_v0 }
0x122e   :  { %8047 = vmatpush1.bf16.msra.mxu0 %v10938_v5  ;;  %8079 = vmatpush1.bf16.msra.mxu1 %v10940_v7 }
0x122f   :  { %8049 = vmatprep.subr.bf16.mxu0 %v10947_v16  ;;  %8081 = vmatprep.subr.bf16.mxu1 %v10949_v3 }
0x1232   :  { %8051 = vmatpush1.bf16.msra.mxu0 %v10955_v42  ;;  %8083 = vmatpush1.bf16.msra.mxu1 %v10957_v11 }
0x1233   :  { %8053 = vmatprep.subr.bf16.mxu0 %v10964_v19  ;;  %8085 = vmatprep.subr.bf16.mxu1 %v10966_v32 }
0x1236   :  { %8055 = vmatpush1.bf16.msra.mxu0 %v10972_v24  ;;  %8087 = vmatpush1.bf16.msra.mxu1 %v10974_v8 }
0x1237   :  { %8057 = vmatprep.subr.bf16.mxu0 %v10981_v29  ;;  %8089 = vmatprep.subr.bf16.mxu1 %v10983_v58 }
0x123a   :  { %8059 = vmatpush1.bf16.msra.mxu0 %v10989_v14  ;;  %8091 = vmatpush1.bf16.msra.mxu1 %v10991_v18 }
0x123b   :  { %8061 = vmatprep.subr.bf16.mxu0 %v10998_v31  ;;  %8093 = vmatprep.subr.bf16.mxu1 %v11000_v62 }
0x123e   :  { %8063 = vmatpush1.bf16.msra.mxu0 %v11006_v38  ;;  %8095 = vmatpush1.bf16.msra.mxu1 %v11008_v34 }
0x123f   :  { %8065 = vmatprep.subr.bf16.mxu0 %v11015_v6  ;;  %8097 = vmatprep.subr.bf16.mxu1 %v11017_v36 }
0x1242   :  { %8067 = vmatpush1.bf16.msra.mxu0 %v11023_v47  ;;  %8099 = vmatpush1.bf16.msra.mxu1 %v11025_v50 }
0x1243   :  { %8069 = vmatprep.subr.bf16.mxu0 %v11029_v17  ;;  %8101 = vmatprep.subr.bf16.mxu1 %v11031_v57 }
0x1246   :  { %8071 = vmatpush1.bf16.msra.mxu0 %v11037_v22  ;;  %8103 = vmatpush1.bf16.msra.mxu1 %v11039_v2 }
0x1247   :  { %8105 = vmatprep.subr.bf16.mxu0 %v10919_v10  ;;  %8137 = vmatprep.subr.bf16.mxu1 %v10921_v26 }
0x12fc   :  { %v4404_v53 = vpop.f32.mrb[36].mxu0  ;;  %v4475_v15 = vpop.f32.mrb[36].mxu1 }
0x12fd   :  { %v8772_v12 = vadd.f32 %v4404_v53, %v11095_v23  ;;  %v4406_v45 = vpop.f32.mrb[37].mxu0  ;;  %v4477_v51 = vpop.f32.mrb[37].mxu1  ;;  %v8784_v52 = vadd.f32 %v4475_v15, %v11107_v46 }
0x12fe   :  { %v8773_v30 = vadd.f32 %v4406_v45, %v11098_v44  ;;  %v8785_v49 = vadd.f32 %v4477_v51, %v11103_v27 }
0x12ff   :  { %v6549_v55 = vmul.f32 -1.442695, %v8772_v12 }
0x1300   :  { %v6550_v20 = vmul.f32 -1.442695, %v8773_v30  ;;  %v6551_v9 = vmul.f32 -1.442695, %v8785_v49 }
0x1301   :  { %9222 = vpow2.f32 %v6549_v55 }
0x1302   :  { %9224 = vpow2.f32 %v6550_v20 }
0x1303   :  { %9226 = vpow2.f32 %v6551_v9 }
0x1304   :  { %9228 = vtanh.f32 %v8784_v52 }
0x130b   :  { %v9223_v59 = vpop.eup %9222 }
0x130c   :  { %v9225_v21 = vpop.eup %9224  ;;  %v4487_v56 = vadd.f32 1.0, %v9223_v59 }
0x130d   :  { %v4493_v48 = vadd.f32 1.0, %v9225_v21  ;;  %v9227_v37 = vpop.eup %9226 }
0x130e   :  { %9230 = vrcp.f32 %v4487_v56  ;;  %v9229_v4 = vpop.eup %9228  ;;  %v4500_v30 = vadd.f32 1.0, %v9227_v37 }
0x130f   :  { %9232 = vrcp.f32 %v4493_v48 }
0x1310   :  { %9234 = vrcp.f32 %v4500_v30 }
0x1318   :  { %v9231_v53 = vpop.eup %9230 }
0x1319   :  { %v9233_v12 = vpop.eup %9232  ;;  %v4504_v45 = vmul.f32 %v9231_v53, %v9229_v4 }
0x131a   :  { %v4503_v55 = vmul.f32 %v9233_v12, %v11157_v60  ;;  %v9235_v15 = vpop.eup %9234 }
0x131c   :  { %v11203_v51 = vadd.f32 %v4504_v45, %v4503_v55 }
0x131e   :  { %9236 = vtanh.f32 %v11203_v51 }
0x1328   :  { %v9237_v20 = vpop.eup %9236 }
0x1329   :  { %v11206_v49 = vmul.f32 %v9237_v20, %v9235_v15 }
0x132b   :  { %4573 = vmatmul.mubr.f32.vlgmr.msra.gmra.mrb[38].mxu0 %v11206_v49  ;;  %4644 = vmatmul.mubr.f32.vlgmr.msra.gmra.mrb[38].mxu1 %v11206_v49 }
0x132c   :  { %8107 = vmatpush1.bf16.msra.mxu0 %v10926_v54  ;;  %8139 = vmatpush1.bf16.msra.mxu1 %v10928_v39 }
0x132d   :  { %8109 = vmatprep.subr.bf16.mxu0 %v10932_v40  ;;  %8141 = vmatprep.subr.bf16.mxu1 %v10934_v28 }
0x132e   :  { %4742 = vmatprep.mubr.f32.mxu0 %v9559_v0  ;;  %4813 = vmatprep.mubr.f32.mxu1 %v9559_v0 }
0x1330   :  { %8111 = vmatpush1.bf16.msra.mxu0 %v10938_v5  ;;  %8143 = vmatpush1.bf16.msra.mxu1 %v10940_v7 }
0x1331   :  { %8113 = vmatprep.subr.bf16.mxu0 %v10947_v16  ;;  %8145 = vmatprep.subr.bf16.mxu1 %v10949_v3 }
0x1334   :  { %8115 = vmatpush1.bf16.msra.mxu0 %v10955_v42  ;;  %8147 = vmatpush1.bf16.msra.mxu1 %v10957_v11 }
0x1335   :  { %8117 = vmatprep.subr.bf16.mxu0 %v10964_v19  ;;  %8149 = vmatprep.subr.bf16.mxu1 %v10966_v32 }
0x1338   :  { %8119 = vmatpush1.bf16.msra.mxu0 %v10972_v24  ;;  %8151 = vmatpush1.bf16.msra.mxu1 %v10974_v8 }
0x1339   :  { %8121 = vmatprep.subr.bf16.mxu0 %v10981_v29  ;;  %8153 = vmatprep.subr.bf16.mxu1 %v10983_v58 }
0x133c   :  { %8123 = vmatpush1.bf16.msra.mxu0 %v10989_v14  ;;  %8155 = vmatpush1.bf16.msra.mxu1 %v10991_v18 }
0x133d   :  { %8125 = vmatprep.subr.bf16.mxu0 %v10998_v31  ;;  %8157 = vmatprep.subr.bf16.mxu1 %v11000_v62 }
0x1340   :  { %8127 = vmatpush1.bf16.msra.mxu0 %v11006_v38  ;;  %8159 = vmatpush1.bf16.msra.mxu1 %v11008_v34 }
0x1341   :  { %8129 = vmatprep.subr.bf16.mxu0 %v11015_v6  ;;  %8161 = vmatprep.subr.bf16.mxu1 %v11017_v36 }
0x1344   :  { %8131 = vmatpush1.bf16.msra.mxu0 %v11023_v47  ;;  %8163 = vmatpush1.bf16.msra.mxu1 %v11025_v50 }
0x1345   :  { %8133 = vmatprep.subr.bf16.mxu0 %v11029_v17  ;;  %8165 = vmatprep.subr.bf16.mxu1 %v11031_v57 }
0x1348   :  { %8135 = vmatpush1.bf16.msra.mxu0 %v11037_v22  ;;  %8167 = vmatpush1.bf16.msra.mxu1 %v11039_v2 }
0x1349   :  { %8169 = vmatprep.subr.bf16.mxu0 %v10919_v10  ;;  %8201 = vmatprep.subr.bf16.mxu1 %v10921_v26 }
0x13fe   :  { %v4574_v60 = vpop.f32.mrb[38].mxu0  ;;  %v4645_v9 = vpop.f32.mrb[38].mxu1 }
0x13ff   :  { %v8774_v52 = vadd.f32 %v4574_v60, %v11095_v23  ;;  %v4576_v59 = vpop.f32.mrb[39].mxu0  ;;  %v4647_v21 = vpop.f32.mrb[39].mxu1  ;;  %v8786_v12 = vadd.f32 %v4645_v9, %v11107_v46 }
0x1400   :  { %v8775_v56 = vadd.f32 %v4576_v59, %v11098_v44  ;;  %v8787_v4 = vadd.f32 %v4647_v21, %v11103_v27 }
0x1401   :  { %v6552_v48 = vmul.f32 -1.442695, %v8774_v52 }
0x1402   :  { %v6553_v37 = vmul.f32 -1.442695, %v8775_v56  ;;  %v6554_v53 = vmul.f32 -1.442695, %v8787_v4  ;;  %v5020_v4 = vld [vmem:[#allocation10 + $0x10] sm:$0xff] }
0x1403   :  { %9238 = vpow2.f32 %v6552_v48 }
0x1404   :  { %9240 = vpow2.f32 %v6553_v37 }
0x1405   :  { %9242 = vpow2.f32 %v6554_v53  ;;  %v5024_v53 = vld [vmem:[#allocation10 + $0x30] sm:$0xff] }
0x1406   :  { %9244 = vtanh.f32 %v8786_v12  ;;  %v5027_v12 = vld [vmem:[#allocation10 + $0x48] sm:$0xff] }
0x140d   :  { %v9239_v10 = vpop.eup %9238 }
0x140e   :  { %v9241_v45 = vpop.eup %9240  ;;  %v4657_v26 = vadd.f32 1.0, %v9239_v10  ;;  %v5031_v10 = vld [vmem:[#allocation10 + $0x68] sm:$0xff] }
0x140f   :  { %v4663_v30 = vadd.f32 1.0, %v9241_v45  ;;  %v9243_v55 = vpop.eup %9242  ;;  %v5029_v45 = vld [vmem:[#allocation10 + $0x58] sm:$0xff] }
0x1410   :  { %9246 = vrcp.f32 %v4657_v26  ;;  %v9245_v15 = vpop.eup %9244  ;;  %v4670_v59 = vadd.f32 1.0, %v9243_v55  ;;  %v5033_v26 = vld [vmem:[#allocation10 + $0x78] sm:$0xff] }
0x1411   :  { %9248 = vrcp.f32 %v4663_v30 }
0x1412   :  { %9250 = vrcp.f32 %v4670_v59 }
0x141a   :  { %v9247_v20 = vpop.eup %9246 }
0x141b   :  { %v9249_v60 = vpop.eup %9248  ;;  %v4674_v52 = vmul.f32 %v9247_v20, %v9245_v15  ;;  %v8266_v20 = vpack.c.bf16 %v5024_v53, %v5020_v4  ;;  %v5050_v4 = vld [vmem:[#allocation10 + $0x100] sm:$0xff] }
0x141c   :  { %v4673_v56 = vmul.f32 %v9249_v60, %v11203_v51  ;;  %v9251_v9 = vpop.eup %9250  ;;  %v5022_v51 = vld [vmem:[#allocation10 + $0x20] sm:$0xff] }
0x141d   :  { %v5026_v60 = vld [vmem:[#allocation10 + $0x40] sm:$0xff] }
0x141e   :  { %v11249_v21 = vadd.f32 %v4674_v52, %v4673_v56  ;;  %v5030_v52 = vld [vmem:[#allocation10 + $0x60] sm:$0xff]  ;;  %v8236_v56 = vpack.c.bf16 %v5031_v10, %v5027_v12 }
0x141f   :  { %v5054_v53 = vld [vmem:[#allocation10 + $0x120] sm:$0xff] }
0x1420   :  { %9252 = vtanh.f32 %v11249_v21 }
0x142a   :  { %v9253_v48 = vpop.eup %9252 }
0x142b   :  { %v11252_v37 = vmul.f32 %v9253_v48, %v9251_v9  ;;  %v5028_v9 = vld [vmem:[#allocation10 + $0x50] sm:$0xff] }
0x142c   :  { %v5032_v48 = vld [vmem:[#allocation10 + $0x70] sm:$0xff] }
0x142d   :  { %4743 = vmatmul.mubr.f32.vlgmr.msra.gmra.mrb[40].mxu0 %v11252_v37  ;;  %4814 = vmatmul.mubr.f32.vlgmr.msra.gmra.mrb[40].mxu1 %v11252_v37 }
0x142e   :  { %8171 = vmatpush1.bf16.msra.mxu0 %v10926_v54  ;;  %8203 = vmatpush1.bf16.msra.mxu1 %v10928_v39  ;;  %v5019_v54 = vld [vmem:[#allocation10 + $0x8] sm:$0xff] }
0x142f   :  { %8173 = vmatprep.subr.bf16.mxu0 %v10932_v40  ;;  %8205 = vmatprep.subr.bf16.mxu1 %v10934_v28  ;;  %v5023_v39 = vld [vmem:[#allocation10 + $0x28] sm:$0xff]  ;;  %v5021_v40 = vld [vmem:[#allocation10 + $0x18] sm:$0xff] }
0x1430   :  { %4912 = vmatprep.mubr.f32.mxu0 %v9559_v0  ;;  %4983 = vmatprep.mubr.f32.mxu1 %v9559_v0  ;;  %v8232_v28 = vpack.c.bf16 %v5023_v39, %v5019_v54  ;;  %v5035_v54 = vld [vmem:[#allocation10 + $0x88] sm:$0xff] }
0x1431   :  { %v5039_v39 = vld [vmem:[#allocation10 + $0xa8] sm:$0xff] }
0x1432   :  { %8175 = vmatpush1.bf16.msra.mxu0 %v10938_v5  ;;  %8207 = vmatpush1.bf16.msra.mxu1 %v10940_v7  ;;  %v5025_v5 = vld [vmem:[#allocation10 + $0x38] sm:$0xff] }
0x1433   :  { %8177 = vmatprep.subr.bf16.mxu0 %v10947_v16  ;;  %8209 = vmatprep.subr.bf16.mxu1 %v10949_v3  ;;  %v8264_v7 = vpack.c.bf16 %v5025_v5, %v5021_v40  ;;  %v5037_v40 = vld [vmem:[#allocation10 + $0x98] sm:$0xff]  ;;  %v8238_v5 = vpack.c.bf16 %v5030_v52, %v5026_v60  ;;  %v8250_v60 = vpack.c.bf16 %v5054_v53, %v5050_v4  ;;  %v5082_v4 = vld [vmem:[#allocation12] sm:$0xff] }
0x1436   :  { %8179 = vmatpush1.bf16.msra.mxu0 %v10955_v42  ;;  %8211 = vmatpush1.bf16.msra.mxu1 %v10957_v11 }
0x1437   :  { %8181 = vmatprep.subr.bf16.mxu0 %v10964_v19  ;;  %8213 = vmatprep.subr.bf16.mxu1 %v10966_v32 }
0x143a   :  { %8183 = vmatpush1.bf16.msra.mxu0 %v10972_v24  ;;  %8215 = vmatpush1.bf16.msra.mxu1 %v10974_v8 }
0x143b   :  { %8185 = vmatprep.subr.bf16.mxu0 %v10981_v29  ;;  %8217 = vmatprep.subr.bf16.mxu1 %v10983_v58 }
0x143e   :  { %8187 = vmatpush1.bf16.msra.mxu0 %v10989_v14  ;;  %8219 = vmatpush1.bf16.msra.mxu1 %v10991_v18 }
0x143f   :  { %8189 = vmatprep.subr.bf16.mxu0 %v10998_v31  ;;  %8221 = vmatprep.subr.bf16.mxu1 %v11000_v62 }
0x1442   :  { %8191 = vmatpush1.bf16.msra.mxu0 %v11006_v38  ;;  %8223 = vmatpush1.bf16.msra.mxu1 %v11008_v34 }
0x1443   :  { %8193 = vmatprep.subr.bf16.mxu0 %v11015_v6  ;;  %8225 = vmatprep.subr.bf16.mxu1 %v11017_v36 }
0x1446   :  { %8195 = vmatpush1.bf16.msra.mxu0 %v11023_v47  ;;  %8227 = vmatpush1.bf16.msra.mxu1 %v11025_v50 }
0x1447   :  { %8197 = vmatprep.subr.bf16.mxu0 %v11029_v17  ;;  %8229 = vmatprep.subr.bf16.mxu1 %v11031_v57 }
0x144a   :  { %8199 = vmatpush1.bf16.msra.mxu0 %v11037_v22  ;;  %8231 = vmatpush1.bf16.msra.mxu1 %v11039_v2  ;;  %v5018_v2 = vld [vmem:[#allocation10] sm:$0xff] }
0x144b   :  { %8233 = vmatprep.subr.bf16.mxu0 %v8232_v28  ;;  %8265 = vmatprep.subr.bf16.mxu1 %v8264_v7  ;;  %v8234_v15 = vpack.c.bf16 %v5022_v51, %v5018_v2  ;;  %v5041_v28 = vld [vmem:[#allocation10 + $0xb8] sm:$0xff]  ;;  %v8270_v7 = vpack.c.bf16 %v5032_v48, %v5028_v9 }
0x1500   :  { %v4744_v16 = vpop.f32.mrb[40].mxu0  ;;  %v4815_v3 = vpop.f32.mrb[40].mxu1 }
0x1501   :  { %v8776_v42 = vadd.f32 %v4744_v16, %v11095_v23  ;;  %v4746_v11 = vpop.f32.mrb[41].mxu0  ;;  %v4817_v19 = vpop.f32.mrb[41].mxu1  ;;  %v8788_v14 = vadd.f32 %v4815_v3, %v11107_v46  ;;  %v5034_v16 = vld [vmem:[#allocation10 + $0x80] sm:$0xff] }
0x1502   :  { %v8777_v32 = vadd.f32 %v4746_v11, %v11098_v44  ;;  %v8789_v29 = vadd.f32 %v4817_v19, %v11103_v27  ;;  %v5038_v3 = vld [vmem:[#allocation10 + $0xa0] sm:$0xff]  ;;  %v8272_v11 = vpack.c.bf16 %v5041_v28, %v5037_v40  ;;  %v5036_v19 = vld [vmem:[#allocation10 + $0x90] sm:$0xff]  ;;  %v5067_v40 = vld [vmem:[#allocation10 + $0x188] sm:$0xff] }
0x1503   :  { %v6555_v24 = vmul.f32 -1.442695, %v8776_v42  ;;  %v8240_v42 = vpack.c.bf16 %v5039_v39, %v5035_v54  ;;  %v5060_v54 = vld [vmem:[#allocation10 + $0x150] sm:$0xff]  ;;  %v5071_v28 = vld [vmem:[#allocation10 + $0x1a8] sm:$0xff] }
0x1504   :  { %v6556_v8 = vmul.f32 -1.442695, %v8777_v32  ;;  %v6557_v58 = vmul.f32 -1.442695, %v8789_v29  ;;  %v5040_v32 = vld [vmem:[#allocation10 + $0xb0] sm:$0xff]  ;;  %v5045_v29 = vld [vmem:[#allocation10 + $0xd8] sm:$0xff] }
0x1505   :  { %9254 = vpow2.f32 %v6555_v24  ;;  %v5043_v24 = vld [vmem:[#allocation10 + $0xc8] sm:$0xff]  ;;  %v5064_v39 = vld [vmem:[#allocation10 + $0x170] sm:$0xff] }
0x1506   :  { %9256 = vpow2.f32 %v6556_v8  ;;  %v5047_v8 = vld [vmem:[#allocation10 + $0xe8] sm:$0xff] }
0x1507   :  { %9258 = vpow2.f32 %v6557_v58  ;;  %v5049_v58 = vld [vmem:[#allocation10 + $0xf8] sm:$0xff] }
0x1508   :  { %9260 = vtanh.f32 %v8788_v14  ;;  %v8242_v14 = vpack.c.bf16 %v5038_v3, %v5034_v16  ;;  %v8286_v3 = vpack.c.bf16 %v5064_v39, %v5060_v54  ;;  %v5099_v39 = vld [vmem:[#allocation12 + $0x88] sm:$0xff] }
0x150f   :  { %v9255_v18 = vpop.eup %9254 }
0x1510   :  { %v9257_v31 = vpop.eup %9256  ;;  %v4827_v62 = vadd.f32 1.0, %v9255_v18  ;;  %v8274_v18 = vpack.c.bf16 %v5040_v32, %v5036_v19  ;;  %v8256_v19 = vpack.c.bf16 %v5071_v28, %v5067_v40  ;;  %v5103_v40 = vld [vmem:[#allocation12 + $0xa8] sm:$0xff]  ;;  %v5101_v28 = vld [vmem:[#allocation12 + $0x98] sm:$0xff] }
0x1511   :  { %v4833_v38 = vadd.f32 1.0, %v9257_v31  ;;  %v9259_v34 = vpop.eup %9258  ;;  %v5042_v31 = vld [vmem:[#allocation10 + $0xc0] sm:$0xff] }
0x1512   :  { %9262 = vrcp.f32 %v4827_v62  ;;  %v9261_v6 = vpop.eup %9260  ;;  %v4840_v17 = vadd.f32 1.0, %v9259_v34  ;;  %v5046_v62 = vld [vmem:[#allocation10 + $0xe0] sm:$0xff]  ;;  %v8276_v34 = vpack.c.bf16 %v5049_v58, %v5045_v29  ;;  %v5075_v29 = vld [vmem:[#allocation10 + $0x1c8] sm:$0xff] }
0x1513   :  { %9264 = vrcp.f32 %v4833_v38  ;;  %v8244_v38 = vpack.c.bf16 %v5047_v8, %v5043_v24  ;;  %v8246_v2 = vpack.c.bf16 %v5046_v62, %v5042_v31  ;;  %v5068_v24 = vld [vmem:[#allocation10 + $0x190] sm:$0xff]  ;;  %v5079_v58 = vld [vmem:[#allocation10 + $0x1e8] sm:$0xff] }
0x1514   :  { %9266 = vrcp.f32 %v4840_v17  ;;  %v5053_v17 = vld [vmem:[#allocation10 + $0x118] sm:$0xff]  ;;  %v5072_v8 = vld [vmem:[#allocation10 + $0x1b0] sm:$0xff] }
0x1515   :  { %v8290_v62 = vpack.c.bf16 %v5072_v8, %v5068_v24  ;;  %v5107_v8 = vld [vmem:[#allocation12 + $0xc8] sm:$0xff] }
0x151c   :  { %v9263_v36 = vpop.eup %9262 }
0x151d   :  { %v9265_v47 = vpop.eup %9264  ;;  %v4844_v50 = vmul.f32 %v9263_v36, %v9261_v6  ;;  %v5044_v6 = vld [vmem:[#allocation10 + $0xd0] sm:$0xff] }
0x151e   :  { %v4843_v57 = vmul.f32 %v9265_v47, %v11249_v21  ;;  %v9267_v30 = vpop.eup %9266  ;;  %v8268_v21 = vpack.c.bf16 %v5033_v26, %v5029_v45  ;;  %v5048_v36 = vld [vmem:[#allocation10 + $0xf0] sm:$0xff]  ;;  %v5051_v47 = vld [vmem:[#allocation10 + $0x108] sm:$0xff] }
0x151f   :  { %v8278_v51 = vpack.c.bf16 %v5048_v36, %v5044_v6  ;;  %v5052_v45 = vld [vmem:[#allocation10 + $0x110] sm:$0xff]  ;;  %v5078_v36 = vld [vmem:[#allocation10 + $0x1e0] sm:$0xff] }
0x1520   :  { %v11293_v22 = vadd.f32 %v4844_v50, %v4843_v57  ;;  %v5055_v50 = vld [vmem:[#allocation10 + $0x128] sm:$0xff]  ;;  %v5057_v57 = vld [vmem:[#allocation10 + $0x138] sm:$0xff]  ;;  %v5056_v26 = vld [vmem:[#allocation10 + $0x130] sm:$0xff] }
0x1521   :  { %v8248_v12 = vpack.c.bf16 %v5055_v50, %v5051_v47  ;;  %v8280_v10 = vpack.c.bf16 %v5057_v57, %v5053_v17  ;;  %v8282_v52 = vpack.c.bf16 %v5056_v26, %v5052_v45  ;;  %v5076_v47 = vld [vmem:[#allocation10 + $0x1d0] sm:$0xff]  ;;  %v5091_v26 = vld [vmem:[#allocation12 + $0x48] sm:$0xff] }
0x1522   :  { %9268 = vtanh.f32 %v11293_v22  ;;  %v5080_v50 = vld [vmem:[#allocation10 + $0x1f0] sm:$0xff] }
0x1523   :  { %v8294_v57 = vpack.c.bf16 %v5080_v50, %v5076_v47  ;;  %v5088_v45 = vld [vmem:[#allocation12 + $0x30] sm:$0xff]  ;;  %v5115_v47 = vld [vmem:[#allocation12 + $0x108] sm:$0xff] }
0x152c   :  { %v9269_v55 = vpop.eup %9268 }
0x152d   :  { %v11296_v59 = vmul.f32 %v9269_v55, %v9267_v30  ;;  %v5059_v30 = vld [vmem:[#allocation10 + $0x148] sm:$0xff] }
0x152e   :  { %v5063_v55 = vld [vmem:[#allocation10 + $0x168] sm:$0xff] }
0x152f   :  { %4913 = vmatmul.mubr.f32.vlgmr.msra.gmra.mrb[42].mxu0 %v11296_v59  ;;  %4984 = vmatmul.mubr.f32.vlgmr.msra.gmra.mrb[42].mxu1 %v11296_v59  ;;  %v8252_v9 = vpack.c.bf16 %v5063_v55, %v5059_v30  ;;  %v5095_v30 = vld [vmem:[#allocation12 + $0x68] sm:$0xff]  ;;  %v5093_v55 = vld [vmem:[#allocation12 + $0x58] sm:$0xff] }
0x1530   :  { %8235 = vmatpush1.bf16.msra.mxu0 %v8234_v15  ;;  %8267 = vmatpush1.bf16.msra.mxu1 %v8266_v20  ;;  %v5061_v15 = vld [vmem:[#allocation10 + $0x158] sm:$0xff] }
0x1531   :  { %8237 = vmatprep.subr.bf16.mxu0 %v8236_v56  ;;  %8269 = vmatprep.subr.bf16.mxu1 %v8268_v21  ;;  %v5065_v20 = vld [vmem:[#allocation10 + $0x178] sm:$0xff]  ;;  %v5058_v56 = vld [vmem:[#allocation10 + $0x140] sm:$0xff] }
0x1532   :  { %5232 = vmatprep.mubr.f32.mxu0 %v9559_v0  ;;  %5333 = vmatprep.mubr.f32.mxu1 %v9559_v0  ;;  %v5062_v21 = vld [vmem:[#allocation10 + $0x160] sm:$0xff]  ;;  %v8284_v48 = vpack.c.bf16 %v5065_v20, %v5061_v15  ;;  %v11334_v15 = vpack.c.bf16 %v5095_v30, %v5091_v26  ;;  %v5097_v20 = vld [vmem:[#allocation12 + $0x78] sm:$0xff]  ;;  %v5123_v26 = vld [vmem:[#allocation12 + $0x148] sm:$0xff] }
0x1533   :  { %v8254_v16 = vpack.c.bf16 %v5062_v21, %v5058_v56  ;;  %v11336_v56 = vpack.c.bf16 %v5097_v20, %v5093_v55  ;;  %v5127_v30 = vld [vmem:[#allocation12 + $0x168] sm:$0xff] }
0x1534   :  { %8239 = vmatpush1.bf16.msra.mxu0 %v8238_v5  ;;  %8271 = vmatpush1.bf16.msra.mxu1 %v8270_v7  ;;  %v5069_v5 = vld [vmem:[#allocation10 + $0x198] sm:$0xff]  ;;  %v11380_v20 = vpack.c.bf16 %v5127_v30, %v5123_v26 }
0x1535   :  { %8241 = vmatprep.subr.bf16.mxu0 %v8240_v42  ;;  %8273 = vmatprep.subr.bf16.mxu1 %v8272_v11  ;;  %v5073_v7 = vld [vmem:[#allocation10 + $0x1b8] sm:$0xff]  ;;  %v5066_v42 = vld [vmem:[#allocation10 + $0x180] sm:$0xff] }
0x1536   :  { %v5070_v11 = vld [vmem:[#allocation10 + $0x1a0] sm:$0xff]  ;;  %v8288_v32 = vpack.c.bf16 %v5073_v7, %v5069_v5  ;;  %v11346_v5 = vpack.c.bf16 %v5103_v40, %v5099_v39  ;;  %v5105_v7 = vld [vmem:[#allocation12 + $0xb8] sm:$0xff]  ;;  %v5124_v40 = vld [vmem:[#allocation12 + $0x150] sm:$0xff] }
0x1537   :  { %v8258_v31 = vpack.c.bf16 %v5070_v11, %v5066_v42  ;;  %v11348_v42 = vpack.c.bf16 %v5105_v7, %v5101_v28  ;;  %v5126_v39 = vld [vmem:[#allocation12 + $0x160] sm:$0xff]  ;;  %v5128_v28 = vld [vmem:[#allocation12 + $0x170] sm:$0xff] }
0x1538   :  { %8243 = vmatpush1.bf16.msra.mxu0 %v8242_v14  ;;  %8275 = vmatpush1.bf16.msra.mxu1 %v8274_v18  ;;  %v5077_v14 = vld [vmem:[#allocation10 + $0x1d8] sm:$0xff] }
0x1539   :  { %8245 = vmatprep.subr.bf16.mxu0 %v8244_v38  ;;  %8277 = vmatprep.subr.bf16.mxu1 %v8276_v34  ;;  %v5081_v18 = vld [vmem:[#allocation10 + $0x1f8] sm:$0xff]  ;;  %v5074_v38 = vld [vmem:[#allocation10 + $0x1c0] sm:$0xff]  ;;  %v8260_v34 = vpack.c.bf16 %v5079_v58, %v5075_v29  ;;  %v5111_v29 = vld [vmem:[#allocation12 + $0xe8] sm:$0xff] }
0x153a   :  { %v8292_v6 = vpack.c.bf16 %v5081_v18, %v5077_v14  ;;  %v8262_v17 = vpack.c.bf16 %v5078_v36, %v5074_v38  ;;  %v5109_v58 = vld [vmem:[#allocation12 + $0xd8] sm:$0xff]  ;;  %v11358_v14 = vpack.c.bf16 %v5111_v29, %v5107_v8  ;;  %v5112_v36 = vld [vmem:[#allocation12 + $0xf0] sm:$0xff] }
0x153b   :  { %v5113_v18 = vld [vmem:[#allocation12 + $0xf8] sm:$0xff] }
0x153c   :  { %8247 = vmatpush1.bf16.msra.mxu0 %v8246_v2  ;;  %8279 = vmatpush1.bf16.msra.mxu1 %v8278_v51  ;;  %v5089_v51 = vld [vmem:[#allocation12 + $0x38] sm:$0xff]  ;;  %v11360_v38 = vpack.c.bf16 %v5113_v18, %v5109_v58  ;;  %v5130_v58 = vld [vmem:[#allocation12 + $0x180] sm:$0xff] }
0x153d   :  { %8249 = vmatprep.subr.bf16.mxu0 %v8248_v12  ;;  %8281 = vmatprep.subr.bf16.mxu1 %v8280_v10  ;;  %v5084_v10 = vld [vmem:[#allocation12 + $0x10] sm:$0xff]  ;;  %v5137_v29 = vld [vmem:[#allocation12 + $0x1b8] sm:$0xff]  ;;  %v5134_v18 = vld [vmem:[#allocation12 + $0x1a0] sm:$0xff] }
0x1540   :  { %8251 = vmatpush1.bf16.msra.mxu0 %v8250_v60  ;;  %8283 = vmatpush1.bf16.msra.mxu1 %v8282_v52  ;;  %v5090_v60 = vld [vmem:[#allocation12 + $0x40] sm:$0xff] }
0x1541   :  { %8253 = vmatprep.subr.bf16.mxu0 %v8252_v9  ;;  %8285 = vmatprep.subr.bf16.mxu1 %v8284_v48  ;;  %v5094_v52 = vld [vmem:[#allocation12 + $0x60] sm:$0xff]  ;;  %v5092_v9 = vld [vmem:[#allocation12 + $0x50] sm:$0xff] }
0x1542   :  { %v11338_v21 = vpack.c.bf16 %v5094_v52, %v5090_v60  ;;  %v5096_v48 = vld [vmem:[#allocation12 + $0x70] sm:$0xff]  ;;  %v5125_v60 = vld [vmem:[#allocation12 + $0x158] sm:$0xff] }
0x1543   :  { %v11341_v54 = vpack.c.bf16 %v5096_v48, %v5092_v9  ;;  %v5129_v52 = vld [vmem:[#allocation12 + $0x178] sm:$0xff]  ;;  %v5122_v9 = vld [vmem:[#allocation12 + $0x140] sm:$0xff] }
0x1544   :  { %8255 = vmatpush1.bf16.msra.mxu0 %v8254_v16  ;;  %8287 = vmatpush1.bf16.msra.mxu1 %v8286_v3  ;;  %v5098_v16 = vld [vmem:[#allocation12 + $0x80] sm:$0xff]  ;;  %v11382_v48 = vpack.c.bf16 %v5129_v52, %v5125_v60  ;;  %v11385_v7 = vpack.c.bf16 %v5126_v39, %v5122_v9  ;;  %v5140_v60 = vld [vmem:[#allocation12 + $0x1d0] sm:$0xff] }
0x1545   :  { %8257 = vmatprep.subr.bf16.mxu0 %v8256_v19  ;;  %8289 = vmatprep.subr.bf16.mxu1 %v8288_v32  ;;  %v5102_v3 = vld [vmem:[#allocation12 + $0xa0] sm:$0xff]  ;;  %v5100_v19 = vld [vmem:[#allocation12 + $0x90] sm:$0xff] }
0x1546   :  { %v11350_v11 = vpack.c.bf16 %v5102_v3, %v5098_v16  ;;  %v5104_v32 = vld [vmem:[#allocation12 + $0xb0] sm:$0xff]  ;;  %v5131_v16 = vld [vmem:[#allocation12 + $0x188] sm:$0xff] }
0x1547   :  { %v11353_v24 = vpack.c.bf16 %v5104_v32, %v5100_v19  ;;  %v5135_v3 = vld [vmem:[#allocation12 + $0x1a8] sm:$0xff]  ;;  %v5133_v19 = vld [vmem:[#allocation12 + $0x198] sm:$0xff]  ;;  %v11389_v32 = vpack.c.bf16 %v5128_v28, %v5124_v40  ;;  %v5144_v52 = vld [vmem:[#allocation12 + $0x1f0] sm:$0xff] }
0x1548   :  { %8259 = vmatpush1.bf16.msra.mxu0 %v8258_v31  ;;  %8291 = vmatpush1.bf16.msra.mxu1 %v8290_v62  ;;  %v5106_v31 = vld [vmem:[#allocation12 + $0xc0] sm:$0xff]  ;;  %v11391_v8 = vpack.c.bf16 %v5135_v3, %v5131_v16  ;;  %v11413_v9 = vpack.c.bf16 %v5144_v52, %v5140_v60 }
0x1549   :  { %8261 = vmatprep.subr.bf16.mxu0 %v8260_v34  ;;  %8293 = vmatprep.subr.bf16.mxu1 %v8292_v6  ;;  %v5110_v62 = vld [vmem:[#allocation12 + $0xe0] sm:$0xff]  ;;  %v5108_v6 = vld [vmem:[#allocation12 + $0xd0] sm:$0xff] }
0x154a   :  { %v11362_v34 = vpack.c.bf16 %v5110_v62, %v5106_v31  ;;  %v11365_v50 = vpack.c.bf16 %v5112_v36, %v5108_v6  ;;  %v11394_v31 = vpack.c.bf16 %v5137_v29, %v5133_v19  ;;  %v5132_v62 = vld [vmem:[#allocation12 + $0x190] sm:$0xff]  ;;  %v11397_v36 = vpack.c.bf16 %v5134_v18, %v5130_v58 }
0x154b   :  { %v5136_v6 = vld [vmem:[#allocation12 + $0x1b0] sm:$0xff] }
0x154c   :  { %8263 = vmatpush1.bf16.msra.mxu0 %v8262_v17  ;;  %8295 = vmatpush1.bf16.msra.mxu1 %v8294_v57  ;;  %v5119_v17 = vld [vmem:[#allocation12 + $0x128] sm:$0xff]  ;;  %v5117_v57 = vld [vmem:[#allocation12 + $0x118] sm:$0xff] }
0x154f   :  { %5233 = vmatmul.mubr.f32.vlgmr.msra.gmra.mrb[44].mxu0 %v11114_v63  ;;  %5334 = vmatmul.mubr.f32.vlgmr.msra.gmra.mrb[44].mxu1 %v11114_v63  ;;  %v5083_v63 = vld [vmem:[#allocation12 + $0x8] sm:$0xff] }
0x1550   :  { %5238 = vmatprep.mubr.f32.mxu0 %v9559_v0  ;;  %5339 = vmatprep.mubr.f32.mxu1 %v9559_v0 }
0x1553   :  { %5239 = vmatmul.mubr.f32.gmra.mrb[46].mxu0 %v11160_v1  ;;  %5340 = vmatmul.mubr.f32.gmra.mrb[46].mxu1 %v11160_v1  ;;  %v5087_v1 = vld [vmem:[#allocation12 + $0x28] sm:$0xff] }
0x1554   :  { %5244 = vmatprep.mubr.f32.mxu0 %v9559_v0  ;;  %5345 = vmatprep.mubr.f32.mxu1 %v9559_v0  ;;  %v11322_v2 = vpack.c.bf16 %v5087_v1, %v5083_v63  ;;  %v5121_v63 = vld [vmem:[#allocation12 + $0x138] sm:$0xff]  ;;  %v11369_v1 = vpack.c.bf16 %v5119_v17, %v5115_v47  ;;  %v11401_v47 = vpack.c.bf16 %v5136_v6, %v5132_v62  ;;  %v5139_v17 = vld [vmem:[#allocation12 + $0x1c8] sm:$0xff] }
0x1555   :  { %v8767_v6 = vadd.f32 %v11084_v25, %v10654_v13 }
0x1556   :  { %8297 = vmatprep.subr.bf16.mxu0 %v11322_v2 }
0x1557   :  { %5245 = vmatmul.mubr.f32.gmra.mrb[48].mxu0 %v11206_v49  ;;  %5346 = vmatmul.mubr.f32.gmra.mrb[48].mxu1 %v11206_v49  ;;  %v5085_v49 = vld [vmem:[#allocation12 + $0x18] sm:$0xff] }
0x1558   :  { %5250 = vmatprep.mubr.f32.mxu0 %v9559_v0  ;;  %5351 = vmatprep.mubr.f32.mxu1 %v9559_v0  ;;  %v11324_v53 = vpack.c.bf16 %v5089_v51, %v5085_v49  ;;  %v11371_v49 = vpack.c.bf16 %v5121_v63, %v5117_v57  ;;  %v5114_v51 = vld [vmem:[#allocation12 + $0x100] sm:$0xff]  ;;  %v5143_v57 = vld [vmem:[#allocation12 + $0x1e8] sm:$0xff]  ;;  %v5141_v63 = vld [vmem:[#allocation12 + $0x1d8] sm:$0xff] }
0x155a   :  { %8329 = vmatprep.subr.bf16.mxu1 %v11324_v53 }
0x155b   :  { %5251 = vmatmul.mubr.f32.gmra.mrb[50].mxu0 %v11252_v37  ;;  %5352 = vmatmul.mubr.f32.gmra.mrb[50].mxu1 %v11252_v37  ;;  %v5086_v37 = vld [vmem:[#allocation12 + $0x20] sm:$0xff] }
0x155c   :  { %5256 = vmatprep.mubr.f32.mxu0 %v9559_v0  ;;  %5357 = vmatprep.mubr.f32.mxu1 %v9559_v0  ;;  %v11326_v12 = vpack.c.bf16 %v5086_v37, %v5082_v4  ;;  %v5118_v4 = vld [vmem:[#allocation12 + $0x120] sm:$0xff]  ;;  %v5116_v37 = vld [vmem:[#allocation12 + $0x110] sm:$0xff] }
0x155e   :  { %8299 = vmatpush1.bf16.msra.mxu0 %v11326_v12 }
0x155f   :  { %5257 = vmatmul.mubr.f32.gmra.mrb[52].mxu0 %v11296_v59  ;;  %5358 = vmatmul.mubr.f32.gmra.mrb[52].mxu1 %v11296_v59  ;;  %v11329_v59 = vpack.c.bf16 %v5088_v45, %v5084_v10  ;;  %v11374_v10 = vpack.c.bf16 %v5118_v4, %v5114_v51  ;;  %v5120_v45 = vld [vmem:[#allocation12 + $0x130] sm:$0xff]  ;;  %v11406_v51 = vpack.c.bf16 %v5143_v57, %v5139_v17  ;;  %v5145_v4 = vld [vmem:[#allocation12 + $0x1f8] sm:$0xff] }
0x1560   :  { %5262 = vmatprep.mubr.f32.mxu0 %v9559_v0  ;;  %5363 = vmatprep.mubr.f32.mxu1 %v9559_v0  ;;  %v11378_v55 = vpack.c.bf16 %v5120_v45, %v5116_v37  ;;  %v5138_v37 = vld [vmem:[#allocation12 + $0x1c0] sm:$0xff]  ;;  %v11408_v26 = vpack.c.bf16 %v5145_v4, %v5141_v63 }
0x1561   :  { %8331 = vmatpush1.bf16.msra.mxu1 %v11329_v59  ;;  %8301 = vmatprep.subr.bf16.mxu0 %v11334_v15  ;;  %v5142_v45 = vld [vmem:[#allocation12 + $0x1e0] sm:$0xff] }
0x1562   :  { %8333 = vmatprep.subr.bf16.mxu1 %v11336_v56  ;;  %8303 = vmatpush1.bf16.msra.mxu0 %v11338_v21  ;;  %v11410_v30 = vpack.c.bf16 %v5142_v45, %v5138_v37 }
0x1563   :  { %8305 = vmatprep.subr.bf16.mxu0 %v11346_v5 }
0x1565   :  { %8335 = vmatpush1.bf16.msra.mxu1 %v11341_v54 }
0x1566   :  { %8337 = vmatprep.subr.bf16.mxu1 %v11348_v42  ;;  %8307 = vmatpush1.bf16.msra.mxu0 %v11350_v11 }
0x1567   :  { %8309 = vmatprep.subr.bf16.mxu0 %v11358_v14 }
0x1569   :  { %8339 = vmatpush1.bf16.msra.mxu1 %v11353_v24 }
0x156a   :  { %8341 = vmatprep.subr.bf16.mxu1 %v11360_v38  ;;  %8311 = vmatpush1.bf16.msra.mxu0 %v11362_v34 }
0x156b   :  { %8313 = vmatprep.subr.bf16.mxu0 %v11369_v1 }
0x156d   :  { %8343 = vmatpush1.bf16.msra.mxu1 %v11365_v50 }
0x156e   :  { %8345 = vmatprep.subr.bf16.mxu1 %v11371_v49  ;;  %8315 = vmatpush1.bf16.msra.mxu0 %v11374_v10 }
0x156f   :  { %8317 = vmatprep.subr.bf16.mxu0 %v11380_v20 }
0x1571   :  { %8347 = vmatpush1.bf16.msra.mxu1 %v11378_v55 }
0x1572   :  { %8349 = vmatprep.subr.bf16.mxu1 %v11382_v48  ;;  %8319 = vmatpush1.bf16.msra.mxu0 %v11385_v7 }
0x1573   :  { %8321 = vmatprep.subr.bf16.mxu0 %v11391_v8 }
0x1575   :  { %8351 = vmatpush1.bf16.msra.mxu1 %v11389_v32 }
0x1576   :  { %8353 = vmatprep.subr.bf16.mxu1 %v11394_v31  ;;  %8323 = vmatpush1.bf16.msra.mxu0 %v11397_v36 }
0x1577   :  { %8325 = vmatprep.subr.bf16.mxu0 %v11406_v51 }
0x1579   :  { %8355 = vmatpush1.bf16.msra.mxu1 %v11401_v47 }
0x157a   :  { %8357 = vmatprep.subr.bf16.mxu1 %v11408_v26  ;;  %8327 = vmatpush1.bf16.msra.mxu0 %v11410_v30 }
0x157b   :  { %8361 = vmatprep.subr.bf16.mxu0 %v11322_v2 }
0x157d   :  { %8359 = vmatpush1.bf16.msra.mxu1 %v11413_v9 }
0x157e   :  { %8393 = vmatprep.subr.bf16.mxu1 %v11324_v53 }
0x1602   :  { %v4914_v39 = vpop.f32.mrb[42].mxu0  ;;  %v4985_v40 = vpop.f32.mrb[42].mxu1 }
0x1603   :  { %v8778_v28 = vadd.f32 %v4914_v39, %v11095_v23  ;;  %v4916_v16 = vpop.f32.mrb[43].mxu0  ;;  %v4987_v3 = vpop.f32.mrb[43].mxu1  ;;  %v8790_v17 = vadd.f32 %v4985_v40, %v11107_v46  ;;  %v6542_v23 = vmul.f32 -1.442695, %v8767_v6 }
0x1604   :  { %v8779_v19 = vadd.f32 %v4916_v16, %v11098_v44  ;;  %v8791_v18 = vadd.f32 %v4987_v3, %v11103_v27 }
0x1605   :  { %v6558_v29 = vmul.f32 -1.442695, %v8778_v28 }
0x1606   :  { %v6559_v58 = vmul.f32 -1.442695, %v8779_v19  ;;  %v6560_v62 = vmul.f32 -1.442695, %v8791_v18 }
0x1607   :  { %9270 = vpow2.f32 %v6558_v29 }
0x1608   :  { %9272 = vpow2.f32 %v6559_v58  ;;  %v5146_v58 = vld [vmem:[%s11728_s15] sm:$0xf] }
0x1609   :  { %9274 = vpow2.f32 %v6560_v62  ;;  %v11468_v18 = vrot.slane %v5146_v58, %v10152_v33  ;;  %v11471_v62 = vrot.slane %v5146_v58, %v10157_v35  ;;  %v11480_v35 = vrot.slane %v5146_v58, %v10172_v61 }
0x160a   :  { %9276 = vtanh.f32 %v8790_v17 }
0x1611   :  { %v9271_v57 = vpop.eup %9270 }
0x1612   :  { %v9273_v63 = vpop.eup %9272  ;;  %v4997_v4 = vadd.f32 1.0, %v9271_v57 }
0x1613   :  { %v5003_v37 = vadd.f32 1.0, %v9273_v63  ;;  %v9275_v44 = vpop.eup %9274 }
0x1614   :  { %9278 = vrcp.f32 %v4997_v4  ;;  %v9277_v45 = vpop.eup %9276  ;;  %v5010_v39 = vadd.f32 1.0, %v9275_v44 }
0x1615   :  { %9280 = vrcp.f32 %v5003_v37 }
0x1616   :  { %9282 = vpow2.f32 %v6542_v23 }
0x1617   :  { %9284 = vrcp.f32 %v5010_v39 }
0x161e   :  { %v9279_v60 = vpop.eup %9278 }
0x161f   :  { %v9281_v27 = vpop.eup %9280  ;;  %v5014_v52 = vmul.f32 %v9279_v60, %v9277_v45  ;;  %v11476_v45 = vrot.slane %v5146_v58, %v10165_v43 }
0x1620   :  { %v5013_v13 = vmul.f32 %v9281_v27, %v11293_v22  ;;  %v9283_v25 = vpop.eup %9282 }
0x1621   :  { %v3632_v40 = vadd.f32 1.0, %v9283_v25  ;;  %v9285_v28 = vpop.eup %9284 }
0x1622   :  { %v5015_v46 = vadd.f32 %v5014_v52, %v5013_v13 }
0x1624   :  { %9286 = vtanh.f32 %v5015_v46 }
0x1625   :  { %9288 = vtanh.f32 %v11089_v41 }
0x1626   :  { %9290 = vrcp.f32 %v3632_v40 }
0x162e   :  { %v9287_v16 = vpop.eup %9286 }
0x162f   :  { %v5017_v3 = vmul.f32 %v9287_v16, %v9285_v28  ;;  %v9289_v19 = vpop.eup %9288 }
0x1630   :  { %v9291_v29 = vpop.eup %9290 }
0x1631   :  { %5263 = vmatmul.mubr.f32.gmra.mrb[54].mxu0 %v5017_v3  ;;  %5364 = vmatmul.mubr.f32.gmra.mrb[54].mxu1 %v5017_v3  ;;  %v3639_v22 = vmul.f32 %v9291_v29, %v9289_v19 }
0x1632   :  { %5434 = vmatprep.mubr.f32.mxu0 %v9559_v0  ;;  %5505 = vmatprep.mubr.f32.mxu1 %v9559_v0 }
0x1635   :  { %5435 = vmatmul.mubr.f32.vlgmr.msra.gmra.mrb[44].mxu0 %v3639_v22  ;;  %5506 = vmatmul.mubr.f32.vlgmr.msra.gmra.mrb[44].mxu1 %v3639_v22 }
0x1636   :  { %8363 = vmatpush1.bf16.msra.mxu0 %v11326_v12  ;;  %8395 = vmatpush1.bf16.msra.mxu1 %v11329_v59 }
0x1637   :  { %8365 = vmatprep.subr.bf16.mxu0 %v11334_v15  ;;  %8397 = vmatprep.subr.bf16.mxu1 %v11336_v56 }
0x1638   :  { %5604 = vmatprep.mubr.f32.mxu0 %v9559_v0  ;;  %5675 = vmatprep.mubr.f32.mxu1 %v9559_v0 }
0x163a   :  { %8367 = vmatpush1.bf16.msra.mxu0 %v11338_v21  ;;  %8399 = vmatpush1.bf16.msra.mxu1 %v11341_v54 }
0x163b   :  { %8369 = vmatprep.subr.bf16.mxu0 %v11346_v5  ;;  %8401 = vmatprep.subr.bf16.mxu1 %v11348_v42 }
0x163e   :  { %8371 = vmatpush1.bf16.msra.mxu0 %v11350_v11  ;;  %8403 = vmatpush1.bf16.msra.mxu1 %v11353_v24 }
0x163f   :  { %8373 = vmatprep.subr.bf16.mxu0 %v11358_v14  ;;  %8405 = vmatprep.subr.bf16.mxu1 %v11360_v38 }
0x1642   :  { %8375 = vmatpush1.bf16.msra.mxu0 %v11362_v34  ;;  %8407 = vmatpush1.bf16.msra.mxu1 %v11365_v50 }
0x1643   :  { %8377 = vmatprep.subr.bf16.mxu0 %v11369_v1  ;;  %8409 = vmatprep.subr.bf16.mxu1 %v11371_v49 }
0x1646   :  { %8379 = vmatpush1.bf16.msra.mxu0 %v11374_v10  ;;  %8411 = vmatpush1.bf16.msra.mxu1 %v11378_v55 }
0x1647   :  { %8381 = vmatprep.subr.bf16.mxu0 %v11380_v20  ;;  %8413 = vmatprep.subr.bf16.mxu1 %v11382_v48 }
0x164a   :  { %8383 = vmatpush1.bf16.msra.mxu0 %v11385_v7  ;;  %8415 = vmatpush1.bf16.msra.mxu1 %v11389_v32 }
0x164b   :  { %8385 = vmatprep.subr.bf16.mxu0 %v11391_v8  ;;  %8417 = vmatprep.subr.bf16.mxu1 %v11394_v31 }
0x164e   :  { %8387 = vmatpush1.bf16.msra.mxu0 %v11397_v36  ;;  %8419 = vmatpush1.bf16.msra.mxu1 %v11401_v47 }
0x164f   :  { %8389 = vmatprep.subr.bf16.mxu0 %v11406_v51  ;;  %8421 = vmatprep.subr.bf16.mxu1 %v11408_v26 }
0x1652   :  { %8391 = vmatpush1.bf16.msra.mxu0 %v11410_v30  ;;  %8423 = vmatpush1.bf16.msra.mxu1 %v11413_v9 }
0x1653   :  { %8425 = vmatprep.subr.bf16.mxu0 %v11322_v2  ;;  %8457 = vmatprep.subr.bf16.mxu1 %v11324_v53 }
0x1708   :  { %v5436_v6 = vpop.f32.mrb[44].mxu0  ;;  %v5507_v17 = vpop.f32.mrb[44].mxu1 }
0x1709   :  { %v8792_v57 = vadd.f32 %v5436_v6, %v11468_v18  ;;  %v5438_v63 = vpop.f32.mrb[45].mxu0  ;;  %v5509_v4 = vpop.f32.mrb[45].mxu1  ;;  %v8804_v27 = vadd.f32 %v5507_v17, %v11480_v35 }
0x170a   :  { %v8793_v23 = vadd.f32 %v5438_v63, %v11471_v62  ;;  %v8805_v33 = vadd.f32 %v5509_v4, %v11476_v45 }
0x170b   :  { %v6561_v37 = vmul.f32 -1.442695, %v8792_v57 }
0x170c   :  { %v6562_v44 = vmul.f32 -1.442695, %v8793_v23  ;;  %v6563_v60 = vmul.f32 -1.442695, %v8805_v33 }
0x170d   :  { %9292 = vpow2.f32 %v6561_v37 }
0x170e   :  { %9294 = vpow2.f32 %v6562_v44 }
0x170f   :  { %9296 = vpow2.f32 %v6563_v60 }
0x1710   :  { %9298 = vtanh.f32 %v8804_v27 }
0x1717   :  { %v9293_v52 = vpop.eup %9292 }
0x1718   :  { %v9295_v39 = vpop.eup %9294  ;;  %v5519_v13 = vadd.f32 1.0, %v9293_v52 }
0x1719   :  { %v5525_v25 = vadd.f32 1.0, %v9295_v39  ;;  %v9297_v43 = vpop.eup %9296 }
0x171a   :  { %9300 = vrcp.f32 %v5519_v13  ;;  %v9299_v46 = vpop.eup %9298  ;;  %v5532_v3 = vadd.f32 1.0, %v9297_v43 }
0x171b   :  { %9302 = vrcp.f32 %v5525_v25 }
0x171c   :  { %9304 = vrcp.f32 %v5532_v3 }
0x1724   :  { %v9301_v40 = vpop.eup %9300 }
0x1725   :  { %v9303_v28 = vpop.eup %9302  ;;  %v5536_v16 = vmul.f32 %v9301_v40, %v9299_v46 }
0x1726   :  { %v5535_v61 = vmul.f32 %v9303_v28, %v11089_v41  ;;  %v9305_v29 = vpop.eup %9304 }
0x1728   :  { %v11484_v19 = vadd.f32 %v5536_v16, %v5535_v61 }
0x172a   :  { %9306 = vtanh.f32 %v11484_v19 }
0x1734   :  { %v9307_v22 = vpop.eup %9306 }
0x1735   :  { %v5539_v58 = vmul.f32 %v9307_v22, %v9305_v29 }
0x1737   :  { %5605 = vmatmul.mubr.f32.vlgmr.msra.gmra.mrb[46].mxu0 %v5539_v58  ;;  %5676 = vmatmul.mubr.f32.vlgmr.msra.gmra.mrb[46].mxu1 %v5539_v58 }
0x1738   :  { %8427 = vmatpush1.bf16.msra.mxu0 %v11326_v12  ;;  %8459 = vmatpush1.bf16.msra.mxu1 %v11329_v59 }
0x1739   :  { %8429 = vmatprep.subr.bf16.mxu0 %v11334_v15  ;;  %8461 = vmatprep.subr.bf16.mxu1 %v11336_v56 }
0x173a   :  { %5774 = vmatprep.mubr.f32.mxu0 %v9559_v0  ;;  %5845 = vmatprep.mubr.f32.mxu1 %v9559_v0 }
0x173c   :  { %8431 = vmatpush1.bf16.msra.mxu0 %v11338_v21  ;;  %8463 = vmatpush1.bf16.msra.mxu1 %v11341_v54 }
0x173d   :  { %8433 = vmatprep.subr.bf16.mxu0 %v11346_v5  ;;  %8465 = vmatprep.subr.bf16.mxu1 %v11348_v42 }
0x1740   :  { %8435 = vmatpush1.bf16.msra.mxu0 %v11350_v11  ;;  %8467 = vmatpush1.bf16.msra.mxu1 %v11353_v24 }
0x1741   :  { %8437 = vmatprep.subr.bf16.mxu0 %v11358_v14  ;;  %8469 = vmatprep.subr.bf16.mxu1 %v11360_v38 }
0x1744   :  { %8439 = vmatpush1.bf16.msra.mxu0 %v11362_v34  ;;  %8471 = vmatpush1.bf16.msra.mxu1 %v11365_v50 }
0x1745   :  { %8441 = vmatprep.subr.bf16.mxu0 %v11369_v1  ;;  %8473 = vmatprep.subr.bf16.mxu1 %v11371_v49 }
0x1748   :  { %8443 = vmatpush1.bf16.msra.mxu0 %v11374_v10  ;;  %8475 = vmatpush1.bf16.msra.mxu1 %v11378_v55 }
0x1749   :  { %8445 = vmatprep.subr.bf16.mxu0 %v11380_v20  ;;  %8477 = vmatprep.subr.bf16.mxu1 %v11382_v48 }
0x174c   :  { %8447 = vmatpush1.bf16.msra.mxu0 %v11385_v7  ;;  %8479 = vmatpush1.bf16.msra.mxu1 %v11389_v32 }
0x174d   :  { %8449 = vmatprep.subr.bf16.mxu0 %v11391_v8  ;;  %8481 = vmatprep.subr.bf16.mxu1 %v11394_v31 }
0x1750   :  { %8451 = vmatpush1.bf16.msra.mxu0 %v11397_v36  ;;  %8483 = vmatpush1.bf16.msra.mxu1 %v11401_v47 }
0x1751   :  { %8453 = vmatprep.subr.bf16.mxu0 %v11406_v51  ;;  %8485 = vmatprep.subr.bf16.mxu1 %v11408_v26 }
0x1754   :  { %8455 = vmatpush1.bf16.msra.mxu0 %v11410_v30  ;;  %8487 = vmatpush1.bf16.msra.mxu1 %v11413_v9 }
0x1755   :  { %8489 = vmatprep.subr.bf16.mxu0 %v11322_v2  ;;  %8521 = vmatprep.subr.bf16.mxu1 %v11324_v53 }
0x180a   :  { %v5606_v41 = vpop.f32.mrb[46].mxu0  ;;  %v5677_v6 = vpop.f32.mrb[46].mxu1 }
0x180b   :  { %v8794_v17 = vadd.f32 %v5606_v41, %v11468_v18  ;;  %v5608_v57 = vpop.f32.mrb[47].mxu0  ;;  %v5679_v63 = vpop.f32.mrb[47].mxu1  ;;  %v8806_v60 = vadd.f32 %v5677_v6, %v11480_v35 }
0x180c   :  { %v8795_v4 = vadd.f32 %v5608_v57, %v11471_v62  ;;  %v8807_v44 = vadd.f32 %v5679_v63, %v11476_v45 }
0x180d   :  { %v6564_v23 = vmul.f32 -1.442695, %v8794_v17 }
0x180e   :  { %v6565_v37 = vmul.f32 -1.442695, %v8795_v4  ;;  %v6566_v33 = vmul.f32 -1.442695, %v8807_v44 }
0x180f   :  { %9308 = vpow2.f32 %v6564_v23 }
0x1810   :  { %9310 = vpow2.f32 %v6565_v37 }
0x1811   :  { %9312 = vpow2.f32 %v6566_v33 }
0x1812   :  { %9314 = vtanh.f32 %v8806_v60 }
0x1819   :  { %v9309_v27 = vpop.eup %9308 }
0x181a   :  { %v9311_v52 = vpop.eup %9310  ;;  %v5689_v39 = vadd.f32 1.0, %v9309_v27 }
0x181b   :  { %v5695_v13 = vadd.f32 1.0, %v9311_v52  ;;  %v9313_v25 = vpop.eup %9312 }
0x181c   :  { %9316 = vrcp.f32 %v5689_v39  ;;  %v9315_v43 = vpop.eup %9314  ;;  %v5702_v16 = vadd.f32 1.0, %v9313_v25 }
0x181d   :  { %9318 = vrcp.f32 %v5695_v13 }
0x181e   :  { %9320 = vrcp.f32 %v5702_v16 }
0x1826   :  { %v9317_v46 = vpop.eup %9316 }
0x1827   :  { %v9319_v40 = vpop.eup %9318  ;;  %v5706_v28 = vmul.f32 %v9317_v46, %v9315_v43 }
0x1828   :  { %v5705_v3 = vmul.f32 %v9319_v40, %v11484_v19  ;;  %v9321_v29 = vpop.eup %9320 }
0x182a   :  { %v11526_v61 = vadd.f32 %v5706_v28, %v5705_v3 }
0x182c   :  { %9322 = vtanh.f32 %v11526_v61 }
0x1836   :  { %v9323_v22 = vpop.eup %9322 }
0x1837   :  { %v5709_v58 = vmul.f32 %v9323_v22, %v9321_v29 }
0x1839   :  { %5775 = vmatmul.mubr.f32.vlgmr.msra.gmra.mrb[48].mxu0 %v5709_v58  ;;  %5846 = vmatmul.mubr.f32.vlgmr.msra.gmra.mrb[48].mxu1 %v5709_v58 }
0x183a   :  { %8491 = vmatpush1.bf16.msra.mxu0 %v11326_v12  ;;  %8523 = vmatpush1.bf16.msra.mxu1 %v11329_v59 }
0x183b   :  { %8493 = vmatprep.subr.bf16.mxu0 %v11334_v15  ;;  %8525 = vmatprep.subr.bf16.mxu1 %v11336_v56 }
0x183c   :  { %5944 = vmatprep.mubr.f32.mxu0 %v9559_v0  ;;  %6015 = vmatprep.mubr.f32.mxu1 %v9559_v0 }
0x183e   :  { %8495 = vmatpush1.bf16.msra.mxu0 %v11338_v21  ;;  %8527 = vmatpush1.bf16.msra.mxu1 %v11341_v54 }
0x183f   :  { %8497 = vmatprep.subr.bf16.mxu0 %v11346_v5  ;;  %8529 = vmatprep.subr.bf16.mxu1 %v11348_v42 }
0x1842   :  { %8499 = vmatpush1.bf16.msra.mxu0 %v11350_v11  ;;  %8531 = vmatpush1.bf16.msra.mxu1 %v11353_v24 }
0x1843   :  { %8501 = vmatprep.subr.bf16.mxu0 %v11358_v14  ;;  %8533 = vmatprep.subr.bf16.mxu1 %v11360_v38 }
0x1846   :  { %8503 = vmatpush1.bf16.msra.mxu0 %v11362_v34  ;;  %8535 = vmatpush1.bf16.msra.mxu1 %v11365_v50 }
0x1847   :  { %8505 = vmatprep.subr.bf16.mxu0 %v11369_v1  ;;  %8537 = vmatprep.subr.bf16.mxu1 %v11371_v49 }
0x184a   :  { %8507 = vmatpush1.bf16.msra.mxu0 %v11374_v10  ;;  %8539 = vmatpush1.bf16.msra.mxu1 %v11378_v55 }
0x184b   :  { %8509 = vmatprep.subr.bf16.mxu0 %v11380_v20  ;;  %8541 = vmatprep.subr.bf16.mxu1 %v11382_v48 }
0x184e   :  { %8511 = vmatpush1.bf16.msra.mxu0 %v11385_v7  ;;  %8543 = vmatpush1.bf16.msra.mxu1 %v11389_v32 }
0x184f   :  { %8513 = vmatprep.subr.bf16.mxu0 %v11391_v8  ;;  %8545 = vmatprep.subr.bf16.mxu1 %v11394_v31 }
0x1852   :  { %8515 = vmatpush1.bf16.msra.mxu0 %v11397_v36  ;;  %8547 = vmatpush1.bf16.msra.mxu1 %v11401_v47 }
0x1853   :  { %8517 = vmatprep.subr.bf16.mxu0 %v11406_v51  ;;  %8549 = vmatprep.subr.bf16.mxu1 %v11408_v26 }
0x1856   :  { %8519 = vmatpush1.bf16.msra.mxu0 %v11410_v30  ;;  %8551 = vmatpush1.bf16.msra.mxu1 %v11413_v9 }
0x1857   :  { %8553 = vmatprep.subr.bf16.mxu0 %v11322_v2  ;;  %8585 = vmatprep.subr.bf16.mxu1 %v11324_v53 }
0x190c   :  { %v5776_v19 = vpop.f32.mrb[48].mxu0  ;;  %v5847_v41 = vpop.f32.mrb[48].mxu1 }
0x190d   :  { %v8796_v6 = vadd.f32 %v5776_v19, %v11468_v18  ;;  %v5778_v17 = vpop.f32.mrb[49].mxu0  ;;  %v5849_v57 = vpop.f32.mrb[49].mxu1  ;;  %v8808_v33 = vadd.f32 %v5847_v41, %v11480_v35 }
0x190e   :  { %v8797_v63 = vadd.f32 %v5778_v17, %v11471_v62  ;;  %v8809_v37 = vadd.f32 %v5849_v57, %v11476_v45 }
0x190f   :  { %v6567_v4 = vmul.f32 -1.442695, %v8796_v6 }
0x1910   :  { %v6568_v23 = vmul.f32 -1.442695, %v8797_v63  ;;  %v6569_v44 = vmul.f32 -1.442695, %v8809_v37 }
0x1911   :  { %9324 = vpow2.f32 %v6567_v4 }
0x1912   :  { %9326 = vpow2.f32 %v6568_v23 }
0x1913   :  { %9328 = vpow2.f32 %v6569_v44 }
0x1914   :  { %9330 = vtanh.f32 %v8808_v33 }
0x191b   :  { %v9325_v60 = vpop.eup %9324 }
0x191c   :  { %v9327_v27 = vpop.eup %9326  ;;  %v5859_v52 = vadd.f32 1.0, %v9325_v60 }
0x191d   :  { %v5865_v39 = vadd.f32 1.0, %v9327_v27  ;;  %v9329_v13 = vpop.eup %9328 }
0x191e   :  { %9332 = vrcp.f32 %v5859_v52  ;;  %v9331_v25 = vpop.eup %9330  ;;  %v5872_v28 = vadd.f32 1.0, %v9329_v13 }
0x191f   :  { %9334 = vrcp.f32 %v5865_v39 }
0x1920   :  { %9336 = vrcp.f32 %v5872_v28 }
0x1928   :  { %v9333_v43 = vpop.eup %9332 }
0x1929   :  { %v9335_v46 = vpop.eup %9334  ;;  %v5876_v40 = vmul.f32 %v9333_v43, %v9331_v25 }
0x192a   :  { %v5875_v16 = vmul.f32 %v9335_v46, %v11526_v61  ;;  %v9337_v29 = vpop.eup %9336 }
0x192c   :  { %v11568_v3 = vadd.f32 %v5876_v40, %v5875_v16 }
0x192e   :  { %9338 = vtanh.f32 %v11568_v3 }
0x1938   :  { %v9339_v22 = vpop.eup %9338 }
0x1939   :  { %v5879_v58 = vmul.f32 %v9339_v22, %v9337_v29  ;;  %v6394_v22 = vld [vmem:[%s11729_s16 + $0x18] sm:$0xff] }
0x193b   :  { %5945 = vmatmul.mubr.f32.vlgmr.msra.gmra.mrb[50].mxu0 %v5879_v58  ;;  %6016 = vmatmul.mubr.f32.vlgmr.msra.gmra.mrb[50].mxu1 %v5879_v58 }
0x193c   :  { %8555 = vmatpush1.bf16.msra.mxu0 %v11326_v12  ;;  %8587 = vmatpush1.bf16.msra.mxu1 %v11329_v59 }
0x193d   :  { %8557 = vmatprep.subr.bf16.mxu0 %v11334_v15  ;;  %8589 = vmatprep.subr.bf16.mxu1 %v11336_v56 }
0x193e   :  { %6114 = vmatprep.mubr.f32.mxu0 %v9559_v0  ;;  %6185 = vmatprep.mubr.f32.mxu1 %v9559_v0 }
0x1940   :  { %8559 = vmatpush1.bf16.msra.mxu0 %v11338_v21  ;;  %8591 = vmatpush1.bf16.msra.mxu1 %v11341_v54 }
0x1941   :  { %8561 = vmatprep.subr.bf16.mxu0 %v11346_v5  ;;  %8593 = vmatprep.subr.bf16.mxu1 %v11348_v42 }
0x1944   :  { %8563 = vmatpush1.bf16.msra.mxu0 %v11350_v11  ;;  %8595 = vmatpush1.bf16.msra.mxu1 %v11353_v24 }
0x1945   :  { %8565 = vmatprep.subr.bf16.mxu0 %v11358_v14  ;;  %8597 = vmatprep.subr.bf16.mxu1 %v11360_v38 }
0x1948   :  { %8567 = vmatpush1.bf16.msra.mxu0 %v11362_v34  ;;  %8599 = vmatpush1.bf16.msra.mxu1 %v11365_v50 }
0x1949   :  { %8569 = vmatprep.subr.bf16.mxu0 %v11369_v1  ;;  %8601 = vmatprep.subr.bf16.mxu1 %v11371_v49 }
0x194c   :  { %8571 = vmatpush1.bf16.msra.mxu0 %v11374_v10  ;;  %8603 = vmatpush1.bf16.msra.mxu1 %v11378_v55 }
0x194d   :  { %8573 = vmatprep.subr.bf16.mxu0 %v11380_v20  ;;  %8605 = vmatprep.subr.bf16.mxu1 %v11382_v48 }
0x1950   :  { %8575 = vmatpush1.bf16.msra.mxu0 %v11385_v7  ;;  %8607 = vmatpush1.bf16.msra.mxu1 %v11389_v32 }
0x1951   :  { %8577 = vmatprep.subr.bf16.mxu0 %v11391_v8  ;;  %8609 = vmatprep.subr.bf16.mxu1 %v11394_v31 }
0x1954   :  { %8579 = vmatpush1.bf16.msra.mxu0 %v11397_v36  ;;  %8611 = vmatpush1.bf16.msra.mxu1 %v11401_v47 }
0x1955   :  { %8581 = vmatprep.subr.bf16.mxu0 %v11406_v51  ;;  %8613 = vmatprep.subr.bf16.mxu1 %v11408_v26 }
0x1958   :  { %8583 = vmatpush1.bf16.msra.mxu0 %v11410_v30  ;;  %8615 = vmatpush1.bf16.msra.mxu1 %v11413_v9 }
0x1959   :  { %8617 = vmatprep.subr.bf16.mxu0 %v11322_v2  ;;  %8649 = vmatprep.subr.bf16.mxu1 %v11324_v53 }
0x1a0e   :  { %v5946_v61 = vpop.f32.mrb[50].mxu0  ;;  %v6017_v19 = vpop.f32.mrb[50].mxu1 }
0x1a0f   :  { %v8798_v41 = vadd.f32 %v5946_v61, %v11468_v18  ;;  %v5948_v6 = vpop.f32.mrb[51].mxu0  ;;  %v6019_v17 = vpop.f32.mrb[51].mxu1  ;;  %v8810_v44 = vadd.f32 %v6017_v19, %v11480_v35  ;;  %v6395_v61 = vld [vmem:[%s11729_s16 + $0x20] sm:$0xff]  ;;  %v6396_v19 = vld [vmem:[%s11729_s16 + $0x28] sm:$0xff] }
0x1a10   :  { %v8799_v57 = vadd.f32 %v5948_v6, %v11471_v62  ;;  %v8811_v23 = vadd.f32 %v6019_v17, %v11476_v45  ;;  %v6397_v6 = vld [vmem:[%s11729_s16 + $0x30] sm:$0xff]  ;;  %v6398_v17 = vld [vmem:[%s11729_s16 + $0x38] sm:$0xff] }
0x1a11   :  { %v6570_v63 = vmul.f32 -1.442695, %v8798_v41  ;;  %v8687_v41 = vpack.c.bf16 %v6396_v19, %v6395_v61 }
0x1a12   :  { %v6571_v4 = vmul.f32 -1.442695, %v8799_v57  ;;  %v6572_v37 = vmul.f32 -1.442695, %v8811_v23  ;;  %v8690_v57 = vpack.c.bf16 %v6398_v17, %v6397_v6 }
0x1a13   :  { %9340 = vpow2.f32 %v6570_v63  ;;  %v6399_v63 = vld [vmem:[%s11729_s16 + $0x40] sm:$0xff] }
0x1a14   :  { %9342 = vpow2.f32 %v6571_v4  ;;  %v6400_v4 = vld [vmem:[%s11729_s16 + $0x48] sm:$0xff] }
0x1a15   :  { %9344 = vpow2.f32 %v6572_v37  ;;  %v8693_v23 = vpack.c.bf16 %v6400_v4, %v6399_v63  ;;  %v6401_v37 = vld [vmem:[%s11729_s16 + $0x50] sm:$0xff] }
0x1a16   :  { %9346 = vtanh.f32 %v8810_v44  ;;  %v6402_v44 = vld [vmem:[%s11729_s16 + $0x58] sm:$0xff] }
0x1a1d   :  { %v9341_v2 = vpop.eup %9340 }
0x1a1e   :  { %v9343_v33 = vpop.eup %9342  ;;  %v6029_v53 = vadd.f32 1.0, %v9341_v2  ;;  %v8696_v2 = vpack.c.bf16 %v6402_v44, %v6401_v37 }
0x1a1f   :  { %v6035_v60 = vadd.f32 1.0, %v9343_v33  ;;  %v9345_v27 = vpop.eup %9344  ;;  %v6403_v33 = vld [vmem:[%s11729_s16 + $0x60] sm:$0xff] }
0x1a20   :  { %9348 = vrcp.f32 %v6029_v53  ;;  %v9347_v52 = vpop.eup %9346  ;;  %v6042_v43 = vadd.f32 1.0, %v9345_v27  ;;  %v6404_v53 = vld [vmem:[%s11729_s16 + $0x68] sm:$0xff]  ;;  %v6405_v27 = vld [vmem:[%s11729_s16 + $0x70] sm:$0xff] }
0x1a21   :  { %9350 = vrcp.f32 %v6035_v60  ;;  %v8699_v60 = vpack.c.bf16 %v6404_v53, %v6403_v33 }
0x1a22   :  { %9352 = vrcp.f32 %v6042_v43 }
0x1a2a   :  { %v9349_v39 = vpop.eup %9348 }
0x1a2b   :  { %v9351_v13 = vpop.eup %9350  ;;  %v6046_v25 = vmul.f32 %v9349_v39, %v9347_v52 }
0x1a2c   :  { %v6045_v46 = vmul.f32 %v9351_v13, %v11568_v3  ;;  %v9353_v28 = vpop.eup %9352  ;;  %v6393_v3 = vld [vmem:[%s11729_s16 + $0x10] sm:$0xff] }
0x1a2d   :  { %v8684_v58 = vpack.c.bf16 %v6394_v22, %v6393_v3 }
0x1a2e   :  { %v11610_v40 = vadd.f32 %v6046_v25, %v6045_v46 }
0x1a30   :  { %9354 = vtanh.f32 %v11610_v40 }
0x1a3a   :  { %v9355_v16 = vpop.eup %9354 }
0x1a3b   :  { %v6049_v29 = vmul.f32 %v9355_v16, %v9353_v28 }
0x1a3d   :  { %6115 = vmatmul.mubr.f32.vlgmr.msra.gmra.mrb[52].mxu0 %v6049_v29  ;;  %6186 = vmatmul.mubr.f32.vlgmr.msra.gmra.mrb[52].mxu1 %v6049_v29 }
0x1a3e   :  { %8619 = vmatpush1.bf16.msra.mxu0 %v11326_v12  ;;  %8651 = vmatpush1.bf16.msra.mxu1 %v11329_v59 }
0x1a3f   :  { %8621 = vmatprep.subr.bf16.mxu0 %v11334_v15  ;;  %8653 = vmatprep.subr.bf16.mxu1 %v11336_v56 }
0x1a40   :  { %6284 = vmatprep.mubr.f32.mxu0 %v9559_v0  ;;  %6355 = vmatprep.mubr.f32.mxu1 %v9559_v0 }
0x1a42   :  { %8623 = vmatpush1.bf16.msra.mxu0 %v11338_v21  ;;  %8655 = vmatpush1.bf16.msra.mxu1 %v11341_v54 }
0x1a43   :  { %8625 = vmatprep.subr.bf16.mxu0 %v11346_v5  ;;  %8657 = vmatprep.subr.bf16.mxu1 %v11348_v42 }
0x1a46   :  { %8627 = vmatpush1.bf16.msra.mxu0 %v11350_v11  ;;  %8659 = vmatpush1.bf16.msra.mxu1 %v11353_v24 }
0x1a47   :  { %8629 = vmatprep.subr.bf16.mxu0 %v11358_v14  ;;  %8661 = vmatprep.subr.bf16.mxu1 %v11360_v38 }
0x1a4a   :  { %8631 = vmatpush1.bf16.msra.mxu0 %v11362_v34  ;;  %8663 = vmatpush1.bf16.msra.mxu1 %v11365_v50 }
0x1a4b   :  { %8633 = vmatprep.subr.bf16.mxu0 %v11369_v1  ;;  %8665 = vmatprep.subr.bf16.mxu1 %v11371_v49 }
0x1a4e   :  { %8635 = vmatpush1.bf16.msra.mxu0 %v11374_v10  ;;  %8667 = vmatpush1.bf16.msra.mxu1 %v11378_v55 }
0x1a4f   :  { %8637 = vmatprep.subr.bf16.mxu0 %v11380_v20  ;;  %8669 = vmatprep.subr.bf16.mxu1 %v11382_v48 }
0x1a52   :  { %8639 = vmatpush1.bf16.msra.mxu0 %v11385_v7  ;;  %8671 = vmatpush1.bf16.msra.mxu1 %v11389_v32 }
0x1a53   :  { %8641 = vmatprep.subr.bf16.mxu0 %v11391_v8  ;;  %8673 = vmatprep.subr.bf16.mxu1 %v11394_v31 }
0x1a56   :  { %8643 = vmatpush1.bf16.msra.mxu0 %v11397_v36  ;;  %8675 = vmatpush1.bf16.msra.mxu1 %v11401_v47 }
0x1a57   :  { %8645 = vmatprep.subr.bf16.mxu0 %v11406_v51  ;;  %8677 = vmatprep.subr.bf16.mxu1 %v11408_v26  ;;  %v6391_v51 = vld [vmem:[%s11729_s16] sm:$0xff]  ;;  %v6392_v26 = vld [vmem:[%s11729_s16 + $0x8] sm:$0xff] }
0x1a5a   :  { %8647 = vmatpush1.bf16.msra.mxu0 %v11410_v30  ;;  %8679 = vmatpush1.bf16.msra.mxu1 %v11413_v9  ;;  %v8681_v30 = vpack.c.bf16 %v6392_v26, %v6391_v51  ;;  %v9560_v9 = vmov 0.0|0.0  }
0x1a5b   :  { %8680 = vmatprep.subr.bf16.mxu0 %v9560_v9 }
0x1b10   :  { %v6116_v12 = vpop.f32.mrb[52].mxu0  ;;  %v6187_v59 = vpop.f32.mrb[52].mxu1 }
0x1b11   :  { %v8800_v15 = vadd.f32 %v6116_v12, %v11468_v18  ;;  %v6118_v56 = vpop.f32.mrb[53].mxu0  ;;  %v6189_v21 = vpop.f32.mrb[53].mxu1  ;;  %v8812_v14 = vadd.f32 %v6187_v59, %v11480_v35 }
0x1b12   :  { %v8801_v54 = vadd.f32 %v6118_v56, %v11471_v62  ;;  %v8813_v11 = vadd.f32 %v6189_v21, %v11476_v45 }
0x1b13   :  { %v6573_v5 = vmul.f32 -1.442695, %v8800_v15 }
0x1b14   :  { %v6574_v42 = vmul.f32 -1.442695, %v8801_v54  ;;  %v6575_v24 = vmul.f32 -1.442695, %v8813_v11 }
0x1b15   :  { %9356 = vpow2.f32 %v6573_v5 }
0x1b16   :  { %9358 = vpow2.f32 %v6574_v42 }
0x1b17   :  { %9360 = vpow2.f32 %v6575_v24 }
0x1b18   :  { %9362 = vtanh.f32 %v8812_v14 }
0x1b1f   :  { %v9357_v38 = vpop.eup %9356 }
0x1b20   :  { %v9359_v34 = vpop.eup %9358  ;;  %v6199_v50 = vadd.f32 1.0, %v9357_v38 }
0x1b21   :  { %v6205_v1 = vadd.f32 1.0, %v9359_v34  ;;  %v9361_v49 = vpop.eup %9360 }
0x1b22   :  { %9364 = vrcp.f32 %v6199_v50  ;;  %v9363_v10 = vpop.eup %9362  ;;  %v6212_v7 = vadd.f32 1.0, %v9361_v49 }
0x1b23   :  { %9366 = vrcp.f32 %v6205_v1  ;;  %v6579_v1 = vld [vmem:[%s11730_s17] ss:$0 sm:$0xff] }
0x1b24   :  { %9368 = vrcp.f32 %v6212_v7 }
0x1b2c   :  { %v9365_v55 = vpop.eup %9364 }
0x1b2d   :  { %v9367_v20 = vpop.eup %9366  ;;  %v6216_v48 = vmul.f32 %v9365_v55, %v9363_v10 }
0x1b2e   :  { %v6215_v32 = vmul.f32 %v9367_v20, %v11610_v40  ;;  %v9369_v31 = vpop.eup %9368 }
0x1b30   :  { %v11650_v8 = vadd.f32 %v6216_v48, %v6215_v32 }
0x1b32   :  { %9370 = vtanh.f32 %v11650_v8 }
0x1b3c   :  { %v9371_v36 = vpop.eup %9370 }
0x1b3d   :  { %v6219_v47 = vmul.f32 %v9371_v36, %v9369_v31 }
0x1b3f   :  { %6285 = vmatmul.mubr.f32.vlgmr.msra.gmra.mrb[54].mxu0 %v6219_v47  ;;  %6356 = vmatmul.mubr.f32.vlgmr.msra.gmra.mrb[54].mxu1 %v6219_v47 }
0x1b40   :  { %8682 = vmatpush3.bf16.msra.mxu0 %v8681_v30  ;;  %6629 = vmatprep.mubr.msk.f32.mxu0 %vm9561_vm0, %v9559_v0  ;;  %v6406_v0 = vld [vmem:[%s11729_s16 + $0x78] sm:$0xff] }
0x1b41   :  { %8683 = vmatprep.subr.bf16.mxu0 %v9560_v9  ;;  %v8702_v52 = vpack.c.bf16 %v6406_v0, %v6405_v27 }
0x1b44   :  { %8685 = vmatpush3.bf16.msra.mxu0 %v8684_v58 }
0x1b45   :  { %8686 = vmatprep.subr.bf16.mxu0 %v9560_v9 }
0x1b48   :  { %8688 = vmatpush3.bf16.msra.mxu0 %v8687_v41 }
0x1b49   :  { %8689 = vmatprep.subr.bf16.mxu0 %v9560_v9 }
0x1b4c   :  { %8691 = vmatpush3.bf16.msra.mxu0 %v8690_v57 }
0x1b4d   :  { %8692 = vmatprep.subr.bf16.mxu0 %v9560_v9 }
0x1b50   :  { %8694 = vmatpush3.bf16.msra.mxu0 %v8693_v23 }
0x1b51   :  { %8695 = vmatprep.subr.bf16.mxu0 %v9560_v9 }
0x1b54   :  { %8697 = vmatpush3.bf16.msra.mxu0 %v8696_v2 }
0x1b55   :  { %8698 = vmatprep.subr.bf16.mxu0 %v9560_v9 }
0x1b58   :  { %8700 = vmatpush3.bf16.msra.mxu0 %v8699_v60 }
0x1b59   :  { %8701 = vmatprep.subr.bf16.mxu0 %v9560_v9 }
0x1b5c   :  { %8703 = vmatpush3.bf16.msra.mxu0 %v8702_v52 }
0x1c12   :  { %v6286_v39 = vpop.f32.mrb[54].mxu0  ;;  %v6357_v13 = vpop.f32.mrb[54].mxu1 }
0x1c13   :  { %v8802_v25 = vadd.f32 %v6286_v39, %v11468_v18  ;;  %v6288_v43 = vpop.f32.mrb[55].mxu0  ;;  %v6359_v46 = vpop.f32.mrb[55].mxu1  ;;  %v8814_v59 = vadd.f32 %v6357_v13, %v11480_v35 }
0x1c14   :  { %v8803_v40 = vadd.f32 %v6288_v43, %v11471_v62  ;;  %v8815_v29 = vadd.f32 %v6359_v46, %v11476_v45 }
0x1c15   :  { %v6576_v28 = vmul.f32 -1.442695, %v8802_v25 }
0x1c16   :  { %v6577_v16 = vmul.f32 -1.442695, %v8803_v40  ;;  %v6578_v12 = vmul.f32 -1.442695, %v8815_v29 }
0x1c17   :  { %9372 = vpow2.f32 %v6576_v28 }
0x1c18   :  { %9374 = vpow2.f32 %v6577_v16 }
0x1c19   :  { %9376 = vpow2.f32 %v6578_v12 }
0x1c1a   :  { %9378 = vtanh.f32 %v8814_v59 }
0x1c21   :  { %v9373_v15 = vpop.eup %9372 }
0x1c22   :  { %v9375_v56 = vpop.eup %9374  ;;  %v6369_v21 = vadd.f32 1.0, %v9373_v15 }
0x1c23   :  { %v6375_v54 = vadd.f32 1.0, %v9375_v56  ;;  %v9377_v18 = vpop.eup %9376 }
0x1c24   :  { %9380 = vrcp.f32 %v6369_v21  ;;  %v9379_v5 = vpop.eup %9378  ;;  %v6382_v24 = vadd.f32 1.0, %v9377_v18 }
0x1c25   :  { %9382 = vrcp.f32 %v6375_v54 }
0x1c26   :  { %9384 = vrcp.f32 %v6382_v24 }
0x1c2e   :  { %v9381_v62 = vpop.eup %9380 }
0x1c2f   :  { %v9383_v42 = vpop.eup %9382  ;;  %v6386_v11 = vmul.f32 %v9381_v62, %v9379_v5 }
0x1c30   :  { %v6385_v14 = vmul.f32 %v9383_v42, %v11650_v8  ;;  %v9385_v35 = vpop.eup %9384 }
0x1c32   :  { %v6387_v45 = vadd.f32 %v6386_v11, %v6385_v14 }
0x1c34   :  { %9386 = vtanh.f32 %v6387_v45 }
0x1c3e   :  { %v9387_v38 = vpop.eup %9386 }
0x1c3f   :  { %v6389_v34 = vmul.f32 %v9387_v38, %v9385_v35 }
0x1c41   :  { %v6390_v50 = vmax.f32 %v6389_v34, 0.0 }
0x1c43   :  { %6630 = vmatmul.mubr.f32.vlgmr.msra.gmra.mrb[56].mxu0 %v6390_v50 }
0x1d16   :  { %v6480_v49 = vpop.f32.mrb[56].mxu0 }
0x1d17   :  { %v6481_v10 = vadd.f32 %v6579_v1, %v6480_v49  ;;  %v6631_v55 = vpop.f32.mrb[57].mxu0 }
0x1d19   :  { %6484 = vst [vmem:[%s11731_s18] sm:$0xff] %v6481_v10 }
0x1d1a   :  { %6489 = vsyncpa [#allocation3], 1 }
0x1d1b   :  { %6490 = vsyncpa [#allocation5], 1 }
0x1d1c   :  { %6491 = vsyncpa [#allocation8], 1 }
0x1d1d   :  { %6492 = vsyncpa [#allocation11], 1 }

</bundles_post_ra>
